<compile_context>
chip_gen: v5e
topology: v5e:2x2
jax: 0.10.0
libtpu: 0.0.40
codegen_flags: <defaults>
</compile_context>

<pallas_src>
import jax
import jax.numpy as jnp
from jax import lax
from jax.experimental import pallas as pl
from jax.experimental.pallas import tpu as pltpu

LANE = 128
SUBLANE = 8


def attention_decoder_kernel(
    l_idx_ref,    # (L_enc, 1, 128) i32   encoder position index (lane-replicated)
    lens_ref,     # (1, TB, 128)    i32   encoder lengths (lane-replicated)
    enc_ref,      # (L_enc, TB, Ep)       padded encoder hidden states h_j
    proj_ref,     # (L_enc, TB, Ap)       cached encoder projection W_enc @ h_j
    dec_in_ref,   # (T, TB, Ip)           decoder inputs for this time chunk
    h0_ref,       # (TB, Hp)              initial decoder hidden state
    w_hcat_ref,   # (Hp, Ap + 3*Hp)       [w_dec^T | fused GRU W_h^T (gates r,z,n)]
    v_ref,        # (Ap, 128)             reducer.v replicated across 128 lanes
    w_word_ref,   # (Ip, 3*Hp)            GRU W_i^T, word-input part (gates r,z,n)
    w_ctx_ref,    # (Ep, 3*Hp)            GRU W_i^T, context part   (gates r,z,n)
    b_i_ref,      # (1, 3*Hp)             GRU bias_ih (gate blocks at k*Hp)
    b_h_ref,      # (1, 3*Hp)             GRU bias_hh (gate blocks at k*Hp)
    out_ref,      # (T, TB, Hp)           hidden states for this time chunk
    h_scr,        # VMEM (TB, Hp) f32     carried decoder hidden state
    giw_scr,      # VMEM (T, TB, 3*Hp) f32  hoisted word-input GRU pre-activations
):
    tc = pl.program_id(1)                      # time-chunk index (sequential)
    L, TB, Ep = enc_ref.shape
    Ap = proj_ref.shape[2]
    Hp = h0_ref.shape[1]
    T = dec_in_ref.shape[0]
    Ip = dec_in_ref.shape[2]
    LV = v_ref.shape[1]                        # = 128
    f32 = jnp.float32

    @pl.when(tc == 0)
    def _init():
        h_scr[...] = h0_ref[...].astype(f32)

    # ---------------- per-grid-step (time-invariant) work ----------------
    # Additive attention mask (0 valid / -inf encoder padding), built lane-dense
    # so the per-step energy+mask add is a plain VPU add.  (At realistic L_enc
    # this would be folded into an L-streaming / online-softmax loop instead.)
    mask = jnp.where(l_idx_ref[...] >= lens_ref[...], -jnp.inf, 0.0).astype(f32)

    # Word-input GRU contribution, hoisted out of the recurrence: one
    # (T*TB, Ip) @ (Ip, 3*Hp) MXU matmul instead of T tiny M=TB ones.  Stored
    # in VMEM scratch and re-read per step (keeps vreg live ranges short).
    dec2d = dec_in_ref[...].reshape(T * TB, Ip)
    giw_scr[...] = (
        jnp.dot(dec2d, w_word_ref[...], preferred_element_type=f32)
        .reshape(T, TB, 3 * Hp)
        + b_i_ref[...].astype(f32)
    )

    # Small weights hoisted out of the loop; the (L, ...) encoder tensors are
    # re-read from their VMEM refs inside step() on purpose.
    w_hcat = w_hcat_ref[...]
    v_rep = v_ref[...]
    w_ctx = w_ctx_ref[...]
    b_h = b_h_ref[...].astype(f32)
    mxu_dt = w_hcat.dtype

    def step(t, h):
        # ---- fused h-dependent matmul: [decoder projection | GRU gh gates] ----
        hproj = jnp.dot(h.astype(mxu_dt), w_hcat,
                        preferred_element_type=f32)          # (TB, Ap + 3*Hp)
        dec_proj = hproj[:, :Ap]                              # (TB, Ap)
        gh = hproj[:, Ap:] + b_h                              # (TB, 3*Hp), f32

        # ---------------- Alignment / attention ----------------
        act = jnp.tanh(proj_ref[...].astype(f32) + dec_proj[None, :, :])  # (L,TB,Ap)
        # Energy on the MXU; v is replicated across 128 lanes only, so the
        # whole softmax runs on a single lane tile.
        energy = jnp.dot(act.reshape(L * TB, Ap).astype(mxu_dt), v_rep,
                         preferred_element_type=f32).reshape(L, TB, LV)
        energy = energy + mask                       # lane-dense add, -inf at pad
        m = jnp.max(energy, axis=0, keepdims=True)   # axis 0: per-vreg VPU max
        e = jnp.exp(energy - m)
        denom = jnp.sum(e, axis=0, keepdims=True)
        scores = e * pl.reciprocal(denom, approx=True)   # softmax over L (dim 0)

        enc = enc_ref[...].astype(f32)
        if Ep == LV:
            context = jnp.sum(scores * enc, axis=0)                  # (TB, Ep)
        else:
            # lane-broadcast the (identical-across-lanes) scores only here
            context = jnp.sum(scores[:, :, 0:1] * enc, axis=0)

        # ---------------- GRUCell (word contribution precomputed) ----------------
        gi = giw_scr[t] + jnp.dot(context.astype(mxu_dt), w_ctx,
                                  preferred_element_type=f32)        # (TB, 3*Hp)
        r = jax.nn.sigmoid(gi[:, 0:Hp] + gh[:, 0:Hp])
        z = jax.nn.sigmoid(gi[:, Hp:2 * Hp] + gh[:, Hp:2 * Hp])
        n = jnp.tanh(gi[:, 2 * Hp:] + r * gh[:, 2 * Hp:])
        h_new = (1.0 - z) * n + z * h
        out_ref[t] = h_new.astype(out_ref.dtype)          # lane-dense store
        return h_new

    # At larger t_chunk / feature dims cap the unroll (e.g. unroll=2) to bound
    # vreg live ranges; at these sizes full unroll is fine.
    h_scr[...] = lax.fori_loop(0, T, step, h_scr[...], unroll=True)


def _round_up(x: int, m: int) -> int:
    return ((x + m - 1) // m) * m


def attention_decoder(enc_padded, enc_lens, dec_in_padded, h0, params, *,
                      t_chunk=8, tb=None, mxu_dtype=jnp.float32):
    """Runs the full decoder. Returns padded hiddens of shape (L_dec, B, H).

    mxu_dtype=jnp.bfloat16 feeds bf16 operands to the MXU (v6e/v7x fast path)
    while keeping f32 accumulation and f32 elementwise/softmax math.
    """
    L_enc, B, E = enc_padded.shape
    L_dec, _, I = dec_in_padded.shape
    H = h0.shape[1]
    A = params["w_enc"].shape[0]
    f32 = jnp.float32

    if tb is None:
        # Fill the MXU M dimension as much as the real batch allows; on v7x
        # also aim for Bp // tb >= 2 so both TensorCores get a batch chunk.
        tb = min(_round_up(B, SUBLANE), 128)
    Bp = _round_up(B, tb)
    Ip = _round_up(I, LANE)
    Ep = _round_up(E, LANE)
    Ap = _round_up(A, LANE)
    Hp = _round_up(H, LANE)
    Tp = _round_up(L_dec, t_chunk)

    # ---- pad activations (zeros; padding is inert, see header comment) ----
    enc_p = jnp.zeros((L_enc, Bp, Ep), f32).at[:, :B, :E].set(enc_padded.astype(f32))
    dec_p = jnp.zeros((Tp, Bp, Ip), mxu_dtype).at[:L_dec, :B, :I].set(
        dec_in_padded.astype(mxu_dtype))
    h0_p = jnp.zeros((Bp, Hp), f32).at[:B, :H].set(h0.astype(f32))

    # ---- pack / pad weights (pre-transposed to (in, out); zero padding;
    #      GRU gate blocks r,z,n at lane-aligned column offsets k*Hp) ----
    w_enc_p = jnp.zeros((Ep, Ap), f32).at[:E, :A].set(params["w_enc"].T.astype(f32))
    w_hcat = jnp.zeros((Hp, Ap + 3 * Hp), mxu_dtype)            # [w_dec^T | W_h^T]
    w_hcat = w_hcat.at[:H, :A].set(params["w_dec"].T.astype(mxu_dtype))
    w_word = jnp.zeros((Ip, 3 * Hp), mxu_dtype)
    w_ctx = jnp.zeros((Ep, 3 * Hp), mxu_dtype)
    b_i = jnp.zeros((1, 3 * Hp), f32)
    b_h = jnp.zeros((1, 3 * Hp), f32)
    w_ih, w_hh = params["w_ih"], params["w_hh"]
    for g in range(3):
        rows = slice(g * H, (g + 1) * H)
        cols = slice(g * Hp, g * Hp + H)
        w_hcat = w_hcat.at[:H, Ap + g * Hp: Ap + g * Hp + H].set(
            w_hh[rows, :].T.astype(mxu_dtype))
        w_word = w_word.at[:I, cols].set(w_ih[rows, :I].T.astype(mxu_dtype))
        w_ctx = w_ctx.at[:E, cols].set(w_ih[rows, I:].T.astype(mxu_dtype))
        b_i = b_i.at[0, cols].set(params["b_ih"][rows].astype(f32))
        b_h = b_h.at[0, cols].set(params["b_hh"][rows].astype(f32))

    # v replicated across 128 lanes only (softmax runs on one lane tile).
    v_rep = jnp.zeros((Ap, LANE), mxu_dtype).at[:A, :].set(
        params["v"].astype(mxu_dtype)[:, None])

    # Cached encoder projection (== Alignment._encoder_pad_and_project) done
    # once here as a single full-MXU-fill XLA matmul.
    enc_proj = jnp.dot(enc_p.reshape(L_enc * Bp, Ep), w_enc_p,
                       preferred_element_type=f32).reshape(L_enc, Bp, Ap)
    enc_proj = enc_proj.astype(mxu_dtype)

    # Tiny mask ingredients (replace the old (L_enc, B, 1) additive-mask input):
    # the kernel builds the lane-dense mask from these once per grid step.
    l_idx = jnp.broadcast_to(
        jnp.arange(L_enc, dtype=jnp.int32)[:, None, None], (L_enc, 1, LANE))
    # Padded batch columns keep position 0 valid so their softmax stays finite
    # (their outputs are discarded).  A real zero-length sequence would NaN,
    # matching the reference module.
    lens_p = jnp.concatenate(
        [enc_lens.astype(jnp.int32), jnp.ones((Bp - B,), jnp.int32)])
    lens_in = jnp.broadcast_to(lens_p[None, :, None], (1, Bp, LANE))

    n_b = Bp // tb
    n_t = Tp // t_chunk

    grid_spec = pltpu.PrefetchScalarGridSpec(
        num_scalar_prefetch=0,
        grid=(n_b, n_t),   # (batch chunks: parallel, time chunks: sequential)
        in_specs=[
            pl.BlockSpec((L_enc, 1, LANE), lambda b, t: (0, 0, 0)),     # l_idx
            pl.BlockSpec((1, tb, LANE), lambda b, t: (0, b, 0)),        # lens
            pl.BlockSpec((L_enc, tb, Ep), lambda b, t: (0, b, 0)),      # enc
            pl.BlockSpec((L_enc, tb, Ap), lambda b, t: (0, b, 0)),      # enc proj
            pl.BlockSpec((t_chunk, tb, Ip), lambda b, t: (t, b, 0)),    # dec input
            pl.BlockSpec((tb, Hp), lambda b, t: (b, 0)),                # h0
            pl.BlockSpec((Hp, Ap + 3 * Hp), lambda b, t: (0, 0)),       # [w_dec|w_h]
            pl.BlockSpec((Ap, LANE), lambda b, t: (0, 0)),              # v replicated
            pl.BlockSpec((Ip, 3 * Hp), lambda b, t: (0, 0)),            # W_i word part
            pl.BlockSpec((Ep, 3 * Hp), lambda b, t: (0, 0)),            # W_i ctx part
            pl.BlockSpec((1, 3 * Hp), lambda b, t: (0, 0)),             # b_ih
            pl.BlockSpec((1, 3 * Hp), lambda b, t: (0, 0)),             # b_hh
        ],
        out_specs=pl.BlockSpec((t_chunk, tb, Hp), lambda b, t: (t, b, 0)),
        scratch_shapes=[
            pltpu.VMEM((tb, Hp), jnp.float32),               # carried hidden state
            pltpu.VMEM((t_chunk, tb, 3 * Hp), jnp.float32),  # hoisted gi_word chunk
        ],
    )

    out = pl.pallas_call(
        attention_decoder_kernel,
        out_shape=jax.ShapeDtypeStruct((Tp, Bp, Hp), jnp.float32),
        grid_spec=grid_spec,
        # At realistic L_enc/E/A, add vmem_limit_bytes=... here (v7x: budget
        # against 64 MiB; v5e/v6e: simply raise toward 128 MiB).
        compiler_params=pltpu.CompilerParams(
            dimension_semantics=("parallel", "arbitrary")),
    )(l_idx, lens_in, enc_p, enc_proj, dec_p, h0_p, w_hcat, v_rep,
      w_word, w_ctx, b_i, b_h)

    return out[:L_dec, :B, :H]


def reference(enc, enc_lens, dec_in, h0, params):
    """Pure-JAX mirror of the PyTorch forward pass (for validation)."""
    w_enc, w_dec, v = params["w_enc"], params["w_dec"], params["v"]
    w_ih, w_hh = params["w_ih"], params["w_hh"]
    b_ih, b_hh = params["b_ih"], params["b_hh"]
    L_enc = enc.shape[0]
    H = h0.shape[1]
    enc_proj = jnp.einsum("lbe,ae->lba", enc, w_enc)
    pad = jnp.arange(L_enc)[:, None] >= enc_lens[None, :]
    hi = h0
    outs = []
    for t in range(dec_in.shape[0]):
        dec_proj = hi @ w_dec.T
        energy = jnp.einsum("lba,a->lb", jnp.tanh(enc_proj + dec_proj[None]), v)
        energy = jnp.where(pad, -jnp.inf, energy)
        scores = jax.nn.softmax(energy, axis=0)
        context = jnp.sum(scores[..., None] * enc, axis=0)
        x = jnp.concatenate([dec_in[t], context], axis=1)
        gi = x @ w_ih.T + b_ih
        gh = hi @ w_hh.T + b_hh
        r = jax.nn.sigmoid(gi[:, :H] + gh[:, :H])
        z = jax.nn.sigmoid(gi[:, H:2 * H] + gh[:, H:2 * H])
        n = jnp.tanh(gi[:, 2 * H:] + r * gh[:, 2 * H:])
        hi = (1.0 - z) * n + z * hi
        outs.append(hi)
    return jnp.stack(outs)


if __name__ == "__main__":
    key = jax.random.PRNGKey(0)
    L_enc, L_dec, B = 8, 6, 4
    I, H, E, A = 16, 32, 32, 32   # input, hidden, encoder_hidden, alignment_dim

    ks = jax.random.split(key, 10)
    enc_lens = jnp.array([8, 5, 7, 3], dtype=jnp.int32)
    enc = jax.random.normal(ks[0], (L_enc, B, E), jnp.float32)
    valid = (jnp.arange(L_enc)[:, None] < enc_lens[None, :]).astype(jnp.float32)
    enc = enc * valid[:, :, None]      # zero padding, as pad_packed_sequence would
    dec_in = jax.random.normal(ks[1], (L_dec, B, I), jnp.float32)
    h0 = jax.random.normal(ks[2], (B, H), jnp.float32)

    s = 0.1
    params = {
        "w_enc": s * jax.random.normal(ks[3], (A, E), jnp.float32),
        "w_dec": s * jax.random.normal(ks[4], (A, H), jnp.float32),
        "v": jax.random.uniform(ks[5], (A,), jnp.float32),
        "w_ih": s * jax.random.normal(ks[6], (3 * H, I + E), jnp.float32),
        "w_hh": s * jax.random.normal(ks[7], (3 * H, H), jnp.float32),
        "b_ih": s * jax.random.normal(ks[8], (3 * H,), jnp.float32),
        "b_hh": s * jax.random.normal(ks[9], (3 * H,), jnp.float32),
    }

    out = attention_decoder(enc, enc_lens, dec_in, h0, params)
    out = jax.block_until_ready(out)

    ref = reference(enc, enc_lens, dec_in, h0, params)
    assert out.shape == (L_dec, B, H)
    err = float(jnp.max(jnp.abs(out - ref)))
    # tolerance loosened slightly vs f32-exact because the softmax denominator
    # uses the EUP approximate reciprocal.
    assert jnp.allclose(out, ref, atol=3e-3, rtol=3e-3), err
    print("KERNEL_OK")
</pallas_src>

<mosaic_0001>
module attributes {stable_mosaic.version = 11 : i64} {
  func.func @attention_decoder_kernel(%arg0: i32, %arg1: i32, %arg2: memref<8x1x128xi32, #tpu.memory_space<vmem>>, %arg3: memref<1x8x128xi32, #tpu.memory_space<vmem>>, %arg4: memref<8x8x128xf32, #tpu.memory_space<vmem>>, %arg5: memref<8x8x128xf32, #tpu.memory_space<vmem>>, %arg6: memref<8x8x128xf32, #tpu.memory_space<vmem>>, %arg7: memref<8x128xf32, #tpu.memory_space<vmem>>, %arg8: memref<128x512xf32, #tpu.memory_space<vmem>>, %arg9: memref<128x128xf32, #tpu.memory_space<vmem>>, %arg10: memref<128x384xf32, #tpu.memory_space<vmem>>, %arg11: memref<128x384xf32, #tpu.memory_space<vmem>>, %arg12: memref<1x384xf32, #tpu.memory_space<vmem>>, %arg13: memref<1x384xf32, #tpu.memory_space<vmem>>, %arg14: memref<8x8x128xf32, #tpu.memory_space<vmem>>, %arg15: memref<8x128xf32, #tpu.memory_space<vmem>>, %arg16: memref<8x8x384xf32, #tpu.memory_space<vmem>>) attributes {dimension_semantics = [#tpu.dimension_semantics<parallel>, #tpu.dimension_semantics<arbitrary>], iteration_bounds = array<i64: 1, 1>, scalar_prefetch = 0 : i64, scratch_operands = 2 : i64, tpu.core_type = #tpu.core_type<tc>, window_params = [{pipeline_mode = #tpu.pipeline_mode<synchronous>, transform_indices = @transform_0, window_bounds = array<i64: 8, 1, 128>}, {transform_indices = @transform_1, window_bounds = array<i64: 1, 8, 128>}, {transform_indices = @transform_2, window_bounds = array<i64: 8, 8, 128>}, {transform_indices = @transform_3, window_bounds = array<i64: 8, 8, 128>}, {transform_indices = @transform_4, window_bounds = array<i64: 8, 8, 128>}, {transform_indices = @transform_5, window_bounds = array<i64: 8, 128>}, {pipeline_mode = #tpu.pipeline_mode<synchronous>, transform_indices = @transform_6, window_bounds = array<i64: 128, 512>}, {pipeline_mode = #tpu.pipeline_mode<synchronous>, transform_indices = @transform_7, window_bounds = array<i64: 128, 128>}, {pipeline_mode = #tpu.pipeline_mode<synchronous>, transform_indices = @transform_8, window_bounds = array<i64: 128, 384>}, {pipeline_mode = #tpu.pipeline_mode<synchronous>, transform_indices = @transform_9, window_bounds = array<i64: 128, 384>}, {pipeline_mode = #tpu.pipeline_mode<synchronous>, transform_indices = @transform_10, window_bounds = array<i64: 1, 384>}, {pipeline_mode = #tpu.pipeline_mode<synchronous>, transform_indices = @transform_11, window_bounds = array<i64: 1, 384>}, {transform_indices = @transform_12, window_bounds = array<i64: 8, 8, 128>}]} {
    %c0_i32 = arith.constant 0 : i32
    %0 = arith.cmpi eq, %arg1, %c0_i32 : i32
    %1 = arith.extui %0 : i1 to i32
    %c0_i32_0 = arith.constant 0 : i32
    %2 = arith.cmpi ne, %1, %c0_i32_0 : i32
    scf.if %2 {
      %c0_183 = arith.constant 0 : index
      %c0_184 = arith.constant 0 : index
      %523 = vector.load %arg7[%c0_183, %c0_184] : memref<8x128xf32, #tpu.memory_space<vmem>>, vector<8x128xf32>
      %c0_185 = arith.constant 0 : index
      %c0_186 = arith.constant 0 : index
      %524 = vector.load %arg15[%c0_185, %c0_186] : memref<8x128xf32, #tpu.memory_space<vmem>>, vector<8x128xf32>
      tpu.vector_store %arg15[%c0_185, %c0_186], %523 {strides = array<i32>} : memref<8x128xf32, #tpu.memory_space<vmem>>, vector<8x128xf32>,
    } else {
    }
    %c0 = arith.constant 0 : index
    %c0_1 = arith.constant 0 : index
    %c0_2 = arith.constant 0 : index
    %3 = vector.load %arg2[%c0, %c0_1, %c0_2] : memref<8x1x128xi32, #tpu.memory_space<vmem>>, vector<8x1x128xi32>
    %c0_3 = arith.constant 0 : index
    %c0_4 = arith.constant 0 : index
    %c0_5 = arith.constant 0 : index
    %4 = vector.load %arg3[%c0_3, %c0_4, %c0_5] : memref<1x8x128xi32, #tpu.memory_space<vmem>>, vector<1x8x128xi32>
    %5 = vector.broadcast %3 : vector<8x1x128xi32> to vector<8x8x128xi32>
    %6 = vector.broadcast %4 : vector<1x8x128xi32> to vector<8x8x128xi32>
    %7 = arith.cmpi sge, %5, %6 : vector<8x8x128xi32>
    %cst = arith.constant 0xFF800000 : f32
    %cst_6 = arith.constant 0.000000e+00 : f32
    %8 = vector.broadcast %cst : f32 to vector<8x8x128xf32>
    %9 = vector.broadcast %cst_6 : f32 to vector<8x8x128xf32>
    %10 = arith.select %7, %8, %9 : vector<8x8x128xi1>, vector<8x8x128xf32>
    %c0_7 = arith.constant 0 : index
    %c0_8 = arith.constant 0 : index
    %c0_9 = arith.constant 0 : index
    %11 = vector.load %arg6[%c0_7, %c0_8, %c0_9] : memref<8x8x128xf32, #tpu.memory_space<vmem>>, vector<8x8x128xf32>
    %12 = vector.shape_cast %11 : vector<8x8x128xf32> to vector<64x128xf32>
    %c0_10 = arith.constant 0 : index
    %c0_11 = arith.constant 0 : index
    %13 = vector.load %arg10[%c0_10, %c0_11] : memref<128x384xf32, #tpu.memory_space<vmem>>, vector<128x384xf32>
    %cst_12 = arith.constant dense<0.000000e+00> : vector<64x384xf32>
    %14 = tpu.matmul %12, %13, %cst_12 {dimension_numbers = #tpu.dot_dimension_numbers<[1], [0], [0], [1], [0, 0, 1, 1], [], []>} : vector<64x128xf32>, vector<128x384xf32>, vector<64x384xf32> -> vector<64x384xf32>
    %15 = vector.shape_cast %14 : vector<64x384xf32> to vector<8x8x384xf32>
    %c0_13 = arith.constant 0 : index
    %c0_14 = arith.constant 0 : index
    %16 = vector.load %arg12[%c0_13, %c0_14] : memref<1x384xf32, #tpu.memory_space<vmem>>, vector<1x384xf32>
    %17 = vector.shape_cast %16 : vector<1x384xf32> to vector<1x1x384xf32>
    %18 = vector.broadcast %17 : vector<1x1x384xf32> to vector<8x8x384xf32>
    %19 = arith.addf %15, %18 : vector<8x8x384xf32>
    %c0_15 = arith.constant 0 : index
    %c0_16 = arith.constant 0 : index
    %c0_17 = arith.constant 0 : index
    %20 = vector.load %arg16[%c0_15, %c0_16, %c0_17] : memref<8x8x384xf32, #tpu.memory_space<vmem>>, vector<8x8x384xf32>
    tpu.vector_store %arg16[%c0_15, %c0_16, %c0_17], %19 {strides = array<i32>} : memref<8x8x384xf32, #tpu.memory_space<vmem>>, vector<8x8x384xf32>,
    %c0_18 = arith.constant 0 : index
    %c0_19 = arith.constant 0 : index
    %21 = vector.load %arg8[%c0_18, %c0_19] : memref<128x512xf32, #tpu.memory_space<vmem>>, vector<128x512xf32>
    %c0_20 = arith.constant 0 : index
    %c0_21 = arith.constant 0 : index
    %22 = vector.load %arg9[%c0_20, %c0_21] : memref<128x128xf32, #tpu.memory_space<vmem>>, vector<128x128xf32>
    %c0_22 = arith.constant 0 : index
    %c0_23 = arith.constant 0 : index
    %23 = vector.load %arg11[%c0_22, %c0_23] : memref<128x384xf32, #tpu.memory_space<vmem>>, vector<128x384xf32>
    %c0_24 = arith.constant 0 : index
    %c0_25 = arith.constant 0 : index
    %24 = vector.load %arg13[%c0_24, %c0_25] : memref<1x384xf32, #tpu.memory_space<vmem>>, vector<1x384xf32>
    %c0_26 = arith.constant 0 : index
    %c0_27 = arith.constant 0 : index
    %25 = vector.load %arg15[%c0_26, %c0_27] : memref<8x128xf32, #tpu.memory_space<vmem>>, vector<8x128xf32>
    %c0_i32_28 = arith.constant 0 : i32
    %cst_29 = arith.constant dense<0.000000e+00> : vector<8x512xf32>
    %26 = tpu.matmul %25, %21, %cst_29 {dimension_numbers = #tpu.dot_dimension_numbers<[1], [0], [0], [1], [0, 0, 1, 1], [], []>} : vector<8x128xf32>, vector<128x512xf32>, vector<8x512xf32> -> vector<8x512xf32>
    %27 = vector.extract_strided_slice %26 {offsets = [0, 0], sizes = [8, 128], strides = [1, 1]} : vector<8x512xf32> to vector<8x128xf32>
    %28 = vector.extract_strided_slice %26 {offsets = [0, 128], sizes = [8, 384], strides = [1, 1]} : vector<8x512xf32> to vector<8x384xf32>
    %29 = vector.broadcast %24 : vector<1x384xf32> to vector<8x384xf32>
    %30 = arith.addf %28, %29 : vector<8x384xf32>
    %c0_30 = arith.constant 0 : index
    %c0_31 = arith.constant 0 : index
    %c0_32 = arith.constant 0 : index
    %31 = vector.load %arg5[%c0_30, %c0_31, %c0_32] : memref<8x8x128xf32, #tpu.memory_space<vmem>>, vector<8x8x128xf32>
    %32 = vector.shape_cast %27 : vector<8x128xf32> to vector<1x8x128xf32>
    %33 = vector.broadcast %32 : vector<1x8x128xf32> to vector<8x8x128xf32>
    %34 = arith.addf %31, %33 : vector<8x8x128xf32>
    %35 = math.tanh %34 : vector<8x8x128xf32>
    %36 = vector.shape_cast %35 : vector<8x8x128xf32> to vector<64x128xf32>
    %cst_33 = arith.constant dense<0.000000e+00> : vector<64x128xf32>
    %37 = tpu.matmul %36, %22, %cst_33 {dimension_numbers = #tpu.dot_dimension_numbers<[1], [0], [0], [1], [0, 0, 1, 1], [], []>} : vector<64x128xf32>, vector<128x128xf32>, vector<64x128xf32> -> vector<64x128xf32>
    %38 = vector.shape_cast %37 : vector<64x128xf32> to vector<8x8x128xf32>
    %39 = arith.addf %38, %10 : vector<8x8x128xf32>
    %cst_34 = arith.constant dense<0xFF800000> : vector<8x128xf32>
    %40 = vector.multi_reduction <maximumf>, %39, %cst_34 [0] : vector<8x8x128xf32> to vector<8x128xf32>
    %41 = vector.shape_cast %40 : vector<8x128xf32> to vector<1x8x128xf32>
    %42 = vector.broadcast %41 : vector<1x8x128xf32> to vector<8x8x128xf32>
    %43 = arith.subf %39, %42 : vector<8x8x128xf32>
    %44 = math.exp %43 : vector<8x8x128xf32>
    %cst_35 = arith.constant dense<0.000000e+00> : vector<8x128xf32>
    %45 = vector.multi_reduction <add>, %44, %cst_35 [0] : vector<8x8x128xf32> to vector<8x128xf32>
    %46 = vector.shape_cast %45 : vector<8x128xf32> to vector<1x8x128xf32>
    %47 = tpu.reciprocal %46 {approx = true} : vector<1x8x128xf32> -> vector<1x8x128xf32>
    %48 = vector.broadcast %47 : vector<1x8x128xf32> to vector<8x8x128xf32>
    %49 = arith.mulf %44, %48 : vector<8x8x128xf32>
    %c0_36 = arith.constant 0 : index
    %c0_37 = arith.constant 0 : index
    %c0_38 = arith.constant 0 : index
    %50 = vector.load %arg4[%c0_36, %c0_37, %c0_38] : memref<8x8x128xf32, #tpu.memory_space<vmem>>, vector<8x8x128xf32>
    %51 = arith.mulf %49, %50 : vector<8x8x128xf32>
    %cst_39 = arith.constant dense<0.000000e+00> : vector<8x128xf32>
    %52 = vector.multi_reduction <add>, %51, %cst_39 [0] : vector<8x8x128xf32> to vector<8x128xf32>
    %53 = arith.index_cast %c0_i32_28 : i32 to index
    %c0_40 = arith.constant 0 : index
    %c0_41 = arith.constant 0 : index
    %54 = vector.load %arg16[%53, %c0_40, %c0_41] : memref<8x8x384xf32, #tpu.memory_space<vmem>>, vector<1x8x384xf32>
    %55 = vector.shape_cast %54 : vector<1x8x384xf32> to vector<8x384xf32>
    %cst_42 = arith.constant dense<0.000000e+00> : vector<8x384xf32>
    %56 = tpu.matmul %52, %23, %cst_42 {dimension_numbers = #tpu.dot_dimension_numbers<[1], [0], [0], [1], [0, 0, 1, 1], [], []>} : vector<8x128xf32>, vector<128x384xf32>, vector<8x384xf32> -> vector<8x384xf32>
    %57 = arith.addf %55, %56 : vector<8x384xf32>
    %58 = vector.extract_strided_slice %57 {offsets = [0, 0], sizes = [8, 128], strides = [1, 1]} : vector<8x384xf32> to vector<8x128xf32>
    %59 = vector.extract_strided_slice %30 {offsets = [0, 0], sizes = [8, 128], strides = [1, 1]} : vector<8x384xf32> to vector<8x128xf32>
    %60 = arith.addf %58, %59 : vector<8x128xf32>
    %61 = arith.negf %60 : vector<8x128xf32>
    %62 = math.exp %61 : vector<8x128xf32>
    %cst_43 = arith.constant 1.000000e+00 : f32
    %63 = vector.broadcast %cst_43 : f32 to vector<8x128xf32>
    %64 = arith.addf %63, %62 : vector<8x128xf32>
    %65 = arith.divf %63, %64 : vector<8x128xf32>
    %66 = vector.extract_strided_slice %57 {offsets = [0, 128], sizes = [8, 128], strides = [1, 1]} : vector<8x384xf32> to vector<8x128xf32>
    %67 = vector.extract_strided_slice %30 {offsets = [0, 128], sizes = [8, 128], strides = [1, 1]} : vector<8x384xf32> to vector<8x128xf32>
    %68 = arith.addf %66, %67 : vector<8x128xf32>
    %69 = arith.negf %68 : vector<8x128xf32>
    %70 = math.exp %69 : vector<8x128xf32>
    %cst_44 = arith.constant 1.000000e+00 : f32
    %71 = vector.broadcast %cst_44 : f32 to vector<8x128xf32>
    %72 = arith.addf %71, %70 : vector<8x128xf32>
    %73 = arith.divf %71, %72 : vector<8x128xf32>
    %74 = vector.extract_strided_slice %57 {offsets = [0, 256], sizes = [8, 128], strides = [1, 1]} : vector<8x384xf32> to vector<8x128xf32>
    %75 = vector.extract_strided_slice %30 {offsets = [0, 256], sizes = [8, 128], strides = [1, 1]} : vector<8x384xf32> to vector<8x128xf32>
    %76 = arith.mulf %65, %75 : vector<8x128xf32>
    %77 = arith.addf %74, %76 : vector<8x128xf32>
    %78 = math.tanh %77 : vector<8x128xf32>
    %cst_45 = arith.constant 1.000000e+00 : f32
    %79 = vector.broadcast %cst_45 : f32 to vector<8x128xf32>
    %80 = arith.subf %79, %73 : vector<8x128xf32>
    %81 = arith.mulf %80, %78 : vector<8x128xf32>
    %82 = arith.mulf %73, %25 : vector<8x128xf32>
    %83 = arith.addf %81, %82 : vector<8x128xf32>
    %84 = arith.index_cast %c0_i32_28 : i32 to index
    %c0_46 = arith.constant 0 : index
    %c0_47 = arith.constant 0 : index
    %85 = vector.load %arg14[%84, %c0_46, %c0_47] : memref<8x8x128xf32, #tpu.memory_space<vmem>>, vector<1x8x128xf32>
    %86 = vector.shape_cast %85 : vector<1x8x128xf32> to vector<8x128xf32>
    %87 = vector.shape_cast %83 : vector<8x128xf32> to vector<1x8x128xf32>
    tpu.vector_store %arg14[%84, %c0_46, %c0_47], %87 {strides = array<i32>} : memref<8x8x128xf32, #tpu.memory_space<vmem>>, vector<1x8x128xf32>,
    %c1_i32 = arith.constant 1 : i32
    %cst_48 = arith.constant dense<0.000000e+00> : vector<8x512xf32>
    %88 = tpu.matmul %83, %21, %cst_48 {dimension_numbers = #tpu.dot_dimension_numbers<[1], [0], [0], [1], [0, 0, 1, 1], [], []>} : vector<8x128xf32>, vector<128x512xf32>, vector<8x512xf32> -> vector<8x512xf32>
    %89 = vector.extract_strided_slice %88 {offsets = [0, 0], sizes = [8, 128], strides = [1, 1]} : vector<8x512xf32> to vector<8x128xf32>
    %90 = vector.extract_strided_slice %88 {offsets = [0, 128], sizes = [8, 384], strides = [1, 1]} : vector<8x512xf32> to vector<8x384xf32>
    %91 = vector.broadcast %24 : vector<1x384xf32> to vector<8x384xf32>
    %92 = arith.addf %90, %91 : vector<8x384xf32>
    %c0_49 = arith.constant 0 : index
    %c0_50 = arith.constant 0 : index
    %c0_51 = arith.constant 0 : index
    %93 = vector.load %arg5[%c0_49, %c0_50, %c0_51] : memref<8x8x128xf32, #tpu.memory_space<vmem>>, vector<8x8x128xf32>
    %94 = vector.shape_cast %89 : vector<8x128xf32> to vector<1x8x128xf32>
    %95 = vector.broadcast %94 : vector<1x8x128xf32> to vector<8x8x128xf32>
    %96 = arith.addf %93, %95 : vector<8x8x128xf32>
    %97 = math.tanh %96 : vector<8x8x128xf32>
    %98 = vector.shape_cast %97 : vector<8x8x128xf32> to vector<64x128xf32>
    %cst_52 = arith.constant dense<0.000000e+00> : vector<64x128xf32>
    %99 = tpu.matmul %98, %22, %cst_52 {dimension_numbers = #tpu.dot_dimension_numbers<[1], [0], [0], [1], [0, 0, 1, 1], [], []>} : vector<64x128xf32>, vector<128x128xf32>, vector<64x128xf32> -> vector<64x128xf32>
    %100 = vector.shape_cast %99 : vector<64x128xf32> to vector<8x8x128xf32>
    %101 = arith.addf %100, %10 : vector<8x8x128xf32>
    %cst_53 = arith.constant dense<0xFF800000> : vector<8x128xf32>
    %102 = vector.multi_reduction <maximumf>, %101, %cst_53 [0] : vector<8x8x128xf32> to vector<8x128xf32>
    %103 = vector.shape_cast %102 : vector<8x128xf32> to vector<1x8x128xf32>
    %104 = vector.broadcast %103 : vector<1x8x128xf32> to vector<8x8x128xf32>
    %105 = arith.subf %101, %104 : vector<8x8x128xf32>
    %106 = math.exp %105 : vector<8x8x128xf32>
    %cst_54 = arith.constant dense<0.000000e+00> : vector<8x128xf32>
    %107 = vector.multi_reduction <add>, %106, %cst_54 [0] : vector<8x8x128xf32> to vector<8x128xf32>
    %108 = vector.shape_cast %107 : vector<8x128xf32> to vector<1x8x128xf32>
    %109 = tpu.reciprocal %108 {approx = true} : vector<1x8x128xf32> -> vector<1x8x128xf32>
    %110 = vector.broadcast %109 : vector<1x8x128xf32> to vector<8x8x128xf32>
    %111 = arith.mulf %106, %110 : vector<8x8x128xf32>
    %c0_55 = arith.constant 0 : index
    %c0_56 = arith.constant 0 : index
    %c0_57 = arith.constant 0 : index
    %112 = vector.load %arg4[%c0_55, %c0_56, %c0_57] : memref<8x8x128xf32, #tpu.memory_space<vmem>>, vector<8x8x128xf32>
    %113 = arith.mulf %111, %112 : vector<8x8x128xf32>
    %cst_58 = arith.constant dense<0.000000e+00> : vector<8x128xf32>
    %114 = vector.multi_reduction <add>, %113, %cst_58 [0] : vector<8x8x128xf32> to vector<8x128xf32>
    %115 = arith.index_cast %c1_i32 : i32 to index
    %c0_59 = arith.constant 0 : index
    %c0_60 = arith.constant 0 : index
    %116 = vector.load %arg16[%115, %c0_59, %c0_60] : memref<8x8x384xf32, #tpu.memory_space<vmem>>, vector<1x8x384xf32>
    %117 = vector.shape_cast %116 : vector<1x8x384xf32> to vector<8x384xf32>
    %cst_61 = arith.constant dense<0.000000e+00> : vector<8x384xf32>
    %118 = tpu.matmul %114, %23, %cst_61 {dimension_numbers = #tpu.dot_dimension_numbers<[1], [0], [0], [1], [0, 0, 1, 1], [], []>} : vector<8x128xf32>, vector<128x384xf32>, vector<8x384xf32> -> vector<8x384xf32>
    %119 = arith.addf %117, %118 : vector<8x384xf32>
    %120 = vector.extract_strided_slice %119 {offsets = [0, 0], sizes = [8, 128], strides = [1, 1]} : vector<8x384xf32> to vector<8x128xf32>
    %121 = vector.extract_strided_slice %92 {offsets = [0, 0], sizes = [8, 128], strides = [1, 1]} : vector<8x384xf32> to vector<8x128xf32>
    %122 = arith.addf %120, %121 : vector<8x128xf32>
    %123 = arith.negf %122 : vector<8x128xf32>
    %124 = math.exp %123 : vector<8x128xf32>
    %cst_62 = arith.constant 1.000000e+00 : f32
    %125 = vector.broadcast %cst_62 : f32 to vector<8x128xf32>
    %126 = arith.addf %125, %124 : vector<8x128xf32>
    %127 = arith.divf %125, %126 : vector<8x128xf32>
    %128 = vector.extract_strided_slice %119 {offsets = [0, 128], sizes = [8, 128], strides = [1, 1]} : vector<8x384xf32> to vector<8x128xf32>
    %129 = vector.extract_strided_slice %92 {offsets = [0, 128], sizes = [8, 128], strides = [1, 1]} : vector<8x384xf32> to vector<8x128xf32>
    %130 = arith.addf %128, %129 : vector<8x128xf32>
    %131 = arith.negf %130 : vector<8x128xf32>
    %132 = math.exp %131 : vector<8x128xf32>
    %cst_63 = arith.constant 1.000000e+00 : f32
    %133 = vector.broadcast %cst_63 : f32 to vector<8x128xf32>
    %134 = arith.addf %133, %132 : vector<8x128xf32>
    %135 = arith.divf %133, %134 : vector<8x128xf32>
    %136 = vector.extract_strided_slice %119 {offsets = [0, 256], sizes = [8, 128], strides = [1, 1]} : vector<8x384xf32> to vector<8x128xf32>
    %137 = vector.extract_strided_slice %92 {offsets = [0, 256], sizes = [8, 128], strides = [1, 1]} : vector<8x384xf32> to vector<8x128xf32>
    %138 = arith.mulf %127, %137 : vector<8x128xf32>
    %139 = arith.addf %136, %138 : vector<8x128xf32>
    %140 = math.tanh %139 : vector<8x128xf32>
    %cst_64 = arith.constant 1.000000e+00 : f32
    %141 = vector.broadcast %cst_64 : f32 to vector<8x128xf32>
    %142 = arith.subf %141, %135 : vector<8x128xf32>
    %143 = arith.mulf %142, %140 : vector<8x128xf32>
    %144 = arith.mulf %135, %83 : vector<8x128xf32>
    %145 = arith.addf %143, %144 : vector<8x128xf32>
    %146 = arith.index_cast %c1_i32 : i32 to index
    %c0_65 = arith.constant 0 : index
    %c0_66 = arith.constant 0 : index
    %147 = vector.load %arg14[%146, %c0_65, %c0_66] : memref<8x8x128xf32, #tpu.memory_space<vmem>>, vector<1x8x128xf32>
    %148 = vector.shape_cast %147 : vector<1x8x128xf32> to vector<8x128xf32>
    %149 = vector.shape_cast %145 : vector<8x128xf32> to vector<1x8x128xf32>
    tpu.vector_store %arg14[%146, %c0_65, %c0_66], %149 {strides = array<i32>} : memref<8x8x128xf32, #tpu.memory_space<vmem>>, vector<1x8x128xf32>,
    %c2_i32 = arith.constant 2 : i32
    %cst_67 = arith.constant dense<0.000000e+00> : vector<8x512xf32>
    %150 = tpu.matmul %145, %21, %cst_67 {dimension_numbers = #tpu.dot_dimension_numbers<[1], [0], [0], [1], [0, 0, 1, 1], [], []>} : vector<8x128xf32>, vector<128x512xf32>, vector<8x512xf32> -> vector<8x512xf32>
    %151 = vector.extract_strided_slice %150 {offsets = [0, 0], sizes = [8, 128], strides = [1, 1]} : vector<8x512xf32> to vector<8x128xf32>
    %152 = vector.extract_strided_slice %150 {offsets = [0, 128], sizes = [8, 384], strides = [1, 1]} : vector<8x512xf32> to vector<8x384xf32>
    %153 = vector.broadcast %24 : vector<1x384xf32> to vector<8x384xf32>
    %154 = arith.addf %152, %153 : vector<8x384xf32>
    %c0_68 = arith.constant 0 : index
    %c0_69 = arith.constant 0 : index
    %c0_70 = arith.constant 0 : index
    %155 = vector.load %arg5[%c0_68, %c0_69, %c0_70] : memref<8x8x128xf32, #tpu.memory_space<vmem>>, vector<8x8x128xf32>
    %156 = vector.shape_cast %151 : vector<8x128xf32> to vector<1x8x128xf32>
    %157 = vector.broadcast %156 : vector<1x8x128xf32> to vector<8x8x128xf32>
    %158 = arith.addf %155, %157 : vector<8x8x128xf32>
    %159 = math.tanh %158 : vector<8x8x128xf32>
    %160 = vector.shape_cast %159 : vector<8x8x128xf32> to vector<64x128xf32>
    %cst_71 = arith.constant dense<0.000000e+00> : vector<64x128xf32>
    %161 = tpu.matmul %160, %22, %cst_71 {dimension_numbers = #tpu.dot_dimension_numbers<[1], [0], [0], [1], [0, 0, 1, 1], [], []>} : vector<64x128xf32>, vector<128x128xf32>, vector<64x128xf32> -> vector<64x128xf32>
    %162 = vector.shape_cast %161 : vector<64x128xf32> to vector<8x8x128xf32>
    %163 = arith.addf %162, %10 : vector<8x8x128xf32>
    %cst_72 = arith.constant dense<0xFF800000> : vector<8x128xf32>
    %164 = vector.multi_reduction <maximumf>, %163, %cst_72 [0] : vector<8x8x128xf32> to vector<8x128xf32>
    %165 = vector.shape_cast %164 : vector<8x128xf32> to vector<1x8x128xf32>
    %166 = vector.broadcast %165 : vector<1x8x128xf32> to vector<8x8x128xf32>
    %167 = arith.subf %163, %166 : vector<8x8x128xf32>
    %168 = math.exp %167 : vector<8x8x128xf32>
    %cst_73 = arith.constant dense<0.000000e+00> : vector<8x128xf32>
    %169 = vector.multi_reduction <add>, %168, %cst_73 [0] : vector<8x8x128xf32> to vector<8x128xf32>
    %170 = vector.shape_cast %169 : vector<8x128xf32> to vector<1x8x128xf32>
    %171 = tpu.reciprocal %170 {approx = true} : vector<1x8x128xf32> -> vector<1x8x128xf32>
    %172 = vector.broadcast %171 : vector<1x8x128xf32> to vector<8x8x128xf32>
    %173 = arith.mulf %168, %172 : vector<8x8x128xf32>
    %c0_74 = arith.constant 0 : index
    %c0_75 = arith.constant 0 : index
    %c0_76 = arith.constant 0 : index
    %174 = vector.load %arg4[%c0_74, %c0_75, %c0_76] : memref<8x8x128xf32, #tpu.memory_space<vmem>>, vector<8x8x128xf32>
    %175 = arith.mulf %173, %174 : vector<8x8x128xf32>
    %cst_77 = arith.constant dense<0.000000e+00> : vector<8x128xf32>
    %176 = vector.multi_reduction <add>, %175, %cst_77 [0] : vector<8x8x128xf32> to vector<8x128xf32>
    %177 = arith.index_cast %c2_i32 : i32 to index
    %c0_78 = arith.constant 0 : index
    %c0_79 = arith.constant 0 : index
    %178 = vector.load %arg16[%177, %c0_78, %c0_79] : memref<8x8x384xf32, #tpu.memory_space<vmem>>, vector<1x8x384xf32>
    %179 = vector.shape_cast %178 : vector<1x8x384xf32> to vector<8x384xf32>
    %cst_80 = arith.constant dense<0.000000e+00> : vector<8x384xf32>
    %180 = tpu.matmul %176, %23, %cst_80 {dimension_numbers = #tpu.dot_dimension_numbers<[1], [0], [0], [1], [0, 0, 1, 1], [], []>} : vector<8x128xf32>, vector<128x384xf32>, vector<8x384xf32> -> vector<8x384xf32>
    %181 = arith.addf %179, %180 : vector<8x384xf32>
    %182 = vector.extract_strided_slice %181 {offsets = [0, 0], sizes = [8, 128], strides = [1, 1]} : vector<8x384xf32> to vector<8x128xf32>
    %183 = vector.extract_strided_slice %154 {offsets = [0, 0], sizes = [8, 128], strides = [1, 1]} : vector<8x384xf32> to vector<8x128xf32>
    %184 = arith.addf %182, %183 : vector<8x128xf32>
    %185 = arith.negf %184 : vector<8x128xf32>
    %186 = math.exp %185 : vector<8x128xf32>
    %cst_81 = arith.constant 1.000000e+00 : f32
    %187 = vector.broadcast %cst_81 : f32 to vector<8x128xf32>
    %188 = arith.addf %187, %186 : vector<8x128xf32>
    %189 = arith.divf %187, %188 : vector<8x128xf32>
    %190 = vector.extract_strided_slice %181 {offsets = [0, 128], sizes = [8, 128], strides = [1, 1]} : vector<8x384xf32> to vector<8x128xf32>
    %191 = vector.extract_strided_slice %154 {offsets = [0, 128], sizes = [8, 128], strides = [1, 1]} : vector<8x384xf32> to vector<8x128xf32>
    %192 = arith.addf %190, %191 : vector<8x128xf32>
    %193 = arith.negf %192 : vector<8x128xf32>
    %194 = math.exp %193 : vector<8x128xf32>
    %cst_82 = arith.constant 1.000000e+00 : f32
    %195 = vector.broadcast %cst_82 : f32 to vector<8x128xf32>
    %196 = arith.addf %195, %194 : vector<8x128xf32>
    %197 = arith.divf %195, %196 : vector<8x128xf32>
    %198 = vector.extract_strided_slice %181 {offsets = [0, 256], sizes = [8, 128], strides = [1, 1]} : vector<8x384xf32> to vector<8x128xf32>
    %199 = vector.extract_strided_slice %154 {offsets = [0, 256], sizes = [8, 128], strides = [1, 1]} : vector<8x384xf32> to vector<8x128xf32>
    %200 = arith.mulf %189, %199 : vector<8x128xf32>
    %201 = arith.addf %198, %200 : vector<8x128xf32>
    %202 = math.tanh %201 : vector<8x128xf32>
    %cst_83 = arith.constant 1.000000e+00 : f32
    %203 = vector.broadcast %cst_83 : f32 to vector<8x128xf32>
    %204 = arith.subf %203, %197 : vector<8x128xf32>
    %205 = arith.mulf %204, %202 : vector<8x128xf32>
    %206 = arith.mulf %197, %145 : vector<8x128xf32>
    %207 = arith.addf %205, %206 : vector<8x128xf32>
    %208 = arith.index_cast %c2_i32 : i32 to index
    %c0_84 = arith.constant 0 : index
    %c0_85 = arith.constant 0 : index
    %209 = vector.load %arg14[%208, %c0_84, %c0_85] : memref<8x8x128xf32, #tpu.memory_space<vmem>>, vector<1x8x128xf32>
    %210 = vector.shape_cast %209 : vector<1x8x128xf32> to vector<8x128xf32>
    %211 = vector.shape_cast %207 : vector<8x128xf32> to vector<1x8x128xf32>
    tpu.vector_store %arg14[%208, %c0_84, %c0_85], %211 {strides = array<i32>} : memref<8x8x128xf32, #tpu.memory_space<vmem>>, vector<1x8x128xf32>,
    %c3_i32 = arith.constant 3 : i32
    %cst_86 = arith.constant dense<0.000000e+00> : vector<8x512xf32>
    %212 = tpu.matmul %207, %21, %cst_86 {dimension_numbers = #tpu.dot_dimension_numbers<[1], [0], [0], [1], [0, 0, 1, 1], [], []>} : vector<8x128xf32>, vector<128x512xf32>, vector<8x512xf32> -> vector<8x512xf32>
    %213 = vector.extract_strided_slice %212 {offsets = [0, 0], sizes = [8, 128], strides = [1, 1]} : vector<8x512xf32> to vector<8x128xf32>
    %214 = vector.extract_strided_slice %212 {offsets = [0, 128], sizes = [8, 384], strides = [1, 1]} : vector<8x512xf32> to vector<8x384xf32>
    %215 = vector.broadcast %24 : vector<1x384xf32> to vector<8x384xf32>
    %216 = arith.addf %214, %215 : vector<8x384xf32>
    %c0_87 = arith.constant 0 : index
    %c0_88 = arith.constant 0 : index
    %c0_89 = arith.constant 0 : index
    %217 = vector.load %arg5[%c0_87, %c0_88, %c0_89] : memref<8x8x128xf32, #tpu.memory_space<vmem>>, vector<8x8x128xf32>
    %218 = vector.shape_cast %213 : vector<8x128xf32> to vector<1x8x128xf32>
    %219 = vector.broadcast %218 : vector<1x8x128xf32> to vector<8x8x128xf32>
    %220 = arith.addf %217, %219 : vector<8x8x128xf32>
    %221 = math.tanh %220 : vector<8x8x128xf32>
    %222 = vector.shape_cast %221 : vector<8x8x128xf32> to vector<64x128xf32>
    %cst_90 = arith.constant dense<0.000000e+00> : vector<64x128xf32>
    %223 = tpu.matmul %222, %22, %cst_90 {dimension_numbers = #tpu.dot_dimension_numbers<[1], [0], [0], [1], [0, 0, 1, 1], [], []>} : vector<64x128xf32>, vector<128x128xf32>, vector<64x128xf32> -> vector<64x128xf32>
    %224 = vector.shape_cast %223 : vector<64x128xf32> to vector<8x8x128xf32>
    %225 = arith.addf %224, %10 : vector<8x8x128xf32>
    %cst_91 = arith.constant dense<0xFF800000> : vector<8x128xf32>
    %226 = vector.multi_reduction <maximumf>, %225, %cst_91 [0] : vector<8x8x128xf32> to vector<8x128xf32>
    %227 = vector.shape_cast %226 : vector<8x128xf32> to vector<1x8x128xf32>
    %228 = vector.broadcast %227 : vector<1x8x128xf32> to vector<8x8x128xf32>
    %229 = arith.subf %225, %228 : vector<8x8x128xf32>
    %230 = math.exp %229 : vector<8x8x128xf32>
    %cst_92 = arith.constant dense<0.000000e+00> : vector<8x128xf32>
    %231 = vector.multi_reduction <add>, %230, %cst_92 [0] : vector<8x8x128xf32> to vector<8x128xf32>
    %232 = vector.shape_cast %231 : vector<8x128xf32> to vector<1x8x128xf32>
    %233 = tpu.reciprocal %232 {approx = true} : vector<1x8x128xf32> -> vector<1x8x128xf32>
    %234 = vector.broadcast %233 : vector<1x8x128xf32> to vector<8x8x128xf32>
    %235 = arith.mulf %230, %234 : vector<8x8x128xf32>
    %c0_93 = arith.constant 0 : index
    %c0_94 = arith.constant 0 : index
    %c0_95 = arith.constant 0 : index
    %236 = vector.load %arg4[%c0_93, %c0_94, %c0_95] : memref<8x8x128xf32, #tpu.memory_space<vmem>>, vector<8x8x128xf32>
    %237 = arith.mulf %235, %236 : vector<8x8x128xf32>
    %cst_96 = arith.constant dense<0.000000e+00> : vector<8x128xf32>
    %238 = vector.multi_reduction <add>, %237, %cst_96 [0] : vector<8x8x128xf32> to vector<8x128xf32>
    %239 = arith.index_cast %c3_i32 : i32 to index
    %c0_97 = arith.constant 0 : index
    %c0_98 = arith.constant 0 : index
    %240 = vector.load %arg16[%239, %c0_97, %c0_98] : memref<8x8x384xf32, #tpu.memory_space<vmem>>, vector<1x8x384xf32>
    %241 = vector.shape_cast %240 : vector<1x8x384xf32> to vector<8x384xf32>
    %cst_99 = arith.constant dense<0.000000e+00> : vector<8x384xf32>
    %242 = tpu.matmul %238, %23, %cst_99 {dimension_numbers = #tpu.dot_dimension_numbers<[1], [0], [0], [1], [0, 0, 1, 1], [], []>} : vector<8x128xf32>, vector<128x384xf32>, vector<8x384xf32> -> vector<8x384xf32>
    %243 = arith.addf %241, %242 : vector<8x384xf32>
    %244 = vector.extract_strided_slice %243 {offsets = [0, 0], sizes = [8, 128], strides = [1, 1]} : vector<8x384xf32> to vector<8x128xf32>
    %245 = vector.extract_strided_slice %216 {offsets = [0, 0], sizes = [8, 128], strides = [1, 1]} : vector<8x384xf32> to vector<8x128xf32>
    %246 = arith.addf %244, %245 : vector<8x128xf32>
    %247 = arith.negf %246 : vector<8x128xf32>
    %248 = math.exp %247 : vector<8x128xf32>
    %cst_100 = arith.constant 1.000000e+00 : f32
    %249 = vector.broadcast %cst_100 : f32 to vector<8x128xf32>
    %250 = arith.addf %249, %248 : vector<8x128xf32>
    %251 = arith.divf %249, %250 : vector<8x128xf32>
    %252 = vector.extract_strided_slice %243 {offsets = [0, 128], sizes = [8, 128], strides = [1, 1]} : vector<8x384xf32> to vector<8x128xf32>
    %253 = vector.extract_strided_slice %216 {offsets = [0, 128], sizes = [8, 128], strides = [1, 1]} : vector<8x384xf32> to vector<8x128xf32>
    %254 = arith.addf %252, %253 : vector<8x128xf32>
    %255 = arith.negf %254 : vector<8x128xf32>
    %256 = math.exp %255 : vector<8x128xf32>
    %cst_101 = arith.constant 1.000000e+00 : f32
    %257 = vector.broadcast %cst_101 : f32 to vector<8x128xf32>
    %258 = arith.addf %257, %256 : vector<8x128xf32>
    %259 = arith.divf %257, %258 : vector<8x128xf32>
    %260 = vector.extract_strided_slice %243 {offsets = [0, 256], sizes = [8, 128], strides = [1, 1]} : vector<8x384xf32> to vector<8x128xf32>
    %261 = vector.extract_strided_slice %216 {offsets = [0, 256], sizes = [8, 128], strides = [1, 1]} : vector<8x384xf32> to vector<8x128xf32>
    %262 = arith.mulf %251, %261 : vector<8x128xf32>
    %263 = arith.addf %260, %262 : vector<8x128xf32>
    %264 = math.tanh %263 : vector<8x128xf32>
    %cst_102 = arith.constant 1.000000e+00 : f32
    %265 = vector.broadcast %cst_102 : f32 to vector<8x128xf32>
    %266 = arith.subf %265, %259 : vector<8x128xf32>
    %267 = arith.mulf %266, %264 : vector<8x128xf32>
    %268 = arith.mulf %259, %207 : vector<8x128xf32>
    %269 = arith.addf %267, %268 : vector<8x128xf32>
    %270 = arith.index_cast %c3_i32 : i32 to index
    %c0_103 = arith.constant 0 : index
    %c0_104 = arith.constant 0 : index
    %271 = vector.load %arg14[%270, %c0_103, %c0_104] : memref<8x8x128xf32, #tpu.memory_space<vmem>>, vector<1x8x128xf32>
    %272 = vector.shape_cast %271 : vector<1x8x128xf32> to vector<8x128xf32>
    %273 = vector.shape_cast %269 : vector<8x128xf32> to vector<1x8x128xf32>
    tpu.vector_store %arg14[%270, %c0_103, %c0_104], %273 {strides = array<i32>} : memref<8x8x128xf32, #tpu.memory_space<vmem>>, vector<1x8x128xf32>,
    %c4_i32 = arith.constant 4 : i32
    %cst_105 = arith.constant dense<0.000000e+00> : vector<8x512xf32>
    %274 = tpu.matmul %269, %21, %cst_105 {dimension_numbers = #tpu.dot_dimension_numbers<[1], [0], [0], [1], [0, 0, 1, 1], [], []>} : vector<8x128xf32>, vector<128x512xf32>, vector<8x512xf32> -> vector<8x512xf32>
    %275 = vector.extract_strided_slice %274 {offsets = [0, 0], sizes = [8, 128], strides = [1, 1]} : vector<8x512xf32> to vector<8x128xf32>
    %276 = vector.extract_strided_slice %274 {offsets = [0, 128], sizes = [8, 384], strides = [1, 1]} : vector<8x512xf32> to vector<8x384xf32>
    %277 = vector.broadcast %24 : vector<1x384xf32> to vector<8x384xf32>
    %278 = arith.addf %276, %277 : vector<8x384xf32>
    %c0_106 = arith.constant 0 : index
    %c0_107 = arith.constant 0 : index
    %c0_108 = arith.constant 0 : index
    %279 = vector.load %arg5[%c0_106, %c0_107, %c0_108] : memref<8x8x128xf32, #tpu.memory_space<vmem>>, vector<8x8x128xf32>
    %280 = vector.shape_cast %275 : vector<8x128xf32> to vector<1x8x128xf32>
    %281 = vector.broadcast %280 : vector<1x8x128xf32> to vector<8x8x128xf32>
    %282 = arith.addf %279, %281 : vector<8x8x128xf32>
    %283 = math.tanh %282 : vector<8x8x128xf32>
    %284 = vector.shape_cast %283 : vector<8x8x128xf32> to vector<64x128xf32>
    %cst_109 = arith.constant dense<0.000000e+00> : vector<64x128xf32>
    %285 = tpu.matmul %284, %22, %cst_109 {dimension_numbers = #tpu.dot_dimension_numbers<[1], [0], [0], [1], [0, 0, 1, 1], [], []>} : vector<64x128xf32>, vector<128x128xf32>, vector<64x128xf32> -> vector<64x128xf32>
    %286 = vector.shape_cast %285 : vector<64x128xf32> to vector<8x8x128xf32>
    %287 = arith.addf %286, %10 : vector<8x8x128xf32>
    %cst_110 = arith.constant dense<0xFF800000> : vector<8x128xf32>
    %288 = vector.multi_reduction <maximumf>, %287, %cst_110 [0] : vector<8x8x128xf32> to vector<8x128xf32>
    %289 = vector.shape_cast %288 : vector<8x128xf32> to vector<1x8x128xf32>
    %290 = vector.broadcast %289 : vector<1x8x128xf32> to vector<8x8x128xf32>
    %291 = arith.subf %287, %290 : vector<8x8x128xf32>
    %292 = math.exp %291 : vector<8x8x128xf32>
    %cst_111 = arith.constant dense<0.000000e+00> : vector<8x128xf32>
    %293 = vector.multi_reduction <add>, %292, %cst_111 [0] : vector<8x8x128xf32> to vector<8x128xf32>
    %294 = vector.shape_cast %293 : vector<8x128xf32> to vector<1x8x128xf32>
    %295 = tpu.reciprocal %294 {approx = true} : vector<1x8x128xf32> -> vector<1x8x128xf32>
    %296 = vector.broadcast %295 : vector<1x8x128xf32> to vector<8x8x128xf32>
    %297 = arith.mulf %292, %296 : vector<8x8x128xf32>
    %c0_112 = arith.constant 0 : index
    %c0_113 = arith.constant 0 : index
    %c0_114 = arith.constant 0 : index
    %298 = vector.load %arg4[%c0_112, %c0_113, %c0_114] : memref<8x8x128xf32, #tpu.memory_space<vmem>>, vector<8x8x128xf32>
    %299 = arith.mulf %297, %298 : vector<8x8x128xf32>
    %cst_115 = arith.constant dense<0.000000e+00> : vector<8x128xf32>
    %300 = vector.multi_reduction <add>, %299, %cst_115 [0] : vector<8x8x128xf32> to vector<8x128xf32>
    %301 = arith.index_cast %c4_i32 : i32 to index
    %c0_116 = arith.constant 0 : index
    %c0_117 = arith.constant 0 : index
    %302 = vector.load %arg16[%301, %c0_116, %c0_117] : memref<8x8x384xf32, #tpu.memory_space<vmem>>, vector<1x8x384xf32>
    %303 = vector.shape_cast %302 : vector<1x8x384xf32> to vector<8x384xf32>
    %cst_118 = arith.constant dense<0.000000e+00> : vector<8x384xf32>
    %304 = tpu.matmul %300, %23, %cst_118 {dimension_numbers = #tpu.dot_dimension_numbers<[1], [0], [0], [1], [0, 0, 1, 1], [], []>} : vector<8x128xf32>, vector<128x384xf32>, vector<8x384xf32> -> vector<8x384xf32>
    %305 = arith.addf %303, %304 : vector<8x384xf32>
    %306 = vector.extract_strided_slice %305 {offsets = [0, 0], sizes = [8, 128], strides = [1, 1]} : vector<8x384xf32> to vector<8x128xf32>
    %307 = vector.extract_strided_slice %278 {offsets = [0, 0], sizes = [8, 128], strides = [1, 1]} : vector<8x384xf32> to vector<8x128xf32>
    %308 = arith.addf %306, %307 : vector<8x128xf32>
    %309 = arith.negf %308 : vector<8x128xf32>
    %310 = math.exp %309 : vector<8x128xf32>
    %cst_119 = arith.constant 1.000000e+00 : f32
    %311 = vector.broadcast %cst_119 : f32 to vector<8x128xf32>
    %312 = arith.addf %311, %310 : vector<8x128xf32>
    %313 = arith.divf %311, %312 : vector<8x128xf32>
    %314 = vector.extract_strided_slice %305 {offsets = [0, 128], sizes = [8, 128], strides = [1, 1]} : vector<8x384xf32> to vector<8x128xf32>
    %315 = vector.extract_strided_slice %278 {offsets = [0, 128], sizes = [8, 128], strides = [1, 1]} : vector<8x384xf32> to vector<8x128xf32>
    %316 = arith.addf %314, %315 : vector<8x128xf32>
    %317 = arith.negf %316 : vector<8x128xf32>
    %318 = math.exp %317 : vector<8x128xf32>
    %cst_120 = arith.constant 1.000000e+00 : f32
    %319 = vector.broadcast %cst_120 : f32 to vector<8x128xf32>
    %320 = arith.addf %319, %318 : vector<8x128xf32>
    %321 = arith.divf %319, %320 : vector<8x128xf32>
    %322 = vector.extract_strided_slice %305 {offsets = [0, 256], sizes = [8, 128], strides = [1, 1]} : vector<8x384xf32> to vector<8x128xf32>
    %323 = vector.extract_strided_slice %278 {offsets = [0, 256], sizes = [8, 128], strides = [1, 1]} : vector<8x384xf32> to vector<8x128xf32>
    %324 = arith.mulf %313, %323 : vector<8x128xf32>
    %325 = arith.addf %322, %324 : vector<8x128xf32>
    %326 = math.tanh %325 : vector<8x128xf32>
    %cst_121 = arith.constant 1.000000e+00 : f32
    %327 = vector.broadcast %cst_121 : f32 to vector<8x128xf32>
    %328 = arith.subf %327, %321 : vector<8x128xf32>
    %329 = arith.mulf %328, %326 : vector<8x128xf32>
    %330 = arith.mulf %321, %269 : vector<8x128xf32>
    %331 = arith.addf %329, %330 : vector<8x128xf32>
    %332 = arith.index_cast %c4_i32 : i32 to index
    %c0_122 = arith.constant 0 : index
    %c0_123 = arith.constant 0 : index
    %333 = vector.load %arg14[%332, %c0_122, %c0_123] : memref<8x8x128xf32, #tpu.memory_space<vmem>>, vector<1x8x128xf32>
    %334 = vector.shape_cast %333 : vector<1x8x128xf32> to vector<8x128xf32>
    %335 = vector.shape_cast %331 : vector<8x128xf32> to vector<1x8x128xf32>
    tpu.vector_store %arg14[%332, %c0_122, %c0_123], %335 {strides = array<i32>} : memref<8x8x128xf32, #tpu.memory_space<vmem>>, vector<1x8x128xf32>,
    %c5_i32 = arith.constant 5 : i32
    %cst_124 = arith.constant dense<0.000000e+00> : vector<8x512xf32>
    %336 = tpu.matmul %331, %21, %cst_124 {dimension_numbers = #tpu.dot_dimension_numbers<[1], [0], [0], [1], [0, 0, 1, 1], [], []>} : vector<8x128xf32>, vector<128x512xf32>, vector<8x512xf32> -> vector<8x512xf32>
    %337 = vector.extract_strided_slice %336 {offsets = [0, 0], sizes = [8, 128], strides = [1, 1]} : vector<8x512xf32> to vector<8x128xf32>
    %338 = vector.extract_strided_slice %336 {offsets = [0, 128], sizes = [8, 384], strides = [1, 1]} : vector<8x512xf32> to vector<8x384xf32>
    %339 = vector.broadcast %24 : vector<1x384xf32> to vector<8x384xf32>
    %340 = arith.addf %338, %339 : vector<8x384xf32>
    %c0_125 = arith.constant 0 : index
    %c0_126 = arith.constant 0 : index
    %c0_127 = arith.constant 0 : index
    %341 = vector.load %arg5[%c0_125, %c0_126, %c0_127] : memref<8x8x128xf32, #tpu.memory_space<vmem>>, vector<8x8x128xf32>
    %342 = vector.shape_cast %337 : vector<8x128xf32> to vector<1x8x128xf32>
    %343 = vector.broadcast %342 : vector<1x8x128xf32> to vector<8x8x128xf32>
    %344 = arith.addf %341, %343 : vector<8x8x128xf32>
    %345 = math.tanh %344 : vector<8x8x128xf32>
    %346 = vector.shape_cast %345 : vector<8x8x128xf32> to vector<64x128xf32>
    %cst_128 = arith.constant dense<0.000000e+00> : vector<64x128xf32>
    %347 = tpu.matmul %346, %22, %cst_128 {dimension_numbers = #tpu.dot_dimension_numbers<[1], [0], [0], [1], [0, 0, 1, 1], [], []>} : vector<64x128xf32>, vector<128x128xf32>, vector<64x128xf32> -> vector<64x128xf32>
    %348 = vector.shape_cast %347 : vector<64x128xf32> to vector<8x8x128xf32>
    %349 = arith.addf %348, %10 : vector<8x8x128xf32>
    %cst_129 = arith.constant dense<0xFF800000> : vector<8x128xf32>
    %350 = vector.multi_reduction <maximumf>, %349, %cst_129 [0] : vector<8x8x128xf32> to vector<8x128xf32>
    %351 = vector.shape_cast %350 : vector<8x128xf32> to vector<1x8x128xf32>
    %352 = vector.broadcast %351 : vector<1x8x128xf32> to vector<8x8x128xf32>
    %353 = arith.subf %349, %352 : vector<8x8x128xf32>
    %354 = math.exp %353 : vector<8x8x128xf32>
    %cst_130 = arith.constant dense<0.000000e+00> : vector<8x128xf32>
    %355 = vector.multi_reduction <add>, %354, %cst_130 [0] : vector<8x8x128xf32> to vector<8x128xf32>
    %356 = vector.shape_cast %355 : vector<8x128xf32> to vector<1x8x128xf32>
    %357 = tpu.reciprocal %356 {approx = true} : vector<1x8x128xf32> -> vector<1x8x128xf32>
    %358 = vector.broadcast %357 : vector<1x8x128xf32> to vector<8x8x128xf32>
    %359 = arith.mulf %354, %358 : vector<8x8x128xf32>
    %c0_131 = arith.constant 0 : index
    %c0_132 = arith.constant 0 : index
    %c0_133 = arith.constant 0 : index
    %360 = vector.load %arg4[%c0_131, %c0_132, %c0_133] : memref<8x8x128xf32, #tpu.memory_space<vmem>>, vector<8x8x128xf32>
    %361 = arith.mulf %359, %360 : vector<8x8x128xf32>
    %cst_134 = arith.constant dense<0.000000e+00> : vector<8x128xf32>
    %362 = vector.multi_reduction <add>, %361, %cst_134 [0] : vector<8x8x128xf32> to vector<8x128xf32>
    %363 = arith.index_cast %c5_i32 : i32 to index
    %c0_135 = arith.constant 0 : index
    %c0_136 = arith.constant 0 : index
    %364 = vector.load %arg16[%363, %c0_135, %c0_136] : memref<8x8x384xf32, #tpu.memory_space<vmem>>, vector<1x8x384xf32>
    %365 = vector.shape_cast %364 : vector<1x8x384xf32> to vector<8x384xf32>
    %cst_137 = arith.constant dense<0.000000e+00> : vector<8x384xf32>
    %366 = tpu.matmul %362, %23, %cst_137 {dimension_numbers = #tpu.dot_dimension_numbers<[1], [0], [0], [1], [0, 0, 1, 1], [], []>} : vector<8x128xf32>, vector<128x384xf32>, vector<8x384xf32> -> vector<8x384xf32>
    %367 = arith.addf %365, %366 : vector<8x384xf32>
    %368 = vector.extract_strided_slice %367 {offsets = [0, 0], sizes = [8, 128], strides = [1, 1]} : vector<8x384xf32> to vector<8x128xf32>
    %369 = vector.extract_strided_slice %340 {offsets = [0, 0], sizes = [8, 128], strides = [1, 1]} : vector<8x384xf32> to vector<8x128xf32>
    %370 = arith.addf %368, %369 : vector<8x128xf32>
    %371 = arith.negf %370 : vector<8x128xf32>
    %372 = math.exp %371 : vector<8x128xf32>
    %cst_138 = arith.constant 1.000000e+00 : f32
    %373 = vector.broadcast %cst_138 : f32 to vector<8x128xf32>
    %374 = arith.addf %373, %372 : vector<8x128xf32>
    %375 = arith.divf %373, %374 : vector<8x128xf32>
    %376 = vector.extract_strided_slice %367 {offsets = [0, 128], sizes = [8, 128], strides = [1, 1]} : vector<8x384xf32> to vector<8x128xf32>
    %377 = vector.extract_strided_slice %340 {offsets = [0, 128], sizes = [8, 128], strides = [1, 1]} : vector<8x384xf32> to vector<8x128xf32>
    %378 = arith.addf %376, %377 : vector<8x128xf32>
    %379 = arith.negf %378 : vector<8x128xf32>
    %380 = math.exp %379 : vector<8x128xf32>
    %cst_139 = arith.constant 1.000000e+00 : f32
    %381 = vector.broadcast %cst_139 : f32 to vector<8x128xf32>
    %382 = arith.addf %381, %380 : vector<8x128xf32>
    %383 = arith.divf %381, %382 : vector<8x128xf32>
    %384 = vector.extract_strided_slice %367 {offsets = [0, 256], sizes = [8, 128], strides = [1, 1]} : vector<8x384xf32> to vector<8x128xf32>
    %385 = vector.extract_strided_slice %340 {offsets = [0, 256], sizes = [8, 128], strides = [1, 1]} : vector<8x384xf32> to vector<8x128xf32>
    %386 = arith.mulf %375, %385 : vector<8x128xf32>
    %387 = arith.addf %384, %386 : vector<8x128xf32>
    %388 = math.tanh %387 : vector<8x128xf32>
    %cst_140 = arith.constant 1.000000e+00 : f32
    %389 = vector.broadcast %cst_140 : f32 to vector<8x128xf32>
    %390 = arith.subf %389, %383 : vector<8x128xf32>
    %391 = arith.mulf %390, %388 : vector<8x128xf32>
    %392 = arith.mulf %383, %331 : vector<8x128xf32>
    %393 = arith.addf %391, %392 : vector<8x128xf32>
    %394 = arith.index_cast %c5_i32 : i32 to index
    %c0_141 = arith.constant 0 : index
    %c0_142 = arith.constant 0 : index
    %395 = vector.load %arg14[%394, %c0_141, %c0_142] : memref<8x8x128xf32, #tpu.memory_space<vmem>>, vector<1x8x128xf32>
    %396 = vector.shape_cast %395 : vector<1x8x128xf32> to vector<8x128xf32>
    %397 = vector.shape_cast %393 : vector<8x128xf32> to vector<1x8x128xf32>
    tpu.vector_store %arg14[%394, %c0_141, %c0_142], %397 {strides = array<i32>} : memref<8x8x128xf32, #tpu.memory_space<vmem>>, vector<1x8x128xf32>,
    %c6_i32 = arith.constant 6 : i32
    %cst_143 = arith.constant dense<0.000000e+00> : vector<8x512xf32>
    %398 = tpu.matmul %393, %21, %cst_143 {dimension_numbers = #tpu.dot_dimension_numbers<[1], [0], [0], [1], [0, 0, 1, 1], [], []>} : vector<8x128xf32>, vector<128x512xf32>, vector<8x512xf32> -> vector<8x512xf32>
    %399 = vector.extract_strided_slice %398 {offsets = [0, 0], sizes = [8, 128], strides = [1, 1]} : vector<8x512xf32> to vector<8x128xf32>
    %400 = vector.extract_strided_slice %398 {offsets = [0, 128], sizes = [8, 384], strides = [1, 1]} : vector<8x512xf32> to vector<8x384xf32>
    %401 = vector.broadcast %24 : vector<1x384xf32> to vector<8x384xf32>
    %402 = arith.addf %400, %401 : vector<8x384xf32>
    %c0_144 = arith.constant 0 : index
    %c0_145 = arith.constant 0 : index
    %c0_146 = arith.constant 0 : index
    %403 = vector.load %arg5[%c0_144, %c0_145, %c0_146] : memref<8x8x128xf32, #tpu.memory_space<vmem>>, vector<8x8x128xf32>
    %404 = vector.shape_cast %399 : vector<8x128xf32> to vector<1x8x128xf32>
    %405 = vector.broadcast %404 : vector<1x8x128xf32> to vector<8x8x128xf32>
    %406 = arith.addf %403, %405 : vector<8x8x128xf32>
    %407 = math.tanh %406 : vector<8x8x128xf32>
    %408 = vector.shape_cast %407 : vector<8x8x128xf32> to vector<64x128xf32>
    %cst_147 = arith.constant dense<0.000000e+00> : vector<64x128xf32>
    %409 = tpu.matmul %408, %22, %cst_147 {dimension_numbers = #tpu.dot_dimension_numbers<[1], [0], [0], [1], [0, 0, 1, 1], [], []>} : vector<64x128xf32>, vector<128x128xf32>, vector<64x128xf32> -> vector<64x128xf32>
    %410 = vector.shape_cast %409 : vector<64x128xf32> to vector<8x8x128xf32>
    %411 = arith.addf %410, %10 : vector<8x8x128xf32>
    %cst_148 = arith.constant dense<0xFF800000> : vector<8x128xf32>
    %412 = vector.multi_reduction <maximumf>, %411, %cst_148 [0] : vector<8x8x128xf32> to vector<8x128xf32>
    %413 = vector.shape_cast %412 : vector<8x128xf32> to vector<1x8x128xf32>
    %414 = vector.broadcast %413 : vector<1x8x128xf32> to vector<8x8x128xf32>
    %415 = arith.subf %411, %414 : vector<8x8x128xf32>
    %416 = math.exp %415 : vector<8x8x128xf32>
    %cst_149 = arith.constant dense<0.000000e+00> : vector<8x128xf32>
    %417 = vector.multi_reduction <add>, %416, %cst_149 [0] : vector<8x8x128xf32> to vector<8x128xf32>
    %418 = vector.shape_cast %417 : vector<8x128xf32> to vector<1x8x128xf32>
    %419 = tpu.reciprocal %418 {approx = true} : vector<1x8x128xf32> -> vector<1x8x128xf32>
    %420 = vector.broadcast %419 : vector<1x8x128xf32> to vector<8x8x128xf32>
    %421 = arith.mulf %416, %420 : vector<8x8x128xf32>
    %c0_150 = arith.constant 0 : index
    %c0_151 = arith.constant 0 : index
    %c0_152 = arith.constant 0 : index
    %422 = vector.load %arg4[%c0_150, %c0_151, %c0_152] : memref<8x8x128xf32, #tpu.memory_space<vmem>>, vector<8x8x128xf32>
    %423 = arith.mulf %421, %422 : vector<8x8x128xf32>
    %cst_153 = arith.constant dense<0.000000e+00> : vector<8x128xf32>
    %424 = vector.multi_reduction <add>, %423, %cst_153 [0] : vector<8x8x128xf32> to vector<8x128xf32>
    %425 = arith.index_cast %c6_i32 : i32 to index
    %c0_154 = arith.constant 0 : index
    %c0_155 = arith.constant 0 : index
    %426 = vector.load %arg16[%425, %c0_154, %c0_155] : memref<8x8x384xf32, #tpu.memory_space<vmem>>, vector<1x8x384xf32>
    %427 = vector.shape_cast %426 : vector<1x8x384xf32> to vector<8x384xf32>
    %cst_156 = arith.constant dense<0.000000e+00> : vector<8x384xf32>
    %428 = tpu.matmul %424, %23, %cst_156 {dimension_numbers = #tpu.dot_dimension_numbers<[1], [0], [0], [1], [0, 0, 1, 1], [], []>} : vector<8x128xf32>, vector<128x384xf32>, vector<8x384xf32> -> vector<8x384xf32>
    %429 = arith.addf %427, %428 : vector<8x384xf32>
    %430 = vector.extract_strided_slice %429 {offsets = [0, 0], sizes = [8, 128], strides = [1, 1]} : vector<8x384xf32> to vector<8x128xf32>
    %431 = vector.extract_strided_slice %402 {offsets = [0, 0], sizes = [8, 128], strides = [1, 1]} : vector<8x384xf32> to vector<8x128xf32>
    %432 = arith.addf %430, %431 : vector<8x128xf32>
    %433 = arith.negf %432 : vector<8x128xf32>
    %434 = math.exp %433 : vector<8x128xf32>
    %cst_157 = arith.constant 1.000000e+00 : f32
    %435 = vector.broadcast %cst_157 : f32 to vector<8x128xf32>
    %436 = arith.addf %435, %434 : vector<8x128xf32>
    %437 = arith.divf %435, %436 : vector<8x128xf32>
    %438 = vector.extract_strided_slice %429 {offsets = [0, 128], sizes = [8, 128], strides = [1, 1]} : vector<8x384xf32> to vector<8x128xf32>
    %439 = vector.extract_strided_slice %402 {offsets = [0, 128], sizes = [8, 128], strides = [1, 1]} : vector<8x384xf32> to vector<8x128xf32>
    %440 = arith.addf %438, %439 : vector<8x128xf32>
    %441 = arith.negf %440 : vector<8x128xf32>
    %442 = math.exp %441 : vector<8x128xf32>
    %cst_158 = arith.constant 1.000000e+00 : f32
    %443 = vector.broadcast %cst_158 : f32 to vector<8x128xf32>
    %444 = arith.addf %443, %442 : vector<8x128xf32>
    %445 = arith.divf %443, %444 : vector<8x128xf32>
    %446 = vector.extract_strided_slice %429 {offsets = [0, 256], sizes = [8, 128], strides = [1, 1]} : vector<8x384xf32> to vector<8x128xf32>
    %447 = vector.extract_strided_slice %402 {offsets = [0, 256], sizes = [8, 128], strides = [1, 1]} : vector<8x384xf32> to vector<8x128xf32>
    %448 = arith.mulf %437, %447 : vector<8x128xf32>
    %449 = arith.addf %446, %448 : vector<8x128xf32>
    %450 = math.tanh %449 : vector<8x128xf32>
    %cst_159 = arith.constant 1.000000e+00 : f32
    %451 = vector.broadcast %cst_159 : f32 to vector<8x128xf32>
    %452 = arith.subf %451, %445 : vector<8x128xf32>
    %453 = arith.mulf %452, %450 : vector<8x128xf32>
    %454 = arith.mulf %445, %393 : vector<8x128xf32>
    %455 = arith.addf %453, %454 : vector<8x128xf32>
    %456 = arith.index_cast %c6_i32 : i32 to index
    %c0_160 = arith.constant 0 : index
    %c0_161 = arith.constant 0 : index
    %457 = vector.load %arg14[%456, %c0_160, %c0_161] : memref<8x8x128xf32, #tpu.memory_space<vmem>>, vector<1x8x128xf32>
    %458 = vector.shape_cast %457 : vector<1x8x128xf32> to vector<8x128xf32>
    %459 = vector.shape_cast %455 : vector<8x128xf32> to vector<1x8x128xf32>
    tpu.vector_store %arg14[%456, %c0_160, %c0_161], %459 {strides = array<i32>} : memref<8x8x128xf32, #tpu.memory_space<vmem>>, vector<1x8x128xf32>,
    %c7_i32 = arith.constant 7 : i32
    %cst_162 = arith.constant dense<0.000000e+00> : vector<8x512xf32>
    %460 = tpu.matmul %455, %21, %cst_162 {dimension_numbers = #tpu.dot_dimension_numbers<[1], [0], [0], [1], [0, 0, 1, 1], [], []>} : vector<8x128xf32>, vector<128x512xf32>, vector<8x512xf32> -> vector<8x512xf32>
    %461 = vector.extract_strided_slice %460 {offsets = [0, 0], sizes = [8, 128], strides = [1, 1]} : vector<8x512xf32> to vector<8x128xf32>
    %462 = vector.extract_strided_slice %460 {offsets = [0, 128], sizes = [8, 384], strides = [1, 1]} : vector<8x512xf32> to vector<8x384xf32>
    %463 = vector.broadcast %24 : vector<1x384xf32> to vector<8x384xf32>
    %464 = arith.addf %462, %463 : vector<8x384xf32>
    %c0_163 = arith.constant 0 : index
    %c0_164 = arith.constant 0 : index
    %c0_165 = arith.constant 0 : index
    %465 = vector.load %arg5[%c0_163, %c0_164, %c0_165] : memref<8x8x128xf32, #tpu.memory_space<vmem>>, vector<8x8x128xf32>
    %466 = vector.shape_cast %461 : vector<8x128xf32> to vector<1x8x128xf32>
    %467 = vector.broadcast %466 : vector<1x8x128xf32> to vector<8x8x128xf32>
    %468 = arith.addf %465, %467 : vector<8x8x128xf32>
    %469 = math.tanh %468 : vector<8x8x128xf32>
    %470 = vector.shape_cast %469 : vector<8x8x128xf32> to vector<64x128xf32>
    %cst_166 = arith.constant dense<0.000000e+00> : vector<64x128xf32>
    %471 = tpu.matmul %470, %22, %cst_166 {dimension_numbers = #tpu.dot_dimension_numbers<[1], [0], [0], [1], [0, 0, 1, 1], [], []>} : vector<64x128xf32>, vector<128x128xf32>, vector<64x128xf32> -> vector<64x128xf32>
    %472 = vector.shape_cast %471 : vector<64x128xf32> to vector<8x8x128xf32>
    %473 = arith.addf %472, %10 : vector<8x8x128xf32>
    %cst_167 = arith.constant dense<0xFF800000> : vector<8x128xf32>
    %474 = vector.multi_reduction <maximumf>, %473, %cst_167 [0] : vector<8x8x128xf32> to vector<8x128xf32>
    %475 = vector.shape_cast %474 : vector<8x128xf32> to vector<1x8x128xf32>
    %476 = vector.broadcast %475 : vector<1x8x128xf32> to vector<8x8x128xf32>
    %477 = arith.subf %473, %476 : vector<8x8x128xf32>
    %478 = math.exp %477 : vector<8x8x128xf32>
    %cst_168 = arith.constant dense<0.000000e+00> : vector<8x128xf32>
    %479 = vector.multi_reduction <add>, %478, %cst_168 [0] : vector<8x8x128xf32> to vector<8x128xf32>
    %480 = vector.shape_cast %479 : vector<8x128xf32> to vector<1x8x128xf32>
    %481 = tpu.reciprocal %480 {approx = true} : vector<1x8x128xf32> -> vector<1x8x128xf32>
    %482 = vector.broadcast %481 : vector<1x8x128xf32> to vector<8x8x128xf32>
    %483 = arith.mulf %478, %482 : vector<8x8x128xf32>
    %c0_169 = arith.constant 0 : index
    %c0_170 = arith.constant 0 : index
    %c0_171 = arith.constant 0 : index
    %484 = vector.load %arg4[%c0_169, %c0_170, %c0_171] : memref<8x8x128xf32, #tpu.memory_space<vmem>>, vector<8x8x128xf32>
    %485 = arith.mulf %483, %484 : vector<8x8x128xf32>
    %cst_172 = arith.constant dense<0.000000e+00> : vector<8x128xf32>
    %486 = vector.multi_reduction <add>, %485, %cst_172 [0] : vector<8x8x128xf32> to vector<8x128xf32>
    %487 = arith.index_cast %c7_i32 : i32 to index
    %c0_173 = arith.constant 0 : index
    %c0_174 = arith.constant 0 : index
    %488 = vector.load %arg16[%487, %c0_173, %c0_174] : memref<8x8x384xf32, #tpu.memory_space<vmem>>, vector<1x8x384xf32>
    %489 = vector.shape_cast %488 : vector<1x8x384xf32> to vector<8x384xf32>
    %cst_175 = arith.constant dense<0.000000e+00> : vector<8x384xf32>
    %490 = tpu.matmul %486, %23, %cst_175 {dimension_numbers = #tpu.dot_dimension_numbers<[1], [0], [0], [1], [0, 0, 1, 1], [], []>} : vector<8x128xf32>, vector<128x384xf32>, vector<8x384xf32> -> vector<8x384xf32>
    %491 = arith.addf %489, %490 : vector<8x384xf32>
    %492 = vector.extract_strided_slice %491 {offsets = [0, 0], sizes = [8, 128], strides = [1, 1]} : vector<8x384xf32> to vector<8x128xf32>
    %493 = vector.extract_strided_slice %464 {offsets = [0, 0], sizes = [8, 128], strides = [1, 1]} : vector<8x384xf32> to vector<8x128xf32>
    %494 = arith.addf %492, %493 : vector<8x128xf32>
    %495 = arith.negf %494 : vector<8x128xf32>
    %496 = math.exp %495 : vector<8x128xf32>
    %cst_176 = arith.constant 1.000000e+00 : f32
    %497 = vector.broadcast %cst_176 : f32 to vector<8x128xf32>
    %498 = arith.addf %497, %496 : vector<8x128xf32>
    %499 = arith.divf %497, %498 : vector<8x128xf32>
    %500 = vector.extract_strided_slice %491 {offsets = [0, 128], sizes = [8, 128], strides = [1, 1]} : vector<8x384xf32> to vector<8x128xf32>
    %501 = vector.extract_strided_slice %464 {offsets = [0, 128], sizes = [8, 128], strides = [1, 1]} : vector<8x384xf32> to vector<8x128xf32>
    %502 = arith.addf %500, %501 : vector<8x128xf32>
    %503 = arith.negf %502 : vector<8x128xf32>
    %504 = math.exp %503 : vector<8x128xf32>
    %cst_177 = arith.constant 1.000000e+00 : f32
    %505 = vector.broadcast %cst_177 : f32 to vector<8x128xf32>
    %506 = arith.addf %505, %504 : vector<8x128xf32>
    %507 = arith.divf %505, %506 : vector<8x128xf32>
    %508 = vector.extract_strided_slice %491 {offsets = [0, 256], sizes = [8, 128], strides = [1, 1]} : vector<8x384xf32> to vector<8x128xf32>
    %509 = vector.extract_strided_slice %464 {offsets = [0, 256], sizes = [8, 128], strides = [1, 1]} : vector<8x384xf32> to vector<8x128xf32>
    %510 = arith.mulf %499, %509 : vector<8x128xf32>
    %511 = arith.addf %508, %510 : vector<8x128xf32>
    %512 = math.tanh %511 : vector<8x128xf32>
    %cst_178 = arith.constant 1.000000e+00 : f32
    %513 = vector.broadcast %cst_178 : f32 to vector<8x128xf32>
    %514 = arith.subf %513, %507 : vector<8x128xf32>
    %515 = arith.mulf %514, %512 : vector<8x128xf32>
    %516 = arith.mulf %507, %455 : vector<8x128xf32>
    %517 = arith.addf %515, %516 : vector<8x128xf32>
    %518 = arith.index_cast %c7_i32 : i32 to index
    %c0_179 = arith.constant 0 : index
    %c0_180 = arith.constant 0 : index
    %519 = vector.load %arg14[%518, %c0_179, %c0_180] : memref<8x8x128xf32, #tpu.memory_space<vmem>>, vector<1x8x128xf32>
    %520 = vector.shape_cast %519 : vector<1x8x128xf32> to vector<8x128xf32>
    %521 = vector.shape_cast %517 : vector<8x128xf32> to vector<1x8x128xf32>
    tpu.vector_store %arg14[%518, %c0_179, %c0_180], %521 {strides = array<i32>} : memref<8x8x128xf32, #tpu.memory_space<vmem>>, vector<1x8x128xf32>,
    %c8_i32 = arith.constant 8 : i32
    %c0_181 = arith.constant 0 : index
    %c0_182 = arith.constant 0 : index
    %522 = vector.load %arg15[%c0_181, %c0_182] : memref<8x128xf32, #tpu.memory_space<vmem>>, vector<8x128xf32>
    tpu.vector_store %arg15[%c0_181, %c0_182], %517 {strides = array<i32>} : memref<8x128xf32, #tpu.memory_space<vmem>>, vector<8x128xf32>,
    return
  }
  func.func @transform_0(%arg0: i32, %arg1: i32) -> (i32, i32, i32) {
    %c0_i32 = arith.constant 0 : i32
    %c0_i32_0 = arith.constant 0 : i32
    %c0_i32_1 = arith.constant 0 : i32
    %c0_i32_2 = arith.constant 0 : i32
    return %c0_i32, %c0_i32_0, %c0_i32_1 : i32, i32, i32
  }
  func.func @transform_1(%arg0: i32, %arg1: i32) -> (i32, i32, i32) {
    %c0_i32 = arith.constant 0 : i32
    %c0_i32_0 = arith.constant 0 : i32
    %c0_i32_1 = arith.constant 0 : i32
    return %c0_i32, %arg0, %c0_i32_0 : i32, i32, i32
  }
  func.func @transform_2(%arg0: i32, %arg1: i32) -> (i32, i32, i32) {
    %c0_i32 = arith.constant 0 : i32
    %c0_i32_0 = arith.constant 0 : i32
    %c0_i32_1 = arith.constant 0 : i32
    return %c0_i32, %arg0, %c0_i32_0 : i32, i32, i32
  }
  func.func @transform_3(%arg0: i32, %arg1: i32) -> (i32, i32, i32) {
    %c0_i32 = arith.constant 0 : i32
    %c0_i32_0 = arith.constant 0 : i32
    %c0_i32_1 = arith.constant 0 : i32
    return %c0_i32, %arg0, %c0_i32_0 : i32, i32, i32
  }
  func.func @transform_4(%arg0: i32, %arg1: i32) -> (i32, i32, i32) {
    %c0_i32 = arith.constant 0 : i32
    %c0_i32_0 = arith.constant 0 : i32
    return %arg1, %arg0, %c0_i32 : i32, i32, i32
  }
  func.func @transform_5(%arg0: i32, %arg1: i32) -> (i32, i32) {
    %c0_i32 = arith.constant 0 : i32
    %c0_i32_0 = arith.constant 0 : i32
    return %arg0, %c0_i32 : i32, i32
  }
  func.func @transform_6(%arg0: i32, %arg1: i32) -> (i32, i32) {
    %c0_i32 = arith.constant 0 : i32
    %c0_i32_0 = arith.constant 0 : i32
    %c0_i32_1 = arith.constant 0 : i32
    return %c0_i32, %c0_i32_0 : i32, i32
  }
  func.func @transform_7(%arg0: i32, %arg1: i32) -> (i32, i32) {
    %c0_i32 = arith.constant 0 : i32
    %c0_i32_0 = arith.constant 0 : i32
    %c0_i32_1 = arith.constant 0 : i32
    return %c0_i32, %c0_i32_0 : i32, i32
  }
  func.func @transform_8(%arg0: i32, %arg1: i32) -> (i32, i32) {
    %c0_i32 = arith.constant 0 : i32
    %c0_i32_0 = arith.constant 0 : i32
    %c0_i32_1 = arith.constant 0 : i32
    return %c0_i32, %c0_i32_0 : i32, i32
  }
  func.func @transform_9(%arg0: i32, %arg1: i32) -> (i32, i32) {
    %c0_i32 = arith.constant 0 : i32
    %c0_i32_0 = arith.constant 0 : i32
    %c0_i32_1 = arith.constant 0 : i32
    return %c0_i32, %c0_i32_0 : i32, i32
  }
  func.func @transform_10(%arg0: i32, %arg1: i32) -> (i32, i32) {
    %c0_i32 = arith.constant 0 : i32
    %c0_i32_0 = arith.constant 0 : i32
    %c0_i32_1 = arith.constant 0 : i32
    return %c0_i32, %c0_i32_0 : i32, i32
  }
  func.func @transform_11(%arg0: i32, %arg1: i32) -> (i32, i32) {
    %c0_i32 = arith.constant 0 : i32
    %c0_i32_0 = arith.constant 0 : i32
    %c0_i32_1 = arith.constant 0 : i32
    return %c0_i32, %c0_i32_0 : i32, i32
  }
  func.func @transform_12(%arg0: i32, %arg1: i32) -> (i32, i32, i32) {
    %c0_i32 = arith.constant 0 : i32
    %c0_i32_0 = arith.constant 0 : i32
    return %arg1, %arg0, %c0_i32 : i32, i32, i32
  }
}

</mosaic_0001>

<bundles_post_ra>
// kernel: tpu_custom_call.1
= control target key start
LH: loop header
LB: loop body
LE: loop exit
PB: predicated region body
PF: predicated region fallthrough
CT: control target
= control target key end

     0   :  { %17 = vsyncpa [#allocation5], 0  ;;  %s6990_s0 = inlined_call_operand.hbm [shape: s32[8,1,128], index: 0, kind: input, shape index: {}]   ;;  %s6991_s1 = inlined_call_operand.hbm [shape: s32[1,8,128], index: 1, kind: input, shape index: {}]   ;;  %s6992_s2 = inlined_call_operand.hbm [shape: f32[8,8,128], index: 2, kind: input, shape index: {}]   ;;  %s6993_s3 = inlined_call_operand.hbm [shape: f32[8,8,128], index: 3, kind: input, shape index: {}]   ;;  %s6994_s4 = inlined_call_operand.hbm [shape: f32[8,8,128], index: 4, kind: input, shape index: {}]   ;;  %s6995_s5 = inlined_call_operand.hbm [shape: f32[8,128], index: 5, kind: input, shape index: {}]   ;;  %s6996_s6 = inlined_call_operand.hbm [shape: f32[128,512], index: 6, kind: input, shape index: {}]   ;;  %s6997_s7 = inlined_call_operand.hbm [shape: f32[128,128], index: 7, kind: input, shape index: {}]   ;;  %s6998_s8 = inlined_call_operand.hbm [shape: f32[128,384], index: 8, kind: input, shape index: {}]   ;;  %s6999_s9 = inlined_call_operand.hbm [shape: f32[128,384], index: 9, kind: input, shape index: {}]   ;;  %s7000_s10 = inlined_call_operand.vmem [shape: f32[1,384], index: 10, kind: input, shape index: {}]   ;;  %s7001_s11 = inlined_call_operand.vmem [shape: f32[1,384], index: 11, kind: input, shape index: {}]   ;;  %s7002_s12 = inlined_call_operand.hbm [shape: f32[8,8,128], index: 12, kind: output, shape index: {}]  }
   0x1   :  { %18 = vsyncpa [#allocation8], 0 }
   0x2   :  { %19 = vsyncpa [#allocation11], 0 }
   0x3   :  { %20 = vsyncpa [#allocation14], 0 }
   0x4   :  { %21 = vsyncpa [#allocation17], 0 }
   0x5   :  { %22 = vsyncpa [#allocation20], 0  ;;  %s42_s23 = sshll.u32 %s6991_s1, 4  ;;  %s43_s23 = int_to_ptr.hbm [resolvable:$true] %s42_s23 }
   0x6   :  { %23 = vsyncpa [#allocation6], 0  ;;  %s4471_s24 = smov [#allocation7]   ;;  %s65_s28 = sshll.u32 %s6993_s3, 4  ;;  %s66_s28 = int_to_ptr.hbm [resolvable:$true] %s65_s28 }
   0x7   :  { %s44_s25 = sshll.u32 %s4471_s24, 4  ;;  %s4472_s29 = smov [#allocation10]   ;;  %s45_s25 = int_to_ptr.vmem [resolvable:$true] %s44_s25 }
   0x8   :  { %47 = dma.hbm_to_vmem [thread:$0]  %s43_s23, 128, %s45_s25, [#allocation8]  }
   0x9   :  { %s67_s30 = sshll.u32 %s4472_s29, 4  ;;  %s92_s15 = sshll.u32 %s6995_s5, 4  ;;  %s68_s30 = int_to_ptr.vmem [resolvable:$true] %s67_s30  ;;  %s93_s15 = int_to_ptr.hbm [resolvable:$true] %s92_s15 }
   0xa   :  { %s4473_s1 = smov 128   ;;  %s4474_s16 = smov 8  }
   0xb   :  { %73 = dma.hbm_to_vmem [thread:$0]  %s66_s28, 1024, %s68_s30, [#allocation11], %s4473_s1, %s4473_s1, %s4474_s16  }
   0xc   :  { %s115_s19 = sshll.u32 %s6997_s7, 4  ;;  %s4475_s3 = smov [#allocation13]   ;;  %s116_s19 = int_to_ptr.hbm [resolvable:$true] %s115_s19 }
   0xd   :  { %s94_s20 = sshll.u32 %s4475_s3, 4  ;;  %s4476_s21 = smov [#allocation16]   ;;  %s95_s20 = int_to_ptr.vmem [resolvable:$true] %s94_s20 }
   0xe   :  { %97 = dma.hbm_to_vmem [thread:$0]  %s93_s15, 128, %s95_s20, [#allocation14]  }
   0xf   :  { %s117_s22 = sshll.u32 %s4476_s21, 4  ;;  %s28_s24 = sshll.u32 %s6990_s0, 4  ;;  %s118_s22 = int_to_ptr.vmem [resolvable:$true] %s117_s22  ;;  %s29_s24 = int_to_ptr.hbm [resolvable:$true] %s28_s24 }
  0x10   :  { %123 = dma.hbm_to_vmem [thread:$0]  %s116_s19, 2048, %s118_s22, [#allocation17], %s4473_s1, %s4473_s1, %s4474_s16  }
  0x11   :  { %s4477_s25 = smov [#allocation4]   ;;  %s52_s28 = sshll.u32 %s6992_s2, 4  ;;  %s53_s28 = int_to_ptr.hbm [resolvable:$true] %s52_s28 }
  0x12   :  { %s30_s26 = sshll.u32 %s4477_s25, 4  ;;  %s4478_s29 = smov 16   ;;  %s31_s26 = int_to_ptr.vmem [resolvable:$true] %s30_s26 }
  0x13   :  { %s4479_s30 = smov 1   ;;  %s4480_s13 = smov [#allocation9]  }
  0x14   :  { %36 = dma.hbm_to_vmem [thread:$0]  %s29_s24, 128, %s31_s26, [#allocation5], %s4478_s29, %s4478_s29, %s4479_s30  }
  0x15   :  { %s54_s14 = sshll.u32 %s4480_s13, 4  ;;  %s78_s17 = sshll.u32 %s6994_s4, 4  ;;  %s55_s14 = int_to_ptr.vmem [resolvable:$true] %s54_s14  ;;  %s79_s17 = int_to_ptr.hbm [resolvable:$true] %s78_s17 }
  0x16   :  { %60 = dma.hbm_to_vmem [thread:$0]  %s53_s28, 1024, %s55_s14, [#allocation8], %s4473_s1, %s4473_s1, %s4474_s16  }
  0x17   :  { %s102_s2 = sshll.u32 %s6996_s6, 4  ;;  %s4481_s3 = smov [#allocation12]   ;;  %s103_s2 = int_to_ptr.hbm [resolvable:$true] %s102_s2 }
  0x18   :  { %s80_s20 = sshll.u32 %s4481_s3, 4  ;;  %s4482_s21 = smov [#allocation15]   ;;  %s81_s20 = int_to_ptr.vmem [resolvable:$true] %s80_s20 }
  0x19   :  { %86 = dma.hbm_to_vmem [thread:$0]  %s79_s17, 1024, %s81_s20, [#allocation11], %s4473_s1, %s4473_s1, %s4474_s16  }
  0x1a   :  { %s104_s4 = sshll.u32 %s4482_s21, 4  ;;  %s4483_s22 = smov 512   ;;  %s105_s4 = int_to_ptr.vmem [resolvable:$true] %s104_s4 }
  0x1b   :  { %s4484_s5 = smov 32   ;;  %s128_s25 = sshll.u32 %s6998_s8, 4  ;;  %s129_s25 = int_to_ptr.hbm [resolvable:$true] %s128_s25 }
  0x1c   :  { %110 = dma.hbm_to_vmem [thread:$0]  %s103_s2, 8192, %s105_s4, [#allocation14], %s4483_s22, %s4483_s22, %s4484_s5  }
  0x1d   :  { %s4485_s6 = smov [#allocation18]   ;;  %s141_s28 = sshll.u32 %s6999_s9, 4  ;;  %s142_s28 = int_to_ptr.hbm [resolvable:$true] %s141_s28 }
  0x1e   :  { %s130_s26 = sshll.u32 %s4485_s6, 4  ;;  %s4486_s29 = smov 384   ;;  %s131_s26 = int_to_ptr.vmem [resolvable:$true] %s130_s26 }
  0x1f   :  { %s4487_s30 = smov 24   ;;  %s4488_s13 = smov [#allocation19]  }
  0x20   :  { %136 = dma.hbm_to_vmem [thread:$0]  %s129_s25, 6144, %s131_s26, [#allocation17], %s4486_s29, %s4486_s29, %s4487_s30  }
  0x21   :  { %s143_s14 = sshll.u32 %s4488_s13, 4  ;;  %s144_s14 = int_to_ptr.vmem [resolvable:$true] %s143_s14 }
  0x22   :  { %149 = dma.hbm_to_vmem [thread:$0]  %s142_s28, 6144, %s144_s14, [#allocation20], %s4486_s29, %s4486_s29, %s4487_s30  }
  0x23   :  { %4457 = dma.done.wait [#allocation5], 128  }
  0x24   :  { %4458 = vsyncadd [#allocation5], 4294967168 }
  0x25   :  { %4459 = dma.done.wait [#allocation8], 1152  }
  0x26   :  { %4460 = vsyncadd [#allocation8], 4294966144 }
  0x27   :  { %4461 = dma.done.wait [#allocation11], 2048  }
  0x28   :  { %4462 = vsyncadd [#allocation11], 4294965248 }
  0x29   :  { %4463 = dma.done.wait [#allocation14], 8320  }
  0x2a   :  { %4464 = vsyncadd [#allocation14], 4294958976 }
  0x2b   :  { %4465 = dma.done.wait [#allocation17], 8192  }
  0x2c   :  { %4466 = vsyncadd [#allocation17], 4294959104 }
  0x2d   :  { %4467 = dma.done.wait [#allocation20], 6144  }
  0x2e   :  { %4468 = vsyncadd [#allocation20], 4294961152  ;;  %v528_v0 = vld [vmem:[#allocation15 + $0x1e0] sm:$0xff]  ;;  %v287_v4 = vld [vmem:[#allocation18 + $0x170] sm:$0xff]  ;;  %s3346_s19 = sshll.u32 %s7002_s12, 4  ;;  %s3347_s19 = int_to_ptr.hbm [resolvable:$true] %s3346_s19 }
  0x2f   :  { %v524_v1 = vld [vmem:[#allocation15 + $0x1c0] sm:$0xff]  ;;  %598 = vmatpush.msra.mxu3 %v528_v0  ;;  %3380 = vmatpush.msra.mxu2 %v287_v4  ;;  %v284_v6 = vld [vmem:[#allocation18 + $0x158] sm:$0xff]  ;;  %v278_v9 = vld [vmem:[#allocation18 + $0x128] sm:$0xff] }
  0x30   :  { %v520_v2 = vld [vmem:[#allocation15 + $0x1a0] sm:$0xff]  ;;  %330 = vmatpush.msra.mxu1 %v287_v4  ;;  %v275_v11 = vld [vmem:[#allocation18 + $0x110] sm:$0xff]  ;;  %v272_v14 = vld [vmem:[#allocation18 + $0xf8] sm:$0xff] }
  0x31   :  { %599 = vmatpush.msra.mxu3 %v524_v1  ;;  %v516_v3 = vld [vmem:[#allocation15 + $0x180] sm:$0xff]  ;;  %3381 = vmatpush.msra.mxu2 %v284_v6  ;;  %v266_v17 = vld [vmem:[#allocation18 + $0xc8] sm:$0xff]  ;;  %v263_v19 = vld [vmem:[#allocation18 + $0xb0] sm:$0xff] }
  0x32   :  { %v512_v5 = vld [vmem:[#allocation15 + $0x160] sm:$0xff]  ;;  %331 = vmatpush.msra.mxu1 %v284_v6  ;;  %v260_v21 = vld [vmem:[#allocation18 + $0x98] sm:$0xff]  ;;  %v254_v25 = vld [vmem:[#allocation18 + $0x68] sm:$0xff] }
  0x33   :  { %600 = vmatpush.msra.mxu3 %v520_v2  ;;  %v281_v7 = vld [vmem:[#allocation18 + $0x140] sm:$0xff]  ;;  %v251_v27 = vld [vmem:[#allocation18 + $0x50] sm:$0xff]  ;;  %v4598_v29 = vld [vmem:[#allocation13] sm:$0xff] }
  0x34   :  { %v508_v8 = vld [vmem:[#allocation15 + $0x140] sm:$0xff]  ;;  %3382 = vmatpush.msra.mxu2 %v281_v7  ;;  %332 = vmatpush.msra.mxu1 %v281_v7  ;;  %v248_v30 = vld [vmem:[#allocation18 + $0x38] sm:$0xff]  ;;  %v242_v32 = vld [vmem:[#allocation18 + $0x8] sm:$0xff] }
  0x35   :  { %601 = vmatpush.msra.mxu3 %v516_v3  ;;  %v504_v10 = vld [vmem:[#allocation15 + $0x120] sm:$0xff]  ;;  %v4601_v33 = vld [vmem:[#allocation12 + $0x20] sm:$0xff]  ;;  %v282_v37 = vld [vmem:[#allocation18 + $0x148] sm:$0xff] }
  0x36   :  { %v500_v12 = vld [vmem:[#allocation15 + $0x100] sm:$0xff]  ;;  %3383 = vmatpush.msra.mxu2 %v278_v9  ;;  %333 = vmatpush.msra.mxu1 %v278_v9  ;;  %v288_v34 = vld [vmem:[#allocation18 + $0x178] sm:$0xff]  ;;  %v279_v38 = vld [vmem:[#allocation18 + $0x130] sm:$0xff] }
  0x37   :  { %602 = vmatpush.msra.mxu3 %v512_v5  ;;  %v496_v13 = vld [vmem:[#allocation15 + $0xe0] sm:$0xff]  ;;  %v4604_v36 = vld [vmem:[#allocation12] sm:$0xff]  ;;  %v270_v43 = vld [vmem:[#allocation18 + $0xe8] sm:$0xff] }
  0x38   :  { %3384 = vmatpush.msra.mxu2 %v275_v11  ;;  %v269_v15 = vld [vmem:[#allocation18 + $0xe0] sm:$0xff]  ;;  %334 = vmatpush.msra.mxu1 %v275_v11  ;;  %v276_v40 = vld [vmem:[#allocation18 + $0x118] sm:$0xff]  ;;  %v267_v44 = vld [vmem:[#allocation18 + $0xd0] sm:$0xff] }
  0x39   :  { %603 = vmatpush.msra.mxu3 %v508_v8  ;;  %v492_v16 = vld [vmem:[#allocation15 + $0xc0] sm:$0xff]  ;;  %v4613_v45 = vld [vmem:[#allocation12 + $0x30] sm:$0xff]  ;;  %v264_v46 = vld [vmem:[#allocation18 + $0xb8] sm:$0xff] }
  0x3a   :  { %3385 = vmatpush.msra.mxu2 %v272_v14  ;;  %335 = vmatpush.msra.mxu1 %v272_v14  ;;  %v488_v18 = vld [vmem:[#allocation15 + $0xa0] sm:$0xff]  ;;  %v4616_v48 = vld [vmem:[#allocation12 + $0x10] sm:$0xff]  ;;  %v255_v50 = vld [vmem:[#allocation18 + $0x70] sm:$0xff] }
  0x3b   :  { %604 = vmatpush.msra.mxu3 %v504_v10  ;;  %v484_v20 = vld [vmem:[#allocation15 + $0x80] sm:$0xff]  ;;  %v258_v49 = vld [vmem:[#allocation18 + $0x88] sm:$0xff]  ;;  %v4619_v51 = vld [vmem:[#allocation12 + $0x38] sm:$0xff] }
  0x3c   :  { %3386 = vmatpush.msra.mxu2 %v269_v15  ;;  %336 = vmatpush.msra.mxu1 %v269_v15  ;;  %v480_v22 = vld [vmem:[#allocation15 + $0x60] sm:$0xff]  ;;  %v252_v52 = vld [vmem:[#allocation18 + $0x58] sm:$0xff]  ;;  %v4622_v54 = vld [vmem:[#allocation12 + $0x18] sm:$0xff] }
  0x3d   :  { %605 = vmatpush.msra.mxu3 %v500_v12  ;;  %v257_v23 = vld [vmem:[#allocation18 + $0x80] sm:$0xff]  ;;  %v246_v55 = vld [vmem:[#allocation18 + $0x28] sm:$0xff]  ;;  %v243_v56 = vld [vmem:[#allocation18 + $0x10] sm:$0xff] }
  0x3e   :  { %3387 = vmatpush.msra.mxu2 %v266_v17  ;;  %337 = vmatpush.msra.mxu1 %v266_v17  ;;  %v476_v24 = vld [vmem:[#allocation15 + $0x40] sm:$0xff]  ;;  %v547_v57 = vld [vmem:[#allocation16 + $0x78] sm:$0xff]  ;;  %v546_v58 = vld [vmem:[#allocation16 + $0x70] sm:$0xff] }
  0x3f   :  { %606 = vmatpush.msra.mxu3 %v496_v13  ;;  %v472_v26 = vld [vmem:[#allocation15 + $0x20] sm:$0xff]  ;;  %v545_v59 = vld [vmem:[#allocation16 + $0x68] sm:$0xff]  ;;  %v543_v61 = vld [vmem:[#allocation16 + $0x58] sm:$0xff] }
  0x40   :  { %3388 = vmatpush.msra.mxu2 %v263_v19  ;;  %338 = vmatpush.msra.mxu1 %v263_v19  ;;  %v468_v28 = vld [vmem:[#allocation15] sm:$0xff]  ;;  %v542_v62 = vld [vmem:[#allocation16 + $0x50] sm:$0xff]  ;;  %v541_v63 = vld [vmem:[#allocation16 + $0x48] sm:$0xff] }
  0x41   :  { %607 = vmatpush.msra.mxu3 %v492_v16  ;;  %v245_v31 = vld [vmem:[#allocation18 + $0x20] sm:$0xff]  ;;  %v539_v1 = vld [vmem:[#allocation16 + $0x38] sm:$0xff]  ;;  %v538_v2 = vld [vmem:[#allocation16 + $0x30] sm:$0xff] }
  0x42   :  { %3389 = vmatpush.msra.mxu2 %v260_v21  ;;  %339 = vmatpush.msra.mxu1 %v260_v21  ;;  %v285_v35 = vld [vmem:[#allocation18 + $0x160] sm:$0xff]  ;;  %v537_v3 = vld [vmem:[#allocation16 + $0x28] sm:$0xff]  ;;  %v535_v5 = vld [vmem:[#allocation16 + $0x18] sm:$0xff] }
  0x43   :  { %608 = vmatpush.msra.mxu3 %v488_v18  ;;  %v4607_v39 = vld [vmem:[#allocation12 + $0x28] sm:$0xff]  ;;  %v534_v6 = vld [vmem:[#allocation16 + $0x10] sm:$0xff]  ;;  %v533_v7 = vld [vmem:[#allocation16 + $0x8] sm:$0xff] }
  0x44   :  { %3390 = vmatpush.msra.mxu2 %v257_v23  ;;  %340 = vmatpush.msra.mxu1 %v257_v23  ;;  %v273_v41 = vld [vmem:[#allocation18 + $0x100] sm:$0xff]  ;;  %v688_v9 = vld [vmem:[#allocation10] sm:$0xff]  ;;  %v690_v15 = vld [vmem:[#allocation10 + $0x10] sm:$0xff] }
  0x45   :  { %609 = vmatpush.msra.mxu3 %v484_v20  ;;  %v4610_v42 = vld [vmem:[#allocation12 + $0x8] sm:$0xff]  ;;  %v691_v18 = vld [vmem:[#allocation10 + $0x18] sm:$0xff] }
  0x46   :  { %3391 = vmatpush.msra.mxu2 %v254_v25  ;;  %341 = vmatpush.msra.mxu1 %v254_v25  ;;  %v261_v47 = vld [vmem:[#allocation18 + $0xa0] sm:$0xff] }
  0x47   :  { %610 = vmatpush.msra.mxu3 %v480_v22  ;;  %v249_v53 = vld [vmem:[#allocation18 + $0x40] sm:$0xff]  ;;  %v692_v22 = vld [vmem:[#allocation10 + $0x20] sm:$0xff] }
  0x48   :  { %3392 = vmatpush.msra.mxu2 %v251_v27  ;;  %342 = vmatpush.msra.mxu1 %v251_v27  ;;  %v544_v60 = vld [vmem:[#allocation16 + $0x60] sm:$0xff] }
  0x49   :  { %611 = vmatpush.msra.mxu3 %v476_v24  ;;  %v540_v0 = vld [vmem:[#allocation16 + $0x40] sm:$0xff] }
  0x4a   :  { %3393 = vmatpush.msra.mxu2 %v248_v30  ;;  %343 = vmatpush.msra.mxu1 %v248_v30  ;;  %v536_v4 = vld [vmem:[#allocation16 + $0x20] sm:$0xff] }
  0x4b   :  { %612 = vmatpush.msra.mxu3 %v472_v26  ;;  %v532_v8 = vld [vmem:[#allocation16] sm:$0xff] }
  0x4c   :  { %3394 = vmatpush.msra.mxu2 %v245_v31  ;;  %344 = vmatpush.msra.mxu1 %v245_v31  ;;  %v689_v12 = vld [vmem:[#allocation10 + $0x8] sm:$0xff]  ;;  %v694_v31 = vld [vmem:[#allocation10 + $0x30] sm:$0xff] }
  0x4d   :  { %613 = vmatpush.msra.mxu3 %v468_v28  ;;  %v693_v26 = vld [vmem:[#allocation10 + $0x28] sm:$0xff] }
  0x4e   :  { %614 = vmatmul.f32.vlgmr.msra.gmra.mxu3 %v4598_v29  ;;  %3395 = vmatpush.msra.mxu2 %v242_v32 }
  0x4f   :  { %358 = vmatmul.f32.vlgmr.msra.gmra.mxu2 %v4601_v33  ;;  %345 = vmatpush.msra.mxu1 %v242_v32 }
  0x50   :  { %371 = vmatpush.msrb.mxu2 %v288_v34  ;;  %346 = vmatmul.f32.vlgmr.msra.gmra.mxu1 %v4604_v36 }
  0x52   :  { %372 = vmatpush.msrb.mxu2 %v285_v35 }
  0x54   :  { %373 = vmatpush.msrb.mxu2 %v282_v37  ;;  %v695_v37 = vld [vmem:[#allocation10 + $0x38] sm:$0xff] }
  0x56   :  { %374 = vmatpush.msrb.mxu2 %v279_v38 }
  0x57   :  { %361 = vmatmul.f32.gmra.mxu2 %v4607_v39 }
  0x58   :  { %375 = vmatpush.msrb.mxu2 %v276_v40  ;;  %349 = vmatmul.f32.gmra.mxu1 %v4610_v42 }
  0x5a   :  { %376 = vmatpush.msrb.mxu2 %v273_v41 }
  0x5c   :  { %377 = vmatpush.msrb.mxu2 %v270_v43 }
  0x5e   :  { %378 = vmatpush.msrb.mxu2 %v267_v44 }
  0x5f   :  { %364 = vmatmul.f32.gmra.mxu2 %v4613_v45 }
  0x60   :  { %379 = vmatpush.msrb.mxu2 %v264_v46  ;;  %352 = vmatmul.f32.gmra.mxu1 %v4616_v48 }
  0x62   :  { %380 = vmatpush.msrb.mxu2 %v261_v47 }
  0x64   :  { %381 = vmatpush.msrb.mxu2 %v258_v49 }
  0x66   :  { %382 = vmatpush.msrb.mxu2 %v255_v50 }
  0x67   :  { %367 = vmatmul.f32.gmra.mxu2 %v4619_v51 }
  0x68   :  { %383 = vmatpush.msrb.mxu2 %v252_v52  ;;  %355 = vmatmul.f32.gmra.mxu1 %v4622_v54  ;;  %v286_v52 = vld [vmem:[#allocation18 + $0x168] sm:$0xff] }
  0x69   :  { %289 = vmatpush.msra.mxu0 %v286_v52  ;;  %v3421_v52 = vld [vmem:[#allocation4 + $0x5] ss:$0 sm:$0xff] }
  0x6a   :  { %384 = vmatpush.msrb.mxu2 %v249_v53  ;;  %v283_v53 = vld [vmem:[#allocation18 + $0x150] sm:$0xff] }
  0x6b   :  { %290 = vmatpush.msra.mxu0 %v283_v53  ;;  %v4723_v53 = vld [vmem:[#allocation15 + $0xf0] sm:$0xff] }
  0x6c   :  { %385 = vmatpush.msrb.mxu2 %v246_v55  ;;  %v280_v55 = vld [vmem:[#allocation18 + $0x138] sm:$0xff] }
  0x6d   :  { %291 = vmatpush.msra.mxu0 %v280_v55  ;;  %v4725_v55 = vld [vmem:[#allocation15 + $0xf8] sm:$0xff] }
  0x6e   :  { %386 = vmatpush.msrb.mxu2 %v243_v56  ;;  %7274 = vst [vmem:[#allocation41_spill] sm:$0xff] %v4725_v55 }
  0x6f   :  { %387 = vmatmul.f32.vlgmr.msrb.gmra.mxu2 %v4604_v36 }
  0x70   :  { %712 = vmatpush.msra.mxu2 %v547_v57  ;;  %v277_v57 = vld [vmem:[#allocation18 + $0x120] sm:$0xff] }
  0x71   :  { %292 = vmatpush.msra.mxu0 %v277_v57  ;;  %v208_v57 = vld [vmem:[#allocation7] sm:$0xff] }
  0x72   :  { %713 = vmatpush.msra.mxu2 %v546_v58  ;;  %v274_v58 = vld [vmem:[#allocation18 + $0x108] sm:$0xff]  ;;  %vm222_vm0 = vcmp.ge.s32.totalorder %v3421_v52, %v208_v57 }
  0x73   :  { %293 = vmatpush.msra.mxu0 %v274_v58  ;;  %v3416_v58 = vld [vmem:[#allocation4] ss:$0 sm:$0xff] }
  0x74   :  { %714 = vmatpush.msra.mxu2 %v545_v59  ;;  %v271_v59 = vld [vmem:[#allocation18 + $0xf0] sm:$0xff]  ;;  %vm217_vm4 = vcmp.ge.s32.totalorder %v3416_v58, %v208_v57 }
  0x75   :  { %294 = vmatpush.msra.mxu0 %v271_v59  ;;  %v3417_v59 = vld [vmem:[#allocation4 + $0x1] ss:$0 sm:$0xff] }
  0x76   :  { %715 = vmatpush.msra.mxu2 %v544_v60  ;;  %v268_v60 = vld [vmem:[#allocation18 + $0xd8] sm:$0xff]  ;;  %vm218_vm1 = vcmp.ge.s32.totalorder %v3417_v59, %v208_v57 }
  0x77   :  { %390 = vmatmul.f32.gmra.mxu2 %v4610_v42  ;;  %295 = vmatpush.msra.mxu0 %v268_v60  ;;  %v3420_v60 = vld [vmem:[#allocation4 + $0x4] ss:$0 sm:$0xff] }
  0x78   :  { %716 = vmatpush.msra.mxu2 %v543_v61  ;;  %vm221_vm2 = vcmp.ge.s32.totalorder %v3420_v60, %v208_v57  ;;  %v4791_v60 = vld [vmem:[#allocation15 + $0x48] sm:$0xff] }
  0x7a   :  { %717 = vmatpush.msra.mxu2 %v542_v62  ;;  %v265_v62 = vld [vmem:[#allocation18 + $0xc0] sm:$0xff] }
  0x7b   :  { %296 = vmatpush.msra.mxu0 %v265_v62  ;;  %v3422_v62 = vld [vmem:[#allocation4 + $0x6] ss:$0 sm:$0xff] }
  0x7c   :  { %718 = vmatpush.msra.mxu2 %v541_v63  ;;  %v262_v63 = vld [vmem:[#allocation18 + $0xa8] sm:$0xff]  ;;  %vm223_vm3 = vcmp.ge.s32.totalorder %v3422_v62, %v208_v57  ;;  %v4793_v62 = vld [vmem:[#allocation15 + $0x50] sm:$0xff] }
  0x7d   :  { %297 = vmatpush.msra.mxu0 %v262_v63  ;;  %v4730_v63 = vld [vmem:[#allocation15 + $0xc8] sm:$0xff] }
  0x7e   :  { %719 = vmatpush.msra.mxu2 %v540_v0  ;;  %v259_v0 = vld [vmem:[#allocation18 + $0x90] sm:$0xff] }
  0x7f   :  { %393 = vmatmul.f32.gmra.mxu2 %v4616_v48  ;;  %298 = vmatpush.msra.mxu0 %v259_v0  ;;  %v4732_v0 = vld [vmem:[#allocation15 + $0xd0] sm:$0xff] }
  0x80   :  { %720 = vmatpush.msra.mxu2 %v539_v1  ;;  %v256_v1 = vld [vmem:[#allocation18 + $0x78] sm:$0xff] }
  0x81   :  { %299 = vmatpush.msra.mxu0 %v256_v1  ;;  %v4734_v1 = vld [vmem:[#allocation15 + $0xd8] sm:$0xff] }
  0x82   :  { %721 = vmatpush.msra.mxu2 %v538_v2  ;;  %7275 = vst [vmem:[#allocation42_spill] sm:$0xff] %v4734_v1 }
  0x84   :  { %722 = vmatpush.msra.mxu2 %v537_v3  ;;  %v253_v3 = vld [vmem:[#allocation18 + $0x60] sm:$0xff] }
  0x85   :  { %300 = vmatpush.msra.mxu0 %v253_v3  ;;  %v3418_v3 = vld [vmem:[#allocation4 + $0x2] ss:$0 sm:$0xff] }
  0x86   :  { %723 = vmatpush.msra.mxu2 %v536_v4  ;;  %v250_v4 = vld [vmem:[#allocation18 + $0x48] sm:$0xff]  ;;  %vm219_vm5 = vcmp.ge.s32.totalorder %v3418_v3, %v208_v57 }
  0x87   :  { %396 = vmatmul.f32.gmra.mxu2 %v4622_v54  ;;  %301 = vmatpush.msra.mxu0 %v250_v4  ;;  %v3419_v4 = vld [vmem:[#allocation4 + $0x3] ss:$0 sm:$0xff] }
  0x88   :  { %724 = vmatpush.msra.mxu2 %v535_v5  ;;  %v247_v5 = vld [vmem:[#allocation18 + $0x30] sm:$0xff]  ;;  %vm220_vm6 = vcmp.ge.s32.totalorder %v3419_v4, %v208_v57 }
  0x89   :  { %302 = vmatpush.msra.mxu0 %v247_v5  ;;  %v3423_v5 = vld [vmem:[#allocation4 + $0x7] ss:$0 sm:$0xff]  ;;  %v4820_v4 = vld [vmem:[#allocation15 + $0x30] sm:$0xff] }
  0x8a   :  { %725 = vmatpush.msra.mxu2 %v534_v6  ;;  %v244_v6 = vld [vmem:[#allocation18 + $0x18] sm:$0xff]  ;;  %vm224_vm7 = vcmp.ge.s32.totalorder %v3423_v5, %v208_v57  ;;  %v4818_v57 = vld [vmem:[#allocation15 + $0x28] sm:$0xff] }
  0x8b   :  { %303 = vmatpush.msra.mxu0 %v244_v6  ;;  %v4739_v6 = vld [vmem:[#allocation15 + $0xa8] sm:$0xff]  ;;  %v4822_v5 = vld [vmem:[#allocation15 + $0x38] sm:$0xff] }
  0x8c   :  { %726 = vmatpush.msra.mxu2 %v533_v7  ;;  %7288 = vst [vmem:[#allocation55_spill] sm:$0xff] %v4822_v5 }
  0x8e   :  { %727 = vmatpush.msra.mxu2 %v532_v8  ;;  %v241_v8 = vld [vmem:[#allocation18] sm:$0xff] }
  0x8f   :  { %399 = vmatmul.f32.gmra.mxu2 %v4601_v33  ;;  %304 = vmatpush.msra.mxu0 %v241_v8  ;;  %v4741_v8 = vld [vmem:[#allocation15 + $0xb0] sm:$0xff] }
  0x90   :  { %305 = vmatmul.f32.vlgmr.msra.gmra.mxu0 %v4604_v36 }
  0x97   :  { %402 = vmatmul.f32.gmra.mxu2 %v4607_v39 }
  0x98   :  { %308 = vmatmul.f32.gmra.mxu0 %v4610_v42  ;;  %v4690_v42 = vld [vmem:[#allocation15 + $0x190] sm:$0xff] }
  0x9f   :  { %405 = vmatmul.f32.gmra.mxu2 %v4613_v45 }
  0xa0   :  { %311 = vmatmul.f32.gmra.mxu0 %v4616_v48  ;;  %v4696_v48 = vld [vmem:[#allocation15 + $0x170] sm:$0xff] }
  0xa7   :  { %408 = vmatmul.f32.gmra.mxu2 %v4619_v51 }
  0xa8   :  { %314 = vmatmul.f32.gmra.mxu0 %v4622_v54  ;;  %v4721_v54 = vld [vmem:[#allocation15 + $0xe8] sm:$0xff] }
  0xb0   :  { %317 = vmatmul.f32.gmra.mxu0 %v4601_v33  ;;  %v4489_v33 = vmov 0.0  }
  0xb1   :  { %v4770_v52 = vsel %vm218_vm1, -inf, %v4489_v33  ;;  %v4799_v58 = vsel %vm220_vm6, -inf, %v4489_v33  ;;  %v4802_v3 = vsel %vm224_vm7, -inf, %v4489_v33 }
  0xb2   :  { %7280 = vst [vmem:[#allocation47_spill] sm:$0xff] %v4770_v52 }
  0xb3   :  { %7286 = vst [vmem:[#allocation53_spill] sm:$0xff] %v4799_v58 }
  0xb4   :  { %7287 = vst [vmem:[#allocation54_spill] sm:$0xff] %v4802_v3 }
  0xb8   :  { %320 = vmatmul.f32.gmra.mxu0 %v4607_v39 }
  0xc0   :  { %323 = vmatmul.f32.gmra.mxu0 %v4613_v45 }
  0xc8   :  { %326 = vmatmul.f32.gmra.mxu0 %v4619_v51 }
  0xd1   :  { %v615_v10 = vpop.f32.mrf.mxu3 }
  0xd2   :  { %v696_v11 = vadd.f32 %v688_v9, %v615_v10  ;;  %v697_v13 = vadd.f32 %v689_v12, %v615_v10  ;;  %v698_v16 = vadd.f32 %v690_v15, %v615_v10  ;;  %v4633_v19 = vpop.f32.mrf.mxu2  ;;  %v699_v20 = vadd.f32 %v691_v18, %v615_v10  ;;  %v531_v12 = vld [vmem:[#allocation15 + $0x1f8] sm:$0xff] }
  0xd3   :  { %7262 = vst [vmem:[#allocation29_spill] sm:$0xff] %v4633_v19  ;;  %v700_v23 = vadd.f32 %v692_v22, %v615_v10  ;;  %v701_v27 = vadd.f32 %v693_v26, %v615_v10  ;;  %v702_v32 = vadd.f32 %v694_v31, %v615_v10  ;;  %v703_v38 = vadd.f32 %v695_v37, %v615_v10  ;;  %v4664_v10 = vld [vmem:[#allocation15 + $0x1e8] sm:$0xff]  ;;  %v527_v15 = vld [vmem:[#allocation15 + $0x1d8] sm:$0xff] }
  0xd4   :  { %3424 = vtanh.f32 %v696_v11  ;;  %v4666_v11 = vld [vmem:[#allocation15 + $0x1f0] sm:$0xff]  ;;  %618 = vmatpush.msrb.mxu3 %v4664_v10  ;;  %658 = vmatpush.msrb.mxu1 %v531_v12  ;;  %v523_v18 = vld [vmem:[#allocation15 + $0x1b8] sm:$0xff]  ;;  %v4700_v26 = vld [vmem:[#allocation15 + $0x148] sm:$0xff] }
  0xd5   :  { %3426 = vtanh.f32 %v697_v13  ;;  %638 = vmatpush.msrb.mxu0 %v4666_v11  ;;  %v4670_v13 = vld [vmem:[#allocation15 + $0x1c8] sm:$0xff]  ;;  %1005 = vmatpush.msrb.mxu2 %v531_v12  ;;  %v519_v22 = vld [vmem:[#allocation15 + $0x198] sm:$0xff] }
  0xd6   :  { %3428 = vtanh.f32 %v698_v16  ;;  %619 = vmatpush.msrb.mxu3 %v4670_v13  ;;  %659 = vmatpush.msrb.mxu1 %v527_v15  ;;  %v4679_v16 = vld [vmem:[#allocation15 + $0x1a8] sm:$0xff]  ;;  %v4743_v12 = vld [vmem:[#allocation15 + $0xb8] sm:$0xff] }
  0xd7   :  { %3430 = vtanh.f32 %v699_v20  ;;  %1006 = vmatpush.msrb.mxu2 %v527_v15  ;;  %v4706_v31 = vld [vmem:[#allocation15 + $0x128] sm:$0xff]  ;;  %7276 = vst [vmem:[#allocation43_spill] sm:$0xff] %v4743_v12 }
  0xd8   :  { %3432 = vtanh.f32 %v700_v23  ;;  %620 = vmatpush.msrb.mxu3 %v4679_v16  ;;  %660 = vmatpush.msrb.mxu1 %v523_v18  ;;  %v4694_v23 = vld [vmem:[#allocation15 + $0x168] sm:$0xff] }
  0xd9   :  { %3434 = vtanh.f32 %v701_v27  ;;  %1007 = vmatpush.msrb.mxu2 %v523_v18  ;;  %v4702_v27 = vld [vmem:[#allocation15 + $0x150] sm:$0xff]  ;;  %v4749_v18 = vld [vmem:[#allocation15 + $0x88] sm:$0xff] }
  0xda   :  { %v3425_v14 = vpop.eup %3424  ;;  %v4635_v24 = vpop.f32.mrf.mxu2  ;;  %3436 = vtanh.f32 %v702_v32  ;;  %661 = vmatpush.msrb.mxu1 %v519_v22  ;;  %v4708_v32 = vld [vmem:[#allocation15 + $0x130] sm:$0xff] }
  0xdb   :  { %728 = vmatmul.f32.vlgmr.msra.gmra.mxu2 %v3425_v14  ;;  %v3427_v17 = vpop.eup %3426  ;;  %7263 = vst [vmem:[#allocation30_spill] sm:$0xff] %v4635_v24  ;;  %3438 = vtanh.f32 %v703_v38  ;;  %v4672_v14 = vld [vmem:[#allocation15 + $0x1d0] sm:$0xff]  ;;  %v4715_v38 = vld [vmem:[#allocation15 + $0x108] sm:$0xff]  ;;  %v4795_v24 = vld [vmem:[#allocation15 + $0x58] sm:$0xff] }
  0xdc   :  { %v3429_v21 = vpop.eup %3428  ;;  %639 = vmatpush.msrb.mxu0 %v4672_v14  ;;  %1008 = vmatpush.msrb.mxu2 %v519_v22  ;;  %v4751_v22 = vld [vmem:[#allocation15 + $0x90] sm:$0xff]  ;;  %7285 = vst [vmem:[#allocation52_spill] sm:$0xff] %v4795_v24 }
  0xdd   :  { %v3431_v25 = vpop.eup %3430 }
  0xde   :  { %v3433_v28 = vpop.eup %3432 }
  0xdf   :  { %v3435_v34 = vpop.eup %3434 }
  0xe0   :  { %v3437_v40 = vpop.eup %3436 }
  0xe1   :  { %v3439_v43 = vpop.eup %3438 }
  0xe2   :  { %v4637_v30 = vpop.f32.mrf.mxu2 }
  0xe3   :  { %731 = vmatmul.f32.gmra.mxu2 %v3427_v17  ;;  %7264 = vst [vmem:[#allocation31_spill] sm:$0xff] %v4637_v30  ;;  %v4681_v17 = vld [vmem:[#allocation15 + $0x1b0] sm:$0xff]  ;;  %v4781_v30 = vsel %vm217_vm4, -inf, %v4489_v33 }
  0xe4   :  { %640 = vmatpush.msrb.mxu0 %v4681_v17  ;;  %7283 = vst [vmem:[#allocation50_spill] sm:$0xff] %v4781_v30 }
  0xe6   :  { %641 = vmatpush.msrb.mxu0 %v4690_v42 }
  0xe8   :  { %642 = vmatpush.msrb.mxu0 %v4696_v48 }
  0xea   :  { %v4639_v35 = vpop.f32.mrf.mxu2  ;;  %643 = vmatpush.msrb.mxu0 %v4702_v27 }
  0xeb   :  { %734 = vmatmul.f32.gmra.mxu2 %v3429_v21  ;;  %7265 = vst [vmem:[#allocation32_spill] sm:$0xff] %v4639_v35  ;;  %v4688_v21 = vld [vmem:[#allocation15 + $0x188] sm:$0xff]  ;;  %v4773_v35 = vsel %vm221_vm2, -inf, %v4489_v33 }
  0xec   :  { %621 = vmatpush.msrb.mxu3 %v4688_v21  ;;  %644 = vmatpush.msrb.mxu0 %v4708_v32  ;;  %7281 = vst [vmem:[#allocation48_spill] sm:$0xff] %v4773_v35 }
  0xee   :  { %622 = vmatpush.msrb.mxu3 %v4694_v23 }
  0xf0   :  { %623 = vmatpush.msrb.mxu3 %v4700_v26 }
  0xf2   :  { %v4641_v41 = vpop.f32.mrf.mxu2  ;;  %624 = vmatpush.msrb.mxu3 %v4706_v31 }
  0xf3   :  { %737 = vmatmul.f32.gmra.mxu2 %v3431_v25  ;;  %7266 = vst [vmem:[#allocation33_spill] sm:$0xff] %v4641_v41  ;;  %v515_v25 = vld [vmem:[#allocation15 + $0x178] sm:$0xff]  ;;  %v4900_v41 = vld [vmem:[#allocation19 + $0x108] sm:$0xff] }
  0xf4   :  { %662 = vmatpush.msrb.mxu1 %v515_v25  ;;  %1009 = vmatpush.msrb.mxu2 %v515_v25  ;;  %v4753_v25 = vld [vmem:[#allocation15 + $0x98] sm:$0xff]  ;;  %7299 = vst [vmem:[#allocation66_spill] sm:$0xff] %v4900_v41 }
  0xf5   :  { %625 = vmatpush.msrb.mxu3 %v4715_v38  ;;  %7277 = vst [vmem:[#allocation44_spill] sm:$0xff] %v4753_v25 }
  0xf7   :  { %626 = vmatpush.msrb.mxu3 %v4721_v54 }
  0xf9   :  { %627 = vmatpush.msrb.mxu3 %v4730_v63 }
  0xfa   :  { %v4643_v44 = vpop.f32.mrf.mxu2 }
  0xfb   :  { %740 = vmatmul.f32.gmra.mxu2 %v3433_v28  ;;  %7267 = vst [vmem:[#allocation34_spill] sm:$0xff] %v4643_v44  ;;  %v511_v28 = vld [vmem:[#allocation15 + $0x158] sm:$0xff]  ;;  %628 = vmatpush.msrb.mxu3 %v4739_v6  ;;  %v4852_v44 = vld [vmem:[#allocation19 + $0x170] sm:$0xff] }
  0xfc   :  { %663 = vmatpush.msrb.mxu1 %v511_v28  ;;  %1010 = vmatpush.msrb.mxu2 %v511_v28  ;;  %v4757_v28 = vsel %vm222_vm0, -inf, %v4489_v33 }
  0xfd   :  { %7278 = vst [vmem:[#allocation45_spill] sm:$0xff] %v4757_v28  ;;  %629 = vmatpush.msrb.mxu3 %v4749_v18 }
 0x102   :  { %v4645_v46 = vpop.f32.mrf.mxu2 }
 0x103   :  { %743 = vmatmul.f32.gmra.mxu2 %v3435_v34  ;;  %7268 = vst [vmem:[#allocation35_spill] sm:$0xff] %v4645_v46  ;;  %v507_v34 = vld [vmem:[#allocation15 + $0x138] sm:$0xff] }
 0x104   :  { %664 = vmatpush.msrb.mxu1 %v507_v34  ;;  %1011 = vmatpush.msrb.mxu2 %v507_v34  ;;  %v4762_v34 = vld [vmem:[#allocation15 + $0x68] sm:$0xff]  ;;  %v4845_v46 = vld [vmem:[#allocation15 + $0x18] sm:$0xff] }
 0x105   :  { %630 = vmatpush.msrb.mxu3 %v4762_v34  ;;  %7289 = vst [vmem:[#allocation56_spill] sm:$0xff] %v4845_v46 }
 0x107   :  { %631 = vmatpush.msrb.mxu3 %v4791_v60 }
 0x109   :  { %632 = vmatpush.msrb.mxu3 %v4818_v57 }
 0x10a   :  { %v4647_v47 = vpop.f32.mrf.mxu2 }
 0x10b   :  { %746 = vmatmul.f32.gmra.mxu2 %v3437_v40  ;;  %7269 = vst [vmem:[#allocation36_spill] sm:$0xff] %v4647_v47  ;;  %v4717_v40 = vld [vmem:[#allocation15 + $0x110] sm:$0xff] }
 0x10c   :  { %645 = vmatpush.msrb.mxu0 %v4717_v40 }
 0x10e   :  { %646 = vmatpush.msrb.mxu0 %v4723_v53 }
 0x110   :  { %647 = vmatpush.msrb.mxu0 %v4732_v0 }
 0x112   :  { %v4649_v49 = vpop.f32.mrf.mxu2  ;;  %648 = vmatpush.msrb.mxu0 %v4741_v8 }
 0x113   :  { %749 = vmatmul.f32.gmra.mxu2 %v3439_v43  ;;  %7270 = vst [vmem:[#allocation37_spill] sm:$0xff] %v4649_v49  ;;  %v503_v43 = vld [vmem:[#allocation15 + $0x118] sm:$0xff] }
 0x114   :  { %665 = vmatpush.msrb.mxu1 %v503_v43  ;;  %1012 = vmatpush.msrb.mxu2 %v503_v43  ;;  %v4764_v43 = vld [vmem:[#allocation15 + $0x70] sm:$0xff] }
 0x115   :  { %649 = vmatpush.msrb.mxu0 %v4751_v22 }
 0x116   :  { %666 = vmatpush.msrb.mxu1 %v4725_v55  ;;  %1013 = vmatpush.msrb.mxu2 %v4725_v55 }
 0x117   :  { %650 = vmatpush.msrb.mxu0 %v4764_v43 }
 0x118   :  { %667 = vmatpush.msrb.mxu1 %v4734_v1  ;;  %1014 = vmatpush.msrb.mxu2 %v4734_v1  ;;  %v4878_v1 = vld [vmem:[#allocation19 + $0x148] sm:$0xff] }
 0x119   :  { %651 = vmatpush.msrb.mxu0 %v4793_v62  ;;  %7295 = vst [vmem:[#allocation62_spill] sm:$0xff] %v4878_v1 }
 0x11a   :  { %v4651_v50 = vpop.f32.mrf.mxu2  ;;  %668 = vmatpush.msrb.mxu1 %v4743_v12  ;;  %1015 = vmatpush.msrb.mxu2 %v4743_v12  ;;  %v4876_v12 = vld [vmem:[#allocation19 + $0x140] sm:$0xff] }
 0x11b   :  { %7271 = vst [vmem:[#allocation38_spill] sm:$0xff] %v4651_v50  ;;  %v4784_v50 = vsel %vm219_vm5, -inf, %v4489_v33  ;;  %652 = vmatpush.msrb.mxu0 %v4820_v4 }
 0x11c   :  { %669 = vmatpush.msrb.mxu1 %v4753_v25  ;;  %7284 = vst [vmem:[#allocation51_spill] sm:$0xff] %v4784_v50  ;;  %1016 = vmatpush.msrb.mxu2 %v4753_v25  ;;  %v4874_v25 = vld [vmem:[#allocation19 + $0x138] sm:$0xff] }
 0x11d   :  { %7293 = vst [vmem:[#allocation60_spill] sm:$0xff] %v4874_v25 }
 0x11e   :  { %7294 = vst [vmem:[#allocation61_spill] sm:$0xff] %v4876_v12 }
 0x122   :  { %v4653_v56 = vpop.f32.mrf.mxu2 }
 0x123   :  { %7272 = vst [vmem:[#allocation39_spill] sm:$0xff] %v4653_v56  ;;  %v4776_v56 = vsel %vm223_vm3, -inf, %v4489_v33 }
 0x124   :  { %7282 = vst [vmem:[#allocation49_spill] sm:$0xff] %v4776_v56 }
 0x12a   :  { %v4655_v61 = vpop.f32.mrf.mxu2 }
 0x12b   :  { %7273 = vst [vmem:[#allocation40_spill] sm:$0xff] %v4655_v61  ;;  %v4766_v61 = vld [vmem:[#allocation15 + $0x78] sm:$0xff] }
 0x12c   :  { %7279 = vst [vmem:[#allocation46_spill] sm:$0xff] %v4766_v61  ;;  %670 = vmatpush.msrb.mxu1 %v4766_v61  ;;  %1017 = vmatpush.msrb.mxu2 %v4766_v61  ;;  %v4931_v61 = vld [vmem:[#allocation19 + $0xc0] sm:$0xff] }
 0x12d   :  { %7308 = vst [vmem:[#allocation75_spill] sm:$0xff] %v4931_v61 }
 0x12e   :  { %671 = vmatpush.msrb.mxu1 %v4795_v24  ;;  %1018 = vmatpush.msrb.mxu2 %v4795_v24 }
 0x130   :  { %672 = vmatpush.msrb.mxu1 %v4822_v5  ;;  %1019 = vmatpush.msrb.mxu2 %v4822_v5 }
 0x132   :  { %673 = vmatpush.msrb.mxu1 %v4845_v46  ;;  %1020 = vmatpush.msrb.mxu2 %v4845_v46 }
 0x133   :  { %674 = vmatmul.f32.vlgmr.msrb.gmra.mxu1 %v4598_v29 }
 0x15e   :  { %v4657_v2 = vpop.f32.mrf.mxu2 }
 0x166   :  { %v4659_v7 = vpop.f32.mrf.mxu2 }
 0x16e   :  { %v4662_v9 = vpop.f32.mrf.mxu2 }
 0x176   :  { %v4677_v36 = vpop.f32.mrf.mxu2 }
 0x17e   :  { %v4684_v20 = vpop.f32.mrf.mxu2 }
 0x17f   :  { %v4812_v49 = vadd.f32 %v4684_v20, %v4773_v35  ;;  %v755_v20 = vadd.f32 %v4662_v9, %v4784_v50  ;;  %v4843_v9 = vld [vmem:[#allocation15 + $0x10] sm:$0xff]  ;;  %v4868_v35 = vld [vmem:[#allocation19 + $0x160] sm:$0xff] }
 0x180   :  { %653 = vmatpush.msrb.mxu0 %v4843_v9  ;;  %7292 = vst [vmem:[#allocation59_spill] sm:$0xff] %v4868_v35 }
 0x181   :  { %654 = vmatmul.f32.vlgmr.msrb.gmra.mxu0 %v4598_v29 }
 0x182   :  { %854 = vmatpush.msra.mxu0 %v4852_v44 }
 0x186   :  { %v4711_v37 = vpop.f32.mrf.mxu2 }
 0x187   :  { %v4788_v59 = vadd.f32 %v4711_v37, %v4757_v28  ;;  %v4808_v37 = vadd.f32 %v4659_v7, %v4770_v52  ;;  %v753_v7 = vadd.f32 %v4657_v2, %v4781_v30  ;;  %v4841_v2 = vld [vmem:[#allocation15 + $0x8] sm:$0xff]  ;;  %v4864_v30 = vld [vmem:[#allocation19 + $0x150] sm:$0xff] }
 0x188   :  { %633 = vmatpush.msrb.mxu3 %v4841_v2 }
 0x189   :  { %v762_v47 = vmax.f32 %v4808_v37, %v4788_v59  ;;  %634 = vmatmul.f32.vlgmr.msrb.gmra.mxu3 %v4598_v29 }
 0x18e   :  { %v747_v15 = vpop.f32.mrf.mxu2 }
 0x18f   :  { %v4815_v19 = vadd.f32 %v747_v15, %v4776_v56  ;;  %v4833_v15 = vadd.f32 %v4677_v36, %v4799_v58  ;;  %v4850_v36 = vld [vmem:[#allocation19 + $0x168] sm:$0xff]  ;;  %v4866_v56 = vld [vmem:[#allocation19 + $0x158] sm:$0xff] }
 0x190   :  { %834 = vmatpush.msra.mxu3 %v4850_v36  ;;  %7291 = vst [vmem:[#allocation58_spill] sm:$0xff] %v4866_v56  ;;  %855 = vmatpush.msra.mxu0 %v4866_v56 }
 0x191   :  { %v763_v58 = vmax.f32 %v755_v20, %v4815_v19 }
 0x192   :  { %835 = vmatpush.msra.mxu3 %v4864_v30  ;;  %856 = vmatpush.msra.mxu0 %v4876_v12  ;;  %v4902_v12 = vld [vmem:[#allocation19 + $0x110] sm:$0xff] }
 0x193   :  { %7300 = vst [vmem:[#allocation67_spill] sm:$0xff] %v4902_v12 }
 0x194   :  { %836 = vmatpush.msra.mxu3 %v4874_v25  ;;  %v4904_v25 = vld [vmem:[#allocation19 + $0x118] sm:$0xff] }
 0x195   :  { %7301 = vst [vmem:[#allocation68_spill] sm:$0xff] %v4904_v25 }
 0x196   :  { %v750_v33 = vpop.f32.mrf.mxu2 }
 0x197   :  { %v4838_v39 = vadd.f32 %v750_v33, %v4802_v3  ;;  %v4854_v33 = vld [vmem:[#allocation19 + $0x178] sm:$0xff]  ;;  %v761_v3 = vmax.f32 %v753_v7, %v4812_v49 }
 0x198   :  { %7290 = vst [vmem:[#allocation57_spill] sm:$0xff] %v4854_v33  ;;  %874 = vmatpush.msra.mxu1 %v4854_v33  ;;  %1215 = vmatpush.msra.mxu2 %v4854_v33 }
 0x199   :  { %v764_v50 = vmax.f32 %v4833_v15, %v4838_v39  ;;  %v765_v52 = vmax.f32 %v761_v3, %v762_v47  ;;  %v4886_v47 = vld [vmem:[#allocation19 + $0x120] sm:$0xff] }
 0x19a   :  { %875 = vmatpush.msra.mxu1 %v4868_v35  ;;  %7296 = vst [vmem:[#allocation63_spill] sm:$0xff] %v4886_v47  ;;  %837 = vmatpush.msra.mxu3 %v4886_v47 }
 0x19b   :  { %v766_v28 = vmax.f32 %v763_v58, %v764_v50  ;;  %v4888_v50 = vld [vmem:[#allocation19 + $0x128] sm:$0xff]  ;;  %v4890_v58 = vld [vmem:[#allocation19 + $0x130] sm:$0xff]  ;;  %1216 = vmatpush.msra.mxu2 %v4868_v35 }
 0x19c   :  { %876 = vmatpush.msra.mxu1 %v4878_v1  ;;  %7297 = vst [vmem:[#allocation64_spill] sm:$0xff] %v4888_v50  ;;  %857 = vmatpush.msra.mxu0 %v4888_v50  ;;  %v4915_v50 = vld [vmem:[#allocation19 + $0xf8] sm:$0xff]  ;;  %v5032_v35 = vld [vmem:[#allocation19 + $0x28] sm:$0xff] }
 0x19d   :  { %v4880_v55 = vmax.f32 %v765_v52, %v766_v28  ;;  %7298 = vst [vmem:[#allocation65_spill] sm:$0xff] %v4890_v58  ;;  %838 = vmatpush.msra.mxu3 %v4900_v41  ;;  %v4933_v41 = vld [vmem:[#allocation19 + $0xc8] sm:$0xff]  ;;  %1217 = vmatpush.msra.mxu2 %v4878_v1  ;;  %v5045_v1 = vld [vmem:[#allocation19 + $0x10] sm:$0xff] }
 0x19e   :  { %877 = vmatpush.msra.mxu1 %v4890_v58  ;;  %858 = vmatpush.msra.mxu0 %v4902_v12  ;;  %7303 = vst [vmem:[#allocation70_spill] sm:$0xff] %v4915_v50  ;;  %v4929_v12 = vld [vmem:[#allocation19 + $0xe8] sm:$0xff] }
 0x19f   :  { %v768_v3 = vsub.f32 %v753_v7, %v4880_v55  ;;  %v769_v28 = vsub.f32 %v4808_v37, %v4880_v55  ;;  %v770_v52 = vsub.f32 %v755_v20, %v4880_v55  ;;  %v771_v45 = vsub.f32 %v4833_v15, %v4880_v55  ;;  %v4913_v15 = vld [vmem:[#allocation19 + $0xf0] sm:$0xff]  ;;  %7307 = vst [vmem:[#allocation74_spill] sm:$0xff] %v4929_v12 }
 0x1a0   :  { %v772_v37 = vsub.f32 %v4812_v49, %v4880_v55  ;;  %878 = vmatpush.msra.mxu1 %v4904_v25  ;;  %7302 = vst [vmem:[#allocation69_spill] sm:$0xff] %v4913_v15  ;;  %839 = vmatpush.msra.mxu3 %v4913_v15  ;;  %v4922_v49 = vld [vmem:[#allocation19 + $0x100] sm:$0xff]  ;;  %v4945_v15 = vld [vmem:[#allocation19 + $0xb0] sm:$0xff]  ;;  %v775_v51 = vsub.f32 %v4838_v39, %v4880_v55 }
 0x1a1   :  { %v776_v56 = vmul.f32 1.442695, %v768_v3  ;;  %v778_v7 = vmul.f32 1.442695, %v769_v28  ;;  %v780_v20 = vmul.f32 1.442695, %v770_v52  ;;  %v773_v3 = vsub.f32 %v4788_v59, %v4880_v55  ;;  %859 = vmatpush.msra.mxu0 %v4915_v50  ;;  %1218 = vmatpush.msra.mxu2 %v4890_v58 }
 0x1a2   :  { %v782_v28 = vmul.f32 1.442695, %v771_v45  ;;  %7304 = vst [vmem:[#allocation71_spill] sm:$0xff] %v4922_v49  ;;  %v4926_v52 = vld [vmem:[#allocation19 + $0xe0] sm:$0xff]  ;;  %879 = vmatpush.msra.mxu1 %v4922_v49  ;;  %v774_v59 = vsub.f32 %v4815_v19, %v4880_v55  ;;  %v784_v45 = vmul.f32 1.442695, %v772_v37 }
 0x1a3   :  { %3440 = vpow2.f32 %v776_v56  ;;  %v4924_v56 = vld [vmem:[#allocation19 + $0xd8] sm:$0xff]  ;;  %7306 = vst [vmem:[#allocation73_spill] sm:$0xff] %v4926_v52  ;;  %860 = vmatpush.msra.mxu0 %v4926_v52  ;;  %v4943_v50 = vld [vmem:[#allocation19 + $0xa8] sm:$0xff]  ;;  %v786_v19 = vmul.f32 1.442695, %v773_v3  ;;  %v4957_v52 = vld [vmem:[#allocation19 + $0x90] sm:$0xff]  ;;  %1219 = vmatpush.msra.mxu2 %v4904_v25 }
 0x1a4   :  { %3442 = vpow2.f32 %v778_v7  ;;  %7305 = vst [vmem:[#allocation72_spill] sm:$0xff] %v4924_v56  ;;  %840 = vmatpush.msra.mxu3 %v4924_v56  ;;  %v4940_v7 = vld [vmem:[#allocation19 + $0xd0] sm:$0xff]  ;;  %880 = vmatpush.msra.mxu1 %v4929_v12  ;;  %v4952_v37 = vld [vmem:[#allocation19 + $0xb8] sm:$0xff]  ;;  %v788_v55 = vmul.f32 1.442695, %v774_v59  ;;  %v4966_v39 = vld [vmem:[#allocation19 + $0xa0] sm:$0xff] }
 0x1a5   :  { %7309 = vst [vmem:[#allocation76_spill] sm:$0xff] %v4933_v41  ;;  %3444 = vpow2.f32 %v780_v20  ;;  %861 = vmatpush.msra.mxu0 %v4933_v41  ;;  %v4959_v56 = vld [vmem:[#allocation19 + $0x98] sm:$0xff]  ;;  %v4973_v41 = vld [vmem:[#allocation19 + $0x80] sm:$0xff]  ;;  %v790_v59 = vmul.f32 1.442695, %v775_v51  ;;  %v4993_v51 = vld [vmem:[#allocation19 + $0x70] sm:$0xff]  ;;  %1220 = vmatpush.msra.mxu2 %v4922_v49 }
 0x1a6   :  { %7310 = vst [vmem:[#allocation77_spill] sm:$0xff] %v4943_v50  ;;  %3446 = vpow2.f32 %v782_v28  ;;  %841 = vmatpush.msra.mxu3 %v4931_v61  ;;  %881 = vmatpush.msra.mxu1 %v4940_v7  ;;  %v4971_v28 = vld [vmem:[#allocation19 + $0x78] sm:$0xff]  ;;  %v4986_v61 = vld [vmem:[#allocation19 + $0x68] sm:$0xff]  ;;  %v5072_v25 = vld [vmem:[#allocation9 + $0x8] sm:$0xff] }
 0x1a7   :  { %7311 = vst [vmem:[#allocation78_spill] sm:$0xff] %v4945_v15  ;;  %3448 = vpow2.f32 %v784_v45  ;;  %862 = vmatpush.msra.mxu0 %v4945_v15  ;;  %v4980_v45 = vld [vmem:[#allocation19 + $0x88] sm:$0xff]  ;;  %1221 = vmatpush.msra.mxu2 %v4929_v12  ;;  %v5074_v49 = vld [vmem:[#allocation15 + $0x180] sm:$0xff] }
 0x1a8   :  { %7312 = vst [vmem:[#allocation79_spill] sm:$0xff] %v4957_v52  ;;  %842 = vmatpush.msra.mxu3 %v4943_v50  ;;  %882 = vmatpush.msra.mxu1 %v4952_v37  ;;  %3450 = vpow2.f32 %v786_v19  ;;  %v4984_v50 = vld [vmem:[#allocation19 + $0x60] sm:$0xff] }
 0x1a9   :  { %v4954_v20 = vpop.eup %3440  ;;  %7313 = vst [vmem:[#allocation80_spill] sm:$0xff] %v4959_v56  ;;  %863 = vmatpush.msra.mxu0 %v4959_v56  ;;  %3452 = vpow2.f32 %v788_v55  ;;  %v4999_v56 = vld [vmem:[#allocation19 + $0x50] sm:$0xff]  ;;  %v5006_v55 = vld [vmem:[#allocation19 + $0x58] sm:$0xff]  ;;  %1222 = vmatpush.msra.mxu2 %v4940_v7 }
 0x1aa   :  { %v4962_v24 = vpop.eup %3442  ;;  %7314 = vst [vmem:[#allocation81_spill] sm:$0xff] %v4971_v28  ;;  %843 = vmatpush.msra.mxu3 %v4957_v52  ;;  %883 = vmatpush.msra.mxu1 %v4966_v39  ;;  %3454 = vpow2.f32 %v790_v59  ;;  %v5019_v59 = vld [vmem:[#allocation19 + $0x40] sm:$0xff] }
 0x1ab   :  { %v792_v3 = vadd.f32 %v4962_v24, %v4954_v20  ;;  %7315 = vst [vmem:[#allocation82_spill] sm:$0xff] %v4973_v41  ;;  %v4976_v5 = vpop.eup %3444  ;;  %864 = vmatpush.msra.mxu0 %v4973_v41  ;;  %1223 = vmatpush.msra.mxu2 %v4952_v37 }
 0x1ac   :  { %7316 = vst [vmem:[#allocation83_spill] sm:$0xff] %v4984_v50  ;;  %v4989_v46 = vpop.eup %3446  ;;  %844 = vmatpush.msra.mxu3 %v4971_v28  ;;  %884 = vmatpush.msra.mxu1 %v4980_v45  ;;  %v5012_v28 = vld [vmem:[#allocation19 + $0x38] sm:$0xff] }
 0x1ad   :  { %v793_v15 = vadd.f32 %v4976_v5, %v792_v3  ;;  %7317 = vst [vmem:[#allocation84_spill] sm:$0xff] %v4986_v61  ;;  %v4997_v3 = vld [vmem:[#allocation19 + $0x48] sm:$0xff]  ;;  %v5002_v29 = vpop.eup %3448  ;;  %865 = vmatpush.msra.mxu0 %v4986_v61  ;;  %1224 = vmatpush.msra.mxu2 %v4966_v39 }
 0x1ae   :  { %7318 = vst [vmem:[#allocation85_spill] sm:$0xff] %v4997_v3  ;;  %845 = vmatpush.msra.mxu3 %v4984_v50  ;;  %885 = vmatpush.msra.mxu1 %v4993_v51  ;;  %v5015_v33 = vpop.eup %3450  ;;  %v5025_v50 = vld [vmem:[#allocation19 + $0x20] sm:$0xff] }
 0x1af   :  { %v794_v19 = vadd.f32 %v4989_v46, %v793_v15  ;;  %7319 = vst [vmem:[#allocation86_spill] sm:$0xff] %v4999_v56  ;;  %v5010_v15 = vld [vmem:[#allocation19 + $0x30] sm:$0xff]  ;;  %866 = vmatpush.msra.mxu0 %v4999_v56  ;;  %v5028_v52 = vpop.eup %3452  ;;  %1225 = vmatpush.msra.mxu2 %v4980_v45 }
 0x1b0   :  { %7320 = vst [vmem:[#allocation87_spill] sm:$0xff] %v5012_v28  ;;  %846 = vmatpush.msra.mxu3 %v4997_v3  ;;  %886 = vmatpush.msra.mxu1 %v5006_v55  ;;  %v5038_v3 = vld [vmem:[#allocation19 + $0x8] sm:$0xff]  ;;  %v5041_v47 = vpop.eup %3454 }
 0x1b1   :  { %v795_v41 = vadd.f32 %v5002_v29, %v794_v19  ;;  %v5023_v19 = vld [vmem:[#allocation19 + $0x18] sm:$0xff]  ;;  %7322 = vst [vmem:[#allocation89_spill] sm:$0xff] %v5025_v50  ;;  %867 = vmatpush.msra.mxu0 %v5012_v28  ;;  %1226 = vmatpush.msra.mxu2 %v4993_v51 }
 0x1b2   :  { %7321 = vst [vmem:[#allocation88_spill] sm:$0xff] %v5023_v19  ;;  %847 = vmatpush.msra.mxu3 %v5010_v15  ;;  %887 = vmatpush.msra.mxu1 %v5019_v59 }
 0x1b3   :  { %v796_v61 = vadd.f32 %v5015_v33, %v795_v41  ;;  %v5036_v41 = vld [vmem:[#allocation19] sm:$0xff]  ;;  %7324 = vst [vmem:[#allocation91_spill] sm:$0xff] %v5038_v3  ;;  %868 = vmatpush.msra.mxu0 %v5025_v50  ;;  %1227 = vmatpush.msra.mxu2 %v5006_v55 }
 0x1b4   :  { %7323 = vst [vmem:[#allocation90_spill] sm:$0xff] %v5036_v41  ;;  %848 = vmatpush.msra.mxu3 %v5023_v19  ;;  %888 = vmatpush.msra.mxu1 %v5032_v35 }
 0x1b5   :  { %v797_v56 = vadd.f32 %v5028_v52, %v796_v61  ;;  %869 = vmatpush.msra.mxu0 %v5038_v3  ;;  %v5053_v61 = vld [vmem:[#allocation15 + $0x1e0] sm:$0xff]  ;;  %7327 = vst [vmem:[#allocation94_spill] sm:$0xff] %v5072_v25  ;;  %1228 = vmatpush.msra.mxu2 %v5019_v59 }
 0x1b6   :  { %849 = vmatpush.msra.mxu3 %v5036_v41  ;;  %889 = vmatpush.msra.mxu1 %v5045_v1  ;;  %7328 = vst [vmem:[#allocation95_spill] sm:$0xff] %v5074_v49 }
 0x1b7   :  { %v798_v28 = vadd.f32 %v5041_v47, %v797_v56  ;;  %965 = vmatpush.msrb.mxu0 %v4664_v10  ;;  %v5058_v56 = vld [vmem:[#allocation15 + $0x1c0] sm:$0xff]  ;;  %1229 = vmatpush.msra.mxu2 %v5032_v35 }
 0x1b8   :  { %945 = vmatpush.msrb.mxu3 %v5053_v61  ;;  %985 = vmatpush.msrb.mxu1 %v4666_v11  ;;  %v5070_v11 = vld [vmem:[#allocation9] sm:$0xff] }
 0x1b9   :  { %3456 = vrcp.f32 %v798_v28  ;;  %966 = vmatpush.msrb.mxu0 %v4670_v13  ;;  %v5064_v28 = vld [vmem:[#allocation15 + $0x1a0] sm:$0xff]  ;;  %7326 = vst [vmem:[#allocation93_spill] sm:$0xff] %v5070_v11  ;;  %1230 = vmatpush.msra.mxu2 %v5045_v1 }
 0x1ba   :  { %946 = vmatpush.msrb.mxu3 %v5058_v56  ;;  %986 = vmatpush.msrb.mxu1 %v4672_v14  ;;  %7325 = vst [vmem:[#allocation92_spill] sm:$0xff] %v5064_v28 }
 0x1bb   :  { %967 = vmatpush.msrb.mxu0 %v4679_v16  ;;  %v5082_v16 = vld [vmem:[#allocation9 + $0x10] sm:$0xff] }
 0x1bc   :  { %947 = vmatpush.msrb.mxu3 %v5064_v28  ;;  %987 = vmatpush.msrb.mxu1 %v4681_v17  ;;  %7329 = vst [vmem:[#allocation96_spill] sm:$0xff] %v5082_v16  ;;  %v5088_v28 = vld [vmem:[#allocation15 + $0x160] sm:$0xff] }
 0x1bd   :  { %968 = vmatpush.msrb.mxu0 %v4688_v21 }
 0x1be   :  { %948 = vmatpush.msrb.mxu3 %v5074_v49  ;;  %988 = vmatpush.msrb.mxu1 %v4690_v42  ;;  %v5100_v42 = vld [vmem:[#allocation9 + $0x20] sm:$0xff] }
 0x1bf   :  { %v3457_v10 = vpop.eup %3456  ;;  %969 = vmatpush.msrb.mxu0 %v4694_v23  ;;  %7331 = vst [vmem:[#allocation98_spill] sm:$0xff] %v5100_v42 }
 0x1c0   :  { %v800_v13 = vmul.f32 %v3457_v10, %v4954_v20  ;;  %v801_v14 = vmul.f32 %v3457_v10, %v4962_v24  ;;  %v802_v12 = vmul.f32 %v3457_v10, %v4976_v5  ;;  %v803_v17 = vmul.f32 %v3457_v10, %v4989_v46  ;;  %949 = vmatpush.msrb.mxu3 %v5088_v28  ;;  %v5091_v20 = vld [vmem:[#allocation9 + $0x18] sm:$0xff]  ;;  %v5097_v46 = vld [vmem:[#allocation15 + $0x140] sm:$0xff] }
 0x1c1   :  { %7330 = vst [vmem:[#allocation97_spill] sm:$0xff] %v5091_v20  ;;  %v804_v24 = vmul.f32 %v3457_v10, %v5002_v29  ;;  %989 = vmatpush.msrb.mxu1 %v4696_v48  ;;  %970 = vmatpush.msrb.mxu0 %v4700_v26  ;;  %v5110_v48 = vld [vmem:[#allocation9 + $0x28] sm:$0xff]  ;;  %v806_v26 = vmul.f32 %v3457_v10, %v5028_v52 }
 0x1c2   :  { %v816_v58 = vmul.f32 %v5070_v11, %v800_v13  ;;  %v817_v49 = vmul.f32 %v5072_v25, %v801_v14  ;;  %v818_v21 = vmul.f32 %v5082_v16, %v802_v12  ;;  %950 = vmatpush.msrb.mxu3 %v5097_v46  ;;  %v805_v13 = vmul.f32 %v3457_v10, %v5015_v33  ;;  %v5107_v12 = vld [vmem:[#allocation15 + $0x120] sm:$0xff] }
 0x1c3   :  { %v819_v23 = vmul.f32 %v5091_v20, %v803_v17  ;;  %990 = vmatpush.msrb.mxu1 %v4702_v27  ;;  %7332 = vst [vmem:[#allocation99_spill] sm:$0xff] %v5110_v48  ;;  %971 = vmatpush.msrb.mxu0 %v4706_v31  ;;  %v5120_v27 = vld [vmem:[#allocation9 + $0x30] sm:$0xff]  ;;  %v807_v31 = vmul.f32 %v3457_v10, %v5041_v47  ;;  %v5127_v17 = vld [vmem:[#allocation15 + $0xe0] sm:$0xff] }
 0x1c4   :  { %v824_v5 = vadd.f32 %v817_v49, %v816_v58  ;;  %951 = vmatpush.msrb.mxu3 %v5107_v12  ;;  %v820_v58 = vmul.f32 %v5100_v42, %v804_v24  ;;  %v5117_v49 = vld [vmem:[#allocation15 + $0x100] sm:$0xff]  ;;  %7333 = vst [vmem:[#allocation100_spill] sm:$0xff] %v5120_v27  ;;  %v821_v14 = vmul.f32 %v5110_v48, %v805_v13 }
 0x1c5   :  { %991 = vmatpush.msrb.mxu1 %v4708_v32  ;;  %972 = vmatpush.msrb.mxu0 %v4715_v38  ;;  %v5130_v32 = vld [vmem:[#allocation9 + $0x38] sm:$0xff]  ;;  %v822_v38 = vmul.f32 %v5120_v27, %v806_v26  ;;  %v5136_v47 = vld [vmem:[#allocation15 + $0xc0] sm:$0xff] }
 0x1c6   :  { %v825_v29 = vadd.f32 %v824_v5, %v818_v21  ;;  %952 = vmatpush.msrb.mxu3 %v5117_v49  ;;  %7334 = vst [vmem:[#allocation101_spill] sm:$0xff] %v5130_v32  ;;  %v5143_v21 = vld [vmem:[#allocation15 + $0xa0] sm:$0xff] }
 0x1c7   :  { %992 = vmatpush.msrb.mxu1 %v4717_v40  ;;  %973 = vmatpush.msrb.mxu0 %v4721_v54  ;;  %v823_v40 = vmul.f32 %v5130_v32, %v807_v31  ;;  %v5149_v13 = vld [vmem:[#allocation15 + $0x80] sm:$0xff]  ;;  %v5180_v31 = vld [vmem:[#allocation16 + $0x70] sm:$0xff] }
 0x1c8   :  { %v826_v33 = vadd.f32 %v825_v29, %v819_v23  ;;  %953 = vmatpush.msrb.mxu3 %v5127_v17  ;;  %v5154_v23 = vld [vmem:[#allocation15 + $0x60] sm:$0xff]  ;;  %7336 = vst [vmem:[#allocation103_spill] sm:$0xff] %v5180_v31 }
 0x1c9   :  { %993 = vmatpush.msrb.mxu1 %v4723_v53  ;;  %974 = vmatpush.msrb.mxu0 %v4730_v63  ;;  %v5159_v29 = vld [vmem:[#allocation15 + $0x40] sm:$0xff] }
 0x1ca   :  { %v827_v52 = vadd.f32 %v826_v33, %v820_v58  ;;  %954 = vmatpush.msrb.mxu3 %v5136_v47  ;;  %v5165_v26 = vld [vmem:[#allocation15 + $0x20] sm:$0xff]  ;;  %v5175_v33 = vld [vmem:[#allocation16 + $0x78] sm:$0xff] }
 0x1cb   :  { %994 = vmatpush.msrb.mxu1 %v4732_v0  ;;  %975 = vmatpush.msrb.mxu0 %v4739_v6  ;;  %v5170_v58 = vld [vmem:[#allocation15] sm:$0xff]  ;;  %7335 = vst [vmem:[#allocation102_spill] sm:$0xff] %v5175_v33 }
 0x1cc   :  { %v828_v24 = vadd.f32 %v827_v52, %v821_v14  ;;  %955 = vmatpush.msrb.mxu3 %v5143_v21  ;;  %v5185_v14 = vld [vmem:[#allocation16 + $0x68] sm:$0xff] }
 0x1cd   :  { %995 = vmatpush.msrb.mxu1 %v4741_v8  ;;  %976 = vmatpush.msrb.mxu0 %v4749_v18  ;;  %7337 = vst [vmem:[#allocation104_spill] sm:$0xff] %v5185_v14  ;;  %v7338_v52 = vld [vmem:[#allocation58_spill] sm:$0xff] }
 0x1ce   :  { %v829_v10 = vadd.f32 %v828_v24, %v822_v38  ;;  %956 = vmatpush.msrb.mxu3 %v5149_v13  ;;  %v7339_v38 = vld [vmem:[#allocation60_spill] sm:$0xff]  ;;  %v5190_v24 = vld [vmem:[#allocation16 + $0x60] sm:$0xff] }
 0x1cf   :  { %996 = vmatpush.msrb.mxu1 %v4751_v22  ;;  %977 = vmatpush.msrb.mxu0 %v4762_v34  ;;  %7340 = vst [vmem:[#allocation58_spill] sm:$0xff] %v5190_v24 }
 0x1d0   :  { %v830_v5 = vadd.f32 %v829_v10, %v823_v40  ;;  %957 = vmatpush.msrb.mxu3 %v5154_v23  ;;  %v7342_v40 = vld [vmem:[#allocation63_spill] sm:$0xff]  ;;  %v5195_v10 = vld [vmem:[#allocation16 + $0x58] sm:$0xff] }
 0x1d1   :  { %997 = vmatpush.msrb.mxu1 %v4764_v43  ;;  %978 = vmatpush.msrb.mxu0 %v4791_v60  ;;  %7343 = vst [vmem:[#allocation60_spill] sm:$0xff] %v5195_v10 }
 0x1d2   :  { %850 = vmatmul.f32.vlgmr.msra.gmra.mxu3 %v830_v5  ;;  %870 = vmatmul.f32.vlgmr.msra.gmra.mxu0 %v830_v5 }
 0x1d3   :  { %890 = vmatmul.f32.vlgmr.msra.gmra.mxu1 %v830_v5  ;;  %958 = vmatpush.msrb.mxu3 %v5159_v29  ;;  %v5200_v5 = vld [vmem:[#allocation16 + $0x50] sm:$0xff] }
 0x1d4   :  { %998 = vmatpush.msrb.mxu1 %v4793_v62  ;;  %979 = vmatpush.msrb.mxu0 %v4818_v57 }
 0x1d5   :  { %959 = vmatpush.msrb.mxu3 %v5165_v26 }
 0x1d6   :  { %999 = vmatpush.msrb.mxu1 %v4820_v4  ;;  %980 = vmatpush.msrb.mxu0 %v4841_v2 }
 0x1d7   :  { %960 = vmatpush.msrb.mxu3 %v5170_v58 }
 0x1d8   :  { %1175 = vmatpush.msra.mxu0 %v4850_v36  ;;  %1000 = vmatpush.msrb.mxu1 %v4843_v9  ;;  %v7341_v36 = vld [vmem:[#allocation61_spill] sm:$0xff] }
 0x1d9   :  { %1052 = vmatpush.msra.mxu3 %v5175_v33  ;;  %7346 = vst [vmem:[#allocation61_spill] sm:$0xff] %v5200_v5 }
 0x1da   :  { %1195 = vmatpush.msra.mxu1 %v4852_v44  ;;  %1176 = vmatpush.msra.mxu0 %v4864_v30  ;;  %v7344_v30 = vld [vmem:[#allocation64_spill] sm:$0xff]  ;;  %v7345_v44 = vld [vmem:[#allocation66_spill] sm:$0xff] }
 0x1db   :  { %1053 = vmatpush.msra.mxu3 %v5180_v31 }
 0x1dc   :  { %1196 = vmatpush.msra.mxu1 %v7338_v52  ;;  %1177 = vmatpush.msra.mxu0 %v7339_v38  ;;  %v7347_v52 = vld [vmem:[#allocation67_spill] sm:$0xff]  ;;  %v7348_v38 = vld [vmem:[#allocation69_spill] sm:$0xff] }
 0x1dd   :  { %1054 = vmatpush.msra.mxu3 %v5185_v14 }
 0x1de   :  { %1197 = vmatpush.msra.mxu1 %v7341_v36  ;;  %1178 = vmatpush.msra.mxu0 %v7342_v40  ;;  %v7350_v36 = vld [vmem:[#allocation70_spill] sm:$0xff]  ;;  %v7351_v40 = vld [vmem:[#allocation72_spill] sm:$0xff] }
 0x1df   :  { %1055 = vmatpush.msra.mxu3 %v5190_v24  ;;  %v5205_v24 = vld [vmem:[#allocation16 + $0x48] sm:$0xff] }
 0x1e0   :  { %1198 = vmatpush.msra.mxu1 %v7344_v30  ;;  %1179 = vmatpush.msra.mxu0 %v7345_v44  ;;  %7349 = vst [vmem:[#allocation63_spill] sm:$0xff] %v5205_v24  ;;  %v7353_v30 = vld [vmem:[#allocation73_spill] sm:$0xff]  ;;  %v7354_v44 = vld [vmem:[#allocation75_spill] sm:$0xff] }
 0x1e1   :  { %1056 = vmatpush.msra.mxu3 %v5195_v10  ;;  %v5210_v10 = vld [vmem:[#allocation16 + $0x40] sm:$0xff] }
 0x1e2   :  { %1199 = vmatpush.msra.mxu1 %v7347_v52  ;;  %1180 = vmatpush.msra.mxu0 %v7348_v38  ;;  %7352 = vst [vmem:[#allocation64_spill] sm:$0xff] %v5210_v10  ;;  %v7356_v52 = vld [vmem:[#allocation76_spill] sm:$0xff]  ;;  %v7357_v38 = vld [vmem:[#allocation77_spill] sm:$0xff] }
 0x1e3   :  { %1057 = vmatpush.msra.mxu3 %v5200_v5  ;;  %v5215_v5 = vld [vmem:[#allocation16 + $0x38] sm:$0xff] }
 0x1e4   :  { %1200 = vmatpush.msra.mxu1 %v7350_v36  ;;  %1181 = vmatpush.msra.mxu0 %v7351_v40  ;;  %7355 = vst [vmem:[#allocation66_spill] sm:$0xff] %v5215_v5  ;;  %v7359_v36 = vld [vmem:[#allocation78_spill] sm:$0xff]  ;;  %v7360_v40 = vld [vmem:[#allocation79_spill] sm:$0xff] }
 0x1e5   :  { %1058 = vmatpush.msra.mxu3 %v5205_v24  ;;  %v5220_v24 = vld [vmem:[#allocation16 + $0x30] sm:$0xff] }
 0x1e6   :  { %1201 = vmatpush.msra.mxu1 %v7353_v30  ;;  %1182 = vmatpush.msra.mxu0 %v7354_v44  ;;  %7358 = vst [vmem:[#allocation67_spill] sm:$0xff] %v5220_v24  ;;  %v7362_v30 = vld [vmem:[#allocation80_spill] sm:$0xff]  ;;  %v7363_v44 = vld [vmem:[#allocation81_spill] sm:$0xff] }
 0x1e7   :  { %1059 = vmatpush.msra.mxu3 %v5210_v10  ;;  %v5225_v10 = vld [vmem:[#allocation16 + $0x28] sm:$0xff] }
 0x1e8   :  { %1202 = vmatpush.msra.mxu1 %v7356_v52  ;;  %1183 = vmatpush.msra.mxu0 %v7357_v38  ;;  %7361 = vst [vmem:[#allocation69_spill] sm:$0xff] %v5225_v10  ;;  %v7365_v52 = vld [vmem:[#allocation82_spill] sm:$0xff]  ;;  %v7366_v38 = vld [vmem:[#allocation83_spill] sm:$0xff] }
 0x1e9   :  { %1060 = vmatpush.msra.mxu3 %v5215_v5  ;;  %v5230_v5 = vld [vmem:[#allocation16 + $0x20] sm:$0xff] }
 0x1ea   :  { %1203 = vmatpush.msra.mxu1 %v7359_v36  ;;  %1184 = vmatpush.msra.mxu0 %v7360_v40  ;;  %7364 = vst [vmem:[#allocation70_spill] sm:$0xff] %v5230_v5  ;;  %v7368_v36 = vld [vmem:[#allocation84_spill] sm:$0xff]  ;;  %v7369_v40 = vld [vmem:[#allocation85_spill] sm:$0xff] }
 0x1eb   :  { %1061 = vmatpush.msra.mxu3 %v5220_v24  ;;  %v5235_v24 = vld [vmem:[#allocation16 + $0x18] sm:$0xff] }
 0x1ec   :  { %1204 = vmatpush.msra.mxu1 %v7362_v30  ;;  %1185 = vmatpush.msra.mxu0 %v7363_v44  ;;  %7367 = vst [vmem:[#allocation72_spill] sm:$0xff] %v5235_v24  ;;  %v5240_v30 = vld [vmem:[#allocation16 + $0x10] sm:$0xff]  ;;  %v7371_v44 = vld [vmem:[#allocation86_spill] sm:$0xff] }
 0x1ed   :  { %1062 = vmatpush.msra.mxu3 %v5225_v10  ;;  %v306_v10 = vpop.f32.mrf.mxu0  ;;  %7370 = vst [vmem:[#allocation73_spill] sm:$0xff] %v5240_v30 }
 0x1ee   :  { %1205 = vmatpush.msra.mxu1 %v7365_v52  ;;  %1186 = vmatpush.msra.mxu0 %v7366_v38  ;;  %v5245_v52 = vld [vmem:[#allocation16 + $0x8] sm:$0xff]  ;;  %v7373_v38 = vld [vmem:[#allocation87_spill] sm:$0xff] }
 0x1ef   :  { %1063 = vmatpush.msra.mxu3 %v5230_v5  ;;  %7372 = vst [vmem:[#allocation75_spill] sm:$0xff] %v5245_v52 }
 0x1f0   :  { %1206 = vmatpush.msra.mxu1 %v7368_v36  ;;  %1187 = vmatpush.msra.mxu0 %v7369_v40  ;;  %v5250_v36 = vld [vmem:[#allocation16] sm:$0xff] }
 0x1f1   :  { %1064 = vmatpush.msra.mxu3 %v5235_v24  ;;  %7374 = vst [vmem:[#allocation76_spill] sm:$0xff] %v5250_v36 }
 0x1f2   :  { %1207 = vmatpush.msra.mxu1 %v7371_v44  ;;  %1188 = vmatpush.msra.mxu0 %v5010_v15 }
 0x1f3   :  { %1065 = vmatpush.msra.mxu3 %v5240_v30 }
 0x1f4   :  { %1208 = vmatpush.msra.mxu1 %v7373_v38  ;;  %1189 = vmatpush.msra.mxu0 %v5023_v19 }
 0x1f5   :  { %1066 = vmatpush.msra.mxu3 %v5245_v52  ;;  %v5256_v40 = vpop.f32.mrf.mxu0 }
 0x1f6   :  { %1209 = vmatpush.msra.mxu1 %v5025_v50  ;;  %1190 = vmatpush.msra.mxu0 %v5036_v41  ;;  %7375 = vst [vmem:[#allocation77_spill] sm:$0xff] %v5256_v40 }
 0x1f7   :  { %1067 = vmatpush.msra.mxu3 %v5250_v36  ;;  %v347_v36 = vpop.f32.mrf.mxu1 }
 0x1f8   :  { %1210 = vmatpush.msra.mxu1 %v5038_v3  ;;  %v412_v3 = vld [vmem:[%s7000_s10] sm:$0x7]  ;;  %s4490_s10 = smov [#allocation21]  }
 0x1f9   :  { %v5276_v40 = vperm.slane %v412_v3, 1  ;;  %v5284_v24 = vperm.slane %v412_v3, 0 }
 0x1fb   :  { %7382 = vst [vmem:[#allocation84_spill] sm:$0xff] %v5276_v40  ;;  %v420_v33 = vadd.f32 %v5284_v24, %v306_v10 }
 0x1fc   :  { %7385 = vst [vmem:[#allocation87_spill] sm:$0xff] %v5284_v24 }
 0x1fd   :  { %v5258_v15 = vpop.f32.mrf.mxu0 }
 0x1fe   :  { %7376 = vst [vmem:[#allocation78_spill] sm:$0xff] %v5258_v15  ;;  %v596_v15 = vld [vmem:[%s7001_s11] sm:$0x7]  ;;  %s3344_s11 = sshll.u32 %s4490_s10, 4  ;;  %s3345_s11 = int_to_ptr.vmem [resolvable:$true] %s3344_s11 }
 0x1ff   :  { %v5286_v14 = vperm.slane %v596_v15, 0 }
 0x201   :  { %7386 = vst [vmem:[#allocation105_spill] sm:$0xff] %v5286_v14 }
 0x205   :  { %v5260_v44 = vpop.f32.mrf.mxu0 }
 0x206   :  { %7377 = vst [vmem:[#allocation79_spill] sm:$0xff] %v5260_v44  ;;  %v5278_v44 = vperm.slane %v596_v15, 1 }
 0x208   :  { %7383 = vst [vmem:[#allocation85_spill] sm:$0xff] %v5278_v44 }
 0x20d   :  { %v5262_v52 = vpop.f32.mrf.mxu0 }
 0x20e   :  { %7378 = vst [vmem:[#allocation80_spill] sm:$0xff] %v5262_v52  ;;  %v5280_v52 = vpop.f32.mrf.mxu1 }
 0x20f   :  { %7384 = vst [vmem:[#allocation86_spill] sm:$0xff] %v5280_v52 }
 0x215   :  { %v5264_v38 = vpop.f32.mrf.mxu0 }
 0x216   :  { %7379 = vst [vmem:[#allocation81_spill] sm:$0xff] %v5264_v38  ;;  %v635_v38 = vpop.f32.mrf.mxu3  ;;  %v5289_v27 = vpop.f32.mrf.mxu1 }
 0x217   :  { %7387 = vst [vmem:[#allocation106_spill] sm:$0xff] %v5289_v27  ;;  %v685_v52 = vadd.f32 %v5286_v14, %v635_v38 }
 0x21d   :  { %v5266_v19 = vpop.f32.mrf.mxu0 }
 0x21e   :  { %7380 = vst [vmem:[#allocation82_spill] sm:$0xff] %v5266_v19  ;;  %v421_v19 = vadd.f32 %v5276_v40, %v347_v36  ;;  %v5292_v20 = vpop.f32.mrf.mxu1 }
 0x21f   :  { %7388 = vst [vmem:[#allocation107_spill] sm:$0xff] %v5292_v20  ;;  %v7390_v20 = vld [vmem:[#allocation33_spill] sm:$0xff] }
 0x225   :  { %v5268_v30 = vpop.f32.mrf.mxu0 }
 0x226   :  { %7381 = vst [vmem:[#allocation83_spill] sm:$0xff] %v5268_v30 }
 0x22d   :  { %v655_v50 = vpop.f32.mrf.mxu0 }
 0x22e   :  { %v686_v30 = vadd.f32 %v5278_v44, %v655_v50 }
 0x24f   :  { %v871_v41 = vpop.f32.mrf.mxu0 }
 0x250   :  { %v895_v5 = vadd.f32 %v871_v41, %v421_v19 }
 0x252   :  { %v917_v31 = vadd.f32 %v895_v5, %v686_v30 }
 0x254   :  { %v3365_v32 = vmul.f32 -1.442695, %v917_v31  ;;  %v675_v31 = vpop.f32.mrf.mxu1 }
 0x255   :  { %v851_v48 = vpop.f32.mrf.mxu3 }
 0x256   :  { %3458 = vpow2.f32 %v3365_v32  ;;  %v894_v42 = vadd.f32 %v851_v48, %v420_v33  ;;  %v5294_v32 = vperm.slane %v412_v3, 2  ;;  %v5296_v48 = vperm.slane %v596_v15, 2 }
 0x258   :  { %v897_v36 = vadd.f32 %v894_v42, %v685_v52  ;;  %7389 = vst [vmem:[#allocation108_spill] sm:$0xff] %v5294_v32  ;;  %v422_v14 = vadd.f32 %v5294_v32, %v7390_v20 }
 0x25a   :  { %v3364_v40 = vmul.f32 -1.442695, %v897_v36 }
 0x25c   :  { %v3459_v50 = vpop.eup %3458  ;;  %3460 = vpow2.f32 %v3364_v40 }
 0x25d   :  { %v921_v44 = vadd.f32 1.0, %v3459_v50  ;;  %v891_v50 = vpop.f32.mrf.mxu1 }
 0x25f   :  { %3462 = vrcp.f32 %v921_v44  ;;  %v933_v16 = vand.u32 2147483648, %v921_v44  ;;  %vm927_vm13 = vweird.f32 %v921_v44 }
 0x261   :  { %v934_v11 = vor.u32 1.1754944e-38, %v933_v16  ;;  %v5315_v16 = vld [vmem:[#allocation15 + $0x1f8] sm:$0xff] }
 0x262   :  { %v3461_v19 = vpop.eup %3460 }
 0x263   :  { %v901_v41 = vadd.f32 1.0, %v3461_v19 }
 0x265   :  { %3464 = vrcp.f32 %v901_v41  ;;  %v3463_v10 = vpop.eup %3462  ;;  %v913_v42 = vand.u32 2147483648, %v901_v41  ;;  %v911_v52 = vand.u32 2147483647, %v901_v41  ;;  %vm907_vm9 = vweird.f32 %v901_v41 }
 0x266   :  { %v923_v5 = vmul.f32 %v3463_v10, %v921_v44  ;;  %vm928_vm12 = vweird.f32 %v3463_v10 }
 0x267   :  { %v914_v19 = vor.u32 1.1754944e-38, %v913_v42  ;;  %vm912_vm11 = vcmp.eq.f32.partialorder %v911_v52, 8.507059e+37  ;;  %vm929_vm14 = vmor %vm927_vm13, %vm928_vm12 }
 0x268   :  { %v924_v24 = vsub.f32 1.0, %v923_v5  ;;  %v687_v5 = vadd.f32 %v5296_v48, %v675_v31 }
 0x26a   :  { %v925_v40 = vmul.f32 %v3463_v10, %v924_v24  ;;  %v931_v24 = vand.u32 2147483647, %v921_v44  ;;  %v5322_v44 = vld [vmem:[#allocation15 + $0x1d0] sm:$0xff] }
 0x26b   :  { %v3465_v30 = vpop.eup %3464 }
 0x26c   :  { %v903_v27 = vmul.f32 %v3465_v30, %v901_v41  ;;  %vm908_vm8 = vweird.f32 %v3465_v30  ;;  %v926_v3 = vadd.f32 %v3463_v10, %v925_v40  ;;  %vm932_vm15 = vcmp.eq.f32.partialorder %v931_v24, 8.507059e+37  ;;  %v5359_v24 = vld [vmem:[#allocation15 + $0x148] sm:$0xff] }
 0x26d   :  { %vm909_vm10 = vmor %vm907_vm9, %vm908_vm8 }
 0x26e   :  { %v904_v38 = vsub.f32 1.0, %v903_v27 }
 0x270   :  { %v905_v33 = vmul.f32 %v3465_v30, %v904_v38  ;;  %v896_v38 = vadd.f32 %v891_v50, %v422_v14  ;;  %v5319_v14 = vld [vmem:[#allocation15 + $0x1c8] sm:$0xff]  ;;  %v7392_v50 = vld [vmem:[#allocation95_spill] sm:$0xff] }
 0x272   :  { %v906_v36 = vadd.f32 %v3465_v30, %v905_v33  ;;  %v930_v33 = vsel %vm929_vm14, %v3463_v10, %v926_v3  ;;  %v7391_v10 = vld [vmem:[#allocation92_spill] sm:$0xff]  ;;  %v5349_v3 = vld [vmem:[#allocation15 + $0x168] sm:$0xff] }
 0x273   :  { %v935_v42 = vsel %vm932_vm15, %v934_v11, %v930_v33  ;;  %v5312_v11 = vld [vmem:[#allocation15 + $0x1f0] sm:$0xff]  ;;  %v5369_v33 = vld [vmem:[#allocation15 + $0x128] sm:$0xff] }
 0x274   :  { %v910_v27 = vsel %vm909_vm10, %v3465_v30, %v906_v36  ;;  %v940_v20 = vsub.f32 1.0, %v935_v42  ;;  %v3808_v30 = vld [vmem:[#allocation13] sm:$0xff]  ;;  %v5332_v36 = vld [vmem:[#allocation15 + $0x1b0] sm:$0xff] }
 0x275   :  { %v915_v15 = vsel %vm912_vm11, %v914_v19, %v910_v27  ;;  %v942_v52 = vmul.f32 %v3808_v30, %v935_v42  ;;  %v5339_v19 = vld [vmem:[#allocation15 + $0x188] sm:$0xff]  ;;  %v5345_v27 = vld [vmem:[#allocation15 + $0x198] sm:$0xff]  ;;  %v5372_v42 = vld [vmem:[#allocation15 + $0x130] sm:$0xff] }
 0x276   :  { %v937_v25 = vmul.f32 %v915_v15, %v687_v5  ;;  %v5342_v5 = vld [vmem:[#allocation15 + $0x190] sm:$0xff]  ;;  %v7393_v30 = vld [vmem:[#allocation41_spill] sm:$0xff] }
 0x277   :  { %v5352_v15 = vld [vmem:[#allocation15 + $0x170] sm:$0xff] }
 0x278   :  { %v938_v41 = vadd.f32 %v937_v25, %v896_v38  ;;  %v5309_v25 = vld [vmem:[#allocation15 + $0x1e8] sm:$0xff]  ;;  %v5355_v38 = vld [vmem:[#allocation15 + $0x178] sm:$0xff] }
 0x27a   :  { %3466 = vtanh.f32 %v938_v41  ;;  %v5362_v41 = vld [vmem:[#allocation15 + $0x150] sm:$0xff] }
 0x280   :  { %v3467_v32 = vpop.eup %3466 }
 0x281   :  { %v941_v31 = vmul.f32 %v3467_v32, %v940_v20  ;;  %v5329_v32 = vld [vmem:[#allocation15 + $0x1a8] sm:$0xff] }
 0x282   :  { %v5379_v20 = vld [vmem:[#allocation15 + $0x108] sm:$0xff] }
 0x283   :  { %v5301_v40 = vadd.f32 %v942_v52, %v941_v31  ;;  %v5382_v31 = vld [vmem:[#allocation15 + $0x110] sm:$0xff] }
 0x285   :  { %961 = vmatmul.f32.vlgmr.msrb.gmra.mxu3 %v5301_v40  ;;  %944 = vst [vmem:[#allocation21] sm:$0xff] %v5301_v40  ;;  %981 = vmatmul.f32.vlgmr.msrb.gmra.mxu0 %v5301_v40 }
 0x286   :  { %1001 = vmatmul.f32.vlgmr.msrb.gmra.mxu1 %v5301_v40  ;;  %1021 = vmatmul.f32.vlgmr.msrb.gmra.mxu2 %v5301_v40 }
 0x287   :  { %1287 = vmatpush.msrb.mxu0 %v5053_v61  ;;  %1307 = vmatpush.msrb.mxu1 %v5309_v25  ;;  %v5325_v61 = vld [vmem:[#allocation15 + $0x1d8] sm:$0xff] }
 0x288   :  { %1327 = vmatpush.msrb.mxu2 %v5312_v11  ;;  %1347 = vmatpush.msrb.mxu3 %v5315_v16 }
 0x289   :  { %1288 = vmatpush.msrb.mxu0 %v5058_v56  ;;  %1308 = vmatpush.msrb.mxu1 %v5319_v14  ;;  %v5335_v56 = vld [vmem:[#allocation15 + $0x1b8] sm:$0xff] }
 0x28a   :  { %1328 = vmatpush.msrb.mxu2 %v5322_v44  ;;  %1348 = vmatpush.msrb.mxu3 %v5325_v61 }
 0x28b   :  { %1289 = vmatpush.msrb.mxu0 %v7391_v10  ;;  %1309 = vmatpush.msrb.mxu1 %v5329_v32  ;;  %v5441_v10 = vld [vmem:[#allocation10 + $0x20] sm:$0xff] }
 0x28c   :  { %1329 = vmatpush.msrb.mxu2 %v5332_v36  ;;  %1349 = vmatpush.msrb.mxu3 %v5335_v56 }
 0x28d   :  { %1290 = vmatpush.msrb.mxu0 %v7392_v50  ;;  %1310 = vmatpush.msrb.mxu1 %v5339_v19 }
 0x28e   :  { %1330 = vmatpush.msrb.mxu2 %v5342_v5  ;;  %1350 = vmatpush.msrb.mxu3 %v5345_v27 }
 0x28f   :  { %1291 = vmatpush.msrb.mxu0 %v5088_v28  ;;  %1311 = vmatpush.msrb.mxu1 %v5349_v3  ;;  %v5365_v28 = vld [vmem:[#allocation15 + $0x158] sm:$0xff] }
 0x290   :  { %1331 = vmatpush.msrb.mxu2 %v5352_v15  ;;  %1351 = vmatpush.msrb.mxu3 %v5355_v38 }
 0x291   :  { %1292 = vmatpush.msrb.mxu0 %v5097_v46  ;;  %1312 = vmatpush.msrb.mxu1 %v5359_v24  ;;  %v5375_v46 = vld [vmem:[#allocation15 + $0x138] sm:$0xff] }
 0x292   :  { %1332 = vmatpush.msrb.mxu2 %v5362_v41  ;;  %1352 = vmatpush.msrb.mxu3 %v5365_v28 }
 0x293   :  { %1293 = vmatpush.msrb.mxu0 %v5107_v12  ;;  %1313 = vmatpush.msrb.mxu1 %v5369_v33  ;;  %v5385_v12 = vld [vmem:[#allocation15 + $0x118] sm:$0xff] }
 0x294   :  { %1333 = vmatpush.msrb.mxu2 %v5372_v42  ;;  %1353 = vmatpush.msrb.mxu3 %v5375_v46 }
 0x295   :  { %1294 = vmatpush.msrb.mxu0 %v5117_v49  ;;  %1314 = vmatpush.msrb.mxu1 %v5379_v20  ;;  %v7394_v49 = vld [vmem:[#allocation42_spill] sm:$0xff] }
 0x296   :  { %1334 = vmatpush.msrb.mxu2 %v5382_v31  ;;  %1354 = vmatpush.msrb.mxu3 %v5385_v12 }
 0x297   :  { %1295 = vmatpush.msrb.mxu0 %v5127_v17  ;;  %1315 = vmatpush.msrb.mxu1 %v4721_v54  ;;  %v7395_v17 = vld [vmem:[#allocation43_spill] sm:$0xff]  ;;  %v7396_v54 = vld [vmem:[#allocation44_spill] sm:$0xff] }
 0x298   :  { %1335 = vmatpush.msrb.mxu2 %v4723_v53  ;;  %1355 = vmatpush.msrb.mxu3 %v7393_v30  ;;  %v7397_v53 = vld [vmem:[#allocation46_spill] sm:$0xff] }
 0x299   :  { %1296 = vmatpush.msrb.mxu0 %v5136_v47  ;;  %1316 = vmatpush.msrb.mxu1 %v4730_v63  ;;  %v7398_v63 = vld [vmem:[#allocation52_spill] sm:$0xff] }
 0x29a   :  { %1336 = vmatpush.msrb.mxu2 %v4732_v0  ;;  %1356 = vmatpush.msrb.mxu3 %v7394_v49  ;;  %v7399_v0 = vld [vmem:[#allocation55_spill] sm:$0xff] }
 0x29b   :  { %1297 = vmatpush.msrb.mxu0 %v5143_v21  ;;  %1317 = vmatpush.msrb.mxu1 %v4739_v6  ;;  %v7400_v6 = vld [vmem:[#allocation56_spill] sm:$0xff]  ;;  %v7404_v21 = vld [vmem:[#allocation65_spill] sm:$0xff] }
 0x29c   :  { %1337 = vmatpush.msrb.mxu2 %v4741_v8  ;;  %1357 = vmatpush.msrb.mxu3 %v7395_v17  ;;  %v5420_v8 = vld [vmem:[#allocation10] sm:$0xff] }
 0x29d   :  { %1298 = vmatpush.msrb.mxu0 %v5149_v13  ;;  %1318 = vmatpush.msrb.mxu1 %v4749_v18  ;;  %v7405_v13 = vld [vmem:[#allocation68_spill] sm:$0xff] }
 0x29e   :  { %1338 = vmatpush.msrb.mxu2 %v4751_v22  ;;  %1358 = vmatpush.msrb.mxu3 %v7396_v54 }
 0x29f   :  { %1299 = vmatpush.msrb.mxu0 %v5154_v23  ;;  %1319 = vmatpush.msrb.mxu1 %v4762_v34  ;;  %v5423_v34 = vld [vmem:[#allocation10 + $0x8] sm:$0xff]  ;;  %v5434_v23 = vld [vmem:[#allocation10 + $0x18] sm:$0xff] }
 0x2a0   :  { %1339 = vmatpush.msrb.mxu2 %v4764_v43  ;;  %1359 = vmatpush.msrb.mxu3 %v7397_v53 }
 0x2a1   :  { %1300 = vmatpush.msrb.mxu0 %v5159_v29  ;;  %1320 = vmatpush.msrb.mxu1 %v4791_v60  ;;  %v7406_v29 = vld [vmem:[#allocation71_spill] sm:$0xff] }
 0x2a2   :  { %1340 = vmatpush.msrb.mxu2 %v4793_v62  ;;  %1360 = vmatpush.msrb.mxu3 %v7398_v63  ;;  %v7401_v62 = vld [vmem:[#allocation57_spill] sm:$0xff] }
 0x2a3   :  { %1301 = vmatpush.msrb.mxu0 %v5165_v26  ;;  %1321 = vmatpush.msrb.mxu1 %v4818_v57  ;;  %v5427_v57 = vld [vmem:[#allocation10 + $0x10] sm:$0xff] }
 0x2a4   :  { %1341 = vmatpush.msrb.mxu2 %v4820_v4  ;;  %1361 = vmatpush.msrb.mxu3 %v7399_v0  ;;  %v7402_v4 = vld [vmem:[#allocation59_spill] sm:$0xff] }
 0x2a5   :  { %1302 = vmatpush.msrb.mxu0 %v5170_v58  ;;  %1322 = vmatpush.msrb.mxu1 %v4841_v2  ;;  %v7407_v58 = vld [vmem:[#allocation74_spill] sm:$0xff] }
 0x2a6   :  { %1342 = vmatpush.msrb.mxu2 %v4843_v9  ;;  %1362 = vmatpush.msrb.mxu3 %v7400_v6  ;;  %v7403_v9 = vld [vmem:[#allocation62_spill] sm:$0xff] }
 0x308   :  { %v962_v18 = vpop.f32.mrf.mxu3 }
 0x309   :  { %v1036_v22 = vadd.f32 %v5420_v8, %v962_v18  ;;  %v1037_v43 = vadd.f32 %v5423_v34, %v962_v18  ;;  %v1038_v2 = vadd.f32 %v5427_v57, %v962_v18  ;;  %v1039_v26 = vadd.f32 %v5434_v23, %v962_v18 }
 0x30a   :  { %v1040_v50 = vadd.f32 %v5441_v10, %v962_v18 }
 0x30b   :  { %3468 = vtanh.f32 %v1036_v22 }
 0x30c   :  { %3470 = vtanh.f32 %v1037_v43  ;;  %v7408_v43 = vld [vmem:[#allocation45_spill] sm:$0xff] }
 0x30d   :  { %3472 = vtanh.f32 %v1038_v2  ;;  %v7410_v2 = vld [vmem:[#allocation48_spill] sm:$0xff] }
 0x30e   :  { %3474 = vtanh.f32 %v1039_v26  ;;  %v7413_v26 = vld [vmem:[#allocation51_spill] sm:$0xff] }
 0x30f   :  { %3476 = vtanh.f32 %v1040_v50 }
 0x311   :  { %v3469_v60 = vpop.eup %3468 }
 0x312   :  { %1068 = vmatmul.f32.vlgmr.msra.gmra.mxu3 %v3469_v60  ;;  %v3471_v47 = vpop.eup %3470 }
 0x313   :  { %1557 = vmatpush.msra.mxu3 %v7401_v62  ;;  %v3473_v52 = vpop.eup %3472  ;;  %v7409_v62 = vld [vmem:[#allocation47_spill] sm:$0xff] }
 0x314   :  { %v3475_v30 = vpop.eup %3474 }
 0x315   :  { %1558 = vmatpush.msra.mxu3 %v7402_v4 }
 0x317   :  { %1559 = vmatpush.msra.mxu3 %v7403_v9 }
 0x319   :  { %1560 = vmatpush.msra.mxu3 %v7404_v21  ;;  %v7412_v21 = vld [vmem:[#allocation50_spill] sm:$0xff] }
 0x31a   :  { %1071 = vmatmul.f32.gmra.mxu3 %v3471_v47  ;;  %v7411_v47 = vld [vmem:[#allocation49_spill] sm:$0xff] }
 0x31b   :  { %1561 = vmatpush.msra.mxu3 %v7405_v13 }
 0x31d   :  { %1562 = vmatpush.msra.mxu3 %v7406_v29 }
 0x31f   :  { %1563 = vmatpush.msra.mxu3 %v7407_v58 }
 0x321   :  { %1564 = vmatpush.msra.mxu3 %v4940_v7  ;;  %v5448_v7 = vld [vmem:[#allocation10 + $0x28] sm:$0xff] }
 0x322   :  { %1074 = vmatmul.f32.gmra.mxu3 %v3473_v52  ;;  %v7414_v52 = vld [vmem:[#allocation53_spill] sm:$0xff] }
 0x323   :  { %1565 = vmatpush.msra.mxu3 %v4952_v37  ;;  %v1041_v37 = vadd.f32 %v5448_v7, %v962_v18 }
 0x325   :  { %1566 = vmatpush.msra.mxu3 %v4966_v39  ;;  %v3477_v39 = vpop.eup %3476  ;;  %3478 = vtanh.f32 %v1041_v37  ;;  %v7415_v37 = vld [vmem:[#allocation54_spill] sm:$0xff] }
 0x327   :  { %1567 = vmatpush.msra.mxu3 %v4980_v45  ;;  %v5454_v45 = vld [vmem:[#allocation10 + $0x30] sm:$0xff] }
 0x329   :  { %1568 = vmatpush.msra.mxu3 %v4993_v51  ;;  %v1042_v51 = vadd.f32 %v5454_v45, %v962_v18 }
 0x32a   :  { %1077 = vmatmul.f32.gmra.mxu3 %v3475_v30 }
 0x32b   :  { %1569 = vmatpush.msra.mxu3 %v5006_v55  ;;  %v3479_v49 = vpop.eup %3478  ;;  %3480 = vtanh.f32 %v1042_v51  ;;  %v5457_v55 = vld [vmem:[#allocation10 + $0x38] sm:$0xff] }
 0x32d   :  { %1570 = vmatpush.msra.mxu3 %v5019_v59  ;;  %v1043_v59 = vadd.f32 %v5457_v55, %v962_v18 }
 0x32f   :  { %1571 = vmatpush.msra.mxu3 %v5032_v35  ;;  %3482 = vtanh.f32 %v1043_v59 }
 0x331   :  { %1572 = vmatpush.msra.mxu3 %v5045_v1  ;;  %v3481_v17 = vpop.eup %3480 }
 0x332   :  { %1080 = vmatmul.f32.gmra.mxu3 %v3477_v39 }
 0x335   :  { %v3483_v35 = vpop.eup %3482 }
 0x33a   :  { %1083 = vmatmul.f32.gmra.mxu3 %v3479_v49 }
 0x342   :  { %1086 = vmatmul.f32.gmra.mxu3 %v3481_v17 }
 0x34a   :  { %1089 = vmatmul.f32.gmra.mxu3 %v3483_v35 }
 0x395   :  { %v1069_v54 = vpop.f32.mrf.mxu3 }
 0x396   :  { %v1093_v13 = vadd.f32 %v1069_v54, %v7412_v21 }
 0x39d   :  { %v1072_v1 = vpop.f32.mrf.mxu3 }
 0x39e   :  { %v1094_v4 = vadd.f32 %v1072_v1, %v7409_v62 }
 0x3a5   :  { %v1075_v53 = vpop.f32.mrf.mxu3 }
 0x3a6   :  { %v1095_v58 = vadd.f32 %v1075_v53, %v7413_v26 }
 0x3ad   :  { %v1078_v63 = vpop.f32.mrf.mxu3 }
 0x3ae   :  { %v1096_v50 = vadd.f32 %v1078_v63, %v7414_v52 }
 0x3b5   :  { %v1081_v0 = vpop.f32.mrf.mxu3 }
 0x3b6   :  { %v1097_v9 = vadd.f32 %v1081_v0, %v7410_v2 }
 0x3b8   :  { %v1101_v51 = vmax.f32 %v1093_v13, %v1097_v9 }
 0x3bd   :  { %v1084_v6 = vpop.f32.mrf.mxu3 }
 0x3be   :  { %v1098_v60 = vadd.f32 %v1084_v6, %v7408_v43  ;;  %v7422_v43 = vld [vmem:[#allocation100_spill] sm:$0xff] }
 0x3c0   :  { %v1102_v30 = vmax.f32 %v1094_v4, %v1098_v60 }
 0x3c2   :  { %v1105_v17 = vmax.f32 %v1101_v51, %v1102_v30 }
 0x3c5   :  { %v1087_v22 = vpop.f32.mrf.mxu3 }
 0x3c6   :  { %v1099_v18 = vadd.f32 %v1087_v22, %v7411_v47 }
 0x3c8   :  { %v1103_v49 = vmax.f32 %v1095_v58, %v1099_v18 }
 0x3cd   :  { %v1090_v29 = vpop.f32.mrf.mxu3 }
 0x3ce   :  { %v1100_v39 = vadd.f32 %v1090_v29, %v7415_v37 }
 0x3d0   :  { %v1104_v59 = vmax.f32 %v1096_v50, %v1100_v39 }
 0x3d2   :  { %v1106_v35 = vmax.f32 %v1103_v49, %v1104_v59 }
 0x3d4   :  { %v1107_v1 = vmax.f32 %v1105_v17, %v1106_v35 }
 0x3d6   :  { %v1108_v6 = vsub.f32 %v1093_v13, %v1107_v1  ;;  %v1109_v0 = vsub.f32 %v1094_v4, %v1107_v1  ;;  %v1110_v2 = vsub.f32 %v1095_v58, %v1107_v1  ;;  %v1111_v22 = vsub.f32 %v1096_v50, %v1107_v1 }
 0x3d7   :  { %v1112_v21 = vsub.f32 %v1097_v9, %v1107_v1  ;;  %v1113_v53 = vsub.f32 %v1098_v60, %v1107_v1  ;;  %v1114_v52 = vsub.f32 %v1099_v18, %v1107_v1  ;;  %v1115_v37 = vsub.f32 %v1100_v39, %v1107_v1 }
 0x3d8   :  { %v1116_v47 = vmul.f32 1.442695, %v1108_v6  ;;  %v1118_v54 = vmul.f32 1.442695, %v1109_v0  ;;  %v1120_v62 = vmul.f32 1.442695, %v1110_v2 }
 0x3d9   :  { %v1122_v63 = vmul.f32 1.442695, %v1111_v22  ;;  %v1124_v29 = vmul.f32 1.442695, %v1112_v21  ;;  %v1126_v30 = vmul.f32 1.442695, %v1113_v53 }
 0x3da   :  { %3484 = vpow2.f32 %v1116_v47  ;;  %v1128_v4 = vmul.f32 1.442695, %v1114_v52  ;;  %v1130_v50 = vmul.f32 1.442695, %v1115_v37  ;;  %v7416_v37 = vld [vmem:[#allocation93_spill] sm:$0xff]  ;;  %v7417_v53 = vld [vmem:[#allocation94_spill] sm:$0xff] }
 0x3db   :  { %3486 = vpow2.f32 %v1118_v54 }
 0x3dc   :  { %3488 = vpow2.f32 %v1120_v62 }
 0x3dd   :  { %3490 = vpow2.f32 %v1122_v63 }
 0x3de   :  { %3492 = vpow2.f32 %v1124_v29 }
 0x3df   :  { %3494 = vpow2.f32 %v1126_v30  ;;  %v7418_v30 = vld [vmem:[#allocation96_spill] sm:$0xff] }
 0x3e0   :  { %v3485_v51 = vpop.eup %3484  ;;  %3496 = vpow2.f32 %v1128_v4 }
 0x3e1   :  { %v3487_v49 = vpop.eup %3486  ;;  %3498 = vpow2.f32 %v1130_v50 }
 0x3e2   :  { %v1132_v13 = vadd.f32 %v3487_v49, %v3485_v51  ;;  %v3489_v58 = vpop.eup %3488 }
 0x3e3   :  { %v3491_v2 = vpop.eup %3490 }
 0x3e4   :  { %v1133_v9 = vadd.f32 %v3489_v58, %v1132_v13  ;;  %v3493_v47 = vpop.eup %3492 }
 0x3e5   :  { %v3495_v62 = vpop.eup %3494 }
 0x3e6   :  { %v1134_v60 = vadd.f32 %v3491_v2, %v1133_v9  ;;  %v3497_v39 = vpop.eup %3496  ;;  %v7419_v9 = vld [vmem:[#allocation97_spill] sm:$0xff] }
 0x3e7   :  { %v3499_v17 = vpop.eup %3498 }
 0x3e8   :  { %v1135_v18 = vadd.f32 %v3493_v47, %v1134_v60 }
 0x3ea   :  { %v1136_v21 = vadd.f32 %v3495_v62, %v1135_v18 }
 0x3ec   :  { %v1137_v59 = vadd.f32 %v3497_v39, %v1136_v21 }
 0x3ee   :  { %v1138_v35 = vadd.f32 %v3499_v17, %v1137_v59  ;;  %v7420_v59 = vld [vmem:[#allocation98_spill] sm:$0xff] }
 0x3f0   :  { %3500 = vrcp.f32 %v1138_v35 }
 0x3f6   :  { %v3501_v1 = vpop.eup %3500 }
 0x3f7   :  { %v1140_v52 = vmul.f32 %v3501_v1, %v3485_v51  ;;  %v1141_v6 = vmul.f32 %v3501_v1, %v3487_v49  ;;  %v1142_v0 = vmul.f32 %v3501_v1, %v3489_v58  ;;  %v1143_v22 = vmul.f32 %v3501_v1, %v3491_v2  ;;  %v7421_v49 = vld [vmem:[#allocation99_spill] sm:$0xff] }
 0x3f8   :  { %v1144_v29 = vmul.f32 %v3501_v1, %v3493_v47  ;;  %v1145_v50 = vmul.f32 %v3501_v1, %v3495_v62  ;;  %v1146_v21 = vmul.f32 %v3501_v1, %v3497_v39  ;;  %v1147_v51 = vmul.f32 %v3501_v1, %v3499_v17  ;;  %v7424_v62 = vld [vmem:[#allocation102_spill] sm:$0xff]  ;;  %v5480_v17 = vld [vmem:[#allocation19 + $0x170] sm:$0xff]  ;;  %v5487_v1 = vld [vmem:[#allocation19 + $0x158] sm:$0xff] }
 0x3f9   :  { %v1156_v54 = vmul.f32 %v1140_v52, %v7416_v37  ;;  %v1157_v63 = vmul.f32 %v1141_v6, %v7417_v53  ;;  %v1158_v4 = vmul.f32 %v1142_v0, %v7418_v30  ;;  %v1159_v60 = vmul.f32 %v1143_v22, %v7419_v9  ;;  %v7423_v6 = vld [vmem:[#allocation101_spill] sm:$0xff]  ;;  %v5477_v39 = vld [vmem:[#allocation19 + $0x168] sm:$0xff]  ;;  %v7426_v22 = vld [vmem:[#allocation104_spill] sm:$0xff] }
 0x3fa   :  { %v1160_v35 = vmul.f32 %v1144_v29, %v7420_v59  ;;  %v1161_v58 = vmul.f32 %v1145_v50, %v7421_v49  ;;  %v1162_v52 = vmul.f32 %v1146_v21, %v7422_v43  ;;  %v1163_v47 = vmul.f32 %v1147_v51, %v7423_v6  ;;  %v5484_v43 = vld [vmem:[#allocation19 + $0x150] sm:$0xff]  ;;  %v7427_v29 = vld [vmem:[#allocation58_spill] sm:$0xff]  ;;  %v5498_v30 = vld [vmem:[#allocation19 + $0x120] sm:$0xff] }
 0x3fb   :  { %v1164_v13 = vadd.f32 %v1157_v63, %v1156_v54  ;;  %v5491_v54 = vld [vmem:[#allocation19 + $0x138] sm:$0xff]  ;;  %v5494_v63 = vld [vmem:[#allocation19 + $0x140] sm:$0xff]  ;;  %7428 = vst [vmem:[#allocation33_spill] sm:$0xff] %v5498_v30  ;;  %v5505_v50 = vld [vmem:[#allocation19 + $0x108] sm:$0xff] }
 0x3fc   :  { %7431 = vst [vmem:[#allocation95_spill] sm:$0xff] %v5505_v50  ;;  %v5508_v9 = vld [vmem:[#allocation19 + $0x110] sm:$0xff]  ;;  %v5515_v21 = vld [vmem:[#allocation19 + $0xf8] sm:$0xff]  ;;  %v5522_v51 = vld [vmem:[#allocation19 + $0xe0] sm:$0xff] }
 0x3fd   :  { %v1165_v18 = vadd.f32 %v1164_v13, %v1158_v4  ;;  %v5501_v4 = vld [vmem:[#allocation19 + $0x128] sm:$0xff]  ;;  %v7430_v13 = vld [vmem:[#allocation60_spill] sm:$0xff]  ;;  %7432 = vst [vmem:[#allocation41_spill] sm:$0xff] %v5508_v9  ;;  %v7436_v59 = vld [vmem:[#allocation63_spill] sm:$0xff] }
 0x3fe   :  { %7429 = vst [vmem:[#allocation92_spill] sm:$0xff] %v5501_v4  ;;  %v7439_v49 = vld [vmem:[#allocation64_spill] sm:$0xff]  ;;  %v5536_v6 = vld [vmem:[#allocation19 + $0xb0] sm:$0xff] }
 0x3ff   :  { %v1166_v26 = vadd.f32 %v1165_v18, %v1159_v60  ;;  %v7433_v60 = vld [vmem:[#allocation61_spill] sm:$0xff]  ;;  %v5512_v18 = vld [vmem:[#allocation19 + $0xf0] sm:$0xff]  ;;  %7435 = vst [vmem:[#allocation43_spill] sm:$0xff] %v5515_v21 }
 0x400   :  { %7434 = vst [vmem:[#allocation42_spill] sm:$0xff] %v5512_v18 }
 0x401   :  { %v1167_v2 = vadd.f32 %v1166_v26, %v1160_v35  ;;  %v7425_v26 = vld [vmem:[#allocation103_spill] sm:$0xff]  ;;  %v5519_v35 = vld [vmem:[#allocation19 + $0xd8] sm:$0xff]  ;;  %7438 = vst [vmem:[#allocation46_spill] sm:$0xff] %v5522_v51 }
 0x402   :  { %7437 = vst [vmem:[#allocation44_spill] sm:$0xff] %v5519_v35 }
 0x403   :  { %v1168_v37 = vadd.f32 %v1167_v2, %v1161_v58  ;;  %v5526_v58 = vld [vmem:[#allocation19 + $0xc0] sm:$0xff]  ;;  %v5529_v2 = vld [vmem:[#allocation19 + $0xc8] sm:$0xff]  ;;  %7444 = vst [vmem:[#allocation57_spill] sm:$0xff] %v5536_v6 }
 0x404   :  { %7440 = vst [vmem:[#allocation52_spill] sm:$0xff] %v5526_v58 }
 0x405   :  { %v1169_v53 = vadd.f32 %v1168_v37, %v1162_v52  ;;  %7441 = vst [vmem:[#allocation55_spill] sm:$0xff] %v5529_v2  ;;  %v7442_v52 = vld [vmem:[#allocation66_spill] sm:$0xff] }
 0x406   :  { %v5533_v37 = vld [vmem:[#allocation19 + $0xa8] sm:$0xff] }
 0x407   :  { %v1170_v0 = vadd.f32 %v1169_v53, %v1163_v47  ;;  %7443 = vst [vmem:[#allocation56_spill] sm:$0xff] %v5533_v37  ;;  %v7445_v47 = vld [vmem:[#allocation67_spill] sm:$0xff] }
 0x408   :  { %v5540_v53 = vld [vmem:[#allocation19 + $0x90] sm:$0xff] }
 0x409   :  { %1191 = vmatmul.f32.vlgmr.msra.gmra.mxu0 %v1170_v0  ;;  %1211 = vmatmul.f32.vlgmr.msra.gmra.mxu1 %v1170_v0  ;;  %7446 = vst [vmem:[#allocation59_spill] sm:$0xff] %v5540_v53 }
 0x40a   :  { %1231 = vmatmul.f32.vlgmr.msra.gmra.mxu2 %v1170_v0  ;;  %1394 = vmatpush.msra.mxu0 %v7424_v62  ;;  %v5543_v0 = vld [vmem:[#allocation19 + $0x98] sm:$0xff]  ;;  %v7448_v62 = vld [vmem:[#allocation69_spill] sm:$0xff] }
 0x40b   :  { %1517 = vmatpush.msra.mxu1 %v5477_v39  ;;  %1537 = vmatpush.msra.mxu2 %v5480_v17  ;;  %7447 = vst [vmem:[#allocation62_spill] sm:$0xff] %v5543_v0 }
 0x40c   :  { %1395 = vmatpush.msra.mxu0 %v7425_v26  ;;  %v5547_v26 = vld [vmem:[#allocation19 + $0x78] sm:$0xff] }
 0x40d   :  { %1518 = vmatpush.msra.mxu1 %v5484_v43  ;;  %1538 = vmatpush.msra.mxu2 %v5487_v1  ;;  %7449 = vst [vmem:[#allocation65_spill] sm:$0xff] %v5547_v26 }
 0x40e   :  { %1396 = vmatpush.msra.mxu0 %v7426_v22  ;;  %v5550_v22 = vld [vmem:[#allocation19 + $0x80] sm:$0xff] }
 0x40f   :  { %1519 = vmatpush.msra.mxu1 %v5491_v54  ;;  %1539 = vmatpush.msra.mxu2 %v5494_v63  ;;  %7450 = vst [vmem:[#allocation68_spill] sm:$0xff] %v5550_v22 }
 0x410   :  { %1397 = vmatpush.msra.mxu0 %v7427_v29  ;;  %v7451_v29 = vld [vmem:[#allocation70_spill] sm:$0xff] }
 0x411   :  { %1520 = vmatpush.msra.mxu1 %v5498_v30  ;;  %1540 = vmatpush.msra.mxu2 %v5501_v4 }
 0x412   :  { %1398 = vmatpush.msra.mxu0 %v7430_v13  ;;  %v5554_v13 = vld [vmem:[#allocation19 + $0x60] sm:$0xff] }
 0x413   :  { %1521 = vmatpush.msra.mxu1 %v5505_v50  ;;  %1541 = vmatpush.msra.mxu2 %v5508_v9  ;;  %7452 = vst [vmem:[#allocation71_spill] sm:$0xff] %v5554_v13 }
 0x414   :  { %1399 = vmatpush.msra.mxu0 %v7433_v60  ;;  %v5557_v60 = vld [vmem:[#allocation19 + $0x68] sm:$0xff] }
 0x415   :  { %1522 = vmatpush.msra.mxu1 %v5512_v18  ;;  %1542 = vmatpush.msra.mxu2 %v5515_v21  ;;  %7453 = vst [vmem:[#allocation74_spill] sm:$0xff] %v5557_v60 }
 0x416   :  { %1400 = vmatpush.msra.mxu0 %v7436_v59  ;;  %v7454_v59 = vld [vmem:[#allocation72_spill] sm:$0xff] }
 0x417   :  { %1523 = vmatpush.msra.mxu1 %v5519_v35  ;;  %1543 = vmatpush.msra.mxu2 %v5522_v51  ;;  %v7471_v51 = vld [vmem:[#allocation85_spill] sm:$0xff] }
 0x418   :  { %1401 = vmatpush.msra.mxu0 %v7439_v49  ;;  %v5561_v49 = vld [vmem:[#allocation19 + $0x48] sm:$0xff] }
 0x419   :  { %1524 = vmatpush.msra.mxu1 %v5526_v58  ;;  %1544 = vmatpush.msra.mxu2 %v5529_v2  ;;  %7455 = vst [vmem:[#allocation93_spill] sm:$0xff] %v5561_v49  ;;  %v7470_v58 = vld [vmem:[#allocation105_spill] sm:$0xff] }
 0x41a   :  { %1402 = vmatpush.msra.mxu0 %v7442_v52  ;;  %v5564_v52 = vld [vmem:[#allocation19 + $0x50] sm:$0xff] }
 0x41b   :  { %1525 = vmatpush.msra.mxu1 %v5533_v37  ;;  %1545 = vmatpush.msra.mxu2 %v5536_v6  ;;  %7456 = vst [vmem:[#allocation94_spill] sm:$0xff] %v5564_v52  ;;  %v7468_v6 = vld [vmem:[#allocation86_spill] sm:$0xff]  ;;  %v7469_v37 = vld [vmem:[#allocation84_spill] sm:$0xff] }
 0x41c   :  { %1403 = vmatpush.msra.mxu0 %v7445_v47  ;;  %v7457_v47 = vld [vmem:[#allocation73_spill] sm:$0xff] }
 0x41d   :  { %1526 = vmatpush.msra.mxu1 %v5540_v53  ;;  %1546 = vmatpush.msra.mxu2 %v5543_v0  ;;  %v7466_v0 = vld [vmem:[#allocation77_spill] sm:$0xff] }
 0x41e   :  { %1404 = vmatpush.msra.mxu0 %v7448_v62  ;;  %v5568_v62 = vld [vmem:[#allocation19 + $0x30] sm:$0xff] }
 0x41f   :  { %1527 = vmatpush.msra.mxu1 %v5547_v26  ;;  %1547 = vmatpush.msra.mxu2 %v5550_v22  ;;  %7458 = vst [vmem:[#allocation96_spill] sm:$0xff] %v5568_v62  ;;  %v7464_v22 = vld [vmem:[#allocation90_spill] sm:$0xff]  ;;  %v1002_v26 = vpop.f32.mrf.mxu1 }
 0x420   :  { %1405 = vmatpush.msra.mxu0 %v7451_v29  ;;  %v5571_v29 = vld [vmem:[#allocation19 + $0x38] sm:$0xff] }
 0x421   :  { %1528 = vmatpush.msra.mxu1 %v5554_v13  ;;  %1548 = vmatpush.msra.mxu2 %v5557_v60  ;;  %7459 = vst [vmem:[#allocation97_spill] sm:$0xff] %v5571_v29  ;;  %v7460_v60 = vld [vmem:[#allocation75_spill] sm:$0xff]  ;;  %v7462_v13 = vld [vmem:[#allocation89_spill] sm:$0xff] }
 0x422   :  { %1406 = vmatpush.msra.mxu0 %v7454_v59  ;;  %v7461_v59 = vld [vmem:[#allocation88_spill] sm:$0xff] }
 0x423   :  { %1529 = vmatpush.msra.mxu1 %v5561_v49  ;;  %1549 = vmatpush.msra.mxu2 %v5564_v52  ;;  %v7463_v49 = vld [vmem:[#allocation76_spill] sm:$0xff]  ;;  %v7465_v52 = vld [vmem:[#allocation91_spill] sm:$0xff] }
 0x424   :  { %1407 = vmatpush.msra.mxu0 %v7457_v47  ;;  %v982_v47 = vpop.f32.mrf.mxu0 }
 0x425   :  { %1530 = vmatpush.msra.mxu1 %v5568_v62  ;;  %1550 = vmatpush.msra.mxu2 %v5571_v29  ;;  %v7467_v62 = vld [vmem:[#allocation87_spill] sm:$0xff]  ;;  %v424_v29 = vadd.f32 %v7469_v37, %v7468_v6  ;;  %v1022_v37 = vpop.f32.mrf.mxu2 }
 0x426   :  { %1408 = vmatpush.msra.mxu0 %v7460_v60  ;;  %v423_v53 = vadd.f32 %v7467_v62, %v7466_v0 }
 0x427   :  { %1531 = vmatpush.msra.mxu1 %v7461_v59  ;;  %1551 = vmatpush.msra.mxu2 %v7462_v13  ;;  %v1025_v59 = vadd.f32 %v982_v47, %v7470_v58  ;;  %v1026_v13 = vadd.f32 %v1002_v26, %v7471_v51 }
 0x428   :  { %1409 = vmatpush.msra.mxu0 %v7463_v49 }
 0x429   :  { %1532 = vmatpush.msra.mxu1 %v7464_v22  ;;  %1552 = vmatpush.msra.mxu2 %v7465_v52 }
 0x486   :  { %v1192_v2 = vpop.f32.mrf.mxu0  ;;  %v1212_v60 = vpop.f32.mrf.mxu1 }
 0x487   :  { %v1235_v35 = vadd.f32 %v1192_v2, %v423_v53  ;;  %v1236_v49 = vadd.f32 %v1212_v60, %v424_v29 }
 0x489   :  { %v1238_v21 = vadd.f32 %v1235_v35, %v1025_v59  ;;  %v1258_v22 = vadd.f32 %v1236_v49, %v1026_v13  ;;  %v7473_v59 = vld [vmem:[#allocation108_spill] sm:$0xff]  ;;  %v1027_v49 = vadd.f32 %v1022_v37, %v5296_v48 }
 0x48b   :  { %v3366_v18 = vmul.f32 -1.442695, %v1238_v21  ;;  %v3367_v52 = vmul.f32 -1.442695, %v1258_v22 }
 0x48d   :  { %3502 = vpow2.f32 %v3366_v18  ;;  %v1232_v60 = vpop.f32.mrf.mxu2 }
 0x48e   :  { %3504 = vpow2.f32 %v3367_v52 }
 0x493   :  { %v3503_v9 = vpop.eup %3502 }
 0x494   :  { %v3505_v50 = vpop.eup %3504  ;;  %v1242_v0 = vadd.f32 1.0, %v3503_v9 }
 0x495   :  { %v1262_v62 = vadd.f32 1.0, %v3505_v50  ;;  %v7472_v50 = vld [vmem:[#allocation34_spill] sm:$0xff] }
 0x496   :  { %3506 = vrcp.f32 %v1242_v0  ;;  %v1254_v53 = vand.u32 2147483648, %v1242_v0  ;;  %v1252_v21 = vand.u32 2147483647, %v1242_v0  ;;  %vm1248_vm1 = vweird.f32 %v1242_v0 }
 0x497   :  { %3508 = vrcp.f32 %v1262_v62  ;;  %v425_v13 = vadd.f32 %v7473_v59, %v7472_v50  ;;  %vm1268_vm5 = vweird.f32 %v1262_v62 }
 0x498   :  { %v1255_v9 = vor.u32 1.1754944e-38, %v1254_v53  ;;  %vm1253_vm3 = vcmp.eq.f32.partialorder %v1252_v21, 8.507059e+37 }
 0x49c   :  { %v3507_v6 = vpop.eup %3506 }
 0x49d   :  { %v3509_v4 = vpop.eup %3508  ;;  %v1244_v47 = vmul.f32 %v3507_v6, %v1242_v0  ;;  %vm1249_vm0 = vweird.f32 %v3507_v6 }
 0x49e   :  { %v1264_v58 = vmul.f32 %v3509_v4, %v1262_v62  ;;  %vm1250_vm2 = vmor %vm1248_vm1, %vm1249_vm0  ;;  %vm1269_vm4 = vweird.f32 %v3509_v4 }
 0x49f   :  { %v1245_v26 = vsub.f32 1.0, %v1244_v47  ;;  %vm1270_vm6 = vmor %vm1268_vm5, %vm1269_vm4 }
 0x4a0   :  { %v1265_v2 = vsub.f32 1.0, %v1264_v58  ;;  %v1237_v58 = vadd.f32 %v1232_v60, %v425_v13  ;;  %v5714_v60 = vld [vmem:[#allocation15 + $0x58] sm:$0xff]  ;;  %v5723_v13 = vld [vmem:[#allocation15 + $0x30] sm:$0xff] }
 0x4a1   :  { %v1246_v35 = vmul.f32 %v3507_v6, %v1245_v26  ;;  %v1274_v26 = vand.u32 2147483648, %v1262_v62  ;;  %7478 = vst [vmem:[#allocation102_spill] sm:$0xff] %v5714_v60 }
 0x4a2   :  { %v1266_v29 = vmul.f32 %v3509_v4, %v1265_v2  ;;  %v1272_v2 = vand.u32 2147483647, %v1262_v62  ;;  %v5705_v62 = vld [vmem:[#allocation15 + $0x40] sm:$0xff]  ;;  %7481 = vst [vmem:[#allocation58_spill] sm:$0xff] %v5723_v13 }
 0x4a3   :  { %v1247_v18 = vadd.f32 %v3507_v6, %v1246_v35  ;;  %v1275_v30 = vor.u32 1.1754944e-38, %v1274_v26  ;;  %7475 = vst [vmem:[#allocation99_spill] sm:$0xff] %v5705_v62 }
 0x4a4   :  { %v1267_v47 = vadd.f32 %v3509_v4, %v1266_v29  ;;  %vm1273_vm7 = vcmp.eq.f32.partialorder %v1272_v2, 8.507059e+37  ;;  %v5708_v29 = vld [vmem:[#allocation15 + $0x48] sm:$0xff] }
 0x4a5   :  { %v1251_v22 = vsel %vm1250_vm2, %v3507_v6, %v1247_v18  ;;  %7476 = vst [vmem:[#allocation100_spill] sm:$0xff] %v5708_v29  ;;  %v5711_v18 = vld [vmem:[#allocation15 + $0x50] sm:$0xff] }
 0x4a6   :  { %v1256_v52 = vsel %vm1253_vm3, %v1255_v9, %v1251_v22  ;;  %v1271_v35 = vsel %vm1270_vm6, %v3509_v4, %v1267_v47  ;;  %v5597_v4 = vld [vmem:[#allocation15 + $0x1e0] sm:$0xff]  ;;  %7477 = vst [vmem:[#allocation101_spill] sm:$0xff] %v5711_v18  ;;  %v5735_v47 = vld [vmem:[#allocation15 + $0x10] sm:$0xff] }
 0x4a7   :  { %v1278_v51 = vmul.f32 %v1256_v52, %v1027_v49  ;;  %v1276_v53 = vsel %vm1273_vm7, %v1275_v30, %v1271_v35  ;;  %v5609_v30 = vld [vmem:[#allocation15 + $0x1a0] sm:$0xff]  ;;  %v5726_v49 = vld [vmem:[#allocation15 + $0x38] sm:$0xff]  ;;  %v5732_v52 = vld [vmem:[#allocation15 + $0x8] sm:$0xff]  ;;  %7485 = vst [vmem:[#allocation64_spill] sm:$0xff] %v5735_v47 }
 0x4a8   :  { %v1281_v50 = vsub.f32 1.0, %v1276_v53  ;;  %v1283_v6 = vmul.f32 %v1276_v53, %v5301_v40  ;;  %v5603_v40 = vld [vmem:[#allocation15 + $0x1c0] sm:$0xff]  ;;  %7482 = vst [vmem:[#allocation60_spill] sm:$0xff] %v5726_v49  ;;  %v5743_v53 = vld [vmem:[#allocation19 + $0x178] sm:$0xff] }
 0x4a9   :  { %v1279_v0 = vadd.f32 %v1278_v51, %v1237_v58  ;;  %v5702_v51 = vld [vmem:[#allocation15 + $0x78] sm:$0xff]  ;;  %v5717_v9 = vld [vmem:[#allocation15 + $0x20] sm:$0xff]  ;;  %7484 = vst [vmem:[#allocation63_spill] sm:$0xff] %v5732_v52 }
 0x4aa   :  { %7474 = vst [vmem:[#allocation98_spill] sm:$0xff] %v5702_v51  ;;  %v5729_v22 = vld [vmem:[#allocation15] sm:$0xff]  ;;  %v5738_v58 = vld [vmem:[#allocation15 + $0x18] sm:$0xff] }
 0x4ab   :  { %3510 = vtanh.f32 %v1279_v0  ;;  %7479 = vst [vmem:[#allocation103_spill] sm:$0xff] %v5717_v9 }
 0x4ac   :  { %7483 = vst [vmem:[#allocation61_spill] sm:$0xff] %v5729_v22 }
 0x4ad   :  { %7486 = vst [vmem:[#allocation66_spill] sm:$0xff] %v5738_v58 }
 0x4ae   :  { %7487 = vst [vmem:[#allocation67_spill] sm:$0xff] %v5743_v53 }
 0x4b1   :  { %v3511_v59 = vpop.eup %3510 }
 0x4b2   :  { %v1282_v37 = vmul.f32 %v3511_v59, %v1281_v50  ;;  %v5720_v59 = vld [vmem:[#allocation15 + $0x28] sm:$0xff]  ;;  %v5746_v50 = vld [vmem:[#allocation19 + $0x160] sm:$0xff] }
 0x4b3   :  { %7480 = vst [vmem:[#allocation104_spill] sm:$0xff] %v5720_v59 }
 0x4b4   :  { %v5590_v21 = vadd.f32 %v1283_v6, %v1282_v37  ;;  %7488 = vst [vmem:[#allocation69_spill] sm:$0xff] %v5746_v50  ;;  %v5750_v6 = vld [vmem:[#allocation19 + $0x148] sm:$0xff] }
 0x4b5   :  { %7489 = vst [vmem:[#allocation70_spill] sm:$0xff] %v5750_v6 }
 0x4b6   :  { %1286 = vst [vmem:[#allocation21 + $0x8] sm:$0xff] %v5590_v21  ;;  %1303 = vmatmul.f32.vlgmr.msrb.gmra.mxu0 %v5590_v21  ;;  %1323 = vmatmul.f32.vlgmr.msrb.gmra.mxu1 %v5590_v21 }
 0x4b7   :  { %1343 = vmatmul.f32.vlgmr.msrb.gmra.mxu2 %v5590_v21  ;;  %1363 = vmatmul.f32.vlgmr.msrb.gmra.mxu3 %v5590_v21 }
 0x4b8   :  { %1629 = vmatpush.msrb.mxu1 %v5597_v4  ;;  %1649 = vmatpush.msrb.mxu2 %v5309_v25  ;;  %v5615_v25 = vld [vmem:[#allocation15 + $0x180] sm:$0xff] }
 0x4b9   :  { %1669 = vmatpush.msrb.mxu3 %v5312_v11  ;;  %1689 = vmatpush.msrb.mxu0 %v5315_v16  ;;  %v5621_v11 = vld [vmem:[#allocation15 + $0x160] sm:$0xff] }
 0x4ba   :  { %1630 = vmatpush.msrb.mxu1 %v5603_v40  ;;  %1650 = vmatpush.msrb.mxu2 %v5319_v14  ;;  %v5627_v16 = vld [vmem:[#allocation15 + $0x140] sm:$0xff] }
 0x4bb   :  { %1670 = vmatpush.msrb.mxu3 %v5322_v44  ;;  %1690 = vmatpush.msrb.mxu0 %v5325_v61  ;;  %v5633_v14 = vld [vmem:[#allocation15 + $0x120] sm:$0xff] }
 0x4bc   :  { %1631 = vmatpush.msrb.mxu1 %v5609_v30  ;;  %1651 = vmatpush.msrb.mxu2 %v5329_v32  ;;  %v5639_v44 = vld [vmem:[#allocation15 + $0x100] sm:$0xff]  ;;  %v5648_v32 = vld [vmem:[#allocation15 + $0xe8] sm:$0xff] }
 0x4bd   :  { %1671 = vmatpush.msrb.mxu3 %v5332_v36  ;;  %1691 = vmatpush.msrb.mxu0 %v5335_v56  ;;  %v5645_v61 = vld [vmem:[#allocation15 + $0xe0] sm:$0xff]  ;;  %v5651_v36 = vld [vmem:[#allocation15 + $0xf0] sm:$0xff]  ;;  %v5654_v56 = vld [vmem:[#allocation15 + $0xf8] sm:$0xff] }
 0x4be   :  { %1632 = vmatpush.msrb.mxu1 %v5615_v25  ;;  %1652 = vmatpush.msrb.mxu2 %v5339_v19  ;;  %v5657_v19 = vld [vmem:[#allocation15 + $0xc0] sm:$0xff] }
 0x4bf   :  { %1672 = vmatpush.msrb.mxu3 %v5342_v5  ;;  %1692 = vmatpush.msrb.mxu0 %v5345_v27  ;;  %v5660_v5 = vld [vmem:[#allocation15 + $0xc8] sm:$0xff]  ;;  %v5663_v27 = vld [vmem:[#allocation15 + $0xd0] sm:$0xff] }
 0x4c0   :  { %1633 = vmatpush.msrb.mxu1 %v5621_v11  ;;  %1653 = vmatpush.msrb.mxu2 %v5349_v3  ;;  %v5666_v3 = vld [vmem:[#allocation15 + $0xd8] sm:$0xff] }
 0x4c1   :  { %1673 = vmatpush.msrb.mxu3 %v5352_v15  ;;  %1693 = vmatpush.msrb.mxu0 %v5355_v38  ;;  %v5669_v15 = vld [vmem:[#allocation15 + $0xa0] sm:$0xff]  ;;  %v5672_v38 = vld [vmem:[#allocation15 + $0xa8] sm:$0xff] }
 0x4c2   :  { %1634 = vmatpush.msrb.mxu1 %v5627_v16  ;;  %1654 = vmatpush.msrb.mxu2 %v5359_v24  ;;  %v5675_v24 = vld [vmem:[#allocation15 + $0xb0] sm:$0xff] }
 0x4c3   :  { %1674 = vmatpush.msrb.mxu3 %v5362_v41  ;;  %1694 = vmatpush.msrb.mxu0 %v5365_v28  ;;  %v5678_v41 = vld [vmem:[#allocation15 + $0xb8] sm:$0xff]  ;;  %v5681_v28 = vld [vmem:[#allocation15 + $0x80] sm:$0xff] }
 0x4c4   :  { %1635 = vmatpush.msrb.mxu1 %v5633_v14  ;;  %1655 = vmatpush.msrb.mxu2 %v5369_v33  ;;  %v5684_v33 = vld [vmem:[#allocation15 + $0x88] sm:$0xff] }
 0x4c5   :  { %1675 = vmatpush.msrb.mxu3 %v5372_v42  ;;  %1695 = vmatpush.msrb.mxu0 %v5375_v46  ;;  %v5687_v42 = vld [vmem:[#allocation15 + $0x90] sm:$0xff]  ;;  %v5690_v46 = vld [vmem:[#allocation15 + $0x98] sm:$0xff] }
 0x4c6   :  { %1636 = vmatpush.msrb.mxu1 %v5639_v44  ;;  %1656 = vmatpush.msrb.mxu2 %v5379_v20  ;;  %v5693_v20 = vld [vmem:[#allocation15 + $0x60] sm:$0xff] }
 0x4c7   :  { %1676 = vmatpush.msrb.mxu3 %v5382_v31  ;;  %1696 = vmatpush.msrb.mxu0 %v5385_v12  ;;  %v5696_v31 = vld [vmem:[#allocation15 + $0x68] sm:$0xff]  ;;  %v5699_v12 = vld [vmem:[#allocation15 + $0x70] sm:$0xff] }
 0x4c8   :  { %1637 = vmatpush.msrb.mxu1 %v5645_v61  ;;  %1657 = vmatpush.msrb.mxu2 %v5648_v32 }
 0x4c9   :  { %1677 = vmatpush.msrb.mxu3 %v5651_v36  ;;  %1697 = vmatpush.msrb.mxu0 %v5654_v56 }
 0x4ca   :  { %1638 = vmatpush.msrb.mxu1 %v5657_v19  ;;  %1658 = vmatpush.msrb.mxu2 %v5660_v5 }
 0x4cb   :  { %1678 = vmatpush.msrb.mxu3 %v5663_v27  ;;  %1698 = vmatpush.msrb.mxu0 %v5666_v3 }
 0x4cc   :  { %1639 = vmatpush.msrb.mxu1 %v5669_v15  ;;  %1659 = vmatpush.msrb.mxu2 %v5672_v38 }
 0x4cd   :  { %1679 = vmatpush.msrb.mxu3 %v5675_v24  ;;  %1699 = vmatpush.msrb.mxu0 %v5678_v41 }
 0x4ce   :  { %1640 = vmatpush.msrb.mxu1 %v5681_v28  ;;  %1660 = vmatpush.msrb.mxu2 %v5684_v33 }
 0x4cf   :  { %1680 = vmatpush.msrb.mxu3 %v5687_v42  ;;  %1700 = vmatpush.msrb.mxu0 %v5690_v46 }
 0x4d0   :  { %1641 = vmatpush.msrb.mxu1 %v5693_v20  ;;  %1661 = vmatpush.msrb.mxu2 %v5696_v31 }
 0x4d1   :  { %1681 = vmatpush.msrb.mxu3 %v5699_v12  ;;  %1701 = vmatpush.msrb.mxu0 %v5702_v51 }
 0x4d2   :  { %1642 = vmatpush.msrb.mxu1 %v5705_v62  ;;  %1662 = vmatpush.msrb.mxu2 %v5708_v29 }
 0x4d3   :  { %1682 = vmatpush.msrb.mxu3 %v5711_v18  ;;  %1702 = vmatpush.msrb.mxu0 %v5714_v60 }
 0x4d4   :  { %1643 = vmatpush.msrb.mxu1 %v5717_v9  ;;  %1663 = vmatpush.msrb.mxu2 %v5720_v59  ;;  %v7510_v9 = vld [vmem:[#allocation54_spill] sm:$0xff] }
 0x4d5   :  { %1683 = vmatpush.msrb.mxu3 %v5723_v13  ;;  %1703 = vmatpush.msrb.mxu0 %v5726_v49  ;;  %v7509_v49 = vld [vmem:[#allocation53_spill] sm:$0xff] }
 0x4d6   :  { %1644 = vmatpush.msrb.mxu1 %v5729_v22  ;;  %1664 = vmatpush.msrb.mxu2 %v5732_v52  ;;  %v7506_v52 = vld [vmem:[#allocation49_spill] sm:$0xff]  ;;  %v7508_v22 = vld [vmem:[#allocation51_spill] sm:$0xff] }
 0x4d7   :  { %1684 = vmatpush.msrb.mxu3 %v5735_v47  ;;  %1704 = vmatpush.msrb.mxu0 %v5738_v58 }
 0x533   :  { %v1304_v26 = vpop.f32.mrf.mxu0 }
 0x534   :  { %v1378_v2 = vadd.f32 %v1304_v26, %v5420_v8  ;;  %v1379_v0 = vadd.f32 %v1304_v26, %v5423_v34  ;;  %v1380_v37 = vadd.f32 %v1304_v26, %v5427_v57  ;;  %v5756_v34 = vld [vmem:[#allocation19 + $0x118] sm:$0xff]  ;;  %v1381_v57 = vadd.f32 %v1304_v26, %v5434_v23 }
 0x535   :  { %7491 = vst [vmem:[#allocation73_spill] sm:$0xff] %v5756_v34  ;;  %v1382_v23 = vadd.f32 %v1304_v26, %v5441_v10  ;;  %v1383_v10 = vadd.f32 %v1304_v26, %v5448_v7 }
 0x536   :  { %3512 = vtanh.f32 %v1378_v2  ;;  %v5753_v2 = vld [vmem:[#allocation19 + $0x130] sm:$0xff] }
 0x537   :  { %3514 = vtanh.f32 %v1379_v0  ;;  %7490 = vst [vmem:[#allocation72_spill] sm:$0xff] %v5753_v2  ;;  %v5759_v0 = vld [vmem:[#allocation19 + $0x100] sm:$0xff] }
 0x538   :  { %3516 = vtanh.f32 %v1380_v37  ;;  %7492 = vst [vmem:[#allocation75_spill] sm:$0xff] %v5759_v0  ;;  %v5769_v37 = vld [vmem:[#allocation19 + $0xb8] sm:$0xff] }
 0x539   :  { %3518 = vtanh.f32 %v1381_v57  ;;  %7495 = vst [vmem:[#allocation76_spill] sm:$0xff] %v5769_v37  ;;  %v5785_v57 = vld [vmem:[#allocation19 + $0x40] sm:$0xff] }
 0x53a   :  { %3520 = vtanh.f32 %v1382_v23  ;;  %7500 = vst [vmem:[#allocation34_spill] sm:$0xff] %v5785_v57 }
 0x53b   :  { %3522 = vtanh.f32 %v1383_v10  ;;  %v7503_v10 = vld [vmem:[#allocation45_spill] sm:$0xff] }
 0x53c   :  { %v3513_v35 = vpop.eup %3512 }
 0x53d   :  { %1410 = vmatmul.f32.vlgmr.msra.gmra.mxu0 %v3513_v35  ;;  %v3515_v8 = vpop.eup %3514  ;;  %v5763_v35 = vld [vmem:[#allocation19 + $0xe8] sm:$0xff] }
 0x53e   :  { %1899 = vmatpush.msra.mxu0 %v5743_v53  ;;  %7493 = vst [vmem:[#allocation88_spill] sm:$0xff] %v5763_v35 }
 0x540   :  { %1900 = vmatpush.msra.mxu0 %v5746_v50  ;;  %v5766_v50 = vld [vmem:[#allocation19 + $0xd0] sm:$0xff] }
 0x541   :  { %7494 = vst [vmem:[#allocation89_spill] sm:$0xff] %v5766_v50 }
 0x542   :  { %1901 = vmatpush.msra.mxu0 %v5750_v6  ;;  %v3517_v6 = vpop.eup %3516 }
 0x544   :  { %1902 = vmatpush.msra.mxu0 %v5753_v2 }
 0x545   :  { %1413 = vmatmul.f32.gmra.mxu0 %v3515_v8  ;;  %v5772_v8 = vld [vmem:[#allocation19 + $0xa0] sm:$0xff] }
 0x546   :  { %1903 = vmatpush.msra.mxu0 %v5756_v34  ;;  %7496 = vst [vmem:[#allocation90_spill] sm:$0xff] %v5772_v8  ;;  %v5779_v34 = vld [vmem:[#allocation19 + $0x70] sm:$0xff] }
 0x547   :  { %7498 = vst [vmem:[#allocation77_spill] sm:$0xff] %v5779_v34 }
 0x548   :  { %1904 = vmatpush.msra.mxu0 %v5759_v0  ;;  %v5776_v0 = vld [vmem:[#allocation19 + $0x88] sm:$0xff] }
 0x549   :  { %7497 = vst [vmem:[#allocation91_spill] sm:$0xff] %v5776_v0 }
 0x54a   :  { %1905 = vmatpush.msra.mxu0 %v5763_v35  ;;  %v3519_v35 = vpop.eup %3518 }
 0x54c   :  { %1906 = vmatpush.msra.mxu0 %v5766_v50 }
 0x54d   :  { %1416 = vmatmul.f32.gmra.mxu0 %v3517_v6  ;;  %v5782_v6 = vld [vmem:[#allocation19 + $0x58] sm:$0xff] }
 0x54e   :  { %1907 = vmatpush.msra.mxu0 %v5769_v37  ;;  %7499 = vst [vmem:[#allocation86_spill] sm:$0xff] %v5782_v6  ;;  %v5792_v37 = vld [vmem:[#allocation19 + $0x10] sm:$0xff] }
 0x54f   :  { %7502 = vst [vmem:[#allocation110_spill] sm:$0xff] %v5792_v37 }
 0x550   :  { %1908 = vmatpush.msra.mxu0 %v5772_v8  ;;  %v5789_v8 = vld [vmem:[#allocation19 + $0x28] sm:$0xff] }
 0x551   :  { %7501 = vst [vmem:[#allocation109_spill] sm:$0xff] %v5789_v8 }
 0x552   :  { %1909 = vmatpush.msra.mxu0 %v5776_v0  ;;  %v3521_v0 = vpop.eup %3520 }
 0x553   :  { %v3523_v23 = vpop.eup %3522 }
 0x554   :  { %1910 = vmatpush.msra.mxu0 %v5779_v34 }
 0x555   :  { %1419 = vmatmul.f32.gmra.mxu0 %v3519_v35  ;;  %v1384_v35 = vadd.f32 %v1304_v26, %v5454_v45  ;;  %v7504_v45 = vld [vmem:[#allocation47_spill] sm:$0xff] }
 0x556   :  { %1911 = vmatpush.msra.mxu0 %v5782_v6 }
 0x557   :  { %3524 = vtanh.f32 %v1384_v35 }
 0x558   :  { %1912 = vmatpush.msra.mxu0 %v5785_v57  ;;  %v1385_v57 = vadd.f32 %v1304_v26, %v5457_v55  ;;  %v7507_v26 = vld [vmem:[#allocation50_spill] sm:$0xff] }
 0x55a   :  { %1913 = vmatpush.msra.mxu0 %v5789_v8  ;;  %3526 = vtanh.f32 %v1385_v57 }
 0x55c   :  { %1914 = vmatpush.msra.mxu0 %v5792_v37 }
 0x55d   :  { %1422 = vmatmul.f32.gmra.mxu0 %v3521_v0  ;;  %v3525_v6 = vpop.eup %3524 }
 0x560   :  { %v3527_v7 = vpop.eup %3526 }
 0x565   :  { %1425 = vmatmul.f32.gmra.mxu0 %v3523_v23  ;;  %v7505_v23 = vld [vmem:[#allocation48_spill] sm:$0xff] }
 0x56d   :  { %1428 = vmatmul.f32.gmra.mxu0 %v3525_v6 }
 0x575   :  { %1431 = vmatmul.f32.gmra.mxu0 %v3527_v7 }
 0x5ba   :  { %v1411_v8 = vpop.f32.mrf.mxu0 }
 0x5bb   :  { %v1435_v6 = vadd.f32 %v1411_v8, %v7507_v26 }
 0x5c2   :  { %v1414_v34 = vpop.f32.mrf.mxu0 }
 0x5c3   :  { %v1436_v47 = vadd.f32 %v1414_v34, %v7504_v45 }
 0x5ca   :  { %v1417_v50 = vpop.f32.mrf.mxu0 }
 0x5cb   :  { %v1437_v7 = vadd.f32 %v1417_v50, %v7508_v22 }
 0x5d2   :  { %v1420_v2 = vpop.f32.mrf.mxu0 }
 0x5d3   :  { %v1438_v13 = vadd.f32 %v1420_v2, %v7509_v49 }
 0x5da   :  { %v1423_v53 = vpop.f32.mrf.mxu0 }
 0x5db   :  { %v1439_v35 = vadd.f32 %v1423_v53, %v7505_v23 }
 0x5dd   :  { %v1443_v18 = vmax.f32 %v1435_v6, %v1439_v35 }
 0x5e2   :  { %v1426_v37 = vpop.f32.mrf.mxu0 }
 0x5e3   :  { %v1440_v58 = vadd.f32 %v1426_v37, %v7503_v10 }
 0x5e5   :  { %v1444_v59 = vmax.f32 %v1436_v47, %v1440_v58 }
 0x5e7   :  { %v1447_v37 = vmax.f32 %v1443_v18, %v1444_v59 }
 0x5ea   :  { %v1429_v0 = vpop.f32.mrf.mxu0 }
 0x5eb   :  { %v1441_v55 = vadd.f32 %v1429_v0, %v7506_v52 }
 0x5ed   :  { %v1445_v29 = vmax.f32 %v1437_v7, %v1441_v55 }
 0x5f2   :  { %v1432_v57 = vpop.f32.mrf.mxu0 }
 0x5f3   :  { %v1442_v60 = vadd.f32 %v1432_v57, %v7510_v9 }
 0x5f5   :  { %v1446_v62 = vmax.f32 %v1438_v13, %v1442_v60 }
 0x5f7   :  { %v1448_v10 = vmax.f32 %v1445_v29, %v1446_v62 }
 0x5f9   :  { %v1449_v34 = vmax.f32 %v1447_v37, %v1448_v10 }
 0x5fb   :  { %v1450_v45 = vsub.f32 %v1435_v6, %v1449_v34  ;;  %v1451_v53 = vsub.f32 %v1436_v47, %v1449_v34  ;;  %v1452_v23 = vsub.f32 %v1437_v7, %v1449_v34  ;;  %v1453_v0 = vsub.f32 %v1438_v13, %v1449_v34 }
 0x5fc   :  { %v1454_v26 = vsub.f32 %v1439_v35, %v1449_v34  ;;  %v1455_v50 = vsub.f32 %v1440_v58, %v1449_v34  ;;  %v1456_v49 = vsub.f32 %v1441_v55, %v1449_v34  ;;  %v1457_v9 = vsub.f32 %v1442_v60, %v1449_v34  ;;  %v5807_v34 = vld [vmem:[#allocation9 + $0x8] sm:$0xff] }
 0x5fd   :  { %v1458_v52 = vmul.f32 1.442695, %v1450_v45  ;;  %v1460_v8 = vmul.f32 1.442695, %v1451_v53  ;;  %v1462_v51 = vmul.f32 1.442695, %v1452_v23 }
 0x5fe   :  { %v1464_v2 = vmul.f32 1.442695, %v1453_v0  ;;  %v1466_v57 = vmul.f32 1.442695, %v1454_v26  ;;  %v1468_v18 = vmul.f32 1.442695, %v1455_v50 }
 0x5ff   :  { %3528 = vpow2.f32 %v1458_v52  ;;  %v1470_v59 = vmul.f32 1.442695, %v1456_v49  ;;  %v1472_v10 = vmul.f32 1.442695, %v1457_v9  ;;  %v5805_v49 = vld [vmem:[#allocation9] sm:$0xff] }
 0x600   :  { %3530 = vpow2.f32 %v1460_v8  ;;  %v5809_v8 = vld [vmem:[#allocation9 + $0x10] sm:$0xff] }
 0x601   :  { %3532 = vpow2.f32 %v1462_v51 }
 0x602   :  { %3534 = vpow2.f32 %v1464_v2 }
 0x603   :  { %3536 = vpow2.f32 %v1466_v57 }
 0x604   :  { %3538 = vpow2.f32 %v1468_v18  ;;  %v5813_v18 = vld [vmem:[#allocation9 + $0x18] sm:$0xff] }
 0x605   :  { %v3529_v62 = vpop.eup %3528  ;;  %3540 = vpow2.f32 %v1470_v59 }
 0x606   :  { %v3531_v29 = vpop.eup %3530  ;;  %3542 = vpow2.f32 %v1472_v10 }
 0x607   :  { %v1474_v47 = vadd.f32 %v3531_v29, %v3529_v62  ;;  %v3533_v13 = vpop.eup %3532 }
 0x608   :  { %v3535_v23 = vpop.eup %3534 }
 0x609   :  { %v1475_v45 = vadd.f32 %v3533_v13, %v1474_v47  ;;  %v3537_v58 = vpop.eup %3536 }
 0x60a   :  { %v3539_v51 = vpop.eup %3538 }
 0x60b   :  { %v1476_v52 = vadd.f32 %v3535_v23, %v1475_v45  ;;  %v3541_v60 = vpop.eup %3540  ;;  %v5816_v45 = vld [vmem:[#allocation9 + $0x20] sm:$0xff] }
 0x60c   :  { %v3543_v6 = vpop.eup %3542 }
 0x60d   :  { %v1477_v35 = vadd.f32 %v3537_v58, %v1476_v52 }
 0x60f   :  { %v1478_v55 = vadd.f32 %v3539_v51, %v1477_v35 }
 0x611   :  { %v1479_v26 = vadd.f32 %v3541_v60, %v1478_v55 }
 0x613   :  { %v1480_v7 = vadd.f32 %v3543_v6, %v1479_v26  ;;  %v5822_v26 = vld [vmem:[#allocation9 + $0x30] sm:$0xff] }
 0x615   :  { %3544 = vrcp.f32 %v1480_v7 }
 0x61b   :  { %v3545_v37 = vpop.eup %3544 }
 0x61c   :  { %v1482_v9 = vmul.f32 %v3545_v37, %v3529_v62  ;;  %v1483_v53 = vmul.f32 %v3545_v37, %v3531_v29  ;;  %v1484_v0 = vmul.f32 %v3545_v37, %v3533_v13  ;;  %v1485_v50 = vmul.f32 %v3545_v37, %v3535_v23  ;;  %v5819_v13 = vld [vmem:[#allocation9 + $0x28] sm:$0xff] }
 0x61d   :  { %v1486_v59 = vmul.f32 %v3545_v37, %v3537_v58  ;;  %v1487_v52 = vmul.f32 %v3545_v37, %v3539_v51  ;;  %v1488_v35 = vmul.f32 %v3545_v37, %v3541_v60  ;;  %v1489_v7 = vmul.f32 %v3545_v37, %v3543_v6  ;;  %v5829_v60 = vld [vmem:[#allocation16 + $0x78] sm:$0xff]  ;;  %v5834_v6 = vld [vmem:[#allocation16 + $0x70] sm:$0xff]  ;;  %v5839_v37 = vld [vmem:[#allocation16 + $0x68] sm:$0xff] }
 0x61e   :  { %v1498_v2 = vmul.f32 %v5805_v49, %v1482_v9  ;;  %v1499_v57 = vmul.f32 %v5807_v34, %v1483_v53  ;;  %v1500_v47 = vmul.f32 %v5809_v8, %v1484_v0  ;;  %v1501_v62 = vmul.f32 %v5813_v18, %v1485_v50  ;;  %v5825_v53 = vld [vmem:[#allocation9 + $0x38] sm:$0xff]  ;;  %7511 = vst [vmem:[#allocation51_spill] sm:$0xff] %v5834_v6 }
 0x61f   :  { %v1502_v23 = vmul.f32 %v5816_v45, %v1486_v59  ;;  %v1503_v58 = vmul.f32 %v5819_v13, %v1487_v52  ;;  %v1504_v0 = vmul.f32 %v5822_v26, %v1488_v35  ;;  %v1505_v50 = vmul.f32 %v5825_v53, %v1489_v7  ;;  %7512 = vst [vmem:[#allocation111_spill] sm:$0xff] %v5839_v37  ;;  %v5844_v59 = vld [vmem:[#allocation16 + $0x60] sm:$0xff]  ;;  %v5859_v52 = vld [vmem:[#allocation16 + $0x48] sm:$0xff]  ;;  %v5869_v7 = vld [vmem:[#allocation16 + $0x38] sm:$0xff] }
 0x620   :  { %v1506_v10 = vadd.f32 %v1499_v57, %v1498_v2  ;;  %7513 = vst [vmem:[#allocation112_spill] sm:$0xff] %v5844_v59  ;;  %v5864_v35 = vld [vmem:[#allocation16 + $0x40] sm:$0xff] }
 0x622   :  { %v1507_v29 = vadd.f32 %v1506_v10, %v1500_v47  ;;  %v5849_v47 = vld [vmem:[#allocation16 + $0x58] sm:$0xff]  ;;  %v5854_v10 = vld [vmem:[#allocation16 + $0x50] sm:$0xff] }
 0x624   :  { %v1508_v55 = vadd.f32 %v1507_v29, %v1501_v62  ;;  %v7523_v62 = vld [vmem:[#allocation44_spill] sm:$0xff]  ;;  %v7524_v29 = vld [vmem:[#allocation46_spill] sm:$0xff] }
 0x626   :  { %v1509_v9 = vadd.f32 %v1508_v55, %v1502_v23  ;;  %v7526_v23 = vld [vmem:[#allocation52_spill] sm:$0xff]  ;;  %v7527_v55 = vld [vmem:[#allocation55_spill] sm:$0xff] }
 0x628   :  { %v1510_v51 = vadd.f32 %v1509_v9, %v1503_v58  ;;  %v7529_v58 = vld [vmem:[#allocation56_spill] sm:$0xff]  ;;  %v7530_v9 = vld [vmem:[#allocation57_spill] sm:$0xff] }
 0x62a   :  { %v1511_v2 = vadd.f32 %v1510_v51, %v1504_v0  ;;  %v5874_v0 = vld [vmem:[#allocation16 + $0x30] sm:$0xff] }
 0x62b   :  { %v7532_v51 = vld [vmem:[#allocation59_spill] sm:$0xff] }
 0x62c   :  { %v1512_v57 = vadd.f32 %v1511_v2, %v1505_v50  ;;  %v7533_v50 = vld [vmem:[#allocation62_spill] sm:$0xff] }
 0x62d   :  { %v5879_v2 = vld [vmem:[#allocation16 + $0x28] sm:$0xff] }
 0x62e   :  { %1533 = vmatmul.f32.vlgmr.msra.gmra.mxu1 %v1512_v57  ;;  %1553 = vmatmul.f32.vlgmr.msra.gmra.mxu2 %v1512_v57  ;;  %7534 = vst [vmem:[#allocation44_spill] sm:$0xff] %v5879_v2 }
 0x62f   :  { %1573 = vmatmul.f32.vlgmr.msra.gmra.mxu3 %v1512_v57  ;;  %1736 = vmatpush.msra.mxu1 %v5829_v60  ;;  %v7535_v57 = vld [vmem:[#allocation65_spill] sm:$0xff] }
 0x630   :  { %1859 = vmatpush.msra.mxu2 %v5477_v39  ;;  %1879 = vmatpush.msra.mxu3 %v5480_v17  ;;  %v7514_v39 = vld [vmem:[#allocation33_spill] sm:$0xff]  ;;  %v7515_v17 = vld [vmem:[#allocation92_spill] sm:$0xff] }
 0x631   :  { %1737 = vmatpush.msra.mxu1 %v5834_v6  ;;  %7516 = vst [vmem:[#allocation33_spill] sm:$0xff] %v5849_v47 }
 0x632   :  { %1860 = vmatpush.msra.mxu2 %v5484_v43  ;;  %1880 = vmatpush.msra.mxu3 %v5487_v1  ;;  %v7517_v43 = vld [vmem:[#allocation95_spill] sm:$0xff]  ;;  %v7518_v1 = vld [vmem:[#allocation41_spill] sm:$0xff]  ;;  %7519 = vst [vmem:[#allocation92_spill] sm:$0xff] %v5854_v10 }
 0x633   :  { %1738 = vmatpush.msra.mxu1 %v5839_v37  ;;  %7522 = vst [vmem:[#allocation95_spill] sm:$0xff] %v5859_v52 }
 0x634   :  { %1861 = vmatpush.msra.mxu2 %v5491_v54  ;;  %1881 = vmatpush.msra.mxu3 %v5494_v63  ;;  %v7520_v54 = vld [vmem:[#allocation42_spill] sm:$0xff]  ;;  %v7521_v63 = vld [vmem:[#allocation43_spill] sm:$0xff]  ;;  %7525 = vst [vmem:[#allocation41_spill] sm:$0xff] %v5864_v35 }
 0x635   :  { %1739 = vmatpush.msra.mxu1 %v5844_v59  ;;  %7528 = vst [vmem:[#allocation42_spill] sm:$0xff] %v5869_v7 }
 0x636   :  { %1862 = vmatpush.msra.mxu2 %v7514_v39  ;;  %1882 = vmatpush.msra.mxu3 %v7515_v17  ;;  %7531 = vst [vmem:[#allocation43_spill] sm:$0xff] %v5874_v0  ;;  %v7536_v39 = vld [vmem:[#allocation68_spill] sm:$0xff]  ;;  %v5884_v17 = vld [vmem:[#allocation16 + $0x20] sm:$0xff] }
 0x637   :  { %1740 = vmatpush.msra.mxu1 %v5849_v47  ;;  %7537 = vst [vmem:[#allocation46_spill] sm:$0xff] %v5884_v17 }
 0x638   :  { %1863 = vmatpush.msra.mxu2 %v7517_v43  ;;  %1883 = vmatpush.msra.mxu3 %v7518_v1  ;;  %v7538_v43 = vld [vmem:[#allocation71_spill] sm:$0xff]  ;;  %v7539_v1 = vld [vmem:[#allocation74_spill] sm:$0xff] }
 0x639   :  { %1741 = vmatpush.msra.mxu1 %v5854_v10 }
 0x63a   :  { %1864 = vmatpush.msra.mxu2 %v7520_v54  ;;  %1884 = vmatpush.msra.mxu3 %v7521_v63  ;;  %v5889_v54 = vld [vmem:[#allocation16 + $0x18] sm:$0xff]  ;;  %v7541_v63 = vld [vmem:[#allocation93_spill] sm:$0xff] }
 0x63b   :  { %1742 = vmatpush.msra.mxu1 %v5859_v52  ;;  %7540 = vst [vmem:[#allocation52_spill] sm:$0xff] %v5889_v54 }
 0x63c   :  { %1865 = vmatpush.msra.mxu2 %v7523_v62  ;;  %1885 = vmatpush.msra.mxu3 %v7524_v29  ;;  %v7542_v62 = vld [vmem:[#allocation94_spill] sm:$0xff]  ;;  %v5894_v29 = vld [vmem:[#allocation16 + $0x10] sm:$0xff] }
 0x63d   :  { %1743 = vmatpush.msra.mxu1 %v5864_v35  ;;  %7543 = vst [vmem:[#allocation55_spill] sm:$0xff] %v5894_v29 }
 0x63e   :  { %1866 = vmatpush.msra.mxu2 %v7526_v23  ;;  %1886 = vmatpush.msra.mxu3 %v7527_v55  ;;  %v7544_v23 = vld [vmem:[#allocation96_spill] sm:$0xff]  ;;  %v7545_v55 = vld [vmem:[#allocation97_spill] sm:$0xff] }
 0x63f   :  { %1744 = vmatpush.msra.mxu1 %v5869_v7 }
 0x640   :  { %1867 = vmatpush.msra.mxu2 %v7529_v58  ;;  %1887 = vmatpush.msra.mxu3 %v7530_v9  ;;  %v5899_v58 = vld [vmem:[#allocation16 + $0x8] sm:$0xff]  ;;  %v5902_v9 = vld [vmem:[#allocation19 + $0x18] sm:$0xff] }
 0x641   :  { %1745 = vmatpush.msra.mxu1 %v5874_v0  ;;  %7546 = vst [vmem:[#allocation56_spill] sm:$0xff] %v5899_v58 }
 0x642   :  { %1868 = vmatpush.msra.mxu2 %v7532_v51  ;;  %1888 = vmatpush.msra.mxu3 %v7533_v50  ;;  %7547 = vst [vmem:[#allocation57_spill] sm:$0xff] %v5902_v9  ;;  %v5905_v51 = vld [vmem:[#allocation19 + $0x20] sm:$0xff] }
 0x643   :  { %1746 = vmatpush.msra.mxu1 %v5879_v2  ;;  %7548 = vst [vmem:[#allocation59_spill] sm:$0xff] %v5905_v51  ;;  %v5908_v50 = vld [vmem:[#allocation16] sm:$0xff] }
 0x644   :  { %1869 = vmatpush.msra.mxu2 %v7535_v57  ;;  %1889 = vmatpush.msra.mxu3 %v7536_v39  ;;  %7549 = vst [vmem:[#allocation62_spill] sm:$0xff] %v5908_v50  ;;  %v5911_v57 = vld [vmem:[#allocation19] sm:$0xff]  ;;  %v5914_v39 = vld [vmem:[#allocation19 + $0x8] sm:$0xff] }
 0x645   :  { %1747 = vmatpush.msra.mxu1 %v5884_v17  ;;  %7550 = vst [vmem:[#allocation65_spill] sm:$0xff] %v5911_v57 }
 0x646   :  { %1870 = vmatpush.msra.mxu2 %v7538_v43  ;;  %1890 = vmatpush.msra.mxu3 %v7539_v1  ;;  %7551 = vst [vmem:[#allocation68_spill] sm:$0xff] %v5914_v39  ;;  %v1324_v43 = vpop.f32.mrf.mxu1  ;;  %v1344_v1 = vpop.f32.mrf.mxu2 }
 0x647   :  { %1748 = vmatpush.msra.mxu1 %v5889_v54  ;;  %v7555_v54 = vld [vmem:[#allocation106_spill] sm:$0xff] }
 0x648   :  { %1871 = vmatpush.msra.mxu2 %v7541_v63  ;;  %1891 = vmatpush.msra.mxu3 %v7542_v62  ;;  %v7552_v63 = vld [vmem:[#allocation78_spill] sm:$0xff]  ;;  %v7553_v62 = vld [vmem:[#allocation87_spill] sm:$0xff] }
 0x649   :  { %1749 = vmatpush.msra.mxu1 %v5894_v29 }
 0x64a   :  { %1872 = vmatpush.msra.mxu2 %v7544_v23  ;;  %1892 = vmatpush.msra.mxu3 %v7545_v55  ;;  %v426_v23 = vadd.f32 %v7553_v62, %v7552_v63 }
 0x64b   :  { %1750 = vmatpush.msra.mxu1 %v5899_v58 }
 0x64c   :  { %1873 = vmatpush.msra.mxu2 %v5902_v9  ;;  %1893 = vmatpush.msra.mxu3 %v5905_v51  ;;  %v7554_v9 = vld [vmem:[#allocation105_spill] sm:$0xff] }
 0x64d   :  { %1751 = vmatpush.msra.mxu1 %v5908_v50  ;;  %v1367_v51 = vadd.f32 %v1324_v43, %v7554_v9  ;;  %v7556_v50 = vld [vmem:[#allocation84_spill] sm:$0xff]  ;;  %v1364_v43 = vpop.f32.mrf.mxu3 }
 0x64e   :  { %1874 = vmatpush.msra.mxu2 %v5911_v57  ;;  %1894 = vmatpush.msra.mxu3 %v5914_v39  ;;  %v427_v17 = vadd.f32 %v7556_v50, %v7555_v54  ;;  %v7557_v57 = vld [vmem:[#allocation85_spill] sm:$0xff] }
 0x64f   :  { %v1368_v7 = vadd.f32 %v1344_v1, %v7557_v57 }
 0x6ab   :  { %v1534_v55 = vpop.f32.mrf.mxu1 }
 0x6ac   :  { %v1577_v58 = vadd.f32 %v1534_v55, %v426_v23 }
 0x6ae   :  { %v1580_v29 = vadd.f32 %v1577_v58, %v1367_v51 }
 0x6b0   :  { %v3368_v2 = vmul.f32 -1.442695, %v1580_v29 }
 0x6b1   :  { %v1554_v0 = vpop.f32.mrf.mxu2 }
 0x6b2   :  { %3546 = vpow2.f32 %v3368_v2  ;;  %v1578_v35 = vadd.f32 %v1554_v0, %v427_v17  ;;  %v1574_v0 = vpop.f32.mrf.mxu3 }
 0x6b4   :  { %v1600_v39 = vadd.f32 %v1578_v35, %v1368_v7  ;;  %v7558_v7 = vld [vmem:[#allocation35_spill] sm:$0xff] }
 0x6b6   :  { %v3369_v52 = vmul.f32 -1.442695, %v1600_v39  ;;  %v1369_v39 = vadd.f32 %v1364_v43, %v5296_v48 }
 0x6b8   :  { %v3547_v10 = vpop.eup %3546  ;;  %3548 = vpow2.f32 %v3369_v52  ;;  %v7559_v52 = vld [vmem:[#allocation108_spill] sm:$0xff] }
 0x6b9   :  { %v1584_v47 = vadd.f32 1.0, %v3547_v10  ;;  %v428_v10 = vadd.f32 %v7559_v52, %v7558_v7 }
 0x6bb   :  { %3550 = vrcp.f32 %v1584_v47  ;;  %v1596_v54 = vand.u32 2147483648, %v1584_v47  ;;  %v1594_v55 = vand.u32 2147483647, %v1584_v47  ;;  %vm1590_vm9 = vweird.f32 %v1584_v47 }
 0x6bd   :  { %v1597_v17 = vor.u32 1.1754944e-38, %v1596_v54  ;;  %vm1595_vm11 = vcmp.eq.f32.partialorder %v1594_v55, 8.507059e+37 }
 0x6be   :  { %v3549_v63 = vpop.eup %3548 }
 0x6bf   :  { %v1604_v62 = vadd.f32 1.0, %v3549_v63 }
 0x6c1   :  { %v3551_v23 = vpop.eup %3550  ;;  %3552 = vrcp.f32 %v1604_v62  ;;  %v1616_v50 = vand.u32 2147483648, %v1604_v62  ;;  %v1614_v37 = vand.u32 2147483647, %v1604_v62  ;;  %vm1610_vm13 = vweird.f32 %v1604_v62 }
 0x6c2   :  { %v1586_v58 = vmul.f32 %v3551_v23, %v1584_v47  ;;  %vm1591_vm8 = vweird.f32 %v3551_v23 }
 0x6c3   :  { %vm1592_vm10 = vmor %vm1590_vm9, %vm1591_vm8  ;;  %v1617_v7 = vor.u32 1.1754944e-38, %v1616_v50  ;;  %vm1615_vm15 = vcmp.eq.f32.partialorder %v1614_v37, 8.507059e+37  ;;  %v5938_v37 = vld [vmem:[#allocation15 + $0x1f0] sm:$0xff]  ;;  %v5955_v50 = vld [vmem:[#allocation15 + $0x1a8] sm:$0xff] }
 0x6c4   :  { %v1587_v51 = vsub.f32 1.0, %v1586_v58  ;;  %v1579_v58 = vadd.f32 %v1574_v0, %v428_v10  ;;  %v5968_v0 = vld [vmem:[#allocation15 + $0x190] sm:$0xff] }
 0x6c5   :  { %v5978_v10 = vld [vmem:[#allocation15 + $0x170] sm:$0xff] }
 0x6c6   :  { %v1588_v29 = vmul.f32 %v3551_v23, %v1587_v51 }
 0x6c7   :  { %v3553_v1 = vpop.eup %3552 }
 0x6c8   :  { %v1606_v2 = vmul.f32 %v3553_v1, %v1604_v62  ;;  %v1589_v35 = vadd.f32 %v3551_v23, %v1588_v29  ;;  %vm1611_vm12 = vweird.f32 %v3553_v1  ;;  %v5958_v62 = vld [vmem:[#allocation15 + $0x1b0] sm:$0xff] }
 0x6c9   :  { %vm1612_vm14 = vmor %vm1610_vm13, %vm1611_vm12 }
 0x6ca   :  { %v1607_v63 = vsub.f32 1.0, %v1606_v2  ;;  %v1593_v57 = vsel %vm1592_vm10, %v3551_v23, %v1589_v35  ;;  %v5975_v35 = vld [vmem:[#allocation15 + $0x168] sm:$0xff] }
 0x6cb   :  { %v1598_v9 = vsel %vm1595_vm11, %v1597_v17, %v1593_v57  ;;  %v5985_v17 = vld [vmem:[#allocation15 + $0x148] sm:$0xff] }
 0x6cc   :  { %v1608_v51 = vmul.f32 %v3553_v1, %v1607_v63  ;;  %v1620_v59 = vmul.f32 %v1598_v9, %v1369_v39  ;;  %v5948_v9 = vld [vmem:[#allocation15 + $0x1d0] sm:$0xff]  ;;  %v5995_v63 = vld [vmem:[#allocation15 + $0x128] sm:$0xff] }
 0x6cd   :  { %v5988_v39 = vld [vmem:[#allocation15 + $0x150] sm:$0xff] }
 0x6ce   :  { %v1609_v29 = vadd.f32 %v3553_v1, %v1608_v51  ;;  %v1621_v47 = vadd.f32 %v1620_v59, %v1579_v58  ;;  %v5945_v59 = vld [vmem:[#allocation15 + $0x1c8] sm:$0xff]  ;;  %v5998_v58 = vld [vmem:[#allocation15 + $0x130] sm:$0xff] }
 0x6cf   :  { %v6005_v51 = vld [vmem:[#allocation15 + $0x108] sm:$0xff] }
 0x6d0   :  { %v1613_v6 = vsel %vm1612_vm14, %v3553_v1, %v1609_v29  ;;  %3554 = vtanh.f32 %v1621_v47  ;;  %v5965_v1 = vld [vmem:[#allocation15 + $0x188] sm:$0xff]  ;;  %v6008_v29 = vld [vmem:[#allocation15 + $0x110] sm:$0xff] }
 0x6d1   :  { %v1618_v54 = vsel %vm1615_vm15, %v1617_v7, %v1613_v6  ;;  %v5935_v6 = vld [vmem:[#allocation15 + $0x1e8] sm:$0xff]  ;;  %v7578_v7 = vld [vmem:[#allocation69_spill] sm:$0xff] }
 0x6d2   :  { %v1623_v43 = vsub.f32 1.0, %v1618_v54  ;;  %v1625_v55 = vmul.f32 %v1618_v54, %v5590_v21  ;;  %v5941_v21 = vld [vmem:[#allocation15 + $0x1f8] sm:$0xff]  ;;  %v6053_v47 = vld [vmem:[#allocation10 + $0x10] sm:$0xff] }
 0x6d3   :  { %7577 = vst [vmem:[#allocation94_spill] sm:$0xff] %v6053_v47 }
 0x6d6   :  { %v3555_v2 = vpop.eup %3554 }
 0x6d7   :  { %v1624_v23 = vmul.f32 %v3555_v2, %v1623_v43  ;;  %v7579_v43 = vld [vmem:[#allocation70_spill] sm:$0xff] }
 0x6d9   :  { %v5927_v57 = vadd.f32 %v1625_v55, %v1624_v23  ;;  %v7580_v23 = vld [vmem:[#allocation72_spill] sm:$0xff]  ;;  %v7581_v55 = vld [vmem:[#allocation73_spill] sm:$0xff] }
 0x6db   :  { %1628 = vst [vmem:[#allocation21 + $0x10] sm:$0xff] %v5927_v57  ;;  %1645 = vmatmul.f32.vlgmr.msrb.gmra.mxu1 %v5927_v57  ;;  %1665 = vmatmul.f32.vlgmr.msrb.gmra.mxu2 %v5927_v57 }
 0x6dc   :  { %1685 = vmatmul.f32.vlgmr.msrb.gmra.mxu3 %v5927_v57  ;;  %1705 = vmatmul.f32.vlgmr.msrb.gmra.mxu0 %v5927_v57 }
 0x6dd   :  { %1971 = vmatpush.msrb.mxu2 %v5597_v4  ;;  %1991 = vmatpush.msrb.mxu3 %v5935_v6  ;;  %v5951_v4 = vld [vmem:[#allocation15 + $0x1d8] sm:$0xff] }
 0x6de   :  { %2011 = vmatpush.msrb.mxu0 %v5938_v37  ;;  %2031 = vmatpush.msrb.mxu1 %v5941_v21 }
 0x6df   :  { %1972 = vmatpush.msrb.mxu2 %v5603_v40  ;;  %1992 = vmatpush.msrb.mxu3 %v5945_v59  ;;  %v5961_v40 = vld [vmem:[#allocation15 + $0x1b8] sm:$0xff] }
 0x6e0   :  { %2012 = vmatpush.msrb.mxu0 %v5948_v9  ;;  %2032 = vmatpush.msrb.mxu1 %v5951_v4 }
 0x6e1   :  { %1973 = vmatpush.msrb.mxu2 %v5609_v30  ;;  %1993 = vmatpush.msrb.mxu3 %v5955_v50  ;;  %v5971_v30 = vld [vmem:[#allocation15 + $0x198] sm:$0xff] }
 0x6e2   :  { %2013 = vmatpush.msrb.mxu0 %v5958_v62  ;;  %2033 = vmatpush.msrb.mxu1 %v5961_v40 }
 0x6e3   :  { %1974 = vmatpush.msrb.mxu2 %v5615_v25  ;;  %1994 = vmatpush.msrb.mxu3 %v5965_v1  ;;  %v5981_v25 = vld [vmem:[#allocation15 + $0x178] sm:$0xff] }
 0x6e4   :  { %2014 = vmatpush.msrb.mxu0 %v5968_v0  ;;  %2034 = vmatpush.msrb.mxu1 %v5971_v30 }
 0x6e5   :  { %1975 = vmatpush.msrb.mxu2 %v5621_v11  ;;  %1995 = vmatpush.msrb.mxu3 %v5975_v35  ;;  %v5991_v11 = vld [vmem:[#allocation15 + $0x158] sm:$0xff] }
 0x6e6   :  { %2015 = vmatpush.msrb.mxu0 %v5978_v10  ;;  %2035 = vmatpush.msrb.mxu1 %v5981_v25 }
 0x6e7   :  { %1976 = vmatpush.msrb.mxu2 %v5627_v16  ;;  %1996 = vmatpush.msrb.mxu3 %v5985_v17  ;;  %v6001_v16 = vld [vmem:[#allocation15 + $0x138] sm:$0xff] }
 0x6e8   :  { %2016 = vmatpush.msrb.mxu0 %v5988_v39  ;;  %2036 = vmatpush.msrb.mxu1 %v5991_v11 }
 0x6e9   :  { %1977 = vmatpush.msrb.mxu2 %v5633_v14  ;;  %1997 = vmatpush.msrb.mxu3 %v5995_v63  ;;  %v6011_v14 = vld [vmem:[#allocation15 + $0x118] sm:$0xff] }
 0x6ea   :  { %2017 = vmatpush.msrb.mxu0 %v5998_v58  ;;  %2037 = vmatpush.msrb.mxu1 %v6001_v16  ;;  %7560 = vst [vmem:[#allocation71_spill] sm:$0xff] %v6011_v14 }
 0x6eb   :  { %1978 = vmatpush.msrb.mxu2 %v5639_v44  ;;  %1998 = vmatpush.msrb.mxu3 %v6005_v51  ;;  %v7561_v44 = vld [vmem:[#allocation98_spill] sm:$0xff] }
 0x6ec   :  { %2018 = vmatpush.msrb.mxu0 %v6008_v29  ;;  %2038 = vmatpush.msrb.mxu1 %v6011_v14 }
 0x6ed   :  { %1979 = vmatpush.msrb.mxu2 %v5645_v61  ;;  %1999 = vmatpush.msrb.mxu3 %v5648_v32  ;;  %v7562_v61 = vld [vmem:[#allocation99_spill] sm:$0xff]  ;;  %v7563_v32 = vld [vmem:[#allocation100_spill] sm:$0xff] }
 0x6ee   :  { %2019 = vmatpush.msrb.mxu0 %v5651_v36  ;;  %2039 = vmatpush.msrb.mxu1 %v5654_v56  ;;  %v7564_v36 = vld [vmem:[#allocation101_spill] sm:$0xff]  ;;  %v7565_v56 = vld [vmem:[#allocation102_spill] sm:$0xff] }
 0x6ef   :  { %1980 = vmatpush.msrb.mxu2 %v5657_v19  ;;  %2000 = vmatpush.msrb.mxu3 %v5660_v5  ;;  %v7566_v19 = vld [vmem:[#allocation103_spill] sm:$0xff]  ;;  %v7567_v5 = vld [vmem:[#allocation104_spill] sm:$0xff] }
 0x6f0   :  { %2020 = vmatpush.msrb.mxu0 %v5663_v27  ;;  %2040 = vmatpush.msrb.mxu1 %v5666_v3  ;;  %v7568_v27 = vld [vmem:[#allocation58_spill] sm:$0xff]  ;;  %v7569_v3 = vld [vmem:[#allocation60_spill] sm:$0xff] }
 0x6f1   :  { %1981 = vmatpush.msrb.mxu2 %v5669_v15  ;;  %2001 = vmatpush.msrb.mxu3 %v5672_v38  ;;  %v7570_v15 = vld [vmem:[#allocation61_spill] sm:$0xff]  ;;  %v7571_v38 = vld [vmem:[#allocation63_spill] sm:$0xff] }
 0x6f2   :  { %2021 = vmatpush.msrb.mxu0 %v5675_v24  ;;  %2041 = vmatpush.msrb.mxu1 %v5678_v41  ;;  %v7572_v24 = vld [vmem:[#allocation64_spill] sm:$0xff]  ;;  %v7573_v41 = vld [vmem:[#allocation66_spill] sm:$0xff] }
 0x6f3   :  { %1982 = vmatpush.msrb.mxu2 %v5681_v28  ;;  %2002 = vmatpush.msrb.mxu3 %v5684_v33  ;;  %v6046_v28 = vld [vmem:[#allocation10] sm:$0xff] }
 0x6f4   :  { %2022 = vmatpush.msrb.mxu0 %v5687_v42  ;;  %2042 = vmatpush.msrb.mxu1 %v5690_v46  ;;  %7574 = vst [vmem:[#allocation74_spill] sm:$0xff] %v6046_v28  ;;  %v6049_v46 = vld [vmem:[#allocation10 + $0x8] sm:$0xff] }
 0x6f5   :  { %1983 = vmatpush.msrb.mxu2 %v5693_v20  ;;  %2003 = vmatpush.msrb.mxu3 %v5696_v31  ;;  %7575 = vst [vmem:[#allocation93_spill] sm:$0xff] %v6049_v46 }
 0x6f6   :  { %2023 = vmatpush.msrb.mxu0 %v5699_v12  ;;  %2043 = vmatpush.msrb.mxu1 %v7561_v44  ;;  %v7576_v12 = vld [vmem:[#allocation67_spill] sm:$0xff] }
 0x6f7   :  { %1984 = vmatpush.msrb.mxu2 %v7562_v61  ;;  %2004 = vmatpush.msrb.mxu3 %v7563_v32  ;;  %v6060_v44 = vld [vmem:[#allocation10 + $0x18] sm:$0xff] }
 0x6f8   :  { %2024 = vmatpush.msrb.mxu0 %v7564_v36  ;;  %2044 = vmatpush.msrb.mxu1 %v7565_v56  ;;  %7582 = vst [vmem:[#allocation96_spill] sm:$0xff] %v6060_v44  ;;  %v7583_v61 = vld [vmem:[#allocation75_spill] sm:$0xff]  ;;  %v7584_v36 = vld [vmem:[#allocation88_spill] sm:$0xff] }
 0x6f9   :  { %1985 = vmatpush.msrb.mxu2 %v7566_v19  ;;  %2005 = vmatpush.msrb.mxu3 %v7567_v5  ;;  %v7585_v19 = vld [vmem:[#allocation89_spill] sm:$0xff]  ;;  %v7586_v5 = vld [vmem:[#allocation76_spill] sm:$0xff] }
 0x6fa   :  { %2025 = vmatpush.msrb.mxu0 %v7568_v27  ;;  %2045 = vmatpush.msrb.mxu1 %v7569_v3  ;;  %v6067_v27 = vld [vmem:[#allocation10 + $0x20] sm:$0xff]  ;;  %v7588_v3 = vld [vmem:[#allocation90_spill] sm:$0xff] }
 0x6fb   :  { %1986 = vmatpush.msrb.mxu2 %v7570_v15  ;;  %2006 = vmatpush.msrb.mxu3 %v7571_v38  ;;  %7587 = vst [vmem:[#allocation97_spill] sm:$0xff] %v6067_v27  ;;  %v7589_v38 = vld [vmem:[#allocation91_spill] sm:$0xff] }
 0x6fc   :  { %2026 = vmatpush.msrb.mxu0 %v7572_v24  ;;  %2046 = vmatpush.msrb.mxu1 %v7573_v41  ;;  %v7590_v41 = vld [vmem:[#allocation77_spill] sm:$0xff] }
 0x758   :  { %v1646_v33 = vpop.f32.mrf.mxu1 }
 0x759   :  { %v1720_v42 = vadd.f32 %v6046_v28, %v1646_v33  ;;  %v1721_v20 = vadd.f32 %v6049_v46, %v1646_v33  ;;  %v1722_v54 = vadd.f32 %v6053_v47, %v1646_v33  ;;  %v1723_v32 = vadd.f32 %v6060_v44, %v1646_v33 }
 0x75a   :  { %v1724_v15 = vadd.f32 %v6067_v27, %v1646_v33  ;;  %v7604_v27 = vld [vmem:[#allocation54_spill] sm:$0xff] }
 0x75b   :  { %3556 = vtanh.f32 %v1720_v42  ;;  %v7591_v42 = vld [vmem:[#allocation86_spill] sm:$0xff] }
 0x75c   :  { %3558 = vtanh.f32 %v1721_v20  ;;  %v6074_v20 = vld [vmem:[#allocation10 + $0x28] sm:$0xff] }
 0x75d   :  { %3560 = vtanh.f32 %v1722_v54  ;;  %7592 = vst [vmem:[#allocation78_spill] sm:$0xff] %v6074_v20 }
 0x75e   :  { %3562 = vtanh.f32 %v1723_v32 }
 0x75f   :  { %3564 = vtanh.f32 %v1724_v15 }
 0x761   :  { %v3557_v31 = vpop.eup %3556 }
 0x762   :  { %1752 = vmatmul.f32.vlgmr.msra.gmra.mxu1 %v3557_v31  ;;  %v3559_v2 = vpop.eup %3558  ;;  %v7593_v31 = vld [vmem:[#allocation34_spill] sm:$0xff] }
 0x763   :  { %2241 = vmatpush.msra.mxu1 %v7576_v12  ;;  %v3561_v56 = vpop.eup %3560  ;;  %v1725_v12 = vadd.f32 %v6074_v20, %v1646_v33 }
 0x764   :  { %v3563_v24 = vpop.eup %3562 }
 0x765   :  { %2242 = vmatpush.msra.mxu1 %v7578_v7  ;;  %v7594_v7 = vld [vmem:[#allocation109_spill] sm:$0xff]  ;;  %v3565_v54 = vpop.eup %3564  ;;  %3566 = vtanh.f32 %v1725_v12  ;;  %v7599_v12 = vld [vmem:[#allocation47_spill] sm:$0xff] }
 0x767   :  { %2243 = vmatpush.msra.mxu1 %v7579_v43  ;;  %v7595_v43 = vld [vmem:[#allocation110_spill] sm:$0xff] }
 0x769   :  { %2244 = vmatpush.msra.mxu1 %v7580_v23 }
 0x76a   :  { %1755 = vmatmul.f32.gmra.mxu1 %v3559_v2  ;;  %v6080_v2 = vld [vmem:[#allocation10 + $0x30] sm:$0xff] }
 0x76b   :  { %2245 = vmatpush.msra.mxu1 %v7581_v55  ;;  %7596 = vst [vmem:[#allocation106_spill] sm:$0xff] %v6080_v2  ;;  %v1726_v23 = vadd.f32 %v6080_v2, %v1646_v33  ;;  %v3567_v55 = vpop.eup %3566 }
 0x76d   :  { %2246 = vmatpush.msra.mxu1 %v7583_v61  ;;  %3568 = vtanh.f32 %v1726_v23  ;;  %v6083_v61 = vld [vmem:[#allocation10 + $0x38] sm:$0xff]  ;;  %v7601_v23 = vld [vmem:[#allocation49_spill] sm:$0xff] }
 0x76e   :  { %7597 = vst [vmem:[#allocation35_spill] sm:$0xff] %v6083_v61  ;;  %v1727_v32 = vadd.f32 %v6083_v61, %v1646_v33  ;;  %v7603_v61 = vld [vmem:[#allocation53_spill] sm:$0xff] }
 0x76f   :  { %2247 = vmatpush.msra.mxu1 %v7584_v36 }
 0x770   :  { %3570 = vtanh.f32 %v1727_v32 }
 0x771   :  { %2248 = vmatpush.msra.mxu1 %v7585_v19 }
 0x772   :  { %1758 = vmatmul.f32.gmra.mxu1 %v3561_v56 }
 0x773   :  { %2249 = vmatpush.msra.mxu1 %v7586_v5  ;;  %v3569_v36 = vpop.eup %3568 }
 0x775   :  { %2250 = vmatpush.msra.mxu1 %v7588_v3 }
 0x776   :  { %v3571_v56 = vpop.eup %3570 }
 0x777   :  { %2251 = vmatpush.msra.mxu1 %v7589_v38 }
 0x779   :  { %2252 = vmatpush.msra.mxu1 %v7590_v41 }
 0x77a   :  { %1761 = vmatmul.f32.gmra.mxu1 %v3563_v24 }
 0x77b   :  { %2253 = vmatpush.msra.mxu1 %v7591_v42  ;;  %v7598_v42 = vld [vmem:[#allocation45_spill] sm:$0xff] }
 0x77d   :  { %2254 = vmatpush.msra.mxu1 %v7593_v31 }
 0x77f   :  { %2255 = vmatpush.msra.mxu1 %v7594_v7 }
 0x781   :  { %2256 = vmatpush.msra.mxu1 %v7595_v43 }
 0x782   :  { %1764 = vmatmul.f32.gmra.mxu1 %v3565_v54  ;;  %v7600_v54 = vld [vmem:[#allocation48_spill] sm:$0xff] }
 0x78a   :  { %1767 = vmatmul.f32.gmra.mxu1 %v3567_v55  ;;  %v7602_v55 = vld [vmem:[#allocation50_spill] sm:$0xff] }
 0x792   :  { %1770 = vmatmul.f32.gmra.mxu1 %v3569_v36 }
 0x79a   :  { %1773 = vmatmul.f32.gmra.mxu1 %v3571_v56 }
 0x7df   :  { %v1753_v19 = vpop.f32.mrf.mxu1 }
 0x7e0   :  { %v1777_v36 = vadd.f32 %v1753_v19, %v7602_v55 }
 0x7e7   :  { %v1756_v5 = vpop.f32.mrf.mxu1 }
 0x7e8   :  { %v1778_v7 = vadd.f32 %v1756_v5, %v7599_v12 }
 0x7ef   :  { %v1759_v3 = vpop.f32.mrf.mxu1 }
 0x7f0   :  { %v1779_v56 = vadd.f32 %v1759_v3, %v7508_v22 }
 0x7f7   :  { %v1762_v15 = vpop.f32.mrf.mxu1 }
 0x7f8   :  { %v1780_v2 = vadd.f32 %v1762_v15, %v7603_v61 }
 0x7ff   :  { %v1765_v38 = vpop.f32.mrf.mxu1 }
 0x800   :  { %v1781_v43 = vadd.f32 %v1765_v38, %v7600_v54 }
 0x802   :  { %v1785_v47 = vmax.f32 %v1777_v36, %v1781_v43 }
 0x807   :  { %v1768_v24 = vpop.f32.mrf.mxu1 }
 0x808   :  { %v1782_v31 = vadd.f32 %v1768_v24, %v7598_v42 }
 0x80a   :  { %v1786_v20 = vmax.f32 %v1778_v7, %v1782_v31 }
 0x80c   :  { %v1789_v24 = vmax.f32 %v1785_v47, %v1786_v20 }
 0x80f   :  { %v1771_v41 = vpop.f32.mrf.mxu1 }
 0x810   :  { %v1783_v33 = vadd.f32 %v1771_v41, %v7601_v23 }
 0x812   :  { %v1787_v46 = vmax.f32 %v1779_v56, %v1783_v33 }
 0x817   :  { %v1774_v32 = vpop.f32.mrf.mxu1 }
 0x818   :  { %v1784_v44 = vadd.f32 %v1774_v32, %v7604_v27 }
 0x81a   :  { %v1788_v28 = vmax.f32 %v1780_v2, %v1784_v44 }
 0x81c   :  { %v1790_v42 = vmax.f32 %v1787_v46, %v1788_v28 }
 0x81e   :  { %v1791_v5 = vmax.f32 %v1789_v24, %v1790_v42 }
 0x820   :  { %v1792_v12 = vsub.f32 %v1777_v36, %v1791_v5  ;;  %v1793_v38 = vsub.f32 %v1778_v7, %v1791_v5  ;;  %v1794_v54 = vsub.f32 %v1779_v56, %v1791_v5  ;;  %v1795_v41 = vsub.f32 %v1780_v2, %v1791_v5 }
 0x821   :  { %v1796_v55 = vsub.f32 %v1781_v43, %v1791_v5  ;;  %v1797_v3 = vsub.f32 %v1782_v31, %v1791_v5  ;;  %v1798_v61 = vsub.f32 %v1783_v33, %v1791_v5  ;;  %v1799_v27 = vsub.f32 %v1784_v44, %v1791_v5 }
 0x822   :  { %v1800_v23 = vmul.f32 1.442695, %v1792_v12  ;;  %v1802_v19 = vmul.f32 1.442695, %v1793_v38  ;;  %v1804_v14 = vmul.f32 1.442695, %v1794_v54 }
 0x823   :  { %v1806_v15 = vmul.f32 1.442695, %v1795_v41  ;;  %v1808_v32 = vmul.f32 1.442695, %v1796_v55  ;;  %v1810_v47 = vmul.f32 1.442695, %v1797_v3 }
 0x824   :  { %3572 = vpow2.f32 %v1800_v23  ;;  %v1812_v20 = vmul.f32 1.442695, %v1798_v61  ;;  %v1814_v12 = vmul.f32 1.442695, %v1799_v27 }
 0x825   :  { %3574 = vpow2.f32 %v1802_v19 }
 0x826   :  { %3576 = vpow2.f32 %v1804_v14 }
 0x827   :  { %3578 = vpow2.f32 %v1806_v15 }
 0x828   :  { %3580 = vpow2.f32 %v1808_v32 }
 0x829   :  { %3582 = vpow2.f32 %v1810_v47 }
 0x82a   :  { %v3573_v28 = vpop.eup %3572  ;;  %3584 = vpow2.f32 %v1812_v20 }
 0x82b   :  { %v3575_v46 = vpop.eup %3574  ;;  %3586 = vpow2.f32 %v1814_v12 }
 0x82c   :  { %v1816_v42 = vadd.f32 %v3575_v46, %v3573_v28  ;;  %v3577_v2 = vpop.eup %3576 }
 0x82d   :  { %v3579_v54 = vpop.eup %3578 }
 0x82e   :  { %v1817_v7 = vadd.f32 %v3577_v2, %v1816_v42  ;;  %v3581_v43 = vpop.eup %3580 }
 0x82f   :  { %v3583_v14 = vpop.eup %3582 }
 0x830   :  { %v1818_v31 = vadd.f32 %v3579_v54, %v1817_v7  ;;  %v3585_v44 = vpop.eup %3584 }
 0x831   :  { %v3587_v36 = vpop.eup %3586 }
 0x832   :  { %v1819_v23 = vadd.f32 %v3581_v43, %v1818_v31 }
 0x834   :  { %v1820_v33 = vadd.f32 %v3583_v14, %v1819_v23  ;;  %v7606_v23 = vld [vmem:[#allocation111_spill] sm:$0xff] }
 0x836   :  { %v1821_v55 = vadd.f32 %v3585_v44, %v1820_v33  ;;  %v7607_v33 = vld [vmem:[#allocation112_spill] sm:$0xff] }
 0x838   :  { %v1822_v56 = vadd.f32 %v3587_v36, %v1821_v55  ;;  %v6127_v55 = vld [vmem:[#allocation19 + $0x128] sm:$0xff] }
 0x83a   :  { %3588 = vrcp.f32 %v1822_v56  ;;  %v6131_v56 = vld [vmem:[#allocation19 + $0x108] sm:$0xff] }
 0x840   :  { %v3589_v24 = vpop.eup %3588 }
 0x841   :  { %v1824_v61 = vmul.f32 %v3589_v24, %v3573_v28  ;;  %v1825_v5 = vmul.f32 %v3589_v24, %v3575_v46  ;;  %v1826_v38 = vmul.f32 %v3589_v24, %v3577_v2  ;;  %v1827_v41 = vmul.f32 %v3589_v24, %v3579_v54 }
 0x842   :  { %v1828_v3 = vmul.f32 %v3589_v24, %v3581_v43  ;;  %v1829_v47 = vmul.f32 %v3589_v24, %v3583_v14  ;;  %v1830_v12 = vmul.f32 %v3589_v24, %v3585_v44  ;;  %v1831_v28 = vmul.f32 %v3589_v24, %v3587_v36  ;;  %v6120_v14 = vld [vmem:[#allocation19 + $0x140] sm:$0xff]  ;;  %v6134_v24 = vld [vmem:[#allocation19 + $0x110] sm:$0xff] }
 0x843   :  { %v1840_v27 = vmul.f32 %v1824_v61, %v5805_v49  ;;  %v1841_v19 = vmul.f32 %v1825_v5, %v5807_v34  ;;  %v1842_v15 = vmul.f32 %v1826_v38, %v5809_v8  ;;  %v1843_v20 = vmul.f32 %v1827_v41, %v5813_v18  ;;  %v6103_v18 = vld [vmem:[#allocation19 + $0x168] sm:$0xff]  ;;  %v6124_v44 = vld [vmem:[#allocation19 + $0x120] sm:$0xff]  ;;  %v7609_v61 = vld [vmem:[#allocation92_spill] sm:$0xff] }
 0x844   :  { %v1844_v7 = vmul.f32 %v1828_v3, %v5816_v45  ;;  %v1845_v46 = vmul.f32 %v1829_v47, %v5819_v13  ;;  %v1846_v49 = vmul.f32 %v1830_v12, %v5822_v26  ;;  %v1847_v34 = vmul.f32 %v1831_v28, %v5825_v53  ;;  %v6106_v45 = vld [vmem:[#allocation19 + $0x170] sm:$0xff]  ;;  %v6113_v53 = vld [vmem:[#allocation19 + $0x158] sm:$0xff]  ;;  %v7608_v36 = vld [vmem:[#allocation33_spill] sm:$0xff] }
 0x845   :  { %v1848_v32 = vadd.f32 %v1841_v19, %v1840_v27  ;;  %v7605_v13 = vld [vmem:[#allocation51_spill] sm:$0xff]  ;;  %v6141_v38 = vld [vmem:[#allocation19 + $0xf8] sm:$0xff]  ;;  %v6148_v19 = vld [vmem:[#allocation19 + $0xe0] sm:$0xff] }
 0x846   :  { %v6110_v26 = vld [vmem:[#allocation19 + $0x150] sm:$0xff]  ;;  %v6145_v27 = vld [vmem:[#allocation19 + $0xd8] sm:$0xff]  ;;  %v7611_v3 = vld [vmem:[#allocation41_spill] sm:$0xff] }
 0x847   :  { %v1849_v42 = vadd.f32 %v1848_v32, %v1842_v15  ;;  %v6138_v5 = vld [vmem:[#allocation19 + $0xf0] sm:$0xff]  ;;  %v6152_v15 = vld [vmem:[#allocation19 + $0xc0] sm:$0xff]  ;;  %v6155_v32 = vld [vmem:[#allocation19 + $0xc8] sm:$0xff] }
 0x848   :  { %v7610_v41 = vld [vmem:[#allocation95_spill] sm:$0xff]  ;;  %7612 = vst [vmem:[#allocation98_spill] sm:$0xff] %v6152_v15  ;;  %v7614_v47 = vld [vmem:[#allocation42_spill] sm:$0xff]  ;;  %v7620_v28 = vld [vmem:[#allocation44_spill] sm:$0xff] }
 0x849   :  { %v1850_v31 = vadd.f32 %v1849_v42, %v1843_v20  ;;  %7613 = vst [vmem:[#allocation99_spill] sm:$0xff] %v6155_v32  ;;  %v6159_v20 = vld [vmem:[#allocation19 + $0xa8] sm:$0xff]  ;;  %v6162_v42 = vld [vmem:[#allocation19 + $0xb0] sm:$0xff] }
 0x84a   :  { %7615 = vst [vmem:[#allocation100_spill] sm:$0xff] %v6159_v20  ;;  %v7617_v12 = vld [vmem:[#allocation43_spill] sm:$0xff] }
 0x84b   :  { %v1851_v2 = vadd.f32 %v1850_v31, %v1844_v7  ;;  %7616 = vst [vmem:[#allocation101_spill] sm:$0xff] %v6162_v42  ;;  %v6166_v7 = vld [vmem:[#allocation19 + $0x90] sm:$0xff]  ;;  %v6169_v31 = vld [vmem:[#allocation19 + $0x98] sm:$0xff] }
 0x84c   :  { %7618 = vst [vmem:[#allocation102_spill] sm:$0xff] %v6166_v7 }
 0x84d   :  { %v1852_v54 = vadd.f32 %v1851_v2, %v1845_v46  ;;  %7619 = vst [vmem:[#allocation103_spill] sm:$0xff] %v6169_v31  ;;  %v6173_v46 = vld [vmem:[#allocation19 + $0x78] sm:$0xff]  ;;  %v6176_v2 = vld [vmem:[#allocation19 + $0x80] sm:$0xff] }
 0x84e   :  { %7621 = vst [vmem:[#allocation104_spill] sm:$0xff] %v6173_v46 }
 0x84f   :  { %v1853_v43 = vadd.f32 %v1852_v54, %v1846_v49  ;;  %7622 = vst [vmem:[#allocation58_spill] sm:$0xff] %v6176_v2  ;;  %v7623_v49 = vld [vmem:[#allocation46_spill] sm:$0xff]  ;;  %v6180_v54 = vld [vmem:[#allocation19 + $0x60] sm:$0xff] }
 0x850   :  { %7624 = vst [vmem:[#allocation60_spill] sm:$0xff] %v6180_v54 }
 0x851   :  { %v1854_v8 = vadd.f32 %v1853_v43, %v1847_v34  ;;  %v6183_v34 = vld [vmem:[#allocation19 + $0x68] sm:$0xff]  ;;  %v7626_v43 = vld [vmem:[#allocation52_spill] sm:$0xff] }
 0x852   :  { %7625 = vst [vmem:[#allocation61_spill] sm:$0xff] %v6183_v34 }
 0x853   :  { %1875 = vmatmul.f32.vlgmr.msra.gmra.mxu2 %v1854_v8  ;;  %1895 = vmatmul.f32.vlgmr.msra.gmra.mxu3 %v1854_v8 }
 0x854   :  { %1915 = vmatmul.f32.vlgmr.msra.gmra.mxu0 %v1854_v8  ;;  %2078 = vmatpush.msra.mxu2 %v5829_v60  ;;  %v6117_v60 = vld [vmem:[#allocation19 + $0x138] sm:$0xff]  ;;  %v6187_v8 = vld [vmem:[#allocation19 + $0x48] sm:$0xff] }
 0x855   :  { %2201 = vmatpush.msra.mxu3 %v6103_v18  ;;  %2221 = vmatpush.msra.mxu0 %v6106_v45  ;;  %7627 = vst [vmem:[#allocation63_spill] sm:$0xff] %v6187_v8 }
 0x856   :  { %2079 = vmatpush.msra.mxu2 %v7605_v13  ;;  %v6190_v13 = vld [vmem:[#allocation19 + $0x50] sm:$0xff] }
 0x857   :  { %2202 = vmatpush.msra.mxu3 %v6110_v26  ;;  %2222 = vmatpush.msra.mxu0 %v6113_v53  ;;  %7628 = vst [vmem:[#allocation64_spill] sm:$0xff] %v6190_v13 }
 0x858   :  { %2080 = vmatpush.msra.mxu2 %v7606_v23  ;;  %v7629_v23 = vld [vmem:[#allocation55_spill] sm:$0xff] }
 0x859   :  { %2203 = vmatpush.msra.mxu3 %v6117_v60  ;;  %2223 = vmatpush.msra.mxu0 %v6120_v14 }
 0x85a   :  { %2081 = vmatpush.msra.mxu2 %v7607_v33  ;;  %v6194_v33 = vld [vmem:[#allocation19 + $0x30] sm:$0xff] }
 0x85b   :  { %2204 = vmatpush.msra.mxu3 %v6124_v44  ;;  %2224 = vmatpush.msra.mxu0 %v6127_v55  ;;  %7630 = vst [vmem:[#allocation66_spill] sm:$0xff] %v6194_v33 }
 0x85c   :  { %2082 = vmatpush.msra.mxu2 %v7608_v36  ;;  %v6197_v36 = vld [vmem:[#allocation19 + $0x38] sm:$0xff] }
 0x85d   :  { %2205 = vmatpush.msra.mxu3 %v6131_v56  ;;  %2225 = vmatpush.msra.mxu0 %v6134_v24  ;;  %7631 = vst [vmem:[#allocation67_spill] sm:$0xff] %v6197_v36 }
 0x85e   :  { %2083 = vmatpush.msra.mxu2 %v7609_v61  ;;  %v7632_v61 = vld [vmem:[#allocation56_spill] sm:$0xff] }
 0x85f   :  { %2206 = vmatpush.msra.mxu3 %v6138_v5  ;;  %2226 = vmatpush.msra.mxu0 %v6141_v38 }
 0x860   :  { %2084 = vmatpush.msra.mxu2 %v7610_v41  ;;  %v7633_v41 = vld [vmem:[#allocation57_spill] sm:$0xff] }
 0x861   :  { %2207 = vmatpush.msra.mxu3 %v6145_v27  ;;  %2227 = vmatpush.msra.mxu0 %v6148_v19 }
 0x862   :  { %2085 = vmatpush.msra.mxu2 %v7611_v3  ;;  %v7634_v3 = vld [vmem:[#allocation59_spill] sm:$0xff] }
 0x863   :  { %2208 = vmatpush.msra.mxu3 %v6152_v15  ;;  %2228 = vmatpush.msra.mxu0 %v6155_v32 }
 0x864   :  { %2086 = vmatpush.msra.mxu2 %v7614_v47  ;;  %v7635_v47 = vld [vmem:[#allocation62_spill] sm:$0xff] }
 0x865   :  { %2209 = vmatpush.msra.mxu3 %v6159_v20  ;;  %2229 = vmatpush.msra.mxu0 %v6162_v42 }
 0x866   :  { %2087 = vmatpush.msra.mxu2 %v7617_v12  ;;  %v7636_v12 = vld [vmem:[#allocation65_spill] sm:$0xff] }
 0x867   :  { %2210 = vmatpush.msra.mxu3 %v6166_v7  ;;  %2230 = vmatpush.msra.mxu0 %v6169_v31 }
 0x868   :  { %2088 = vmatpush.msra.mxu2 %v7620_v28  ;;  %v7637_v28 = vld [vmem:[#allocation68_spill] sm:$0xff] }
 0x869   :  { %2211 = vmatpush.msra.mxu3 %v6173_v46  ;;  %2231 = vmatpush.msra.mxu0 %v6176_v2  ;;  %v7642_v2 = vld [vmem:[#allocation105_spill] sm:$0xff] }
 0x86a   :  { %2089 = vmatpush.msra.mxu2 %v7623_v49  ;;  %v1666_v49 = vpop.f32.mrf.mxu2  ;;  %v7643_v46 = vld [vmem:[#allocation85_spill] sm:$0xff] }
 0x86b   :  { %2212 = vmatpush.msra.mxu3 %v6180_v54  ;;  %2232 = vmatpush.msra.mxu0 %v6183_v34  ;;  %v7641_v34 = vld [vmem:[#allocation84_spill] sm:$0xff] }
 0x86c   :  { %2090 = vmatpush.msra.mxu2 %v7626_v43  ;;  %v1686_v43 = vpop.f32.mrf.mxu3 }
 0x86d   :  { %2213 = vmatpush.msra.mxu3 %v6187_v8  ;;  %2233 = vmatpush.msra.mxu0 %v6190_v13  ;;  %v7640_v8 = vld [vmem:[#allocation107_spill] sm:$0xff] }
 0x86e   :  { %2091 = vmatpush.msra.mxu2 %v7629_v23  ;;  %v7638_v23 = vld [vmem:[#allocation79_spill] sm:$0xff] }
 0x86f   :  { %2214 = vmatpush.msra.mxu3 %v6194_v33  ;;  %2234 = vmatpush.msra.mxu0 %v6197_v36  ;;  %v7639_v33 = vld [vmem:[#allocation87_spill] sm:$0xff]  ;;  %v430_v36 = vadd.f32 %v7641_v34, %v7640_v8  ;;  %v1706_v34 = vpop.f32.mrf.mxu0 }
 0x870   :  { %2092 = vmatpush.msra.mxu2 %v7632_v61  ;;  %v429_v13 = vadd.f32 %v7639_v33, %v7638_v23 }
 0x871   :  { %2215 = vmatpush.msra.mxu3 %v7633_v41  ;;  %2235 = vmatpush.msra.mxu0 %v7634_v3  ;;  %v1709_v41 = vadd.f32 %v1666_v49, %v7642_v2  ;;  %v1710_v3 = vadd.f32 %v1686_v43, %v7643_v46 }
 0x872   :  { %2093 = vmatpush.msra.mxu2 %v7635_v47 }
 0x873   :  { %2216 = vmatpush.msra.mxu3 %v7636_v12  ;;  %2236 = vmatpush.msra.mxu0 %v7637_v28 }
 0x8d6   :  { %v1876_v54 = vpop.f32.mrf.mxu2  ;;  %v1896_v61 = vpop.f32.mrf.mxu3 }
 0x8d7   :  { %v1919_v31 = vadd.f32 %v1876_v54, %v429_v13  ;;  %v1920_v47 = vadd.f32 %v1896_v61, %v430_v36  ;;  %v1916_v61 = vpop.f32.mrf.mxu0 }
 0x8d9   :  { %v1922_v7 = vadd.f32 %v1919_v31, %v1709_v41  ;;  %v1942_v12 = vadd.f32 %v1920_v47, %v1710_v3  ;;  %v1711_v3 = vadd.f32 %v1706_v34, %v5296_v48 }
 0x8db   :  { %v3370_v42 = vmul.f32 -1.442695, %v1922_v7  ;;  %v3371_v28 = vmul.f32 -1.442695, %v1942_v12 }
 0x8dd   :  { %3590 = vpow2.f32 %v3370_v42 }
 0x8de   :  { %3592 = vpow2.f32 %v3371_v28 }
 0x8e3   :  { %v3591_v20 = vpop.eup %3590 }
 0x8e4   :  { %v3593_v32 = vpop.eup %3592  ;;  %v1926_v23 = vadd.f32 1.0, %v3591_v20 }
 0x8e5   :  { %v1946_v33 = vadd.f32 1.0, %v3593_v32  ;;  %v7644_v32 = vld [vmem:[#allocation36_spill] sm:$0xff] }
 0x8e6   :  { %3594 = vrcp.f32 %v1926_v23  ;;  %v1938_v54 = vand.u32 2147483648, %v1926_v23  ;;  %v1936_v7 = vand.u32 2147483647, %v1926_v23  ;;  %vm1932_vm1 = vweird.f32 %v1926_v23 }
 0x8e7   :  { %3596 = vrcp.f32 %v1946_v33  ;;  %v431_v41 = vadd.f32 %v7559_v52, %v7644_v32  ;;  %vm1952_vm5 = vweird.f32 %v1946_v33 }
 0x8e8   :  { %v1939_v20 = vor.u32 1.1754944e-38, %v1938_v54  ;;  %vm1937_vm3 = vcmp.eq.f32.partialorder %v1936_v7, 8.507059e+37 }
 0x8ec   :  { %v3595_v8 = vpop.eup %3594 }
 0x8ed   :  { %v3597_v15 = vpop.eup %3596  ;;  %v1928_v49 = vmul.f32 %v3595_v8, %v1926_v23  ;;  %vm1933_vm0 = vweird.f32 %v3595_v8 }
 0x8ee   :  { %v1948_v2 = vmul.f32 %v3597_v15, %v1946_v33  ;;  %vm1934_vm2 = vmor %vm1932_vm1, %vm1933_vm0  ;;  %vm1953_vm4 = vweird.f32 %v3597_v15 }
 0x8ef   :  { %v1929_v43 = vsub.f32 1.0, %v1928_v49  ;;  %vm1954_vm6 = vmor %vm1952_vm5, %vm1953_vm4 }
 0x8f0   :  { %v1949_v13 = vsub.f32 1.0, %v1948_v2  ;;  %v1921_v2 = vadd.f32 %v1916_v61, %v431_v41  ;;  %v6334_v61 = vld [vmem:[#allocation15 + $0x48] sm:$0xff]  ;;  %v6340_v41 = vld [vmem:[#allocation15 + $0x58] sm:$0xff] }
 0x8f1   :  { %v1930_v31 = vmul.f32 %v3595_v8, %v1929_v43  ;;  %v1958_v43 = vand.u32 2147483648, %v1946_v33  ;;  %7656 = vst [vmem:[#allocation77_spill] sm:$0xff] %v6334_v61 }
 0x8f2   :  { %v1950_v36 = vmul.f32 %v3597_v15, %v1949_v13  ;;  %v1956_v13 = vand.u32 2147483647, %v1946_v33  ;;  %v6325_v33 = vld [vmem:[#allocation15 + $0x70] sm:$0xff]  ;;  %7658 = vst [vmem:[#allocation34_spill] sm:$0xff] %v6340_v41 }
 0x8f3   :  { %v1931_v42 = vadd.f32 %v3595_v8, %v1930_v31  ;;  %v1959_v54 = vor.u32 1.1754944e-38, %v1958_v43  ;;  %7653 = vst [vmem:[#allocation76_spill] sm:$0xff] %v6325_v33  ;;  %v6361_v43 = vld [vmem:[#allocation15 + $0x10] sm:$0xff] }
 0x8f4   :  { %v1951_v28 = vadd.f32 %v3597_v15, %v1950_v36  ;;  %vm1957_vm7 = vcmp.eq.f32.partialorder %v1956_v13, 8.507059e+37  ;;  %v6328_v36 = vld [vmem:[#allocation15 + $0x78] sm:$0xff]  ;;  %7665 = vst [vmem:[#allocation92_spill] sm:$0xff] %v6361_v43 }
 0x8f5   :  { %v1935_v47 = vsel %vm1934_vm2, %v3595_v8, %v1931_v42  ;;  %7654 = vst [vmem:[#allocation90_spill] sm:$0xff] %v6328_v36  ;;  %v6331_v42 = vld [vmem:[#allocation15 + $0x40] sm:$0xff]  ;;  %v6364_v13 = vld [vmem:[#allocation15 + $0x18] sm:$0xff] }
 0x8f6   :  { %v1940_v12 = vsel %vm1937_vm3, %v1939_v20, %v1935_v47  ;;  %v1955_v23 = vsel %vm1954_vm6, %v3597_v15, %v1951_v28  ;;  %v6223_v15 = vld [vmem:[#allocation15 + $0x1e0] sm:$0xff]  ;;  %7655 = vst [vmem:[#allocation91_spill] sm:$0xff] %v6331_v42  ;;  %v6337_v20 = vld [vmem:[#allocation15 + $0x50] sm:$0xff]  ;;  %v6346_v47 = vld [vmem:[#allocation15 + $0x28] sm:$0xff] }
 0x8f7   :  { %v1962_v49 = vmul.f32 %v1940_v12, %v1711_v3  ;;  %v1960_v46 = vsel %vm1957_vm7, %v1959_v54, %v1955_v23  ;;  %7657 = vst [vmem:[#allocation86_spill] sm:$0xff] %v6337_v20  ;;  %v6343_v3 = vld [vmem:[#allocation15 + $0x20] sm:$0xff]  ;;  %v6349_v12 = vld [vmem:[#allocation15 + $0x30] sm:$0xff]  ;;  %v6352_v28 = vld [vmem:[#allocation15 + $0x38] sm:$0xff] }
 0x8f8   :  { %v1965_v32 = vsub.f32 1.0, %v1960_v46  ;;  %v1967_v8 = vmul.f32 %v1960_v46, %v5927_v57  ;;  %v6235_v57 = vld [vmem:[#allocation15 + $0x1a0] sm:$0xff]  ;;  %v6322_v46 = vld [vmem:[#allocation15 + $0x68] sm:$0xff]  ;;  %7659 = vst [vmem:[#allocation109_spill] sm:$0xff] %v6343_v3 }
 0x8f9   :  { %v1963_v31 = vadd.f32 %v1962_v49, %v1921_v2  ;;  %7652 = vst [vmem:[#allocation89_spill] sm:$0xff] %v6322_v46  ;;  %v6355_v2 = vld [vmem:[#allocation15] sm:$0xff]  ;;  %v6358_v49 = vld [vmem:[#allocation15 + $0x8] sm:$0xff] }
 0x8fa   :  { %7660 = vst [vmem:[#allocation110_spill] sm:$0xff] %v6346_v47  ;;  %v7667_v23 = vld [vmem:[#allocation74_spill] sm:$0xff] }
 0x8fb   :  { %3598 = vtanh.f32 %v1963_v31  ;;  %7661 = vst [vmem:[#allocation51_spill] sm:$0xff] %v6349_v12 }
 0x8fc   :  { %7662 = vst [vmem:[#allocation111_spill] sm:$0xff] %v6352_v28 }
 0x8fd   :  { %7663 = vst [vmem:[#allocation112_spill] sm:$0xff] %v6355_v2 }
 0x8fe   :  { %7664 = vst [vmem:[#allocation33_spill] sm:$0xff] %v6358_v49 }
 0x8ff   :  { %7666 = vst [vmem:[#allocation95_spill] sm:$0xff] %v6364_v13 }
 0x901   :  { %v3599_v52 = vpop.eup %3598 }
 0x902   :  { %v1966_v34 = vmul.f32 %v3599_v52, %v1965_v32  ;;  %v6229_v52 = vld [vmem:[#allocation15 + $0x1c0] sm:$0xff] }
 0x903   :  { %v7668_v32 = vld [vmem:[#allocation93_spill] sm:$0xff] }
 0x904   :  { %v6216_v7 = vadd.f32 %v1967_v8, %v1966_v34 }
 0x906   :  { %1987 = vmatmul.f32.vlgmr.msrb.gmra.mxu2 %v6216_v7  ;;  %1970 = vst [vmem:[#allocation21 + $0x18] sm:$0xff] %v6216_v7  ;;  %2007 = vmatmul.f32.vlgmr.msrb.gmra.mxu3 %v6216_v7 }
 0x907   :  { %2027 = vmatmul.f32.vlgmr.msrb.gmra.mxu0 %v6216_v7  ;;  %2047 = vmatmul.f32.vlgmr.msrb.gmra.mxu1 %v6216_v7 }
 0x908   :  { %2313 = vmatpush.msrb.mxu3 %v6223_v15  ;;  %2333 = vmatpush.msrb.mxu0 %v5935_v6  ;;  %v6241_v6 = vld [vmem:[#allocation15 + $0x180] sm:$0xff] }
 0x909   :  { %2353 = vmatpush.msrb.mxu1 %v5938_v37  ;;  %2373 = vmatpush.msrb.mxu2 %v5941_v21  ;;  %v6247_v37 = vld [vmem:[#allocation15 + $0x160] sm:$0xff] }
 0x90a   :  { %2314 = vmatpush.msrb.mxu3 %v6229_v52  ;;  %2334 = vmatpush.msrb.mxu0 %v5945_v59  ;;  %v6253_v21 = vld [vmem:[#allocation15 + $0x140] sm:$0xff] }
 0x90b   :  { %2354 = vmatpush.msrb.mxu1 %v5948_v9  ;;  %2374 = vmatpush.msrb.mxu2 %v5951_v4  ;;  %v6259_v59 = vld [vmem:[#allocation15 + $0x120] sm:$0xff]  ;;  %v7645_v4 = vld [vmem:[#allocation71_spill] sm:$0xff] }
 0x90c   :  { %2315 = vmatpush.msrb.mxu3 %v6235_v57  ;;  %2335 = vmatpush.msrb.mxu0 %v5955_v50  ;;  %v6265_v9 = vld [vmem:[#allocation15 + $0x100] sm:$0xff] }
 0x90d   :  { %2355 = vmatpush.msrb.mxu1 %v5958_v62  ;;  %2375 = vmatpush.msrb.mxu2 %v5961_v40  ;;  %v6271_v50 = vld [vmem:[#allocation15 + $0xe0] sm:$0xff]  ;;  %v6274_v62 = vld [vmem:[#allocation15 + $0xe8] sm:$0xff]  ;;  %v6277_v40 = vld [vmem:[#allocation15 + $0xf0] sm:$0xff] }
 0x90e   :  { %2316 = vmatpush.msrb.mxu3 %v6241_v6  ;;  %2336 = vmatpush.msrb.mxu0 %v5965_v1  ;;  %v6280_v1 = vld [vmem:[#allocation15 + $0xf8] sm:$0xff] }
 0x90f   :  { %2356 = vmatpush.msrb.mxu1 %v5968_v0  ;;  %2376 = vmatpush.msrb.mxu2 %v5971_v30  ;;  %v6283_v0 = vld [vmem:[#allocation15 + $0xc0] sm:$0xff]  ;;  %v6286_v30 = vld [vmem:[#allocation15 + $0xc8] sm:$0xff] }
 0x910   :  { %2317 = vmatpush.msrb.mxu3 %v6247_v37  ;;  %2337 = vmatpush.msrb.mxu0 %v5975_v35  ;;  %v6289_v35 = vld [vmem:[#allocation15 + $0xd0] sm:$0xff] }
 0x911   :  { %2357 = vmatpush.msrb.mxu1 %v5978_v10  ;;  %2377 = vmatpush.msrb.mxu2 %v5981_v25  ;;  %v6292_v10 = vld [vmem:[#allocation15 + $0xd8] sm:$0xff]  ;;  %v6295_v25 = vld [vmem:[#allocation15 + $0xa0] sm:$0xff] }
 0x912   :  { %2318 = vmatpush.msrb.mxu3 %v6253_v21  ;;  %2338 = vmatpush.msrb.mxu0 %v5985_v17  ;;  %v6298_v17 = vld [vmem:[#allocation15 + $0xa8] sm:$0xff] }
 0x913   :  { %2358 = vmatpush.msrb.mxu1 %v5988_v39  ;;  %2378 = vmatpush.msrb.mxu2 %v5991_v11  ;;  %v6301_v39 = vld [vmem:[#allocation15 + $0xb0] sm:$0xff]  ;;  %v6304_v11 = vld [vmem:[#allocation15 + $0xb8] sm:$0xff] }
 0x914   :  { %2319 = vmatpush.msrb.mxu3 %v6259_v59  ;;  %2339 = vmatpush.msrb.mxu0 %v5995_v63  ;;  %7646 = vst [vmem:[#allocation69_spill] sm:$0xff] %v6304_v11  ;;  %v6307_v63 = vld [vmem:[#allocation15 + $0x80] sm:$0xff] }
 0x915   :  { %2359 = vmatpush.msrb.mxu1 %v5998_v58  ;;  %2379 = vmatpush.msrb.mxu2 %v6001_v16  ;;  %7647 = vst [vmem:[#allocation70_spill] sm:$0xff] %v6307_v63  ;;  %v6310_v58 = vld [vmem:[#allocation15 + $0x88] sm:$0xff]  ;;  %v6313_v16 = vld [vmem:[#allocation15 + $0x90] sm:$0xff] }
 0x916   :  { %2320 = vmatpush.msrb.mxu3 %v6265_v9  ;;  %2340 = vmatpush.msrb.mxu0 %v6005_v51  ;;  %7648 = vst [vmem:[#allocation72_spill] sm:$0xff] %v6310_v58  ;;  %v6316_v51 = vld [vmem:[#allocation15 + $0x98] sm:$0xff] }
 0x917   :  { %2360 = vmatpush.msrb.mxu1 %v6008_v29  ;;  %2380 = vmatpush.msrb.mxu2 %v7645_v4  ;;  %7649 = vst [vmem:[#allocation73_spill] sm:$0xff] %v6313_v16  ;;  %v6319_v29 = vld [vmem:[#allocation15 + $0x60] sm:$0xff]  ;;  %v6369_v4 = vld [vmem:[#allocation19 + $0x178] sm:$0xff] }
 0x918   :  { %2321 = vmatpush.msrb.mxu3 %v6271_v50  ;;  %2341 = vmatpush.msrb.mxu0 %v6274_v62  ;;  %7650 = vst [vmem:[#allocation75_spill] sm:$0xff] %v6316_v51 }
 0x919   :  { %2361 = vmatpush.msrb.mxu1 %v6277_v40  ;;  %2381 = vmatpush.msrb.mxu2 %v6280_v1  ;;  %7651 = vst [vmem:[#allocation88_spill] sm:$0xff] %v6319_v29 }
 0x91a   :  { %2322 = vmatpush.msrb.mxu3 %v6283_v0  ;;  %2342 = vmatpush.msrb.mxu0 %v6286_v30  ;;  %7669 = vst [vmem:[#allocation41_spill] sm:$0xff] %v6369_v4 }
 0x91b   :  { %2362 = vmatpush.msrb.mxu1 %v6289_v35  ;;  %2382 = vmatpush.msrb.mxu2 %v6292_v10 }
 0x91c   :  { %2323 = vmatpush.msrb.mxu3 %v6295_v25  ;;  %2343 = vmatpush.msrb.mxu0 %v6298_v17 }
 0x91d   :  { %2363 = vmatpush.msrb.mxu1 %v6301_v39  ;;  %2383 = vmatpush.msrb.mxu2 %v6304_v11 }
 0x91e   :  { %2324 = vmatpush.msrb.mxu3 %v6307_v63  ;;  %2344 = vmatpush.msrb.mxu0 %v6310_v58 }
 0x91f   :  { %2364 = vmatpush.msrb.mxu1 %v6313_v16  ;;  %2384 = vmatpush.msrb.mxu2 %v6316_v51 }
 0x920   :  { %2325 = vmatpush.msrb.mxu3 %v6319_v29  ;;  %2345 = vmatpush.msrb.mxu0 %v6322_v46  ;;  %v7697_v29 = vld [vmem:[#allocation54_spill] sm:$0xff] }
 0x921   :  { %2365 = vmatpush.msrb.mxu1 %v6325_v33  ;;  %2385 = vmatpush.msrb.mxu2 %v6328_v36  ;;  %v7696_v36 = vld [vmem:[#allocation53_spill] sm:$0xff] }
 0x922   :  { %2326 = vmatpush.msrb.mxu3 %v6331_v42  ;;  %2346 = vmatpush.msrb.mxu0 %v6334_v61  ;;  %v7694_v42 = vld [vmem:[#allocation49_spill] sm:$0xff] }
 0x923   :  { %2366 = vmatpush.msrb.mxu1 %v6337_v20  ;;  %2386 = vmatpush.msrb.mxu2 %v6340_v41 }
 0x924   :  { %2327 = vmatpush.msrb.mxu3 %v6343_v3  ;;  %2347 = vmatpush.msrb.mxu0 %v6346_v47 }
 0x925   :  { %2367 = vmatpush.msrb.mxu1 %v6349_v12  ;;  %2387 = vmatpush.msrb.mxu2 %v6352_v28 }
 0x926   :  { %2328 = vmatpush.msrb.mxu3 %v6355_v2  ;;  %2348 = vmatpush.msrb.mxu0 %v6358_v49  ;;  %v6372_v49 = vld [vmem:[#allocation19 + $0x160] sm:$0xff] }
 0x927   :  { %2368 = vmatpush.msrb.mxu1 %v6361_v43  ;;  %2388 = vmatpush.msrb.mxu2 %v6364_v13  ;;  %7670 = vst [vmem:[#allocation42_spill] sm:$0xff] %v6372_v49  ;;  %v7671_v43 = vld [vmem:[#allocation94_spill] sm:$0xff] }
 0x928   :  { %v6376_v13 = vld [vmem:[#allocation19 + $0x148] sm:$0xff] }
 0x929   :  { %7672 = vst [vmem:[#allocation43_spill] sm:$0xff] %v6376_v13 }
 0x989   :  { %v1988_v31 = vpop.f32.mrf.mxu2 }
 0x98a   :  { %v2062_v54 = vadd.f32 %v1988_v31, %v7667_v23  ;;  %v2063_v34 = vadd.f32 %v1988_v31, %v7668_v32  ;;  %v2064_v2 = vadd.f32 %v1988_v31, %v7671_v43  ;;  %v6382_v32 = vld [vmem:[#allocation19 + $0x118] sm:$0xff] }
 0x98b   :  { %7674 = vst [vmem:[#allocation46_spill] sm:$0xff] %v6382_v32  ;;  %v7676_v43 = vld [vmem:[#allocation96_spill] sm:$0xff] }
 0x98c   :  { %3600 = vtanh.f32 %v2062_v54  ;;  %v6379_v54 = vld [vmem:[#allocation19 + $0x130] sm:$0xff] }
 0x98d   :  { %3602 = vtanh.f32 %v2063_v34  ;;  %7673 = vst [vmem:[#allocation44_spill] sm:$0xff] %v6379_v54  ;;  %v6385_v34 = vld [vmem:[#allocation19 + $0x100] sm:$0xff] }
 0x98e   :  { %3604 = vtanh.f32 %v2064_v2  ;;  %7675 = vst [vmem:[#allocation52_spill] sm:$0xff] %v6385_v34  ;;  %v6395_v2 = vld [vmem:[#allocation19 + $0xb8] sm:$0xff] }
 0x98f   :  { %7679 = vst [vmem:[#allocation57_spill] sm:$0xff] %v6395_v2 }
 0x992   :  { %v3601_v8 = vpop.eup %3600 }
 0x993   :  { %2094 = vmatmul.f32.vlgmr.msra.gmra.mxu2 %v3601_v8  ;;  %v3603_v23 = vpop.eup %3602  ;;  %v2065_v8 = vadd.f32 %v1988_v31, %v7676_v43  ;;  %v7681_v43 = vld [vmem:[#allocation97_spill] sm:$0xff] }
 0x994   :  { %2583 = vmatpush.msra.mxu2 %v6369_v4  ;;  %v6392_v4 = vld [vmem:[#allocation19 + $0xd0] sm:$0xff] }
 0x995   :  { %7678 = vst [vmem:[#allocation56_spill] sm:$0xff] %v6392_v4  ;;  %3606 = vtanh.f32 %v2065_v8  ;;  %v6411_v8 = vld [vmem:[#allocation19 + $0x40] sm:$0xff] }
 0x996   :  { %2584 = vmatpush.msra.mxu2 %v6372_v49  ;;  %v6389_v49 = vld [vmem:[#allocation19 + $0xe8] sm:$0xff]  ;;  %7685 = vst [vmem:[#allocation79_spill] sm:$0xff] %v6411_v8 }
 0x997   :  { %7677 = vst [vmem:[#allocation55_spill] sm:$0xff] %v6389_v49 }
 0x998   :  { %2585 = vmatpush.msra.mxu2 %v6376_v13  ;;  %v3605_v13 = vpop.eup %3604 }
 0x99a   :  { %2586 = vmatpush.msra.mxu2 %v6379_v54  ;;  %v6405_v54 = vld [vmem:[#allocation19 + $0x70] sm:$0xff] }
 0x99b   :  { %2097 = vmatmul.f32.gmra.mxu2 %v3603_v23  ;;  %v6398_v23 = vld [vmem:[#allocation19 + $0xa0] sm:$0xff]  ;;  %7683 = vst [vmem:[#allocation65_spill] sm:$0xff] %v6405_v54 }
 0x99c   :  { %2587 = vmatpush.msra.mxu2 %v6382_v32  ;;  %7680 = vst [vmem:[#allocation59_spill] sm:$0xff] %v6398_v23  ;;  %v6402_v32 = vld [vmem:[#allocation19 + $0x88] sm:$0xff] }
 0x99d   :  { %7682 = vst [vmem:[#allocation62_spill] sm:$0xff] %v6402_v32 }
 0x99e   :  { %2588 = vmatpush.msra.mxu2 %v6385_v34  ;;  %v2066_v34 = vadd.f32 %v1988_v31, %v7681_v43  ;;  %v7686_v43 = vld [vmem:[#allocation78_spill] sm:$0xff] }
 0x9a0   :  { %2589 = vmatpush.msra.mxu2 %v6389_v49  ;;  %v3607_v49 = vpop.eup %3606  ;;  %3608 = vtanh.f32 %v2066_v34 }
 0x9a2   :  { %2590 = vmatpush.msra.mxu2 %v6392_v4  ;;  %v6418_v4 = vld [vmem:[#allocation19 + $0x10] sm:$0xff] }
 0x9a3   :  { %2100 = vmatmul.f32.gmra.mxu2 %v3605_v13  ;;  %v6408_v13 = vld [vmem:[#allocation19 + $0x58] sm:$0xff]  ;;  %7688 = vst [vmem:[#allocation36_spill] sm:$0xff] %v6418_v4 }
 0x9a4   :  { %2591 = vmatpush.msra.mxu2 %v6395_v2  ;;  %7684 = vst [vmem:[#allocation68_spill] sm:$0xff] %v6408_v13  ;;  %v6415_v2 = vld [vmem:[#allocation19 + $0x28] sm:$0xff] }
 0x9a5   :  { %7687 = vst [vmem:[#allocation107_spill] sm:$0xff] %v6415_v2 }
 0x9a6   :  { %2592 = vmatpush.msra.mxu2 %v6398_v23  ;;  %v2067_v23 = vadd.f32 %v1988_v31, %v7686_v43 }
 0x9a8   :  { %2593 = vmatpush.msra.mxu2 %v6402_v32  ;;  %v3609_v32 = vpop.eup %3608  ;;  %3610 = vtanh.f32 %v2067_v23  ;;  %v7691_v23 = vld [vmem:[#allocation45_spill] sm:$0xff] }
 0x9aa   :  { %2594 = vmatpush.msra.mxu2 %v6405_v54  ;;  %v7690_v54 = vld [vmem:[#allocation35_spill] sm:$0xff] }
 0x9ab   :  { %2103 = vmatmul.f32.gmra.mxu2 %v3607_v49  ;;  %v7689_v49 = vld [vmem:[#allocation106_spill] sm:$0xff] }
 0x9ac   :  { %2595 = vmatpush.msra.mxu2 %v6408_v13  ;;  %v2068_v34 = vadd.f32 %v1988_v31, %v7689_v49  ;;  %v7692_v49 = vld [vmem:[#allocation47_spill] sm:$0xff] }
 0x9ae   :  { %2596 = vmatpush.msra.mxu2 %v6411_v8  ;;  %v3611_v13 = vpop.eup %3610  ;;  %3612 = vtanh.f32 %v2068_v34  ;;  %v2069_v8 = vadd.f32 %v1988_v31, %v7690_v54  ;;  %v7695_v54 = vld [vmem:[#allocation50_spill] sm:$0xff] }
 0x9b0   :  { %2597 = vmatpush.msra.mxu2 %v6415_v2  ;;  %3614 = vtanh.f32 %v2069_v8 }
 0x9b2   :  { %2598 = vmatpush.msra.mxu2 %v6418_v4 }
 0x9b3   :  { %2106 = vmatmul.f32.gmra.mxu2 %v3609_v32 }
 0x9b4   :  { %v3613_v28 = vpop.eup %3612 }
 0x9b6   :  { %v3615_v43 = vpop.eup %3614 }
 0x9bb   :  { %2109 = vmatmul.f32.gmra.mxu2 %v3611_v13  ;;  %v7693_v13 = vld [vmem:[#allocation48_spill] sm:$0xff] }
 0x9c3   :  { %2112 = vmatmul.f32.gmra.mxu2 %v3613_v28 }
 0x9cb   :  { %2115 = vmatmul.f32.gmra.mxu2 %v3615_v43 }
 0xa16   :  { %v2095_v2 = vpop.f32.mrf.mxu2 }
 0xa17   :  { %v2119_v28 = vadd.f32 %v2095_v2, %v7695_v54 }
 0xa1e   :  { %v2098_v12 = vpop.f32.mrf.mxu2 }
 0xa1f   :  { %v2120_v61 = vadd.f32 %v2098_v12, %v7692_v49 }
 0xa26   :  { %v2101_v47 = vpop.f32.mrf.mxu2 }
 0xa27   :  { %v2121_v43 = vadd.f32 %v2101_v47, %v7508_v22 }
 0xa2e   :  { %v2104_v3 = vpop.f32.mrf.mxu2 }
 0xa2f   :  { %v2122_v33 = vadd.f32 %v2104_v3, %v7696_v36 }
 0xa36   :  { %v2107_v41 = vpop.f32.mrf.mxu2 }
 0xa37   :  { %v2123_v34 = vadd.f32 %v2107_v41, %v7693_v13 }
 0xa39   :  { %v2127_v16 = vmax.f32 %v2119_v28, %v2123_v34 }
 0xa3e   :  { %v2110_v4 = vpop.f32.mrf.mxu2 }
 0xa3f   :  { %v2124_v20 = vadd.f32 %v2110_v4, %v7691_v23 }
 0xa41   :  { %v2128_v46 = vmax.f32 %v2120_v61, %v2124_v20 }
 0xa43   :  { %v2131_v4 = vmax.f32 %v2127_v16, %v2128_v46 }
 0xa46   :  { %v2113_v32 = vpop.f32.mrf.mxu2 }
 0xa47   :  { %v2125_v31 = vadd.f32 %v2113_v32, %v7694_v42 }
 0xa49   :  { %v2129_v58 = vmax.f32 %v2121_v43, %v2125_v31 }
 0xa4e   :  { %v2116_v8 = vpop.f32.mrf.mxu2 }
 0xa4f   :  { %v2126_v51 = vadd.f32 %v2116_v8, %v7697_v29 }
 0xa51   :  { %v2130_v63 = vmax.f32 %v2122_v33, %v2126_v51 }
 0xa53   :  { %v2132_v23 = vmax.f32 %v2129_v58, %v2130_v63 }
 0xa55   :  { %v2133_v12 = vmax.f32 %v2131_v4, %v2132_v23 }
 0xa57   :  { %v2134_v49 = vsub.f32 %v2119_v28, %v2133_v12  ;;  %v2135_v41 = vsub.f32 %v2120_v61, %v2133_v12  ;;  %v2136_v13 = vsub.f32 %v2121_v43, %v2133_v12  ;;  %v2137_v32 = vsub.f32 %v2122_v33, %v2133_v12 }
 0xa58   :  { %v2138_v54 = vsub.f32 %v2123_v34, %v2133_v12  ;;  %v2139_v47 = vsub.f32 %v2124_v20, %v2133_v12  ;;  %v2140_v36 = vsub.f32 %v2125_v31, %v2133_v12  ;;  %v2141_v29 = vsub.f32 %v2126_v51, %v2133_v12  ;;  %v6433_v12 = vld [vmem:[#allocation9 + $0x8] sm:$0xff] }
 0xa59   :  { %v2142_v42 = vmul.f32 1.442695, %v2134_v49  ;;  %v2144_v2 = vmul.f32 1.442695, %v2135_v41  ;;  %v2146_v11 = vmul.f32 1.442695, %v2136_v13 }
 0xa5a   :  { %v2148_v3 = vmul.f32 1.442695, %v2137_v32  ;;  %v2150_v8 = vmul.f32 1.442695, %v2138_v54  ;;  %v2152_v16 = vmul.f32 1.442695, %v2139_v47 }
 0xa5b   :  { %3616 = vpow2.f32 %v2142_v42  ;;  %v2154_v46 = vmul.f32 1.442695, %v2140_v36  ;;  %v2156_v23 = vmul.f32 1.442695, %v2141_v29  ;;  %v6431_v36 = vld [vmem:[#allocation9] sm:$0xff] }
 0xa5c   :  { %3618 = vpow2.f32 %v2144_v2  ;;  %v6435_v2 = vld [vmem:[#allocation9 + $0x10] sm:$0xff] }
 0xa5d   :  { %3620 = vpow2.f32 %v2146_v11 }
 0xa5e   :  { %3622 = vpow2.f32 %v2148_v3 }
 0xa5f   :  { %3624 = vpow2.f32 %v2150_v8 }
 0xa60   :  { %3626 = vpow2.f32 %v2152_v16  ;;  %v6439_v16 = vld [vmem:[#allocation9 + $0x18] sm:$0xff] }
 0xa61   :  { %v3617_v63 = vpop.eup %3616  ;;  %3628 = vpow2.f32 %v2154_v46 }
 0xa62   :  { %v3619_v58 = vpop.eup %3618  ;;  %3630 = vpow2.f32 %v2156_v23 }
 0xa63   :  { %v2158_v61 = vadd.f32 %v3619_v58, %v3617_v63  ;;  %v3621_v33 = vpop.eup %3620 }
 0xa64   :  { %v3623_v13 = vpop.eup %3622 }
 0xa65   :  { %v2159_v49 = vadd.f32 %v3621_v33, %v2158_v61  ;;  %v3625_v20 = vpop.eup %3624 }
 0xa66   :  { %v3627_v11 = vpop.eup %3626 }
 0xa67   :  { %v2160_v42 = vadd.f32 %v3623_v13, %v2159_v49  ;;  %v3629_v51 = vpop.eup %3628  ;;  %v6442_v49 = vld [vmem:[#allocation9 + $0x20] sm:$0xff] }
 0xa68   :  { %v3631_v28 = vpop.eup %3630 }
 0xa69   :  { %v2161_v34 = vadd.f32 %v3625_v20, %v2160_v42 }
 0xa6b   :  { %v2162_v31 = vadd.f32 %v3627_v11, %v2161_v34 }
 0xa6d   :  { %v2163_v54 = vadd.f32 %v3629_v51, %v2162_v31 }
 0xa6f   :  { %v2164_v43 = vadd.f32 %v3631_v28, %v2163_v54  ;;  %v6448_v54 = vld [vmem:[#allocation9 + $0x30] sm:$0xff] }
 0xa71   :  { %3632 = vrcp.f32 %v2164_v43 }
 0xa77   :  { %v3633_v4 = vpop.eup %3632 }
 0xa78   :  { %v2166_v29 = vmul.f32 %v3633_v4, %v3617_v63  ;;  %v2167_v41 = vmul.f32 %v3633_v4, %v3619_v58  ;;  %v2168_v32 = vmul.f32 %v3633_v4, %v3621_v33  ;;  %v2169_v47 = vmul.f32 %v3633_v4, %v3623_v13  ;;  %v6445_v33 = vld [vmem:[#allocation9 + $0x28] sm:$0xff] }
 0xa79   :  { %v2170_v46 = vmul.f32 %v3633_v4, %v3625_v20  ;;  %v2171_v42 = vmul.f32 %v3633_v4, %v3627_v11  ;;  %v2172_v34 = vmul.f32 %v3633_v4, %v3629_v51  ;;  %v2173_v43 = vmul.f32 %v3633_v4, %v3631_v28  ;;  %v6455_v51 = vld [vmem:[#allocation16 + $0x78] sm:$0xff]  ;;  %v6460_v28 = vld [vmem:[#allocation16 + $0x70] sm:$0xff]  ;;  %v6465_v4 = vld [vmem:[#allocation16 + $0x68] sm:$0xff] }
 0xa7a   :  { %v2182_v3 = vmul.f32 %v6431_v36, %v2166_v29  ;;  %v2183_v8 = vmul.f32 %v6433_v12, %v2167_v41  ;;  %v2184_v61 = vmul.f32 %v6435_v2, %v2168_v32  ;;  %v2185_v63 = vmul.f32 %v6439_v16, %v2169_v47  ;;  %v6451_v41 = vld [vmem:[#allocation9 + $0x38] sm:$0xff] }
 0xa7b   :  { %v2186_v13 = vmul.f32 %v6442_v49, %v2170_v46  ;;  %v2187_v20 = vmul.f32 %v6445_v33, %v2171_v42  ;;  %v2188_v32 = vmul.f32 %v6448_v54, %v2172_v34  ;;  %v2189_v47 = vmul.f32 %v6451_v41, %v2173_v43  ;;  %v6470_v46 = vld [vmem:[#allocation16 + $0x60] sm:$0xff]  ;;  %v7708_v42 = vld [vmem:[#allocation60_spill] sm:$0xff]  ;;  %v7711_v34 = vld [vmem:[#allocation63_spill] sm:$0xff] }
 0xa7c   :  { %v2190_v23 = vadd.f32 %v2183_v8, %v2182_v3  ;;  %v7714_v43 = vld [vmem:[#allocation66_spill] sm:$0xff] }
 0xa7e   :  { %v2191_v58 = vadd.f32 %v2190_v23, %v2184_v61  ;;  %v7706_v61 = vld [vmem:[#allocation58_spill] sm:$0xff]  ;;  %v6510_v23 = vld [vmem:[#allocation16 + $0x20] sm:$0xff] }
 0xa7f   :  { %7707 = vst [vmem:[#allocation74_spill] sm:$0xff] %v6510_v23 }
 0xa80   :  { %v2192_v31 = vadd.f32 %v2191_v58, %v2185_v63  ;;  %v7709_v63 = vld [vmem:[#allocation61_spill] sm:$0xff]  ;;  %v6515_v58 = vld [vmem:[#allocation16 + $0x18] sm:$0xff] }
 0xa81   :  { %7710 = vst [vmem:[#allocation93_spill] sm:$0xff] %v6515_v58 }
 0xa82   :  { %v2193_v29 = vadd.f32 %v2192_v31, %v2186_v13  ;;  %v7712_v13 = vld [vmem:[#allocation64_spill] sm:$0xff]  ;;  %v6520_v31 = vld [vmem:[#allocation16 + $0x10] sm:$0xff] }
 0xa83   :  { %7713 = vst [vmem:[#allocation94_spill] sm:$0xff] %v6520_v31 }
 0xa84   :  { %v2194_v11 = vadd.f32 %v2193_v29, %v2187_v20  ;;  %v7715_v20 = vld [vmem:[#allocation67_spill] sm:$0xff]  ;;  %v6525_v29 = vld [vmem:[#allocation16 + $0x8] sm:$0xff] }
 0xa85   :  { %7716 = vst [vmem:[#allocation96_spill] sm:$0xff] %v6525_v29 }
 0xa86   :  { %v2195_v3 = vadd.f32 %v2194_v11, %v2188_v32  ;;  %v6528_v32 = vld [vmem:[#allocation19 + $0x18] sm:$0xff]  ;;  %v6531_v11 = vld [vmem:[#allocation19 + $0x20] sm:$0xff] }
 0xa87   :  { %7717 = vst [vmem:[#allocation97_spill] sm:$0xff] %v6528_v32 }
 0xa88   :  { %v2196_v8 = vadd.f32 %v2195_v3, %v2189_v47  ;;  %7718 = vst [vmem:[#allocation78_spill] sm:$0xff] %v6531_v11  ;;  %v6534_v47 = vld [vmem:[#allocation16] sm:$0xff] }
 0xa89   :  { %7719 = vst [vmem:[#allocation106_spill] sm:$0xff] %v6534_v47  ;;  %v6537_v3 = vld [vmem:[#allocation19] sm:$0xff] }
 0xa8a   :  { %2217 = vmatmul.f32.vlgmr.msra.gmra.mxu3 %v2196_v8  ;;  %2237 = vmatmul.f32.vlgmr.msra.gmra.mxu0 %v2196_v8  ;;  %7720 = vst [vmem:[#allocation35_spill] sm:$0xff] %v6537_v3 }
 0xa8b   :  { %2257 = vmatmul.f32.vlgmr.msra.gmra.mxu1 %v2196_v8  ;;  %2420 = vmatpush.msra.mxu3 %v6455_v51  ;;  %v6540_v8 = vld [vmem:[#allocation19 + $0x8] sm:$0xff] }
 0xa8c   :  { %2543 = vmatpush.msra.mxu0 %v6103_v18  ;;  %2563 = vmatpush.msra.mxu1 %v6106_v45  ;;  %v6475_v18 = vld [vmem:[#allocation16 + $0x58] sm:$0xff]  ;;  %v6480_v45 = vld [vmem:[#allocation16 + $0x50] sm:$0xff] }
 0xa8d   :  { %2421 = vmatpush.msra.mxu3 %v6460_v28 }
 0xa8e   :  { %2544 = vmatpush.msra.mxu0 %v6110_v26  ;;  %2564 = vmatpush.msra.mxu1 %v6113_v53  ;;  %v6485_v26 = vld [vmem:[#allocation16 + $0x48] sm:$0xff]  ;;  %v6490_v53 = vld [vmem:[#allocation16 + $0x40] sm:$0xff] }
 0xa8f   :  { %2422 = vmatpush.msra.mxu3 %v6465_v4 }
 0xa90   :  { %2545 = vmatpush.msra.mxu0 %v6117_v60  ;;  %2565 = vmatpush.msra.mxu1 %v6120_v14  ;;  %v7698_v60 = vld [vmem:[#allocation98_spill] sm:$0xff]  ;;  %v7699_v14 = vld [vmem:[#allocation99_spill] sm:$0xff] }
 0xa91   :  { %2423 = vmatpush.msra.mxu3 %v6470_v46  ;;  %7721 = vst [vmem:[#allocation98_spill] sm:$0xff] %v6540_v8 }
 0xa92   :  { %2546 = vmatpush.msra.mxu0 %v6124_v44  ;;  %2566 = vmatpush.msra.mxu1 %v6127_v55  ;;  %v6495_v44 = vld [vmem:[#allocation16 + $0x38] sm:$0xff] }
 0xa93   :  { %2424 = vmatpush.msra.mxu3 %v6475_v18  ;;  %v7700_v55 = vld [vmem:[#allocation100_spill] sm:$0xff] }
 0xa94   :  { %2547 = vmatpush.msra.mxu0 %v6131_v56  ;;  %2567 = vmatpush.msra.mxu1 %v6134_v24  ;;  %v7701_v56 = vld [vmem:[#allocation101_spill] sm:$0xff]  ;;  %v6500_v24 = vld [vmem:[#allocation16 + $0x30] sm:$0xff] }
 0xa95   :  { %2425 = vmatpush.msra.mxu3 %v6480_v45 }
 0xa96   :  { %2548 = vmatpush.msra.mxu0 %v6138_v5  ;;  %2568 = vmatpush.msra.mxu1 %v6141_v38  ;;  %v7702_v5 = vld [vmem:[#allocation102_spill] sm:$0xff]  ;;  %v7703_v38 = vld [vmem:[#allocation103_spill] sm:$0xff] }
 0xa97   :  { %2426 = vmatpush.msra.mxu3 %v6485_v26 }
 0xa98   :  { %2549 = vmatpush.msra.mxu0 %v6145_v27  ;;  %2569 = vmatpush.msra.mxu1 %v6148_v19  ;;  %v6505_v27 = vld [vmem:[#allocation16 + $0x28] sm:$0xff]  ;;  %v7705_v19 = vld [vmem:[#allocation104_spill] sm:$0xff] }
 0xa99   :  { %2427 = vmatpush.msra.mxu3 %v6490_v53  ;;  %7704 = vst [vmem:[#allocation71_spill] sm:$0xff] %v6505_v27 }
 0xa9a   :  { %2550 = vmatpush.msra.mxu0 %v7698_v60  ;;  %2570 = vmatpush.msra.mxu1 %v7699_v14  ;;  %v2028_v60 = vpop.f32.mrf.mxu0  ;;  %v2008_v14 = vpop.f32.mrf.mxu3 }
 0xa9b   :  { %2428 = vmatpush.msra.mxu3 %v6495_v44 }
 0xa9c   :  { %2551 = vmatpush.msra.mxu0 %v7700_v55  ;;  %2571 = vmatpush.msra.mxu1 %v7701_v56  ;;  %v7722_v55 = vld [vmem:[#allocation29_spill] sm:$0xff]  ;;  %v7723_v56 = vld [vmem:[#allocation84_spill] sm:$0xff] }
 0xa9d   :  { %2429 = vmatpush.msra.mxu3 %v6500_v24 }
 0xa9e   :  { %2552 = vmatpush.msra.mxu0 %v7702_v5  ;;  %2572 = vmatpush.msra.mxu1 %v7703_v38  ;;  %v433_v5 = vadd.f32 %v7723_v56, %v7722_v55 }
 0xa9f   :  { %2430 = vmatpush.msra.mxu3 %v6505_v27 }
 0xaa0   :  { %2553 = vmatpush.msra.mxu0 %v7705_v19  ;;  %2573 = vmatpush.msra.mxu1 %v7706_v61  ;;  %v7724_v19 = vld [vmem:[#allocation85_spill] sm:$0xff] }
 0xaa1   :  { %2431 = vmatpush.msra.mxu3 %v6510_v23  ;;  %v2052_v61 = vadd.f32 %v2028_v60, %v7724_v19 }
 0xaa2   :  { %2554 = vmatpush.msra.mxu0 %v7708_v42  ;;  %2574 = vmatpush.msra.mxu1 %v7709_v63 }
 0xaa3   :  { %2432 = vmatpush.msra.mxu3 %v6515_v58 }
 0xaa4   :  { %2555 = vmatpush.msra.mxu0 %v7711_v34  ;;  %2575 = vmatpush.msra.mxu1 %v7712_v13  ;;  %v7725_v34 = vld [vmem:[#allocation80_spill] sm:$0xff]  ;;  %v7726_v13 = vld [vmem:[#allocation87_spill] sm:$0xff] }
 0xaa5   :  { %2433 = vmatpush.msra.mxu3 %v6520_v31 }
 0xaa6   :  { %2556 = vmatpush.msra.mxu0 %v7714_v43  ;;  %2576 = vmatpush.msra.mxu1 %v7715_v20  ;;  %v432_v43 = vadd.f32 %v7726_v13, %v7725_v34 }
 0xaa7   :  { %2434 = vmatpush.msra.mxu3 %v6525_v29 }
 0xaa8   :  { %2557 = vmatpush.msra.mxu0 %v6528_v32  ;;  %2577 = vmatpush.msra.mxu1 %v6531_v11 }
 0xaa9   :  { %2435 = vmatpush.msra.mxu3 %v6534_v47 }
 0xaaa   :  { %2558 = vmatpush.msra.mxu0 %v6537_v3  ;;  %2578 = vmatpush.msra.mxu1 %v6540_v8  ;;  %v7727_v3 = vld [vmem:[#allocation105_spill] sm:$0xff] }
 0xaab   :  { %v2051_v11 = vadd.f32 %v2008_v14, %v7727_v3 }
 0xb07   :  { %v2238_v38 = vpop.f32.mrf.mxu0 }
 0xb08   :  { %v2262_v42 = vadd.f32 %v2238_v38, %v433_v5 }
 0xb0a   :  { %v2284_v63 = vadd.f32 %v2262_v42, %v2052_v61  ;;  %v2048_v61 = vpop.f32.mrf.mxu1 }
 0xb0c   :  { %v3373_v20 = vmul.f32 -1.442695, %v2284_v63 }
 0xb0d   :  { %v2218_v47 = vpop.f32.mrf.mxu3 }
 0xb0e   :  { %3634 = vpow2.f32 %v3373_v20  ;;  %v2261_v32 = vadd.f32 %v2218_v47, %v432_v43  ;;  %v7729_v43 = vld [vmem:[#allocation108_spill] sm:$0xff] }
 0xb10   :  { %v2264_v8 = vadd.f32 %v2261_v32, %v2051_v11 }
 0xb12   :  { %v3372_v29 = vmul.f32 -1.442695, %v2264_v8  ;;  %v7728_v8 = vld [vmem:[#allocation37_spill] sm:$0xff] }
 0xb13   :  { %v434_v20 = vadd.f32 %v7729_v43, %v7728_v8 }
 0xb14   :  { %v3635_v31 = vpop.eup %3634  ;;  %3636 = vpow2.f32 %v3372_v29  ;;  %v2258_v29 = vpop.f32.mrf.mxu1 }
 0xb15   :  { %v2288_v58 = vadd.f32 1.0, %v3635_v31 }
 0xb17   :  { %3638 = vrcp.f32 %v2288_v58  ;;  %vm2294_vm13 = vweird.f32 %v2288_v58 }
 0xb1a   :  { %v3637_v55 = vpop.eup %3636 }
 0xb1b   :  { %v2268_v56 = vadd.f32 1.0, %v3637_v55  ;;  %v2053_v55 = vadd.f32 %v2048_v61, %v5296_v48 }
 0xb1d   :  { %3640 = vrcp.f32 %v2268_v56  ;;  %v3639_v60 = vpop.eup %3638  ;;  %v2280_v19 = vand.u32 2147483648, %v2268_v56  ;;  %v2278_v47 = vand.u32 2147483647, %v2268_v56  ;;  %vm2274_vm9 = vweird.f32 %v2268_v56 }
 0xb1e   :  { %v2290_v5 = vmul.f32 %v3639_v60, %v2288_v58  ;;  %vm2295_vm12 = vweird.f32 %v3639_v60 }
 0xb1f   :  { %v2281_v31 = vor.u32 1.1754944e-38, %v2280_v19  ;;  %vm2279_vm11 = vcmp.eq.f32.partialorder %v2278_v47, 8.507059e+37  ;;  %vm2296_vm14 = vmor %vm2294_vm13, %vm2295_vm12 }
 0xb20   :  { %v2291_v63 = vsub.f32 1.0, %v2290_v5 }
 0xb22   :  { %v2292_v32 = vmul.f32 %v3639_v60, %v2291_v63  ;;  %v2298_v63 = vand.u32 2147483647, %v2288_v58 }
 0xb23   :  { %v3641_v38 = vpop.eup %3640 }
 0xb24   :  { %v2270_v42 = vmul.f32 %v3641_v38, %v2268_v56  ;;  %vm2275_vm8 = vweird.f32 %v3641_v38  ;;  %v2293_v13 = vadd.f32 %v3639_v60, %v2292_v32  ;;  %vm2299_vm15 = vcmp.eq.f32.partialorder %v2298_v63, 8.507059e+37  ;;  %v6591_v32 = vld [vmem:[#allocation15 + $0x188] sm:$0xff] }
 0xb25   :  { %vm2276_vm10 = vmor %vm2274_vm9, %vm2275_vm8  ;;  %v7751_v63 = vld [vmem:[#allocation34_spill] sm:$0xff] }
 0xb26   :  { %v2271_v34 = vsub.f32 1.0, %v2270_v42  ;;  %v2300_v42 = vand.u32 2147483648, %v2288_v58  ;;  %v6571_v58 = vld [vmem:[#allocation15 + $0x1c8] sm:$0xff] }
 0xb28   :  { %v2272_v14 = vmul.f32 %v3641_v38, %v2271_v34  ;;  %v2263_v34 = vadd.f32 %v2258_v29, %v434_v20  ;;  %v2301_v27 = vor.u32 1.1754944e-38, %v2300_v42  ;;  %v6601_v29 = vld [vmem:[#allocation15 + $0x168] sm:$0xff]  ;;  %v6614_v20 = vld [vmem:[#allocation15 + $0x150] sm:$0xff] }
 0xb29   :  { %7731 = vst [vmem:[#allocation100_spill] sm:$0xff] %v6614_v20  ;;  %v6631_v42 = vld [vmem:[#allocation15 + $0x108] sm:$0xff] }
 0xb2a   :  { %v2273_v11 = vadd.f32 %v3641_v38, %v2272_v14  ;;  %v2297_v14 = vsel %vm2296_vm14, %v3639_v60, %v2293_v13  ;;  %v6581_v13 = vld [vmem:[#allocation15 + $0x1a8] sm:$0xff]  ;;  %v6584_v60 = vld [vmem:[#allocation15 + $0x1b0] sm:$0xff]  ;;  %7736 = vst [vmem:[#allocation58_spill] sm:$0xff] %v6631_v42 }
 0xb2b   :  { %v2302_v19 = vsel %vm2299_vm15, %v2301_v27, %v2297_v14  ;;  %v6561_v27 = vld [vmem:[#allocation15 + $0x1e8] sm:$0xff] }
 0xb2c   :  { %v2277_v3 = vsel %vm2276_vm10, %v3641_v38, %v2273_v11  ;;  %v2307_v8 = vsub.f32 1.0, %v2302_v19  ;;  %v2309_v38 = vmul.f32 %v2302_v19, %v6216_v7  ;;  %v6567_v7 = vld [vmem:[#allocation15 + $0x1f8] sm:$0xff]  ;;  %v6594_v11 = vld [vmem:[#allocation15 + $0x190] sm:$0xff]  ;;  %v7753_v14 = vld [vmem:[#allocation110_spill] sm:$0xff] }
 0xb2d   :  { %v2282_v5 = vsel %vm2279_vm11, %v2281_v31, %v2277_v3  ;;  %v6574_v3 = vld [vmem:[#allocation15 + $0x1d0] sm:$0xff] }
 0xb2e   :  { %v2304_v23 = vmul.f32 %v2282_v5, %v2053_v55  ;;  %v6604_v31 = vld [vmem:[#allocation15 + $0x170] sm:$0xff]  ;;  %v6621_v55 = vld [vmem:[#allocation15 + $0x128] sm:$0xff] }
 0xb2f   :  { %7733 = vst [vmem:[#allocation102_spill] sm:$0xff] %v6621_v55  ;;  %v6624_v5 = vld [vmem:[#allocation15 + $0x130] sm:$0xff] }
 0xb30   :  { %v2305_v56 = vadd.f32 %v2304_v23, %v2263_v34  ;;  %v6564_v23 = vld [vmem:[#allocation15 + $0x1f0] sm:$0xff]  ;;  %7734 = vst [vmem:[#allocation103_spill] sm:$0xff] %v6624_v5 }
 0xb31   :  { %v6634_v34 = vld [vmem:[#allocation15 + $0x110] sm:$0xff] }
 0xb32   :  { %3642 = vtanh.f32 %v2305_v56  ;;  %7737 = vst [vmem:[#allocation60_spill] sm:$0xff] %v6634_v34  ;;  %v7752_v56 = vld [vmem:[#allocation109_spill] sm:$0xff]  ;;  %v7754_v19 = vld [vmem:[#allocation51_spill] sm:$0xff] }
 0xb38   :  { %v3643_v43 = vpop.eup %3642 }
 0xb39   :  { %v2308_v61 = vmul.f32 %v3643_v43, %v2307_v8  ;;  %v6611_v43 = vld [vmem:[#allocation15 + $0x148] sm:$0xff]  ;;  %v7755_v8 = vld [vmem:[#allocation111_spill] sm:$0xff] }
 0xb3a   :  { %7730 = vst [vmem:[#allocation99_spill] sm:$0xff] %v6611_v43 }
 0xb3b   :  { %v6553_v47 = vadd.f32 %v2309_v38, %v2308_v61  ;;  %v7756_v61 = vld [vmem:[#allocation112_spill] sm:$0xff]  ;;  %v7757_v38 = vld [vmem:[#allocation33_spill] sm:$0xff] }
 0xb3d   :  { %2329 = vmatmul.f32.vlgmr.msrb.gmra.mxu3 %v6553_v47  ;;  %2312 = vst [vmem:[#allocation21 + $0x20] sm:$0xff] %v6553_v47  ;;  %2349 = vmatmul.f32.vlgmr.msrb.gmra.mxu0 %v6553_v47 }
 0xb3e   :  { %2369 = vmatmul.f32.vlgmr.msrb.gmra.mxu1 %v6553_v47  ;;  %2389 = vmatmul.f32.vlgmr.msrb.gmra.mxu2 %v6553_v47 }
 0xb3f   :  { %2655 = vmatpush.msrb.mxu0 %v6223_v15  ;;  %2675 = vmatpush.msrb.mxu1 %v6561_v27  ;;  %v6577_v15 = vld [vmem:[#allocation15 + $0x1d8] sm:$0xff] }
 0xb40   :  { %2695 = vmatpush.msrb.mxu2 %v6564_v23  ;;  %2715 = vmatpush.msrb.mxu3 %v6567_v7 }
 0xb41   :  { %2656 = vmatpush.msrb.mxu0 %v6229_v52  ;;  %2676 = vmatpush.msrb.mxu1 %v6571_v58  ;;  %v6587_v52 = vld [vmem:[#allocation15 + $0x1b8] sm:$0xff] }
 0xb42   :  { %2696 = vmatpush.msrb.mxu2 %v6574_v3  ;;  %2716 = vmatpush.msrb.mxu3 %v6577_v15 }
 0xb43   :  { %2657 = vmatpush.msrb.mxu0 %v6235_v57  ;;  %2677 = vmatpush.msrb.mxu1 %v6581_v13  ;;  %v6597_v57 = vld [vmem:[#allocation15 + $0x198] sm:$0xff] }
 0xb44   :  { %2697 = vmatpush.msrb.mxu2 %v6584_v60  ;;  %2717 = vmatpush.msrb.mxu3 %v6587_v52 }
 0xb45   :  { %2658 = vmatpush.msrb.mxu0 %v6241_v6  ;;  %2678 = vmatpush.msrb.mxu1 %v6591_v32  ;;  %v6607_v6 = vld [vmem:[#allocation15 + $0x178] sm:$0xff] }
 0xb46   :  { %2698 = vmatpush.msrb.mxu2 %v6594_v11  ;;  %2718 = vmatpush.msrb.mxu3 %v6597_v57 }
 0xb47   :  { %2659 = vmatpush.msrb.mxu0 %v6247_v37  ;;  %2679 = vmatpush.msrb.mxu1 %v6601_v29  ;;  %v6617_v37 = vld [vmem:[#allocation15 + $0x158] sm:$0xff] }
 0xb48   :  { %2699 = vmatpush.msrb.mxu2 %v6604_v31  ;;  %2719 = vmatpush.msrb.mxu3 %v6607_v6  ;;  %7732 = vst [vmem:[#allocation101_spill] sm:$0xff] %v6617_v37 }
 0xb49   :  { %2660 = vmatpush.msrb.mxu0 %v6253_v21  ;;  %2680 = vmatpush.msrb.mxu1 %v6611_v43  ;;  %v6627_v21 = vld [vmem:[#allocation15 + $0x138] sm:$0xff] }
 0xb4a   :  { %2700 = vmatpush.msrb.mxu2 %v6614_v20  ;;  %2720 = vmatpush.msrb.mxu3 %v6617_v37  ;;  %7735 = vst [vmem:[#allocation104_spill] sm:$0xff] %v6627_v21 }
 0xb4b   :  { %2661 = vmatpush.msrb.mxu0 %v6259_v59  ;;  %2681 = vmatpush.msrb.mxu1 %v6621_v55  ;;  %v6637_v59 = vld [vmem:[#allocation15 + $0x118] sm:$0xff] }
 0xb4c   :  { %2701 = vmatpush.msrb.mxu2 %v6624_v5  ;;  %2721 = vmatpush.msrb.mxu3 %v6627_v21  ;;  %7738 = vst [vmem:[#allocation61_spill] sm:$0xff] %v6637_v59  ;;  %v7790_v21 = vld [vmem:[#allocation54_spill] sm:$0xff] }
 0xb4d   :  { %2662 = vmatpush.msrb.mxu0 %v6265_v9  ;;  %2682 = vmatpush.msrb.mxu1 %v6631_v42  ;;  %v7739_v9 = vld [vmem:[#allocation69_spill] sm:$0xff] }
 0xb4e   :  { %2702 = vmatpush.msrb.mxu2 %v6634_v34  ;;  %2722 = vmatpush.msrb.mxu3 %v6637_v59  ;;  %v7789_v59 = vld [vmem:[#allocation53_spill] sm:$0xff] }
 0xb4f   :  { %2663 = vmatpush.msrb.mxu0 %v6271_v50  ;;  %2683 = vmatpush.msrb.mxu1 %v6274_v62  ;;  %v7740_v50 = vld [vmem:[#allocation70_spill] sm:$0xff]  ;;  %v7741_v62 = vld [vmem:[#allocation72_spill] sm:$0xff] }
 0xb50   :  { %2703 = vmatpush.msrb.mxu2 %v6277_v40  ;;  %2723 = vmatpush.msrb.mxu3 %v6280_v1  ;;  %v7742_v40 = vld [vmem:[#allocation73_spill] sm:$0xff]  ;;  %v7743_v1 = vld [vmem:[#allocation75_spill] sm:$0xff] }
 0xb51   :  { %2664 = vmatpush.msrb.mxu0 %v6283_v0  ;;  %2684 = vmatpush.msrb.mxu1 %v6286_v30  ;;  %v7744_v0 = vld [vmem:[#allocation88_spill] sm:$0xff]  ;;  %v7745_v30 = vld [vmem:[#allocation89_spill] sm:$0xff] }
 0xb52   :  { %2704 = vmatpush.msrb.mxu2 %v6289_v35  ;;  %2724 = vmatpush.msrb.mxu3 %v6292_v10  ;;  %v7746_v35 = vld [vmem:[#allocation76_spill] sm:$0xff]  ;;  %v7747_v10 = vld [vmem:[#allocation90_spill] sm:$0xff] }
 0xb53   :  { %2665 = vmatpush.msrb.mxu0 %v6295_v25  ;;  %2685 = vmatpush.msrb.mxu1 %v6298_v17  ;;  %v7748_v25 = vld [vmem:[#allocation91_spill] sm:$0xff]  ;;  %v7749_v17 = vld [vmem:[#allocation77_spill] sm:$0xff] }
 0xb54   :  { %2705 = vmatpush.msrb.mxu2 %v6301_v39  ;;  %2725 = vmatpush.msrb.mxu3 %v7739_v9  ;;  %v7750_v39 = vld [vmem:[#allocation86_spill] sm:$0xff]  ;;  %v7758_v9 = vld [vmem:[#allocation92_spill] sm:$0xff] }
 0xb55   :  { %2666 = vmatpush.msrb.mxu0 %v7740_v50  ;;  %2686 = vmatpush.msrb.mxu1 %v7741_v62  ;;  %v7759_v50 = vld [vmem:[#allocation95_spill] sm:$0xff]  ;;  %v6672_v62 = vld [vmem:[#allocation10] sm:$0xff] }
 0xb56   :  { %2706 = vmatpush.msrb.mxu2 %v7742_v40  ;;  %2726 = vmatpush.msrb.mxu3 %v7743_v1  ;;  %7760 = vst [vmem:[#allocation63_spill] sm:$0xff] %v6672_v62 }
 0xb57   :  { %2667 = vmatpush.msrb.mxu0 %v7744_v0  ;;  %2687 = vmatpush.msrb.mxu1 %v7745_v30  ;;  %v6675_v0 = vld [vmem:[#allocation10 + $0x8] sm:$0xff] }
 0xb58   :  { %2707 = vmatpush.msrb.mxu2 %v7746_v35  ;;  %2727 = vmatpush.msrb.mxu3 %v7747_v10  ;;  %7761 = vst [vmem:[#allocation64_spill] sm:$0xff] %v6675_v0  ;;  %v7762_v10 = vld [vmem:[#allocation41_spill] sm:$0xff] }
 0xb59   :  { %2668 = vmatpush.msrb.mxu0 %v7748_v25  ;;  %2688 = vmatpush.msrb.mxu1 %v7749_v17  ;;  %v6679_v25 = vld [vmem:[#allocation10 + $0x10] sm:$0xff] }
 0xb5a   :  { %2708 = vmatpush.msrb.mxu2 %v7750_v39  ;;  %2728 = vmatpush.msrb.mxu3 %v7751_v63  ;;  %7763 = vst [vmem:[#allocation66_spill] sm:$0xff] %v6679_v25  ;;  %v7764_v17 = vld [vmem:[#allocation42_spill] sm:$0xff]  ;;  %v7765_v63 = vld [vmem:[#allocation43_spill] sm:$0xff] }
 0xb5b   :  { %2669 = vmatpush.msrb.mxu0 %v7752_v56  ;;  %2689 = vmatpush.msrb.mxu1 %v7753_v14  ;;  %v7766_v14 = vld [vmem:[#allocation44_spill] sm:$0xff] }
 0xb5c   :  { %2709 = vmatpush.msrb.mxu2 %v7754_v19  ;;  %2729 = vmatpush.msrb.mxu3 %v7755_v8  ;;  %v7767_v19 = vld [vmem:[#allocation46_spill] sm:$0xff]  ;;  %v6686_v8 = vld [vmem:[#allocation10 + $0x18] sm:$0xff] }
 0xb5d   :  { %2670 = vmatpush.msrb.mxu0 %v7756_v61  ;;  %2690 = vmatpush.msrb.mxu1 %v7757_v38  ;;  %7768 = vst [vmem:[#allocation67_spill] sm:$0xff] %v6686_v8  ;;  %v7769_v61 = vld [vmem:[#allocation52_spill] sm:$0xff] }
 0xb5e   :  { %2710 = vmatpush.msrb.mxu2 %v7758_v9  ;;  %2730 = vmatpush.msrb.mxu3 %v7759_v50  ;;  %v7770_v9 = vld [vmem:[#allocation55_spill] sm:$0xff] }
 0xbc0   :  { %v2330_v40 = vpop.f32.mrf.mxu3 }
 0xbc1   :  { %v2404_v1 = vadd.f32 %v6672_v62, %v2330_v40  ;;  %v2405_v30 = vadd.f32 %v6675_v0, %v2330_v40  ;;  %v2406_v39 = vadd.f32 %v6679_v25, %v2330_v40  ;;  %v2407_v38 = vadd.f32 %v6686_v8, %v2330_v40  ;;  %v7786_v25 = vld [vmem:[#allocation48_spill] sm:$0xff]  ;;  %v7787_v62 = vld [vmem:[#allocation49_spill] sm:$0xff] }
 0xbc3   :  { %3644 = vtanh.f32 %v2404_v1  ;;  %v7771_v1 = vld [vmem:[#allocation56_spill] sm:$0xff] }
 0xbc4   :  { %3646 = vtanh.f32 %v2405_v30  ;;  %v7772_v30 = vld [vmem:[#allocation57_spill] sm:$0xff] }
 0xbc5   :  { %3648 = vtanh.f32 %v2406_v39  ;;  %v7775_v39 = vld [vmem:[#allocation62_spill] sm:$0xff] }
 0xbc6   :  { %3650 = vtanh.f32 %v2407_v38 }
 0xbc9   :  { %v3645_v35 = vpop.eup %3644 }
 0xbca   :  { %2436 = vmatmul.f32.vlgmr.msra.gmra.mxu3 %v3645_v35  ;;  %v3647_v56 = vpop.eup %3646  ;;  %v6693_v35 = vld [vmem:[#allocation10 + $0x20] sm:$0xff] }
 0xbcb   :  { %2925 = vmatpush.msra.mxu3 %v7762_v10  ;;  %v3649_v50 = vpop.eup %3648  ;;  %7773 = vst [vmem:[#allocation29_spill] sm:$0xff] %v6693_v35  ;;  %v7774_v10 = vld [vmem:[#allocation59_spill] sm:$0xff] }
 0xbcd   :  { %2926 = vmatpush.msra.mxu3 %v7764_v17  ;;  %v2408_v17 = vadd.f32 %v6693_v35, %v2330_v40 }
 0xbcf   :  { %2927 = vmatpush.msra.mxu3 %v7765_v63  ;;  %v3651_v63 = vpop.eup %3650  ;;  %3652 = vtanh.f32 %v2408_v17 }
 0xbd1   :  { %2928 = vmatpush.msra.mxu3 %v7766_v14  ;;  %v7777_v14 = vld [vmem:[#allocation68_spill] sm:$0xff] }
 0xbd2   :  { %2439 = vmatmul.f32.gmra.mxu3 %v3647_v56  ;;  %v7776_v56 = vld [vmem:[#allocation65_spill] sm:$0xff] }
 0xbd3   :  { %2929 = vmatpush.msra.mxu3 %v7767_v19  ;;  %v6700_v19 = vld [vmem:[#allocation10 + $0x28] sm:$0xff] }
 0xbd4   :  { %7778 = vst [vmem:[#allocation80_spill] sm:$0xff] %v6700_v19  ;;  %v2409_v38 = vadd.f32 %v6700_v19, %v2330_v40 }
 0xbd5   :  { %2930 = vmatpush.msra.mxu3 %v7769_v61  ;;  %v7779_v61 = vld [vmem:[#allocation79_spill] sm:$0xff] }
 0xbd6   :  { %3654 = vtanh.f32 %v2409_v38 }
 0xbd7   :  { %2931 = vmatpush.msra.mxu3 %v7770_v9  ;;  %v7780_v9 = vld [vmem:[#allocation107_spill] sm:$0xff] }
 0xbd9   :  { %2932 = vmatpush.msra.mxu3 %v7771_v1  ;;  %v7781_v1 = vld [vmem:[#allocation36_spill] sm:$0xff] }
 0xbda   :  { %2442 = vmatmul.f32.gmra.mxu3 %v3649_v50  ;;  %v3653_v50 = vpop.eup %3652 }
 0xbdb   :  { %2933 = vmatpush.msra.mxu3 %v7772_v30  ;;  %v6706_v30 = vld [vmem:[#allocation10 + $0x30] sm:$0xff] }
 0xbdc   :  { %7782 = vst [vmem:[#allocation37_spill] sm:$0xff] %v6706_v30  ;;  %v3655_v17 = vpop.eup %3654 }
 0xbdd   :  { %2934 = vmatpush.msra.mxu3 %v7774_v10  ;;  %v2410_v10 = vadd.f32 %v6706_v30, %v2330_v40  ;;  %v7784_v30 = vld [vmem:[#allocation45_spill] sm:$0xff] }
 0xbdf   :  { %2935 = vmatpush.msra.mxu3 %v7775_v39  ;;  %3656 = vtanh.f32 %v2410_v10  ;;  %v6709_v39 = vld [vmem:[#allocation10 + $0x38] sm:$0xff] }
 0xbe0   :  { %7783 = vst [vmem:[#allocation69_spill] sm:$0xff] %v6709_v39 }
 0xbe1   :  { %2936 = vmatpush.msra.mxu3 %v7776_v56 }
 0xbe2   :  { %2445 = vmatmul.f32.gmra.mxu3 %v3651_v63  ;;  %v2411_v63 = vadd.f32 %v6709_v39, %v2330_v40  ;;  %v7788_v39 = vld [vmem:[#allocation50_spill] sm:$0xff] }
 0xbe3   :  { %2937 = vmatpush.msra.mxu3 %v7777_v14 }
 0xbe4   :  { %3658 = vtanh.f32 %v2411_v63 }
 0xbe5   :  { %2938 = vmatpush.msra.mxu3 %v7779_v61  ;;  %v3657_v56 = vpop.eup %3656 }
 0xbe7   :  { %2939 = vmatpush.msra.mxu3 %v7780_v9 }
 0xbe9   :  { %2940 = vmatpush.msra.mxu3 %v7781_v1 }
 0xbea   :  { %2448 = vmatmul.f32.gmra.mxu3 %v3653_v50  ;;  %v3659_v14 = vpop.eup %3658 }
 0xbf2   :  { %2451 = vmatmul.f32.gmra.mxu3 %v3655_v17  ;;  %v7785_v17 = vld [vmem:[#allocation47_spill] sm:$0xff] }
 0xbfa   :  { %2454 = vmatmul.f32.gmra.mxu3 %v3657_v56 }
 0xc02   :  { %2457 = vmatmul.f32.gmra.mxu3 %v3659_v14 }
 0xc4d   :  { %v2437_v61 = vpop.f32.mrf.mxu3 }
 0xc4e   :  { %v2461_v56 = vadd.f32 %v2437_v61, %v7788_v39 }
 0xc55   :  { %v2440_v9 = vpop.f32.mrf.mxu3 }
 0xc56   :  { %v2462_v10 = vadd.f32 %v2440_v9, %v7785_v17 }
 0xc5d   :  { %v2443_v50 = vpop.f32.mrf.mxu3 }
 0xc5e   :  { %v2463_v14 = vadd.f32 %v2443_v50, %v7508_v22 }
 0xc65   :  { %v2446_v38 = vpop.f32.mrf.mxu3 }
 0xc66   :  { %v2464_v34 = vadd.f32 %v2446_v38, %v7789_v59 }
 0xc6d   :  { %v2449_v1 = vpop.f32.mrf.mxu3 }
 0xc6e   :  { %v2465_v0 = vadd.f32 %v2449_v1, %v7786_v25 }
 0xc70   :  { %v2469_v55 = vmax.f32 %v2461_v56, %v2465_v0 }
 0xc75   :  { %v2452_v19 = vpop.f32.mrf.mxu3 }
 0xc76   :  { %v2466_v8 = vadd.f32 %v2452_v19, %v7784_v30 }
 0xc78   :  { %v2470_v42 = vmax.f32 %v2462_v10, %v2466_v8 }
 0xc7a   :  { %v2473_v19 = vmax.f32 %v2469_v55, %v2470_v42 }
 0xc7d   :  { %v2455_v35 = vpop.f32.mrf.mxu3 }
 0xc7e   :  { %v2467_v40 = vadd.f32 %v2455_v35, %v7787_v62 }
 0xc80   :  { %v2471_v37 = vmax.f32 %v2463_v14, %v2467_v40 }
 0xc85   :  { %v2458_v63 = vpop.f32.mrf.mxu3 }
 0xc86   :  { %v2468_v5 = vadd.f32 %v2458_v63, %v7790_v21 }
 0xc88   :  { %v2472_v20 = vmax.f32 %v2464_v34, %v2468_v5 }
 0xc8a   :  { %v2474_v30 = vmax.f32 %v2471_v37, %v2472_v20 }
 0xc8c   :  { %v2475_v9 = vmax.f32 %v2473_v19, %v2474_v30 }
 0xc8e   :  { %v2476_v17 = vsub.f32 %v2461_v56, %v2475_v9  ;;  %v2477_v1 = vsub.f32 %v2462_v10, %v2475_v9  ;;  %v2478_v25 = vsub.f32 %v2463_v14, %v2475_v9  ;;  %v2479_v35 = vsub.f32 %v2464_v34, %v2475_v9 }
 0xc8f   :  { %v2480_v39 = vsub.f32 %v2465_v0, %v2475_v9  ;;  %v2481_v50 = vsub.f32 %v2466_v8, %v2475_v9  ;;  %v2482_v59 = vsub.f32 %v2467_v40, %v2475_v9  ;;  %v2483_v21 = vsub.f32 %v2468_v5, %v2475_v9 }
 0xc90   :  { %v2484_v62 = vmul.f32 1.442695, %v2476_v17  ;;  %v2486_v61 = vmul.f32 1.442695, %v2477_v1  ;;  %v2488_v43 = vmul.f32 1.442695, %v2478_v25 }
 0xc91   :  { %v2490_v38 = vmul.f32 1.442695, %v2479_v35  ;;  %v2492_v63 = vmul.f32 1.442695, %v2480_v39  ;;  %v2494_v55 = vmul.f32 1.442695, %v2481_v50 }
 0xc92   :  { %3660 = vpow2.f32 %v2484_v62  ;;  %v2496_v42 = vmul.f32 1.442695, %v2482_v59  ;;  %v2498_v17 = vmul.f32 1.442695, %v2483_v21 }
 0xc93   :  { %3662 = vpow2.f32 %v2486_v61 }
 0xc94   :  { %3664 = vpow2.f32 %v2488_v43 }
 0xc95   :  { %3666 = vpow2.f32 %v2490_v38 }
 0xc96   :  { %3668 = vpow2.f32 %v2492_v63 }
 0xc97   :  { %3670 = vpow2.f32 %v2494_v55 }
 0xc98   :  { %v3661_v20 = vpop.eup %3660  ;;  %3672 = vpow2.f32 %v2496_v42 }
 0xc99   :  { %v3663_v37 = vpop.eup %3662  ;;  %3674 = vpow2.f32 %v2498_v17 }
 0xc9a   :  { %v2500_v30 = vadd.f32 %v3663_v37, %v3661_v20  ;;  %v3665_v34 = vpop.eup %3664 }
 0xc9b   :  { %v3667_v25 = vpop.eup %3666 }
 0xc9c   :  { %v2501_v0 = vadd.f32 %v3665_v34, %v2500_v30  ;;  %v3669_v8 = vpop.eup %3668 }
 0xc9d   :  { %v3671_v43 = vpop.eup %3670 }
 0xc9e   :  { %v2502_v62 = vadd.f32 %v3667_v25, %v2501_v0  ;;  %v3673_v5 = vpop.eup %3672 }
 0xc9f   :  { %v3675_v56 = vpop.eup %3674 }
 0xca0   :  { %v2503_v10 = vadd.f32 %v3669_v8, %v2502_v62 }
 0xca2   :  { %v2504_v39 = vadd.f32 %v3671_v43, %v2503_v10  ;;  %v6753_v10 = vld [vmem:[#allocation19 + $0x128] sm:$0xff] }
 0xca4   :  { %v2505_v40 = vadd.f32 %v3673_v5, %v2504_v39  ;;  %v6767_v39 = vld [vmem:[#allocation19 + $0xf8] sm:$0xff] }
 0xca6   :  { %v2506_v14 = vadd.f32 %v3675_v56, %v2505_v40  ;;  %v6781_v40 = vld [vmem:[#allocation19 + $0xc8] sm:$0xff] }
 0xca8   :  { %3676 = vrcp.f32 %v2506_v14  ;;  %v6795_v14 = vld [vmem:[#allocation19 + $0x98] sm:$0xff] }
 0xcae   :  { %v3677_v19 = vpop.eup %3676 }
 0xcaf   :  { %v2508_v59 = vmul.f32 %v3677_v19, %v3661_v20  ;;  %v2509_v9 = vmul.f32 %v3677_v19, %v3663_v37  ;;  %v2510_v1 = vmul.f32 %v3677_v19, %v3665_v34  ;;  %v2511_v35 = vmul.f32 %v3677_v19, %v3667_v25 }
 0xcb0   :  { %v2512_v50 = vmul.f32 %v3677_v19, %v3669_v8  ;;  %v2513_v55 = vmul.f32 %v3677_v19, %v3671_v43  ;;  %v2514_v17 = vmul.f32 %v3677_v19, %v3673_v5  ;;  %v2515_v20 = vmul.f32 %v3677_v19, %v3675_v56  ;;  %v6760_v43 = vld [vmem:[#allocation19 + $0x110] sm:$0xff]  ;;  %v6774_v5 = vld [vmem:[#allocation19 + $0xe0] sm:$0xff] }
 0xcb1   :  { %v2524_v21 = vmul.f32 %v2508_v59, %v6431_v36  ;;  %v2525_v61 = vmul.f32 %v2509_v9, %v6433_v12  ;;  %v2526_v38 = vmul.f32 %v2510_v1, %v6435_v2  ;;  %v2527_v42 = vmul.f32 %v2511_v35, %v6439_v16  ;;  %v6729_v16 = vld [vmem:[#allocation19 + $0x168] sm:$0xff]  ;;  %v6788_v56 = vld [vmem:[#allocation19 + $0xb0] sm:$0xff]  ;;  %v6802_v59 = vld [vmem:[#allocation19 + $0x80] sm:$0xff] }
 0xcb2   :  { %v2528_v0 = vmul.f32 %v2512_v50, %v6442_v49  ;;  %v2529_v37 = vmul.f32 %v2513_v55, %v6445_v33  ;;  %v2530_v36 = vmul.f32 %v2514_v17, %v6448_v54  ;;  %v2531_v12 = vmul.f32 %v2515_v20, %v6451_v41  ;;  %v6732_v49 = vld [vmem:[#allocation19 + $0x170] sm:$0xff]  ;;  %v6739_v54 = vld [vmem:[#allocation19 + $0x158] sm:$0xff]  ;;  %v7792_v9 = vld [vmem:[#allocation74_spill] sm:$0xff]  ;;  %v2350_v20 = vpop.f32.mrf.mxu0 }
 0xcb3   :  { %v2532_v63 = vadd.f32 %v2525_v61, %v2524_v21  ;;  %v6736_v33 = vld [vmem:[#allocation19 + $0x150] sm:$0xff]  ;;  %v6743_v41 = vld [vmem:[#allocation19 + $0x138] sm:$0xff]  ;;  %v6809_v1 = vld [vmem:[#allocation19 + $0x68] sm:$0xff] }
 0xcb4   :  { %v7791_v19 = vld [vmem:[#allocation71_spill] sm:$0xff]  ;;  %7794 = vst [vmem:[#allocation72_spill] sm:$0xff] %v6809_v1  ;;  %v7795_v35 = vld [vmem:[#allocation93_spill] sm:$0xff]  ;;  %v6813_v21 = vld [vmem:[#allocation19 + $0x48] sm:$0xff] }
 0xcb5   :  { %v2533_v30 = vadd.f32 %v2532_v63, %v2526_v38  ;;  %7796 = vst [vmem:[#allocation73_spill] sm:$0xff] %v6813_v21  ;;  %v6816_v61 = vld [vmem:[#allocation19 + $0x50] sm:$0xff]  ;;  %v7798_v50 = vld [vmem:[#allocation94_spill] sm:$0xff]  ;;  %v6823_v63 = vld [vmem:[#allocation19 + $0x38] sm:$0xff] }
 0xcb6   :  { %7797 = vst [vmem:[#allocation75_spill] sm:$0xff] %v6816_v61  ;;  %v6820_v38 = vld [vmem:[#allocation19 + $0x30] sm:$0xff]  ;;  %v7801_v55 = vld [vmem:[#allocation96_spill] sm:$0xff]  ;;  %v7804_v17 = vld [vmem:[#allocation106_spill] sm:$0xff] }
 0xcb7   :  { %v2534_v62 = vadd.f32 %v2533_v30, %v2527_v42  ;;  %7799 = vst [vmem:[#allocation88_spill] sm:$0xff] %v6820_v38  ;;  %v7802_v42 = vld [vmem:[#allocation97_spill] sm:$0xff]  ;;  %v7803_v30 = vld [vmem:[#allocation78_spill] sm:$0xff] }
 0xcb8   :  { %7800 = vst [vmem:[#allocation89_spill] sm:$0xff] %v6823_v63 }
 0xcb9   :  { %v2535_v34 = vadd.f32 %v2534_v62, %v2528_v0  ;;  %v7805_v0 = vld [vmem:[#allocation35_spill] sm:$0xff]  ;;  %v7806_v62 = vld [vmem:[#allocation98_spill] sm:$0xff] }
 0xcbb   :  { %v2536_v25 = vadd.f32 %v2535_v34, %v2529_v37  ;;  %v2370_v37 = vpop.f32.mrf.mxu1  ;;  %v7807_v34 = vld [vmem:[#allocation30_spill] sm:$0xff] }
 0xcbd   :  { %v2537_v8 = vadd.f32 %v2536_v25, %v2530_v36  ;;  %v7808_v36 = vld [vmem:[#allocation84_spill] sm:$0xff] }
 0xcbe   :  { %v436_v25 = vadd.f32 %v7808_v36, %v7807_v34 }
 0xcbf   :  { %v2538_v2 = vadd.f32 %v2537_v8, %v2531_v12  ;;  %v7809_v12 = vld [vmem:[#allocation81_spill] sm:$0xff]  ;;  %v7810_v8 = vld [vmem:[#allocation87_spill] sm:$0xff] }
 0xcc1   :  { %2559 = vmatmul.f32.vlgmr.msra.gmra.mxu0 %v2538_v2  ;;  %2579 = vmatmul.f32.vlgmr.msra.gmra.mxu1 %v2538_v2 }
 0xcc2   :  { %2599 = vmatmul.f32.vlgmr.msra.gmra.mxu2 %v2538_v2  ;;  %2762 = vmatpush.msra.mxu0 %v6455_v51  ;;  %v6746_v51 = vld [vmem:[#allocation19 + $0x140] sm:$0xff]  ;;  %v435_v2 = vadd.f32 %v7810_v8, %v7809_v12  ;;  %v2390_v8 = vpop.f32.mrf.mxu2 }
 0xcc3   :  { %2885 = vmatpush.msra.mxu1 %v6729_v16  ;;  %2905 = vmatpush.msra.mxu2 %v6732_v49 }
 0xcc4   :  { %2763 = vmatpush.msra.mxu0 %v6460_v28  ;;  %v6750_v28 = vld [vmem:[#allocation19 + $0x120] sm:$0xff] }
 0xcc5   :  { %2886 = vmatpush.msra.mxu1 %v6736_v33  ;;  %2906 = vmatpush.msra.mxu2 %v6739_v54 }
 0xcc6   :  { %2764 = vmatpush.msra.mxu0 %v6465_v4  ;;  %v6757_v4 = vld [vmem:[#allocation19 + $0x108] sm:$0xff] }
 0xcc7   :  { %2887 = vmatpush.msra.mxu1 %v6743_v41  ;;  %2907 = vmatpush.msra.mxu2 %v6746_v51 }
 0xcc8   :  { %2765 = vmatpush.msra.mxu0 %v6470_v46  ;;  %v6764_v46 = vld [vmem:[#allocation19 + $0xf0] sm:$0xff] }
 0xcc9   :  { %2888 = vmatpush.msra.mxu1 %v6750_v28  ;;  %2908 = vmatpush.msra.mxu2 %v6753_v10 }
 0xcca   :  { %2766 = vmatpush.msra.mxu0 %v6475_v18  ;;  %v6771_v18 = vld [vmem:[#allocation19 + $0xd8] sm:$0xff] }
 0xccb   :  { %2889 = vmatpush.msra.mxu1 %v6757_v4  ;;  %2909 = vmatpush.msra.mxu2 %v6760_v43 }
 0xccc   :  { %2767 = vmatpush.msra.mxu0 %v6480_v45  ;;  %v6778_v45 = vld [vmem:[#allocation19 + $0xc0] sm:$0xff] }
 0xccd   :  { %2890 = vmatpush.msra.mxu1 %v6764_v46  ;;  %2910 = vmatpush.msra.mxu2 %v6767_v39 }
 0xcce   :  { %2768 = vmatpush.msra.mxu0 %v6485_v26  ;;  %v6785_v26 = vld [vmem:[#allocation19 + $0xa8] sm:$0xff] }
 0xccf   :  { %2891 = vmatpush.msra.mxu1 %v6771_v18  ;;  %2911 = vmatpush.msra.mxu2 %v6774_v5 }
 0xcd0   :  { %2769 = vmatpush.msra.mxu0 %v6490_v53  ;;  %v6792_v53 = vld [vmem:[#allocation19 + $0x90] sm:$0xff] }
 0xcd1   :  { %2892 = vmatpush.msra.mxu1 %v6778_v45  ;;  %2912 = vmatpush.msra.mxu2 %v6781_v40 }
 0xcd2   :  { %2770 = vmatpush.msra.mxu0 %v6495_v44  ;;  %v6799_v44 = vld [vmem:[#allocation19 + $0x78] sm:$0xff] }
 0xcd3   :  { %2893 = vmatpush.msra.mxu1 %v6785_v26  ;;  %2913 = vmatpush.msra.mxu2 %v6788_v56 }
 0xcd4   :  { %2771 = vmatpush.msra.mxu0 %v6500_v24  ;;  %v6806_v24 = vld [vmem:[#allocation19 + $0x60] sm:$0xff] }
 0xcd5   :  { %2894 = vmatpush.msra.mxu1 %v6792_v53  ;;  %2914 = vmatpush.msra.mxu2 %v6795_v14  ;;  %7793 = vst [vmem:[#allocation70_spill] sm:$0xff] %v6806_v24 }
 0xcd6   :  { %2772 = vmatpush.msra.mxu0 %v7791_v19 }
 0xcd7   :  { %2895 = vmatpush.msra.mxu1 %v6799_v44  ;;  %2915 = vmatpush.msra.mxu2 %v6802_v59 }
 0xcd8   :  { %2773 = vmatpush.msra.mxu0 %v7792_v9 }
 0xcd9   :  { %2896 = vmatpush.msra.mxu1 %v6806_v24  ;;  %2916 = vmatpush.msra.mxu2 %v6809_v1 }
 0xcda   :  { %2774 = vmatpush.msra.mxu0 %v7795_v35  ;;  %v7811_v35 = vld [vmem:[#allocation105_spill] sm:$0xff] }
 0xcdb   :  { %2897 = vmatpush.msra.mxu1 %v6813_v21  ;;  %2917 = vmatpush.msra.mxu2 %v6816_v61 }
 0xcdc   :  { %2775 = vmatpush.msra.mxu0 %v7798_v50  ;;  %v2393_v50 = vadd.f32 %v2350_v20, %v7811_v35 }
 0xcdd   :  { %2898 = vmatpush.msra.mxu1 %v6820_v38  ;;  %2918 = vmatpush.msra.mxu2 %v6823_v63 }
 0xcde   :  { %2776 = vmatpush.msra.mxu0 %v7801_v55  ;;  %v7812_v55 = vld [vmem:[#allocation85_spill] sm:$0xff] }
 0xcdf   :  { %2899 = vmatpush.msra.mxu1 %v7802_v42  ;;  %2919 = vmatpush.msra.mxu2 %v7803_v30  ;;  %v2394_v42 = vadd.f32 %v2370_v37, %v7812_v55 }
 0xce0   :  { %2777 = vmatpush.msra.mxu0 %v7804_v17 }
 0xce1   :  { %2900 = vmatpush.msra.mxu1 %v7805_v0  ;;  %2920 = vmatpush.msra.mxu2 %v7806_v62 }
 0xd3e   :  { %v2560_v19 = vpop.f32.mrf.mxu0  ;;  %v2580_v9 = vpop.f32.mrf.mxu1 }
 0xd3f   :  { %v2603_v30 = vadd.f32 %v2560_v19, %v435_v2  ;;  %v2604_v17 = vadd.f32 %v2580_v9, %v436_v25 }
 0xd41   :  { %v2606_v63 = vadd.f32 %v2603_v30, %v2393_v50  ;;  %v2626_v0 = vadd.f32 %v2604_v17, %v2394_v42  ;;  %v7814_v42 = vld [vmem:[#allocation108_spill] sm:$0xff]  ;;  %v2395_v17 = vadd.f32 %v2390_v8, %v5296_v48 }
 0xd43   :  { %v3374_v38 = vmul.f32 -1.442695, %v2606_v63  ;;  %v3375_v62 = vmul.f32 -1.442695, %v2626_v0 }
 0xd45   :  { %3678 = vpow2.f32 %v3374_v38  ;;  %v2600_v50 = vpop.f32.mrf.mxu2 }
 0xd46   :  { %3680 = vpow2.f32 %v3375_v62 }
 0xd4b   :  { %v3679_v61 = vpop.eup %3678 }
 0xd4c   :  { %v3681_v21 = vpop.eup %3680  ;;  %v2610_v34 = vadd.f32 1.0, %v3679_v61 }
 0xd4d   :  { %v2630_v36 = vadd.f32 1.0, %v3681_v21  ;;  %v7813_v21 = vld [vmem:[#allocation38_spill] sm:$0xff] }
 0xd4e   :  { %3682 = vrcp.f32 %v2610_v34  ;;  %v2622_v25 = vand.u32 2147483648, %v2610_v34  ;;  %v2620_v63 = vand.u32 2147483647, %v2610_v34  ;;  %vm2616_vm1 = vweird.f32 %v2610_v34 }
 0xd4f   :  { %3684 = vrcp.f32 %v2630_v36  ;;  %v437_v30 = vadd.f32 %v7814_v42, %v7813_v21  ;;  %vm2636_vm5 = vweird.f32 %v2630_v36 }
 0xd50   :  { %v2623_v61 = vor.u32 1.1754944e-38, %v2622_v25  ;;  %vm2621_vm3 = vcmp.eq.f32.partialorder %v2620_v63, 8.507059e+37 }
 0xd54   :  { %v3683_v12 = vpop.eup %3682 }
 0xd55   :  { %v3685_v1 = vpop.eup %3684  ;;  %v2612_v20 = vmul.f32 %v3683_v12, %v2610_v34  ;;  %vm2617_vm0 = vweird.f32 %v3683_v12 }
 0xd56   :  { %v2632_v35 = vmul.f32 %v3685_v1, %v2630_v36  ;;  %vm2618_vm2 = vmor %vm2616_vm1, %vm2617_vm0  ;;  %vm2637_vm4 = vweird.f32 %v3685_v1 }
 0xd57   :  { %v2613_v37 = vsub.f32 1.0, %v2612_v20  ;;  %vm2638_vm6 = vmor %vm2636_vm5, %vm2637_vm4 }
 0xd58   :  { %v2633_v2 = vsub.f32 1.0, %v2632_v35  ;;  %v2642_v35 = vand.u32 2147483648, %v2630_v36 }
 0xd59   :  { %v2614_v19 = vmul.f32 %v3683_v12, %v2613_v37  ;;  %v2605_v37 = vadd.f32 %v2600_v50, %v437_v30  ;;  %v4130_v50 = vld [vmem:[#allocation15 + $0xc8] sm:$0xff]  ;;  %v4133_v30 = vld [vmem:[#allocation15 + $0xa0] sm:$0xff] }
 0xd5a   :  { %v2634_v9 = vmul.f32 %v3685_v1, %v2633_v2  ;;  %v2640_v2 = vand.u32 2147483647, %v2630_v36  ;;  %v2643_v24 = vor.u32 1.1754944e-38, %v2642_v35  ;;  %v4126_v36 = vld [vmem:[#allocation15 + $0xe8] sm:$0xff] }
 0xd5b   :  { %v2615_v38 = vadd.f32 %v3683_v12, %v2614_v19  ;;  %v4138_v35 = vld [vmem:[#allocation15 + $0x88] sm:$0xff] }
 0xd5c   :  { %v2635_v20 = vadd.f32 %v3685_v1, %v2634_v9  ;;  %vm2641_vm7 = vcmp.eq.f32.partialorder %v2640_v2, 8.507059e+37  ;;  %v4128_v9 = vld [vmem:[#allocation15 + $0xf8] sm:$0xff] }
 0xd5d   :  { %v2619_v0 = vsel %vm2618_vm2, %v3683_v12, %v2615_v38  ;;  %v4129_v38 = vld [vmem:[#allocation15 + $0xc0] sm:$0xff]  ;;  %v4140_v2 = vld [vmem:[#allocation15 + $0x98] sm:$0xff] }
 0xd5e   :  { %v2624_v62 = vsel %vm2621_vm3, %v2623_v61, %v2619_v0  ;;  %v2639_v19 = vsel %vm2638_vm6, %v3685_v1, %v2635_v20  ;;  %v4117_v1 = vld [vmem:[#allocation15 + $0x1e0] sm:$0xff]  ;;  %v4131_v61 = vld [vmem:[#allocation15 + $0xd0] sm:$0xff] }
 0xd5f   :  { %v2646_v55 = vmul.f32 %v2624_v62, %v2395_v17  ;;  %v2644_v25 = vsel %vm2641_vm7, %v2643_v24, %v2639_v19  ;;  %v4119_v24 = vld [vmem:[#allocation15 + $0x1a0] sm:$0xff]  ;;  %v4134_v17 = vld [vmem:[#allocation15 + $0xa8] sm:$0xff]  ;;  %v4135_v0 = vld [vmem:[#allocation15 + $0xb0] sm:$0xff] }
 0xd60   :  { %v2649_v21 = vsub.f32 1.0, %v2644_v25  ;;  %v2651_v12 = vmul.f32 %v2644_v25, %v6553_v47  ;;  %v4118_v47 = vld [vmem:[#allocation15 + $0x1c0] sm:$0xff]  ;;  %v4136_v62 = vld [vmem:[#allocation15 + $0xb8] sm:$0xff]  ;;  %v4142_v19 = vld [vmem:[#allocation15 + $0x68] sm:$0xff] }
 0xd61   :  { %v2647_v34 = vadd.f32 %v2646_v55, %v2605_v37  ;;  %v4127_v55 = vld [vmem:[#allocation15 + $0xf0] sm:$0xff]  ;;  %v4137_v20 = vld [vmem:[#allocation15 + $0x80] sm:$0xff] }
 0xd62   :  { %v4139_v37 = vld [vmem:[#allocation15 + $0x90] sm:$0xff] }
 0xd63   :  { %3686 = vtanh.f32 %v2647_v34  ;;  %v4141_v34 = vld [vmem:[#allocation15 + $0x60] sm:$0xff]  ;;  %v4143_v25 = vld [vmem:[#allocation15 + $0x70] sm:$0xff] }
 0xd69   :  { %v3687_v42 = vpop.eup %3686 }
 0xd6a   :  { %v2650_v8 = vmul.f32 %v3687_v42, %v2649_v21  ;;  %v4132_v42 = vld [vmem:[#allocation15 + $0xd8] sm:$0xff] }
 0xd6b   :  { %v4144_v21 = vld [vmem:[#allocation15 + $0x78] sm:$0xff] }
 0xd6c   :  { %v6842_v63 = vadd.f32 %v2651_v12, %v2650_v8  ;;  %v4145_v8 = vld [vmem:[#allocation15 + $0x40] sm:$0xff]  ;;  %v4146_v12 = vld [vmem:[#allocation15 + $0x48] sm:$0xff] }
 0xd6e   :  { %2654 = vst [vmem:[#allocation21 + $0x28] sm:$0xff] %v6842_v63  ;;  %2671 = vmatmul.f32.vlgmr.msrb.gmra.mxu0 %v6842_v63  ;;  %2691 = vmatmul.f32.vlgmr.msrb.gmra.mxu1 %v6842_v63 }
 0xd6f   :  { %2711 = vmatmul.f32.vlgmr.msrb.gmra.mxu2 %v6842_v63  ;;  %2731 = vmatmul.f32.vlgmr.msrb.gmra.mxu3 %v6842_v63 }
 0xd70   :  { %2997 = vmatpush.msrb.mxu1 %v4117_v1  ;;  %3017 = vmatpush.msrb.mxu2 %v6561_v27  ;;  %v4120_v27 = vld [vmem:[#allocation15 + $0x180] sm:$0xff]  ;;  %v4147_v1 = vld [vmem:[#allocation15 + $0x50] sm:$0xff] }
 0xd71   :  { %3037 = vmatpush.msrb.mxu3 %v6564_v23  ;;  %3057 = vmatpush.msrb.mxu0 %v6567_v7  ;;  %v4121_v23 = vld [vmem:[#allocation15 + $0x160] sm:$0xff] }
 0xd72   :  { %2998 = vmatpush.msrb.mxu1 %v4118_v47  ;;  %3018 = vmatpush.msrb.mxu2 %v6571_v58  ;;  %v4122_v7 = vld [vmem:[#allocation15 + $0x140] sm:$0xff]  ;;  %v7815_v58 = vld [vmem:[#allocation99_spill] sm:$0xff]  ;;  %v4148_v47 = vld [vmem:[#allocation15 + $0x58] sm:$0xff] }
 0xd73   :  { %3038 = vmatpush.msrb.mxu3 %v6574_v3  ;;  %3058 = vmatpush.msrb.mxu0 %v6577_v15  ;;  %v7816_v3 = vld [vmem:[#allocation100_spill] sm:$0xff]  ;;  %v7817_v15 = vld [vmem:[#allocation101_spill] sm:$0xff] }
 0xd74   :  { %2999 = vmatpush.msrb.mxu1 %v4119_v24  ;;  %3019 = vmatpush.msrb.mxu2 %v6581_v13  ;;  %v4123_v13 = vld [vmem:[#allocation15 + $0x120] sm:$0xff] }
 0xd75   :  { %3039 = vmatpush.msrb.mxu3 %v6584_v60  ;;  %3059 = vmatpush.msrb.mxu0 %v6587_v52  ;;  %v7818_v60 = vld [vmem:[#allocation102_spill] sm:$0xff]  ;;  %v7819_v52 = vld [vmem:[#allocation103_spill] sm:$0xff]  ;;  %v4149_v24 = vld [vmem:[#allocation15 + $0x20] sm:$0xff] }
 0xd76   :  { %3000 = vmatpush.msrb.mxu1 %v4120_v27  ;;  %3020 = vmatpush.msrb.mxu2 %v6591_v32  ;;  %v7820_v32 = vld [vmem:[#allocation104_spill] sm:$0xff]  ;;  %v4150_v27 = vld [vmem:[#allocation15 + $0x28] sm:$0xff] }
 0xd77   :  { %3040 = vmatpush.msrb.mxu3 %v6594_v11  ;;  %3060 = vmatpush.msrb.mxu0 %v6597_v57  ;;  %v4124_v11 = vld [vmem:[#allocation15 + $0x100] sm:$0xff]  ;;  %v7821_v57 = vld [vmem:[#allocation58_spill] sm:$0xff] }
 0xd78   :  { %3001 = vmatpush.msrb.mxu1 %v4121_v23  ;;  %3021 = vmatpush.msrb.mxu2 %v6601_v29  ;;  %v7822_v29 = vld [vmem:[#allocation60_spill] sm:$0xff]  ;;  %v4151_v23 = vld [vmem:[#allocation15 + $0x30] sm:$0xff] }
 0xd79   :  { %3041 = vmatpush.msrb.mxu3 %v6604_v31  ;;  %3061 = vmatpush.msrb.mxu0 %v6607_v6  ;;  %v7823_v31 = vld [vmem:[#allocation61_spill] sm:$0xff] }
 0xd7a   :  { %3002 = vmatpush.msrb.mxu1 %v4122_v7  ;;  %3022 = vmatpush.msrb.mxu2 %v7815_v58  ;;  %v4125_v6 = vld [vmem:[#allocation15 + $0xe0] sm:$0xff]  ;;  %v4152_v7 = vld [vmem:[#allocation15 + $0x38] sm:$0xff] }
 0xd7b   :  { %3042 = vmatpush.msrb.mxu3 %v7816_v3  ;;  %3062 = vmatpush.msrb.mxu0 %v7817_v15  ;;  %v4153_v58 = vld [vmem:[#allocation15] sm:$0xff]  ;;  %v4154_v3 = vld [vmem:[#allocation15 + $0x8] sm:$0xff]  ;;  %v4155_v15 = vld [vmem:[#allocation15 + $0x10] sm:$0xff] }
 0xd7c   :  { %3003 = vmatpush.msrb.mxu1 %v4123_v13  ;;  %3023 = vmatpush.msrb.mxu2 %v7818_v60  ;;  %v4156_v13 = vld [vmem:[#allocation15 + $0x18] sm:$0xff] }
 0xd7d   :  { %3043 = vmatpush.msrb.mxu3 %v7819_v52  ;;  %3063 = vmatpush.msrb.mxu0 %v7820_v32  ;;  %v7824_v52 = vld [vmem:[#allocation63_spill] sm:$0xff] }
 0xd7e   :  { %3004 = vmatpush.msrb.mxu1 %v4124_v11  ;;  %3024 = vmatpush.msrb.mxu2 %v7821_v57  ;;  %v7825_v11 = vld [vmem:[#allocation64_spill] sm:$0xff] }
 0xd7f   :  { %3044 = vmatpush.msrb.mxu3 %v7822_v29  ;;  %3064 = vmatpush.msrb.mxu0 %v7823_v31  ;;  %v4157_v31 = vld [vmem:[#allocation19 + $0x178] sm:$0xff] }
 0xd80   :  { %3005 = vmatpush.msrb.mxu1 %v4125_v6  ;;  %3025 = vmatpush.msrb.mxu2 %v4126_v36  ;;  %v4158_v6 = vld [vmem:[#allocation19 + $0x160] sm:$0xff]  ;;  %v7826_v36 = vld [vmem:[#allocation66_spill] sm:$0xff] }
 0xd81   :  { %3045 = vmatpush.msrb.mxu3 %v4127_v55  ;;  %3065 = vmatpush.msrb.mxu0 %v4128_v9  ;;  %v4159_v9 = vld [vmem:[#allocation19 + $0x148] sm:$0xff] }
 0xd82   :  { %3006 = vmatpush.msrb.mxu1 %v4129_v38  ;;  %3026 = vmatpush.msrb.mxu2 %v4130_v50  ;;  %v4160_v50 = vld [vmem:[#allocation19 + $0x130] sm:$0xff] }
 0xd83   :  { %3046 = vmatpush.msrb.mxu3 %v4131_v61  ;;  %3066 = vmatpush.msrb.mxu0 %v4132_v42  ;;  %v4161_v61 = vld [vmem:[#allocation19 + $0x118] sm:$0xff]  ;;  %v4162_v42 = vld [vmem:[#allocation19 + $0x100] sm:$0xff] }
 0xd84   :  { %3007 = vmatpush.msrb.mxu1 %v4133_v30  ;;  %3027 = vmatpush.msrb.mxu2 %v4134_v17  ;;  %v7827_v30 = vld [vmem:[#allocation67_spill] sm:$0xff] }
 0xd85   :  { %3047 = vmatpush.msrb.mxu3 %v4135_v0  ;;  %3067 = vmatpush.msrb.mxu0 %v4136_v62  ;;  %v4163_v0 = vld [vmem:[#allocation19 + $0xe8] sm:$0xff] }
 0xd86   :  { %3008 = vmatpush.msrb.mxu1 %v4137_v20  ;;  %3028 = vmatpush.msrb.mxu2 %v4138_v35  ;;  %v4164_v20 = vld [vmem:[#allocation19 + $0xd0] sm:$0xff]  ;;  %v4165_v35 = vld [vmem:[#allocation19 + $0xb8] sm:$0xff] }
 0xd87   :  { %3048 = vmatpush.msrb.mxu3 %v4139_v37  ;;  %3068 = vmatpush.msrb.mxu0 %v4140_v2  ;;  %v4166_v37 = vld [vmem:[#allocation19 + $0xa0] sm:$0xff] }
 0xd88   :  { %3009 = vmatpush.msrb.mxu1 %v4141_v34  ;;  %3029 = vmatpush.msrb.mxu2 %v4142_v19  ;;  %v7828_v2 = vld [vmem:[#allocation29_spill] sm:$0xff]  ;;  %v4167_v19 = vld [vmem:[#allocation19 + $0x88] sm:$0xff] }
 0xd89   :  { %3049 = vmatpush.msrb.mxu3 %v4143_v25  ;;  %3069 = vmatpush.msrb.mxu0 %v4144_v21  ;;  %v4168_v21 = vld [vmem:[#allocation19 + $0x70] sm:$0xff] }
 0xd8a   :  { %3010 = vmatpush.msrb.mxu1 %v4145_v8  ;;  %3030 = vmatpush.msrb.mxu2 %v4146_v12  ;;  %v4169_v8 = vld [vmem:[#allocation19 + $0x58] sm:$0xff]  ;;  %v4170_v12 = vld [vmem:[#allocation19 + $0x40] sm:$0xff] }
 0xd8b   :  { %3050 = vmatpush.msrb.mxu3 %v4147_v1  ;;  %3070 = vmatpush.msrb.mxu0 %v4148_v47  ;;  %v7829_v1 = vld [vmem:[#allocation80_spill] sm:$0xff] }
 0xd8c   :  { %3011 = vmatpush.msrb.mxu1 %v4149_v24  ;;  %3031 = vmatpush.msrb.mxu2 %v4150_v27  ;;  %v4171_v24 = vld [vmem:[#allocation19 + $0x28] sm:$0xff] }
 0xd8d   :  { %3051 = vmatpush.msrb.mxu3 %v4151_v23  ;;  %3071 = vmatpush.msrb.mxu0 %v4152_v7  ;;  %v4172_v23 = vld [vmem:[#allocation19 + $0x10] sm:$0xff]  ;;  %v7830_v7 = vld [vmem:[#allocation37_spill] sm:$0xff] }
 0xd8e   :  { %3012 = vmatpush.msrb.mxu1 %v4153_v58  ;;  %3032 = vmatpush.msrb.mxu2 %v4154_v3 }
 0xd8f   :  { %3052 = vmatpush.msrb.mxu3 %v4155_v15  ;;  %3072 = vmatpush.msrb.mxu0 %v4156_v13  ;;  %v7831_v15 = vld [vmem:[#allocation69_spill] sm:$0xff] }
 0xdeb   :  { %v2672_v60 = vpop.f32.mrf.mxu0 }
 0xdec   :  { %v2746_v32 = vadd.f32 %v2672_v60, %v7824_v52  ;;  %v2747_v57 = vadd.f32 %v2672_v60, %v7825_v11  ;;  %v2748_v55 = vadd.f32 %v2672_v60, %v7826_v36  ;;  %v2749_v17 = vadd.f32 %v2672_v60, %v7827_v30 }
 0xded   :  { %v2750_v34 = vadd.f32 %v2672_v60, %v7828_v2  ;;  %v2751_v47 = vadd.f32 %v2672_v60, %v7829_v1  ;;  %v2752_v58 = vadd.f32 %v2672_v60, %v7830_v7  ;;  %v2753_v13 = vadd.f32 %v2672_v60, %v7831_v15 }
 0xdee   :  { %3688 = vtanh.f32 %v2746_v32 }
 0xdef   :  { %3690 = vtanh.f32 %v2747_v57 }
 0xdf0   :  { %3692 = vtanh.f32 %v2748_v55 }
 0xdf1   :  { %3694 = vtanh.f32 %v2749_v17  ;;  %v7835_v17 = vld [vmem:[#allocation49_spill] sm:$0xff] }
 0xdf2   :  { %3696 = vtanh.f32 %v2750_v34 }
 0xdf3   :  { %3698 = vtanh.f32 %v2751_v47 }
 0xdf4   :  { %v3689_v29 = vpop.eup %3688  ;;  %3700 = vtanh.f32 %v2752_v58 }
 0xdf5   :  { %2778 = vmatmul.f32.vlgmr.msra.gmra.mxu0 %v3689_v29  ;;  %v3691_v38 = vpop.eup %3690  ;;  %3702 = vtanh.f32 %v2753_v13 }
 0xdf6   :  { %3267 = vmatpush.msra.mxu0 %v4157_v31  ;;  %v3693_v62 = vpop.eup %3692 }
 0xdf7   :  { %v3695_v25 = vpop.eup %3694 }
 0xdf8   :  { %3268 = vmatpush.msra.mxu0 %v4158_v6  ;;  %v3697_v27 = vpop.eup %3696 }
 0xdf9   :  { %v3699_v3 = vpop.eup %3698 }
 0xdfa   :  { %3269 = vmatpush.msra.mxu0 %v4159_v9  ;;  %v3701_v52 = vpop.eup %3700  ;;  %v7832_v9 = vld [vmem:[#allocation45_spill] sm:$0xff] }
 0xdfb   :  { %v3703_v32 = vpop.eup %3702 }
 0xdfc   :  { %3270 = vmatpush.msra.mxu0 %v4160_v50  ;;  %v7833_v50 = vld [vmem:[#allocation47_spill] sm:$0xff] }
 0xdfd   :  { %2781 = vmatmul.f32.gmra.mxu0 %v3691_v38 }
 0xdfe   :  { %3271 = vmatpush.msra.mxu0 %v4161_v61 }
 0xe00   :  { %3272 = vmatpush.msra.mxu0 %v4162_v42  ;;  %v7834_v42 = vld [vmem:[#allocation48_spill] sm:$0xff] }
 0xe02   :  { %3273 = vmatpush.msra.mxu0 %v4163_v0  ;;  %v7836_v0 = vld [vmem:[#allocation50_spill] sm:$0xff] }
 0xe04   :  { %3274 = vmatpush.msra.mxu0 %v4164_v20 }
 0xe05   :  { %2784 = vmatmul.f32.gmra.mxu0 %v3693_v62 }
 0xe06   :  { %3275 = vmatpush.msra.mxu0 %v4165_v35 }
 0xe08   :  { %3276 = vmatpush.msra.mxu0 %v4166_v37  ;;  %v7837_v37 = vld [vmem:[#allocation53_spill] sm:$0xff] }
 0xe0a   :  { %3277 = vmatpush.msra.mxu0 %v4167_v19  ;;  %v7838_v19 = vld [vmem:[#allocation54_spill] sm:$0xff] }
 0xe0c   :  { %3278 = vmatpush.msra.mxu0 %v4168_v21 }
 0xe0d   :  { %2787 = vmatmul.f32.gmra.mxu0 %v3695_v25 }
 0xe0e   :  { %3279 = vmatpush.msra.mxu0 %v4169_v8 }
 0xe10   :  { %3280 = vmatpush.msra.mxu0 %v4170_v12 }
 0xe12   :  { %3281 = vmatpush.msra.mxu0 %v4171_v24 }
 0xe14   :  { %3282 = vmatpush.msra.mxu0 %v4172_v23 }
 0xe15   :  { %2790 = vmatmul.f32.gmra.mxu0 %v3697_v27 }
 0xe1d   :  { %2793 = vmatmul.f32.gmra.mxu0 %v3699_v3 }
 0xe25   :  { %2796 = vmatmul.f32.gmra.mxu0 %v3701_v52 }
 0xe2d   :  { %2799 = vmatmul.f32.gmra.mxu0 %v3703_v32 }
 0xe72   :  { %v2779_v11 = vpop.f32.mrf.mxu0 }
 0xe73   :  { %v2803_v62 = vadd.f32 %v2779_v11, %v7836_v0 }
 0xe7a   :  { %v2782_v57 = vpop.f32.mrf.mxu0 }
 0xe7b   :  { %v2804_v61 = vadd.f32 %v2782_v57, %v7833_v50 }
 0xe82   :  { %v2785_v29 = vpop.f32.mrf.mxu0 }
 0xe83   :  { %v2805_v35 = vadd.f32 %v2785_v29, %v7508_v22 }
 0xe8a   :  { %v2788_v31 = vpop.f32.mrf.mxu0 }
 0xe8b   :  { %v2806_v2 = vadd.f32 %v2788_v31, %v7837_v37 }
 0xe92   :  { %v2791_v6 = vpop.f32.mrf.mxu0 }
 0xe93   :  { %v2807_v30 = vadd.f32 %v2791_v6, %v7834_v42 }
 0xe95   :  { %v2811_v21 = vmax.f32 %v2803_v62, %v2807_v30 }
 0xe9a   :  { %v2794_v36 = vpop.f32.mrf.mxu0 }
 0xe9b   :  { %v2808_v38 = vadd.f32 %v2794_v36, %v7832_v9 }
 0xe9d   :  { %v2812_v34 = vmax.f32 %v2804_v61, %v2808_v38 }
 0xe9f   :  { %v2815_v1 = vmax.f32 %v2811_v21, %v2812_v34 }
 0xea2   :  { %v2797_v55 = vpop.f32.mrf.mxu0 }
 0xea3   :  { %v2809_v60 = vadd.f32 %v2797_v55, %v7835_v17 }
 0xea5   :  { %v2813_v8 = vmax.f32 %v2805_v35, %v2809_v60 }
 0xeaa   :  { %v2800_v20 = vpop.f32.mrf.mxu0 }
 0xeab   :  { %v2810_v25 = vadd.f32 %v2800_v20, %v7838_v19 }
 0xead   :  { %v2814_v12 = vmax.f32 %v2806_v2, %v2810_v25 }
 0xeaf   :  { %v2816_v47 = vmax.f32 %v2813_v8, %v2814_v12 }
 0xeb1   :  { %v2817_v24 = vmax.f32 %v2815_v1, %v2816_v47 }
 0xeb3   :  { %v2818_v27 = vsub.f32 %v2803_v62, %v2817_v24  ;;  %v2819_v23 = vsub.f32 %v2804_v61, %v2817_v24  ;;  %v2820_v7 = vsub.f32 %v2805_v35, %v2817_v24  ;;  %v2821_v58 = vsub.f32 %v2806_v2, %v2817_v24 }
 0xeb4   :  { %v2822_v13 = vsub.f32 %v2807_v30, %v2817_v24  ;;  %v2823_v32 = vsub.f32 %v2808_v38, %v2817_v24  ;;  %v2824_v57 = vsub.f32 %v2809_v60, %v2817_v24  ;;  %v2825_v31 = vsub.f32 %v2810_v25, %v2817_v24 }
 0xeb5   :  { %v2826_v3 = vmul.f32 1.442695, %v2818_v27  ;;  %v2828_v15 = vmul.f32 1.442695, %v2819_v23  ;;  %v2830_v52 = vmul.f32 1.442695, %v2820_v7 }
 0xeb6   :  { %v2832_v11 = vmul.f32 1.442695, %v2821_v58  ;;  %v2834_v29 = vmul.f32 1.442695, %v2822_v13  ;;  %v2836_v6 = vmul.f32 1.442695, %v2823_v32 }
 0xeb7   :  { %3704 = vpow2.f32 %v2826_v3  ;;  %v2838_v61 = vmul.f32 1.442695, %v2824_v57  ;;  %v2840_v35 = vmul.f32 1.442695, %v2825_v31  ;;  %v6889_v27 = vld [vmem:[#allocation9] sm:$0xff]  ;;  %v6891_v23 = vld [vmem:[#allocation9 + $0x8] sm:$0xff] }
 0xeb8   :  { %3706 = vpow2.f32 %v2828_v15  ;;  %v6893_v15 = vld [vmem:[#allocation9 + $0x10] sm:$0xff] }
 0xeb9   :  { %3708 = vpow2.f32 %v2830_v52 }
 0xeba   :  { %3710 = vpow2.f32 %v2832_v11  ;;  %v6897_v11 = vld [vmem:[#allocation9 + $0x18] sm:$0xff] }
 0xebb   :  { %3712 = vpow2.f32 %v2834_v29 }
 0xebc   :  { %3714 = vpow2.f32 %v2836_v6  ;;  %v6900_v6 = vld [vmem:[#allocation9 + $0x20] sm:$0xff] }
 0xebd   :  { %v3705_v36 = vpop.eup %3704  ;;  %3716 = vpow2.f32 %v2838_v61 }
 0xebe   :  { %v3707_v55 = vpop.eup %3706  ;;  %3718 = vpow2.f32 %v2840_v35 }
 0xebf   :  { %v2842_v62 = vadd.f32 %v3707_v55, %v3705_v36  ;;  %v3709_v20 = vpop.eup %3708 }
 0xec0   :  { %v3711_v2 = vpop.eup %3710 }
 0xec1   :  { %v2843_v30 = vadd.f32 %v3709_v20, %v2842_v62  ;;  %v3713_v34 = vpop.eup %3712  ;;  %v6903_v62 = vld [vmem:[#allocation9 + $0x28] sm:$0xff] }
 0xec2   :  { %v3715_v21 = vpop.eup %3714 }
 0xec3   :  { %v2844_v38 = vadd.f32 %v3711_v2, %v2843_v30  ;;  %v3717_v25 = vpop.eup %3716 }
 0xec4   :  { %v3719_v1 = vpop.eup %3718 }
 0xec5   :  { %v2845_v60 = vadd.f32 %v3713_v34, %v2844_v38 }
 0xec7   :  { %v2846_v8 = vadd.f32 %v3715_v21, %v2845_v60 }
 0xec9   :  { %v2847_v12 = vadd.f32 %v3717_v25, %v2846_v8  ;;  %v6909_v8 = vld [vmem:[#allocation9 + $0x38] sm:$0xff] }
 0xecb   :  { %v2848_v47 = vadd.f32 %v3719_v1, %v2847_v12 }
 0xecd   :  { %3720 = vrcp.f32 %v2848_v47 }
 0xed3   :  { %v3721_v24 = vpop.eup %3720 }
 0xed4   :  { %v2850_v7 = vmul.f32 %v3721_v24, %v3705_v36  ;;  %v2851_v58 = vmul.f32 %v3721_v24, %v3707_v55  ;;  %v2852_v3 = vmul.f32 %v3721_v24, %v3709_v20  ;;  %v2853_v13 = vmul.f32 %v3721_v24, %v3711_v2  ;;  %v6906_v2 = vld [vmem:[#allocation9 + $0x30] sm:$0xff] }
 0xed5   :  { %v2854_v57 = vmul.f32 %v3721_v24, %v3713_v34  ;;  %v2855_v61 = vmul.f32 %v3721_v24, %v3715_v21  ;;  %v2856_v20 = vmul.f32 %v3721_v24, %v3717_v25  ;;  %v2857_v38 = vmul.f32 %v3721_v24, %v3719_v1  ;;  %v4173_v25 = vld [vmem:[#allocation16 + $0x78] sm:$0xff]  ;;  %v4174_v1 = vld [vmem:[#allocation16 + $0x70] sm:$0xff]  ;;  %v4175_v24 = vld [vmem:[#allocation16 + $0x68] sm:$0xff] }
 0xed6   :  { %v2866_v52 = vmul.f32 %v6889_v27, %v2850_v7  ;;  %v2867_v32 = vmul.f32 %v6891_v23, %v2851_v58  ;;  %v2868_v29 = vmul.f32 %v6893_v15, %v2852_v3  ;;  %v2869_v36 = vmul.f32 %v6897_v11, %v2853_v13  ;;  %v4176_v3 = vld [vmem:[#allocation16 + $0x60] sm:$0xff]  ;;  %v2692_v13 = vpop.f32.mrf.mxu1 }
 0xed7   :  { %v2870_v35 = vmul.f32 %v6900_v6, %v2854_v57  ;;  %v2871_v34 = vmul.f32 %v6903_v62, %v2855_v61  ;;  %v2872_v12 = vmul.f32 %v6906_v2, %v2856_v20  ;;  %v2873_v47 = vmul.f32 %v6909_v8, %v2857_v38  ;;  %v7846_v57 = vld [vmem:[#allocation87_spill] sm:$0xff]  ;;  %v7847_v61 = vld [vmem:[#allocation105_spill] sm:$0xff] }
 0xed8   :  { %v2874_v31 = vadd.f32 %v2867_v32, %v2866_v52  ;;  %v2712_v52 = vpop.f32.mrf.mxu2  ;;  %v7845_v32 = vld [vmem:[#allocation82_spill] sm:$0xff] }
 0xeda   :  { %v2875_v55 = vadd.f32 %v2874_v31, %v2868_v29  ;;  %v438_v29 = vadd.f32 %v7846_v57, %v7845_v32 }
 0xedc   :  { %v2876_v30 = vadd.f32 %v2875_v55, %v2869_v36  ;;  %v2735_v36 = vadd.f32 %v2692_v13, %v7847_v61 }
 0xede   :  { %v2877_v60 = vadd.f32 %v2876_v30, %v2870_v35  ;;  %v7848_v35 = vld [vmem:[#allocation31_spill] sm:$0xff]  ;;  %v7849_v30 = vld [vmem:[#allocation84_spill] sm:$0xff] }
 0xedf   :  { %v439_v38 = vadd.f32 %v7849_v30, %v7848_v35 }
 0xee0   :  { %v2878_v21 = vadd.f32 %v2877_v60, %v2871_v34 }
 0xee2   :  { %v2879_v7 = vadd.f32 %v2878_v21, %v2872_v12  ;;  %v7850_v12 = vld [vmem:[#allocation85_spill] sm:$0xff] }
 0xee3   :  { %v2736_v21 = vadd.f32 %v2712_v52, %v7850_v12 }
 0xee4   :  { %v2880_v58 = vadd.f32 %v2879_v7, %v2873_v47 }
 0xee6   :  { %2901 = vmatmul.f32.vlgmr.msra.gmra.mxu1 %v2880_v58  ;;  %2921 = vmatmul.f32.vlgmr.msra.gmra.mxu2 %v2880_v58 }
 0xee7   :  { %2941 = vmatmul.f32.vlgmr.msra.gmra.mxu3 %v2880_v58  ;;  %3104 = vmatpush.msra.mxu1 %v4173_v25 }
 0xee8   :  { %3227 = vmatpush.msra.mxu2 %v6729_v16  ;;  %3247 = vmatpush.msra.mxu3 %v6732_v49  ;;  %v4177_v16 = vld [vmem:[#allocation16 + $0x58] sm:$0xff]  ;;  %v4178_v49 = vld [vmem:[#allocation16 + $0x50] sm:$0xff] }
 0xee9   :  { %3105 = vmatpush.msra.mxu1 %v4174_v1 }
 0xeea   :  { %3228 = vmatpush.msra.mxu2 %v6736_v33  ;;  %3248 = vmatpush.msra.mxu3 %v6739_v54  ;;  %v4179_v33 = vld [vmem:[#allocation16 + $0x48] sm:$0xff]  ;;  %v4180_v54 = vld [vmem:[#allocation16 + $0x40] sm:$0xff] }
 0xeeb   :  { %3106 = vmatpush.msra.mxu1 %v4175_v24 }
 0xeec   :  { %3229 = vmatpush.msra.mxu2 %v6743_v41  ;;  %3249 = vmatpush.msra.mxu3 %v6746_v51  ;;  %v4181_v41 = vld [vmem:[#allocation16 + $0x38] sm:$0xff]  ;;  %v4182_v51 = vld [vmem:[#allocation16 + $0x30] sm:$0xff] }
 0xeed   :  { %3107 = vmatpush.msra.mxu1 %v4176_v3 }
 0xeee   :  { %3230 = vmatpush.msra.mxu2 %v6750_v28  ;;  %3250 = vmatpush.msra.mxu3 %v6753_v10  ;;  %v4183_v28 = vld [vmem:[#allocation16 + $0x28] sm:$0xff]  ;;  %v4184_v10 = vld [vmem:[#allocation16 + $0x20] sm:$0xff] }
 0xeef   :  { %3108 = vmatpush.msra.mxu1 %v4177_v16  ;;  %v2732_v16 = vpop.f32.mrf.mxu3 }
 0xef0   :  { %3231 = vmatpush.msra.mxu2 %v6757_v4  ;;  %3251 = vmatpush.msra.mxu3 %v6760_v43  ;;  %v7839_v4 = vld [vmem:[#allocation70_spill] sm:$0xff]  ;;  %v7840_v43 = vld [vmem:[#allocation72_spill] sm:$0xff] }
 0xef1   :  { %3109 = vmatpush.msra.mxu1 %v4178_v49 }
 0xef2   :  { %3232 = vmatpush.msra.mxu2 %v6764_v46  ;;  %3252 = vmatpush.msra.mxu3 %v6767_v39  ;;  %v4185_v46 = vld [vmem:[#allocation16 + $0x18] sm:$0xff]  ;;  %v7841_v39 = vld [vmem:[#allocation73_spill] sm:$0xff] }
 0xef3   :  { %3110 = vmatpush.msra.mxu1 %v4179_v33 }
 0xef4   :  { %3233 = vmatpush.msra.mxu2 %v6771_v18  ;;  %3253 = vmatpush.msra.mxu3 %v6774_v5  ;;  %v7842_v18 = vld [vmem:[#allocation75_spill] sm:$0xff] }
 0xef5   :  { %3111 = vmatpush.msra.mxu1 %v4180_v54  ;;  %v4186_v5 = vld [vmem:[#allocation16 + $0x10] sm:$0xff] }
 0xef6   :  { %3234 = vmatpush.msra.mxu2 %v6778_v45  ;;  %3254 = vmatpush.msra.mxu3 %v6781_v40  ;;  %v7843_v45 = vld [vmem:[#allocation88_spill] sm:$0xff]  ;;  %v7844_v40 = vld [vmem:[#allocation89_spill] sm:$0xff] }
 0xef7   :  { %3112 = vmatpush.msra.mxu1 %v4181_v41 }
 0xef8   :  { %3235 = vmatpush.msra.mxu2 %v6785_v26  ;;  %3255 = vmatpush.msra.mxu3 %v6788_v56  ;;  %v4187_v26 = vld [vmem:[#allocation16 + $0x8] sm:$0xff]  ;;  %v4188_v56 = vld [vmem:[#allocation19 + $0x18] sm:$0xff] }
 0xef9   :  { %3113 = vmatpush.msra.mxu1 %v4182_v51 }
 0xefa   :  { %3236 = vmatpush.msra.mxu2 %v6792_v53  ;;  %3256 = vmatpush.msra.mxu3 %v6795_v14  ;;  %v4189_v53 = vld [vmem:[#allocation19 + $0x20] sm:$0xff] }
 0xefb   :  { %3114 = vmatpush.msra.mxu1 %v4183_v28  ;;  %v4190_v14 = vld [vmem:[#allocation16] sm:$0xff] }
 0xefc   :  { %3237 = vmatpush.msra.mxu2 %v6799_v44  ;;  %3257 = vmatpush.msra.mxu3 %v6802_v59  ;;  %v4191_v44 = vld [vmem:[#allocation19] sm:$0xff]  ;;  %v4192_v59 = vld [vmem:[#allocation19 + $0x8] sm:$0xff] }
 0xefd   :  { %3115 = vmatpush.msra.mxu1 %v4184_v10 }
 0xefe   :  { %3238 = vmatpush.msra.mxu2 %v7839_v4  ;;  %3258 = vmatpush.msra.mxu3 %v7840_v43 }
 0xeff   :  { %3116 = vmatpush.msra.mxu1 %v4185_v46 }
 0xf00   :  { %3239 = vmatpush.msra.mxu2 %v7841_v39  ;;  %3259 = vmatpush.msra.mxu3 %v7842_v18  ;;  %v7851_v39 = vld [vmem:[#allocation39_spill] sm:$0xff]  ;;  %v7852_v18 = vld [vmem:[#allocation108_spill] sm:$0xff] }
 0xf01   :  { %3117 = vmatpush.msra.mxu1 %v4186_v5  ;;  %v440_v5 = vadd.f32 %v7852_v18, %v7851_v39 }
 0xf02   :  { %3240 = vmatpush.msra.mxu2 %v7843_v45  ;;  %3260 = vmatpush.msra.mxu3 %v7844_v40  ;;  %v2737_v40 = vadd.f32 %v2732_v16, %v5296_v48  ;;  %v3083_v16 = vld [vmem:[#allocation10 + $0x18] sm:$0xff] }
 0xf03   :  { %3118 = vmatpush.msra.mxu1 %v4187_v26 }
 0xf04   :  { %3241 = vmatpush.msra.mxu2 %v4188_v56  ;;  %3261 = vmatpush.msra.mxu3 %v4189_v53 }
 0xf05   :  { %3119 = vmatpush.msra.mxu1 %v4190_v14 }
 0xf06   :  { %3242 = vmatpush.msra.mxu2 %v4191_v44  ;;  %3262 = vmatpush.msra.mxu3 %v4192_v59 }
 0xf63   :  { %v2902_v31 = vpop.f32.mrf.mxu1 }
 0xf64   :  { %v2945_v55 = vadd.f32 %v2902_v31, %v438_v29 }
 0xf66   :  { %v2948_v20 = vadd.f32 %v2945_v55, %v2735_v36 }
 0xf68   :  { %v3376_v34 = vmul.f32 -1.442695, %v2948_v20 }
 0xf69   :  { %v2922_v60 = vpop.f32.mrf.mxu2 }
 0xf6a   :  { %3722 = vpow2.f32 %v3376_v34  ;;  %v2946_v47 = vadd.f32 %v2922_v60, %v439_v38  ;;  %v2942_v43 = vpop.f32.mrf.mxu3 }
 0xf6b   :  { %v2947_v53 = vadd.f32 %v2942_v43, %v440_v5  ;;  %v3086_v43 = vld [vmem:[#allocation10 + $0x30] sm:$0xff]  ;;  %v3087_v5 = vld [vmem:[#allocation10 + $0x38] sm:$0xff] }
 0xf6c   :  { %v2968_v7 = vadd.f32 %v2946_v47, %v2736_v21  ;;  %v3080_v21 = vld [vmem:[#allocation10] sm:$0xff] }
 0xf6e   :  { %v3377_v58 = vmul.f32 -1.442695, %v2968_v7 }
 0xf70   :  { %v3723_v25 = vpop.eup %3722  ;;  %3724 = vpow2.f32 %v3377_v58  ;;  %v3081_v58 = vld [vmem:[#allocation10 + $0x8] sm:$0xff] }
 0xf71   :  { %v2952_v1 = vadd.f32 1.0, %v3723_v25 }
 0xf73   :  { %3726 = vrcp.f32 %v2952_v1  ;;  %v2964_v41 = vand.u32 2147483648, %v2952_v1  ;;  %v2962_v28 = vand.u32 2147483647, %v2952_v1  ;;  %vm2958_vm9 = vweird.f32 %v2952_v1 }
 0xf75   :  { %v2965_v45 = vor.u32 1.1754944e-38, %v2964_v41  ;;  %vm2963_vm11 = vcmp.eq.f32.partialorder %v2962_v28, 8.507059e+37  ;;  %v3085_v28 = vld [vmem:[#allocation10 + $0x28] sm:$0xff] }
 0xf76   :  { %v3725_v24 = vpop.eup %3724 }
 0xf77   :  { %v2972_v3 = vadd.f32 1.0, %v3725_v24 }
 0xf79   :  { %v3727_v49 = vpop.eup %3726  ;;  %3728 = vrcp.f32 %v2972_v3  ;;  %v2984_v59 = vand.u32 2147483648, %v2972_v3  ;;  %v2982_v52 = vand.u32 2147483647, %v2972_v3  ;;  %vm2978_vm13 = vweird.f32 %v2972_v3 }
 0xf7a   :  { %v2954_v33 = vmul.f32 %v3727_v49, %v2952_v1  ;;  %vm2959_vm8 = vweird.f32 %v3727_v49 }
 0xf7b   :  { %vm2960_vm10 = vmor %vm2958_vm9, %vm2959_vm8  ;;  %v2985_v36 = vor.u32 1.1754944e-38, %v2984_v59  ;;  %vm2983_vm15 = vcmp.eq.f32.partialorder %v2982_v52, 8.507059e+37 }
 0xf7c   :  { %v2955_v54 = vsub.f32 1.0, %v2954_v33 }
 0xf7e   :  { %v2956_v51 = vmul.f32 %v3727_v49, %v2955_v54  ;;  %v3084_v54 = vld [vmem:[#allocation10 + $0x20] sm:$0xff] }
 0xf7f   :  { %v3729_v10 = vpop.eup %3728 }
 0xf80   :  { %v2974_v4 = vmul.f32 %v3729_v10, %v2972_v3  ;;  %v2957_v46 = vadd.f32 %v3727_v49, %v2956_v51  ;;  %vm2979_vm12 = vweird.f32 %v3729_v10 }
 0xf81   :  { %vm2980_vm14 = vmor %vm2978_vm13, %vm2979_vm12 }
 0xf82   :  { %v2975_v26 = vsub.f32 1.0, %v2974_v4  ;;  %v2961_v56 = vsel %vm2960_vm10, %v3727_v49, %v2957_v46 }
 0xf83   :  { %v2966_v14 = vsel %vm2963_vm11, %v2965_v45, %v2961_v56 }
 0xf84   :  { %v2976_v44 = vmul.f32 %v3729_v10, %v2975_v26  ;;  %v2988_v13 = vmul.f32 %v2966_v14, %v2737_v40 }
 0xf86   :  { %v2977_v32 = vadd.f32 %v3729_v10, %v2976_v44  ;;  %v2989_v29 = vadd.f32 %v2988_v13, %v2947_v53 }
 0xf88   :  { %v2981_v31 = vsel %vm2980_vm14, %v3729_v10, %v2977_v32  ;;  %3730 = vtanh.f32 %v2989_v29 }
 0xf89   :  { %v2986_v55 = vsel %vm2983_vm15, %v2985_v36, %v2981_v31 }
 0xf8a   :  { %v2991_v20 = vsub.f32 1.0, %v2986_v55  ;;  %v2993_v34 = vmul.f32 %v2986_v55, %v6842_v63  ;;  %v3082_v63 = vld [vmem:[#allocation10 + $0x10] sm:$0xff] }
 0xf8e   :  { %v3731_v35 = vpop.eup %3730 }
 0xf8f   :  { %v2992_v38 = vmul.f32 %v3731_v35, %v2991_v20 }
 0xf91   :  { %v6951_v60 = vadd.f32 %v2993_v34, %v2992_v38 }
 0xf93   :  { %2996 = vst [vmem:[#allocation21 + $0x30] sm:$0xff] %v6951_v60  ;;  %3013 = vmatmul.f32.vlgmr.msrb.gmra.mxu1 %v6951_v60  ;;  %3033 = vmatmul.f32.vlgmr.msrb.gmra.mxu2 %v6951_v60 }
 0xf94   :  { %3053 = vmatmul.f32.vlgmr.msrb.gmra.mxu3 %v6951_v60  ;;  %3073 = vmatmul.f32.vlgmr.msrb.gmra.mxu0 %v6951_v60 }
0x1010   :  { %v3014_v47 = vpop.f32.mrf.mxu1 }
0x1011   :  { %v3088_v7 = vadd.f32 %v3080_v21, %v3014_v47  ;;  %v3089_v25 = vadd.f32 %v3081_v58, %v3014_v47  ;;  %v3090_v24 = vadd.f32 %v3082_v63, %v3014_v47  ;;  %v3091_v49 = vadd.f32 %v3083_v16, %v3014_v47 }
0x1012   :  { %v3092_v41 = vadd.f32 %v3084_v54, %v3014_v47  ;;  %v3093_v10 = vadd.f32 %v3085_v28, %v3014_v47  ;;  %v3094_v46 = vadd.f32 %v3086_v43, %v3014_v47  ;;  %v3095_v45 = vadd.f32 %v3087_v5, %v3014_v47 }
0x1013   :  { %3732 = vtanh.f32 %v3088_v7 }
0x1014   :  { %3734 = vtanh.f32 %v3089_v25 }
0x1015   :  { %3736 = vtanh.f32 %v3090_v24 }
0x1016   :  { %3738 = vtanh.f32 %v3091_v49 }
0x1017   :  { %3740 = vtanh.f32 %v3092_v41 }
0x1018   :  { %3742 = vtanh.f32 %v3093_v10 }
0x1019   :  { %v3733_v1 = vpop.eup %3732  ;;  %3744 = vtanh.f32 %v3094_v46 }
0x101a   :  { %3120 = vmatmul.f32.vlgmr.msra.gmra.mxu1 %v3733_v1  ;;  %v3735_v3 = vpop.eup %3734  ;;  %3746 = vtanh.f32 %v3095_v45 }
0x101b   :  { %v3737_v33 = vpop.eup %3736 }
0x101c   :  { %v3739_v51 = vpop.eup %3738 }
0x101d   :  { %v3741_v4 = vpop.eup %3740 }
0x101e   :  { %v3743_v39 = vpop.eup %3742 }
0x101f   :  { %v3745_v40 = vpop.eup %3744 }
0x1020   :  { %v3747_v26 = vpop.eup %3746 }
0x1022   :  { %3123 = vmatmul.f32.gmra.mxu1 %v3735_v3 }
0x102a   :  { %3126 = vmatmul.f32.gmra.mxu1 %v3737_v33 }
0x1032   :  { %3129 = vmatmul.f32.gmra.mxu1 %v3739_v51 }
0x103a   :  { %3132 = vmatmul.f32.gmra.mxu1 %v3741_v4 }
0x1042   :  { %3135 = vmatmul.f32.gmra.mxu1 %v3743_v39 }
0x104a   :  { %3138 = vmatmul.f32.gmra.mxu1 %v3745_v40 }
0x1052   :  { %3141 = vmatmul.f32.gmra.mxu1 %v3747_v26 }
0x1097   :  { %v3121_v56 = vpop.f32.mrf.mxu1 }
0x1098   :  { %v3145_v55 = vadd.f32 %v3121_v56, %v7836_v0 }
0x109f   :  { %v3124_v53 = vpop.f32.mrf.mxu1 }
0x10a0   :  { %v3146_v29 = vadd.f32 %v3124_v53, %v7833_v50 }
0x10a7   :  { %v3127_v14 = vpop.f32.mrf.mxu1 }
0x10a8   :  { %v3147_v35 = vadd.f32 %v3127_v14, %v7508_v22 }
0x10af   :  { %v3130_v44 = vpop.f32.mrf.mxu1 }
0x10b0   :  { %v3148_v38 = vadd.f32 %v3130_v44, %v7837_v37 }
0x10b7   :  { %v3133_v59 = vpop.f32.mrf.mxu1 }
0x10b8   :  { %v3149_v31 = vadd.f32 %v3133_v59, %v7834_v42 }
0x10ba   :  { %v3153_v47 = vmax.f32 %v3145_v55, %v3149_v31 }
0x10bf   :  { %v3136_v13 = vpop.f32.mrf.mxu1 }
0x10c0   :  { %v3150_v32 = vadd.f32 %v3136_v13, %v7832_v9 }
0x10c2   :  { %v3154_v34 = vmax.f32 %v3146_v29, %v3150_v32 }
0x10c4   :  { %v3157_v9 = vmax.f32 %v3153_v47, %v3154_v34 }
0x10c7   :  { %v3139_v52 = vpop.f32.mrf.mxu1 }
0x10c8   :  { %v3151_v36 = vadd.f32 %v3139_v52, %v7835_v17 }
0x10ca   :  { %v3155_v7 = vmax.f32 %v3147_v35, %v3151_v36 }
0x10cf   :  { %v3142_v20 = vpop.f32.mrf.mxu1 }
0x10d0   :  { %v3152_v21 = vadd.f32 %v3142_v20, %v7838_v19 }
0x10d2   :  { %v3156_v58 = vmax.f32 %v3148_v38, %v3152_v21 }
0x10d4   :  { %v3158_v25 = vmax.f32 %v3155_v7, %v3156_v58 }
0x10d6   :  { %v3159_v50 = vmax.f32 %v3157_v9, %v3158_v25 }
0x10d8   :  { %v3160_v1 = vsub.f32 %v3145_v55, %v3159_v50  ;;  %v3161_v42 = vsub.f32 %v3146_v29, %v3159_v50  ;;  %v3162_v63 = vsub.f32 %v3147_v35, %v3159_v50  ;;  %v3163_v17 = vsub.f32 %v3148_v38, %v3159_v50 }
0x10d9   :  { %v3164_v3 = vsub.f32 %v3149_v31, %v3159_v50  ;;  %v3165_v22 = vsub.f32 %v3150_v32, %v3159_v50  ;;  %v3166_v49 = vsub.f32 %v3151_v36, %v3159_v50  ;;  %v3167_v33 = vsub.f32 %v3152_v21, %v3159_v50 }
0x10da   :  { %v3168_v24 = vmul.f32 1.442695, %v3160_v1  ;;  %v3170_v0 = vmul.f32 1.442695, %v3161_v42  ;;  %v3172_v16 = vmul.f32 1.442695, %v3162_v63 }
0x10db   :  { %v3174_v37 = vmul.f32 1.442695, %v3163_v17  ;;  %v3176_v19 = vmul.f32 1.442695, %v3164_v3  ;;  %v3178_v54 = vmul.f32 1.442695, %v3165_v22  ;;  %v3054_v17 = vpop.f32.mrf.mxu3 }
0x10dc   :  { %3748 = vpow2.f32 %v3168_v24  ;;  %v3180_v28 = vmul.f32 1.442695, %v3166_v49  ;;  %v3182_v43 = vmul.f32 1.442695, %v3167_v33  ;;  %v7853_v24 = vld [vmem:[#allocation32_spill] sm:$0xff]  ;;  %v3078_v22 = vadd.f32 %v3054_v17, %v7850_v12 }
0x10dd   :  { %3750 = vpow2.f32 %v3170_v0  ;;  %v7854_v0 = vld [vmem:[#allocation83_spill] sm:$0xff] }
0x10de   :  { %3752 = vpow2.f32 %v3172_v16  ;;  %v441_v3 = vadd.f32 %v7846_v57, %v7854_v0 }
0x10df   :  { %3754 = vpow2.f32 %v3174_v37 }
0x10e0   :  { %3756 = vpow2.f32 %v3176_v19 }
0x10e1   :  { %3758 = vpow2.f32 %v3178_v54 }
0x10e2   :  { %v3749_v41 = vpop.eup %3748  ;;  %3760 = vpow2.f32 %v3180_v28 }
0x10e3   :  { %v3751_v51 = vpop.eup %3750  ;;  %3762 = vpow2.f32 %v3182_v43 }
0x10e4   :  { %v3184_v10 = vadd.f32 %v3751_v51, %v3749_v41  ;;  %v3753_v4 = vpop.eup %3752 }
0x10e5   :  { %v3755_v39 = vpop.eup %3754 }
0x10e6   :  { %v3185_v46 = vadd.f32 %v3753_v4, %v3184_v10  ;;  %v3757_v45 = vpop.eup %3756  ;;  %v3074_v10 = vpop.f32.mrf.mxu0 }
0x10e7   :  { %v3759_v26 = vpop.eup %3758 }
0x10e8   :  { %v3186_v5 = vadd.f32 %v3755_v39, %v3185_v46  ;;  %v3761_v53 = vpop.eup %3760 }
0x10e9   :  { %v3763_v44 = vpop.eup %3762 }
0x10ea   :  { %v3187_v40 = vadd.f32 %v3757_v45, %v3186_v5 }
0x10ec   :  { %v3188_v56 = vadd.f32 %v3759_v26, %v3187_v40 }
0x10ee   :  { %v3189_v14 = vadd.f32 %v3761_v53, %v3188_v56 }
0x10f0   :  { %v3190_v59 = vadd.f32 %v3763_v44, %v3189_v14  ;;  %v7855_v14 = vld [vmem:[#allocation40_spill] sm:$0xff] }
0x10f2   :  { %3764 = vrcp.f32 %v3190_v59  ;;  %v3079_v59 = vadd.f32 %v3074_v10, %v5296_v48 }
0x10f8   :  { %v3765_v13 = vpop.eup %3764 }
0x10f9   :  { %v3192_v52 = vmul.f32 %v3765_v13, %v3749_v41  ;;  %v3193_v32 = vmul.f32 %v3765_v13, %v3751_v51  ;;  %v3194_v29 = vmul.f32 %v3765_v13, %v3753_v4  ;;  %v3195_v31 = vmul.f32 %v3765_v13, %v3755_v39 }
0x10fa   :  { %v3196_v20 = vmul.f32 %v3765_v13, %v3757_v45  ;;  %v3197_v34 = vmul.f32 %v3765_v13, %v3759_v26  ;;  %v3198_v7 = vmul.f32 %v3765_v13, %v3761_v53  ;;  %v3199_v25 = vmul.f32 %v3765_v13, %v3763_v44 }
0x10fb   :  { %v3208_v36 = vmul.f32 %v3192_v52, %v6889_v27  ;;  %v3209_v55 = vmul.f32 %v3193_v32, %v6891_v23  ;;  %v3210_v35 = vmul.f32 %v3194_v29, %v6893_v15  ;;  %v3211_v21 = vmul.f32 %v3195_v31, %v6897_v11  ;;  %v3034_v11 = vpop.f32.mrf.mxu2 }
0x10fc   :  { %v3212_v58 = vmul.f32 %v3196_v20, %v6900_v6  ;;  %v3213_v50 = vmul.f32 %v3197_v34, %v6903_v62  ;;  %v3214_v27 = vmul.f32 %v3198_v7, %v6906_v2  ;;  %v3215_v23 = vmul.f32 %v3199_v25, %v6909_v8 }
0x10fd   :  { %v3216_v38 = vadd.f32 %v3209_v55, %v3208_v36  ;;  %v442_v6 = vadd.f32 %v7849_v30, %v7853_v24  ;;  %v3077_v2 = vadd.f32 %v3034_v11, %v7847_v61  ;;  %v443_v44 = vadd.f32 %v7852_v18, %v7855_v14 }
0x10ff   :  { %v3217_v47 = vadd.f32 %v3216_v38, %v3210_v35 }
0x1101   :  { %v3218_v9 = vadd.f32 %v3217_v47, %v3211_v21 }
0x1103   :  { %v3219_v1 = vadd.f32 %v3218_v9, %v3212_v58 }
0x1105   :  { %v3220_v42 = vadd.f32 %v3219_v1, %v3213_v50 }
0x1107   :  { %v3221_v63 = vadd.f32 %v3220_v42, %v3214_v27 }
0x1109   :  { %v3222_v15 = vadd.f32 %v3221_v63, %v3215_v23 }
0x110b   :  { %3243 = vmatmul.f32.vlgmr.msra.gmra.mxu2 %v3222_v15  ;;  %3263 = vmatmul.f32.vlgmr.msra.gmra.mxu3 %v3222_v15 }
0x110c   :  { %3283 = vmatmul.f32.vlgmr.msra.gmra.mxu0 %v3222_v15 }
0x1189   :  { %v3284_v56 = vpop.f32.mrf.mxu0 }
0x118a   :  { %v3289_v29 = vadd.f32 %v3284_v56, %v443_v44 }
0x118e   :  { %v3244_v62 = vpop.f32.mrf.mxu2  ;;  %v3264_v16 = vpop.f32.mrf.mxu3 }
0x118f   :  { %v3287_v8 = vadd.f32 %v3244_v62, %v441_v3  ;;  %v3288_v37 = vadd.f32 %v3264_v16, %v442_v6 }
0x1191   :  { %v3290_v49 = vadd.f32 %v3287_v8, %v3077_v2  ;;  %v3310_v19 = vadd.f32 %v3288_v37, %v3078_v22 }
0x1193   :  { %v3378_v33 = vmul.f32 -1.442695, %v3290_v49  ;;  %v3379_v54 = vmul.f32 -1.442695, %v3310_v19 }
0x1195   :  { %3766 = vpow2.f32 %v3378_v33 }
0x1196   :  { %3768 = vpow2.f32 %v3379_v54 }
0x119b   :  { %v3767_v41 = vpop.eup %3766 }
0x119c   :  { %v3769_v51 = vpop.eup %3768  ;;  %v3294_v30 = vadd.f32 1.0, %v3767_v41 }
0x119d   :  { %v3314_v28 = vadd.f32 1.0, %v3769_v51 }
0x119e   :  { %3770 = vrcp.f32 %v3294_v30  ;;  %v3306_v46 = vand.u32 2147483648, %v3294_v30  ;;  %v3304_v45 = vand.u32 2147483647, %v3294_v30  ;;  %vm3300_vm1 = vweird.f32 %v3294_v30 }
0x119f   :  { %3772 = vrcp.f32 %v3314_v28  ;;  %v3326_v36 = vand.u32 2147483648, %v3314_v28  ;;  %vm3320_vm5 = vweird.f32 %v3314_v28  ;;  %v3324_v55 = vand.u32 2147483647, %v3314_v28 }
0x11a0   :  { %v3307_v53 = vor.u32 1.1754944e-38, %v3306_v46  ;;  %vm3305_vm3 = vcmp.eq.f32.partialorder %v3304_v45, 8.507059e+37 }
0x11a1   :  { %v3327_v38 = vor.u32 1.1754944e-38, %v3326_v36  ;;  %vm3325_vm7 = vcmp.eq.f32.partialorder %v3324_v55, 8.507059e+37 }
0x11a4   :  { %v3771_v57 = vpop.eup %3770 }
0x11a5   :  { %v3773_v4 = vpop.eup %3772  ;;  %v3296_v61 = vmul.f32 %v3771_v57, %v3294_v30  ;;  %vm3301_vm0 = vweird.f32 %v3771_v57 }
0x11a6   :  { %v3316_v43 = vmul.f32 %v3773_v4, %v3314_v28  ;;  %vm3302_vm2 = vmor %vm3300_vm1, %vm3301_vm0  ;;  %vm3321_vm4 = vweird.f32 %v3773_v4 }
0x11a7   :  { %v3297_v12 = vsub.f32 1.0, %v3296_v61  ;;  %vm3322_vm6 = vmor %vm3320_vm5, %vm3321_vm4 }
0x11a8   :  { %v3317_v39 = vsub.f32 1.0, %v3316_v43 }
0x11a9   :  { %v3298_v5 = vmul.f32 %v3771_v57, %v3297_v12 }
0x11aa   :  { %v3318_v40 = vmul.f32 %v3773_v4, %v3317_v39 }
0x11ab   :  { %v3299_v26 = vadd.f32 %v3771_v57, %v3298_v5 }
0x11ac   :  { %v3319_v32 = vadd.f32 %v3773_v4, %v3318_v40 }
0x11ad   :  { %v3303_v13 = vsel %vm3302_vm2, %v3771_v57, %v3299_v26 }
0x11ae   :  { %v3308_v52 = vsel %vm3305_vm3, %v3307_v53, %v3303_v13  ;;  %v3323_v35 = vsel %vm3322_vm6, %v3773_v4, %v3319_v32 }
0x11af   :  { %v3330_v31 = vmul.f32 %v3308_v52, %v3079_v59  ;;  %v3328_v34 = vsel %vm3325_vm7, %v3327_v38, %v3323_v35 }
0x11b0   :  { %v3333_v18 = vsub.f32 1.0, %v3328_v34  ;;  %v3335_v47 = vmul.f32 %v3328_v34, %v6951_v60 }
0x11b1   :  { %v3331_v20 = vadd.f32 %v3330_v31, %v3289_v29 }
0x11b3   :  { %3774 = vtanh.f32 %v3331_v20 }
0x11b9   :  { %v3775_v21 = vpop.eup %3774 }
0x11ba   :  { %v3334_v48 = vmul.f32 %v3775_v21, %v3333_v18 }
0x11bc   :  { %v3336_v7 = vadd.f32 %v3335_v47, %v3334_v48 }
0x11be   :  { %3338 = vst [vmem:[#allocation21 + $0x38] sm:$0xff] %v3336_v7 }
0x11bf   :  { %3352 = dma.vmem_to_hbm [thread:$0]  %s3345_s11, 1024, %s3347_s19, [#allocation6], %s4473_s1, %s4473_s1, %s4474_s16  }
0x11c0   :  { %4469 = dma.done.wait [#allocation6], 1024  }
0x11c1   :  { %4470 = vsyncadd [#allocation6], 4294966272 }
0x11c2   :  { %3357 = vsyncpa [#allocation5], 1 }
0x11c3   :  { %3358 = vsyncpa [#allocation8], 1 }
0x11c4   :  { %3359 = vsyncpa [#allocation11], 1 }
0x11c5   :  { %3360 = vsyncpa [#allocation14], 1 }
0x11c6   :  { %3361 = vsyncpa [#allocation17], 1 }
0x11c7   :  { %3362 = vsyncpa [#allocation20], 1 }
0x11c8   :  { %3363 = vsyncpa [#allocation6], 1 }

</bundles_post_ra>
